<compile_context>
chip_gen: v6e
topology: v6e:2x2x1
jax: 0.10.0
libtpu: 0.0.40
codegen_flags: <defaults>
</compile_context>

<pallas_src>
import functools

import jax
import jax.numpy as jnp
from jax import lax
from jax.experimental import pallas as pl
from jax.experimental.pallas import tpu as pltpu

BN_EPS = 1e-3                  # YOLOX-style BatchNorm eps
ACT_DTYPE = jnp.bfloat16       # inter-layer activation dtype (halves HBM traffic)

_K_SINGLE_SHOT = 1024          # total K at/below this -> single-shot kernel
_K_SINGLE_SHOT_MAX = 4096      # hard cap before HBM-concat + K-loop fallback
_VMEM_LIMIT = 32 * 1024 * 1024


# --------------------------- tile selection -----------------------------------
def _choose_tile(dim, pref, mult):
    """Largest tile <= pref that is a multiple of `mult` and divides `dim`;
    falls back to the full extent (always a legal TPU block) otherwise."""
    if dim % mult == 0:
        t = min(pref, dim)
        t -= t % mult
        while t >= mult:
            if dim % t == 0:
                return t
            t -= mult
    return dim


# --------------------------- kernels --------------------------------------------
def _epilogue(acc_f32, s_ref, b_ref, res_ref, out_dtype):
    y = acc_f32 * s_ref[...] + b_ref[...]        # folded BN (f32)
    y = y * jax.nn.sigmoid(y)                    # SiLU (EUP)
    if res_ref is not None:
        y = y + res_ref[...].astype(jnp.float32)  # fused residual add
    return y.astype(out_dtype)


def _make_single_shot_kernel(n_seg, has_res):
    """Whole-K matmul (+ concat segments) + BN + SiLU (+ residual). No scratch."""
    def kernel(*refs):
        x_refs = refs[:n_seg]
        w_refs = refs[n_seg:2 * n_seg]
        s_ref = refs[2 * n_seg]
        b_ref = refs[2 * n_seg + 1]
        pos = 2 * n_seg + 2
        res_ref = refs[pos] if has_res else None
        o_ref = refs[pos + (1 if has_res else 0)]

        acc = jnp.dot(x_refs[0][...], w_refs[0][...],
                      preferred_element_type=jnp.float32)
        for s in range(1, n_seg):
            acc = acc + jnp.dot(x_refs[s][...], w_refs[s][...],
                                preferred_element_type=jnp.float32)
        o_ref[...] = _epilogue(acc, s_ref, b_ref, res_ref, o_ref.dtype)
    return kernel


def _make_looped_kernel(has_res):
    """K-tiled matmul with f32 VMEM accumulator + epilogue on the last K step."""
    def kernel(*refs):
        x_ref, w_ref, s_ref, b_ref = refs[:4]
        pos = 4
        res_ref = refs[pos] if has_res else None
        if has_res:
            pos += 1
        o_ref = refs[pos]
        acc_ref = refs[pos + 1]

        k = pl.program_id(2)

        @pl.when(k == 0)
        def _():
            acc_ref[...] = jnp.zeros_like(acc_ref)

        acc_ref[...] += jnp.dot(x_ref[...], w_ref[...],
                                preferred_element_type=jnp.float32)

        @pl.when(k == pl.num_programs(2) - 1)
        def _():
            o_ref[...] = _epilogue(acc_ref[...], s_ref, b_ref, res_ref, o_ref.dtype)
    return kernel


# --------------------------- pallas_call wrappers --------------------------------
def _single_shot_call(xs, ws, scale, bias, residual, out_dtype):
    n_seg = len(xs)
    M = xs[0].shape[0]
    N = ws[0].shape[1]
    Ks = [x.shape[1] for x in xs]

    tm = _choose_tile(M, 256, 8)
    tn = _choose_tile(N, 256, 128)
    grid = (M // tm, N // tn)

    in_specs = [pl.BlockSpec((tm, Ks[s]), lambda i, j: (i, 0)) for s in range(n_seg)]
    in_specs += [pl.BlockSpec((Ks[s], tn), lambda i, j: (0, j)) for s in range(n_seg)]
    in_specs += [pl.BlockSpec((1, tn), lambda i, j: (0, j)),
                 pl.BlockSpec((1, tn), lambda i, j: (0, j))]
    has_res = residual is not None
    if has_res:
        in_specs.append(pl.BlockSpec((tm, tn), lambda i, j: (i, j)))
    out_spec = pl.BlockSpec((tm, tn), lambda i, j: (i, j))

    k_total = sum(Ks)
    cost = pl.CostEstimate(
        flops=2 * M * N * k_total,
        transcendentals=M * N,
        bytes_accessed=int(2 * (M * k_total + k_total * N + M * N)
                           + (2 * M * N if has_res else 0) + 8 * N))

    args = ([x.astype(jnp.bfloat16) for x in xs]
            + [w.astype(jnp.bfloat16) for w in ws]
            + [scale.astype(jnp.float32), bias.astype(jnp.float32)])
    if has_res:
        args.append(residual.astype(jnp.bfloat16))

    return pl.pallas_call(
        _make_single_shot_kernel(n_seg, has_res),
        out_shape=jax.ShapeDtypeStruct((M, N), out_dtype),
        grid_spec=pltpu.PrefetchScalarGridSpec(
            num_scalar_prefetch=0,
            grid=grid,
            in_specs=in_specs,
            out_specs=out_spec),
        compiler_params=pltpu.CompilerParams(
            dimension_semantics=("parallel", "parallel"),
            vmem_limit_bytes=_VMEM_LIMIT),
        cost_estimate=cost,
    )(*args)


def _looped_call(x, w, scale, bias, residual, out_dtype):
    M, K = x.shape
    N = w.shape[1]

    tm = _choose_tile(M, 256, 8)
    tn = _choose_tile(N, 256, 128)
    tk = _choose_tile(K, 512, 128)
    grid = (M // tm, N // tn, K // tk)

    in_specs = [pl.BlockSpec((tm, tk), lambda i, j, k: (i, k)),
                pl.BlockSpec((tk, tn), lambda i, j, k: (k, j)),
                pl.BlockSpec((1, tn), lambda i, j, k: (0, j)),
                pl.BlockSpec((1, tn), lambda i, j, k: (0, j))]
    has_res = residual is not None
    if has_res:
        in_specs.append(pl.BlockSpec((tm, tn), lambda i, j, k: (i, j)))
    out_spec = pl.BlockSpec((tm, tn), lambda i, j, k: (i, j))

    cost = pl.CostEstimate(
        flops=2 * M * N * K,
        transcendentals=M * N,
        bytes_accessed=int(2 * (M * K + K * N + M * N)
                           + (2 * M * N if has_res else 0) + 8 * N))

    args = [x.astype(jnp.bfloat16), w.astype(jnp.bfloat16),
            scale.astype(jnp.float32), bias.astype(jnp.float32)]
    if has_res:
        args.append(residual.astype(jnp.bfloat16))

    return pl.pallas_call(
        _make_looped_kernel(has_res),
        out_shape=jax.ShapeDtypeStruct((M, N), out_dtype),
        grid_spec=pltpu.PrefetchScalarGridSpec(
            num_scalar_prefetch=0,
            grid=grid,
            in_specs=in_specs,
            out_specs=out_spec,
            scratch_shapes=[pltpu.VMEM((tm, tn), jnp.float32)]),
        compiler_params=pltpu.CompilerParams(
            dimension_semantics=("parallel", "parallel", "arbitrary"),
            vmem_limit_bytes=_VMEM_LIMIT),
        cost_estimate=cost,
    )(*args)


def fused_matmul_bn_silu(xs, ws, scale, bias, residual=None, out_dtype=ACT_DTYPE):
    """out = SiLU(concat(xs, -1) @ concat(ws, 0) * scale + bias) [+ residual].

    Channel concats are fused as separate dot segments inside one kernel
    (no jnp.concatenate HBM round trip)."""
    k_total = sum(x.shape[1] for x in xs)
    if len(xs) > 1:
        if k_total > _K_SINGLE_SHOT_MAX:
            # Robustness fallback (never hit for PANet channel counts).
            x = jnp.concatenate(xs, axis=-1)
            w = jnp.concatenate(ws, axis=0)
            return _looped_call(x, w, scale, bias, residual, out_dtype)
        return _single_shot_call(xs, ws, scale, bias, residual, out_dtype)
    K = xs[0].shape[1]
    tk = _choose_tile(K, 512, 128)
    if K <= _K_SINGLE_SHOT or K // tk <= 1:
        return _single_shot_call(xs, ws, scale, bias, residual, out_dtype)
    return _looped_call(xs[0], ws[0], scale, bias, residual, out_dtype)


# --------------------------- plain-JAX glue -------------------------------------
def im2col_3x3(x, stride):
    """x: (N,H,W,C) -> patches (N,Ho,Wo,9*C), padding=1, patch order [kh,kw,cin]."""
    xp = jnp.pad(x, ((0, 0), (1, 1), (1, 1), (0, 0)))
    _, Hp, Wp, _ = xp.shape
    Ho = (Hp - 3) // stride + 1
    Wo = (Wp - 3) // stride + 1
    cols = []
    for dh in range(3):
        for dw in range(3):
            cols.append(xp[:, dh:dh + stride * (Ho - 1) + 1:stride,
                              dw:dw + stride * (Wo - 1) + 1:stride, :])
    return jnp.concatenate(cols, axis=-1)


def conv_bn_act(x_parts, p, ksize, stride, residual=None):
    """ConvBnAct: conv(k,k,stride,pad=(k-1)//2, no bias) -> BN -> SiLU (NHWC).

    `x_parts` is a list of NHWC tensors that are logically channel-concatenated;
    the concat happens as dot segments inside the Pallas kernel."""
    if not isinstance(x_parts, (list, tuple)):
        x_parts = [x_parts]
    if ksize == 3:
        assert len(x_parts) == 1
        x_parts = [im2col_3x3(x_parts[0], stride)]
    n, ho, wo = x_parts[0].shape[:3]
    xs = [xp.reshape(n * ho * wo, xp.shape[-1]) for xp in x_parts]
    ks = [x2.shape[1] for x2 in xs]
    offs = [0]
    for kk in ks:
        offs.append(offs[-1] + kk)
    w = p["w"]
    ws = [w[offs[i]:offs[i + 1]] for i in range(len(ks))]
    res2d = None
    if residual is not None:
        res2d = residual.reshape(n * ho * wo, residual.shape[-1])
    y = fused_matmul_bn_silu(xs, ws, p["scale"], p["bias"], residual=res2d)
    return y.reshape(n, ho, wo, y.shape[-1])


def _up2_axis(x, axis):
    """2x bilinear (align_corners=False) along one axis: fixed 0.25/0.75 taps,
    edge clamp — pure slices + weighted adds, no gathers."""
    pad = [(0, 0)] * x.ndim
    pad[axis] = (1, 1)
    xp = jnp.pad(x, pad, mode="edge")
    n = x.shape[axis]
    lo = lax.slice_in_dim(xp, 0, n, axis=axis)        # x[i-1] (clamped)
    mid = lax.slice_in_dim(xp, 1, n + 1, axis=axis)   # x[i]
    hi = lax.slice_in_dim(xp, 2, n + 2, axis=axis)    # x[i+1] (clamped)
    even = 0.25 * lo + 0.75 * mid                     # out[2i]
    odd = 0.75 * mid + 0.25 * hi                      # out[2i+1]
    out = jnp.stack([even, odd], axis=axis + 1)
    new_shape = list(x.shape)
    new_shape[axis] = 2 * n
    return out.reshape(new_shape)


def upsample2x_bilinear(x):
    """nn.Upsample(scale_factor=2, mode='bilinear', align_corners=False), NHWC."""
    return _up2_axis(_up2_axis(x, 1), 2)


def csp_layer(x_parts, p, n=3):
    """YOLOX-style CSPLayer: expansion=0.5, n Bottlenecks with shortcut.
    conv1+conv2 are fused into one Pallas call (single read of the wide input);
    concat inputs stay split (fused in-kernel); residual add fused in epilogue."""
    y12 = conv_bn_act(x_parts, p["conv12"], ksize=1, stride=1)
    hidden = y12.shape[-1] // 2
    x1 = y12[..., :hidden]
    x2 = y12[..., hidden:]
    for i in range(n):
        bp = p["m"][i]
        y = conv_bn_act(x1, bp["conv1"], ksize=1, stride=1)
        x1 = conv_bn_act(y, bp["conv2"], ksize=3, stride=1, residual=x1)
    return conv_bn_act([x1, x2], p["conv3"], ksize=1, stride=1)


def panet_forward(params, c3, c4, c5):
    """PANet forward on NHWC feature pyramid (c3, c4, c5)."""
    p5 = conv_bn_act(c5, params["lateral_conv"], ksize=1, stride=1)
    m4_up = upsample2x_bilinear(p5)
    m4 = csp_layer([m4_up, c4], params["CSP_p4"])            # cat(m4, c4) fused
    p4 = conv_bn_act(m4, params["topdown_conv"], ksize=1, stride=1)
    m3_up = upsample2x_bilinear(p4)
    out1 = csp_layer([m3_up, c3], params["CSP_p3"])          # cat(m3, c3) fused
    n4 = conv_bn_act(out1, params["bottomup_conv1"], ksize=3, stride=2)
    out2 = csp_layer([n4, p4], params["CSP_n3"])             # cat(n4, p4) fused
    n5 = conv_bn_act(out2, params["bottomup_conv2"], ksize=3, stride=2)
    out3 = csp_layer([n5, p5], params["CSP_n4"])             # cat(n5, p5) fused
    return out1, out2, out3


# --------------------------- deterministic params -------------------------------
def make_cba_params(key, cin, cout, k):
    kw, kg, kb, km, kv = jax.random.split(key, 5)
    fan = cin * k * k
    w = jax.random.normal(kw, (k, k, cin, cout), jnp.float32) / jnp.sqrt(float(fan))
    gamma = 1.0 + 0.1 * jax.random.normal(kg, (cout,), jnp.float32)
    beta = 0.1 * jax.random.normal(kb, (cout,), jnp.float32)
    mean = 0.1 * jax.random.normal(km, (cout,), jnp.float32)
    var = 1.0 + 0.1 * jax.random.uniform(kv, (cout,), jnp.float32)
    scale = gamma / jnp.sqrt(var + BN_EPS)        # fold BN into scale/bias (f32)
    bias = beta - mean * scale
    return dict(w=w.reshape(k * k * cin, cout).astype(ACT_DTYPE),  # bf16 MXU operand
                scale=scale.reshape(1, cout),
                bias=bias.reshape(1, cout))


def _fuse_parallel_cba(pa, pb):
    """Fuse two 1x1 ConvBnActs with the same input into one (out-channel concat)."""
    return dict(w=jnp.concatenate([pa["w"], pb["w"]], axis=1),
                scale=jnp.concatenate([pa["scale"], pb["scale"]], axis=1),
                bias=jnp.concatenate([pa["bias"], pb["bias"]], axis=1))


def make_csp_params(key, cin, cout, n=3):
    hidden = cout // 2  # expansion = 0.5
    keys = jax.random.split(key, 3 + 2 * n)
    conv1 = make_cba_params(keys[0], cin, hidden, 1)
    conv2 = make_cba_params(keys[1], cin, hidden, 1)
    return dict(
        conv12=_fuse_parallel_cba(conv1, conv2),
        conv3=make_cba_params(keys[2], 2 * hidden, cout, 1),
        m=[dict(conv1=make_cba_params(keys[3 + 2 * i], hidden, hidden, 1),
                conv2=make_cba_params(keys[4 + 2 * i], hidden, hidden, 3))
           for i in range(n)],
    )


def make_panet_params(key, in_channels):
    C3, C4, C5 = in_channels
    ks = jax.random.split(key, 8)
    return dict(
        lateral_conv=make_cba_params(ks[0], C5, C4, 1),
        CSP_p4=make_csp_params(ks[1], 2 * C4, C4),
        topdown_conv=make_cba_params(ks[2], C4, C3, 1),
        CSP_p3=make_csp_params(ks[3], 2 * C3, C3),
        bottomup_conv1=make_cba_params(ks[4], C3, C3, 3),
        CSP_n3=make_csp_params(ks[5], 2 * C3, C4),
        bottomup_conv2=make_cba_params(ks[6], C4, C4, 3),
        CSP_n4=make_csp_params(ks[7], 2 * C4, C5),
    )


# ------------------------------------ main ---------------------------------------
if __name__ == "__main__":
    key = jax.random.PRNGKey(0)
    C3, C4, C5 = 8, 16, 32           # scaled-down stand-in for (256, 512, 1024)
    kp, k3, k4, k5 = jax.random.split(key, 4)
    params = make_panet_params(kp, (C3, C4, C5))

    # PyTorch-convention NCHW feature pyramid inputs.
    x = {
        "c3": jax.random.normal(k3, (2, C3, 16, 16), jnp.float32),
        "c4": jax.random.normal(k4, (2, C4, 8, 8), jnp.float32),
        "c5": jax.random.normal(k5, (2, C5, 4, 4), jnp.float32),
    }

    fwd = jax.jit(functools.partial(panet_forward, params))
    out1, out2, out3 = fwd(
        jnp.transpose(x["c3"], (0, 2, 3, 1)),
        jnp.transpose(x["c4"], (0, 2, 3, 1)),
        jnp.transpose(x["c5"], (0, 2, 3, 1)),
    )
    # Back to NCHW / f32 to match the PyTorch module's output convention.
    outs = tuple(jnp.transpose(o.astype(jnp.float32), (0, 3, 1, 2))
                 for o in (out1, out2, out3))
    jax.block_until_ready(outs)

    assert outs[0].shape == (2, C3, 16, 16)
    assert outs[1].shape == (2, C4, 8, 8)
    assert outs[2].shape == (2, C5, 4, 4)
    assert all(bool(jnp.all(jnp.isfinite(o))) for o in outs)
    print("KERNEL_OK")
</pallas_src>

<mosaic_0001>
module attributes {stable_mosaic.version = 11 : i64} {
  func.func @kernel(%arg0: i32, %arg1: i32, %arg2: memref<32x32xbf16, #tpu.memory_space<vmem>>, %arg3: memref<32x16xbf16, #tpu.memory_space<vmem>>, %arg4: memref<1x16xf32, #tpu.memory_space<vmem>>, %arg5: memref<1x16xf32, #tpu.memory_space<vmem>>, %arg6: memref<32x16xbf16, #tpu.memory_space<vmem>>) attributes {dimension_semantics = [#tpu.dimension_semantics<parallel>, #tpu.dimension_semantics<parallel>], iteration_bounds = array<i64: 1, 1>, scalar_prefetch = 0 : i64, scratch_operands = 0 : i64, tpu.core_type = #tpu.core_type<tc>, window_params = [{transform_indices = @transform_0, window_bounds = array<i64: 32, 32>}, {transform_indices = @transform_1, window_bounds = array<i64: 32, 16>}, {transform_indices = @transform_2, window_bounds = array<i64: 1, 16>}, {transform_indices = @transform_3, window_bounds = array<i64: 1, 16>}, {transform_indices = @transform_4, window_bounds = array<i64: 32, 16>}]} {
    %c0 = arith.constant 0 : index
    %c0_0 = arith.constant 0 : index
    %0 = vector.load %arg2[%c0, %c0_0] : memref<32x32xbf16, #tpu.memory_space<vmem>>, vector<32x32xbf16>
    %c0_1 = arith.constant 0 : index
    %c0_2 = arith.constant 0 : index
    %1 = vector.load %arg3[%c0_1, %c0_2] : memref<32x16xbf16, #tpu.memory_space<vmem>>, vector<32x16xbf16>
    %cst = arith.constant dense<0.000000e+00> : vector<32x16xf32>
    %2 = tpu.matmul %0, %1, %cst {dimension_numbers = #tpu.dot_dimension_numbers<[1], [0], [0], [1], [0, 0, 1, 1], [], []>} : vector<32x32xbf16>, vector<32x16xbf16>, vector<32x16xf32> -> vector<32x16xf32>
    %c0_3 = arith.constant 0 : index
    %c0_4 = arith.constant 0 : index
    %3 = vector.load %arg4[%c0_3, %c0_4] : memref<1x16xf32, #tpu.memory_space<vmem>>, vector<1x16xf32>
    %4 = vector.broadcast %3 : vector<1x16xf32> to vector<32x16xf32>
    %5 = arith.mulf %2, %4 : vector<32x16xf32>
    %c0_5 = arith.constant 0 : index
    %c0_6 = arith.constant 0 : index
    %6 = vector.load %arg5[%c0_5, %c0_6] : memref<1x16xf32, #tpu.memory_space<vmem>>, vector<1x16xf32>
    %7 = vector.broadcast %6 : vector<1x16xf32> to vector<32x16xf32>
    %8 = arith.addf %5, %7 : vector<32x16xf32>
    %9 = arith.negf %8 : vector<32x16xf32>
    %10 = math.exp %9 : vector<32x16xf32>
    %cst_7 = arith.constant 1.000000e+00 : f32
    %11 = vector.broadcast %cst_7 : f32 to vector<32x16xf32>
    %12 = arith.addf %11, %10 : vector<32x16xf32>
    %13 = arith.divf %11, %12 : vector<32x16xf32>
    %14 = arith.mulf %8, %13 : vector<32x16xf32>
    %15 = arith.truncf %14 : vector<32x16xf32> to vector<32x16xbf16>
    %c0_8 = arith.constant 0 : index
    %c0_9 = arith.constant 0 : index
    %16 = vector.load %arg6[%c0_8, %c0_9] : memref<32x16xbf16, #tpu.memory_space<vmem>>, vector<32x16xbf16>
    tpu.vector_store %arg6[%c0_8, %c0_9], %15 {strides = array<i32>} : memref<32x16xbf16, #tpu.memory_space<vmem>>, vector<32x16xbf16>,
    return
  }
  func.func @transform_0(%arg0: i32, %arg1: i32) -> (i32, i32) {
    %c0_i32 = arith.constant 0 : i32
    %c0_i32_0 = arith.constant 0 : i32
    return %arg0, %c0_i32 : i32, i32
  }
  func.func @transform_1(%arg0: i32, %arg1: i32) -> (i32, i32) {
    %c0_i32 = arith.constant 0 : i32
    %c0_i32_0 = arith.constant 0 : i32
    return %c0_i32, %arg1 : i32, i32
  }
  func.func @transform_2(%arg0: i32, %arg1: i32) -> (i32, i32) {
    %c0_i32 = arith.constant 0 : i32
    %c0_i32_0 = arith.constant 0 : i32
    return %c0_i32, %arg1 : i32, i32
  }
  func.func @transform_3(%arg0: i32, %arg1: i32) -> (i32, i32) {
    %c0_i32 = arith.constant 0 : i32
    %c0_i32_0 = arith.constant 0 : i32
    return %c0_i32, %arg1 : i32, i32
  }
  func.func @transform_4(%arg0: i32, %arg1: i32) -> (i32, i32) {
    %c0_i32 = arith.constant 0 : i32
    return %arg0, %arg1 : i32, i32
  }
}

module attributes {stable_mosaic.version = 11 : i64} {
  func.func @kernel(%arg0: i32, %arg1: i32, %arg2: memref<128x16xbf16, #tpu.memory_space<vmem>>, %arg3: memref<128x16xbf16, #tpu.memory_space<vmem>>, %arg4: memref<16x16xbf16, #tpu.memory_space<vmem>>, %arg5: memref<16x16xbf16, #tpu.memory_space<vmem>>, %arg6: memref<1x16xf32, #tpu.memory_space<vmem>>, %arg7: memref<1x16xf32, #tpu.memory_space<vmem>>, %arg8: memref<128x16xbf16, #tpu.memory_space<vmem>>) attributes {dimension_semantics = [#tpu.dimension_semantics<parallel>, #tpu.dimension_semantics<parallel>], iteration_bounds = array<i64: 1, 1>, scalar_prefetch = 0 : i64, scratch_operands = 0 : i64, tpu.core_type = #tpu.core_type<tc>, window_params = [{transform_indices = @transform_0, window_bounds = array<i64: 128, 16>}, {transform_indices = @transform_1, window_bounds = array<i64: 128, 16>}, {transform_indices = @transform_2, window_bounds = array<i64: 16, 16>}, {transform_indices = @transform_3, window_bounds = array<i64: 16, 16>}, {transform_indices = @transform_4, window_bounds = array<i64: 1, 16>}, {transform_indices = @transform_5, window_bounds = array<i64: 1, 16>}, {transform_indices = @transform_6, window_bounds = array<i64: 128, 16>}]} {
    %c0 = arith.constant 0 : index
    %c0_0 = arith.constant 0 : index
    %0 = vector.load %arg2[%c0, %c0_0] : memref<128x16xbf16, #tpu.memory_space<vmem>>, vector<128x16xbf16>
    %c0_1 = arith.constant 0 : index
    %c0_2 = arith.constant 0 : index
    %1 = vector.load %arg4[%c0_1, %c0_2] : memref<16x16xbf16, #tpu.memory_space<vmem>>, vector<16x16xbf16>
    %cst = arith.constant dense<0.000000e+00> : vector<128x16xf32>
    %2 = tpu.matmul %0, %1, %cst {dimension_numbers = #tpu.dot_dimension_numbers<[1], [0], [0], [1], [0, 0, 1, 1], [], []>} : vector<128x16xbf16>, vector<16x16xbf16>, vector<128x16xf32> -> vector<128x16xf32>
    %c0_3 = arith.constant 0 : index
    %c0_4 = arith.constant 0 : index
    %3 = vector.load %arg3[%c0_3, %c0_4] : memref<128x16xbf16, #tpu.memory_space<vmem>>, vector<128x16xbf16>
    %c0_5 = arith.constant 0 : index
    %c0_6 = arith.constant 0 : index
    %4 = vector.load %arg5[%c0_5, %c0_6] : memref<16x16xbf16, #tpu.memory_space<vmem>>, vector<16x16xbf16>
    %cst_7 = arith.constant dense<0.000000e+00> : vector<128x16xf32>
    %5 = tpu.matmul %3, %4, %cst_7 {dimension_numbers = #tpu.dot_dimension_numbers<[1], [0], [0], [1], [0, 0, 1, 1], [], []>} : vector<128x16xbf16>, vector<16x16xbf16>, vector<128x16xf32> -> vector<128x16xf32>
    %6 = arith.addf %2, %5 : vector<128x16xf32>
    %c0_8 = arith.constant 0 : index
    %c0_9 = arith.constant 0 : index
    %7 = vector.load %arg6[%c0_8, %c0_9] : memref<1x16xf32, #tpu.memory_space<vmem>>, vector<1x16xf32>
    %8 = vector.broadcast %7 : vector<1x16xf32> to vector<128x16xf32>
    %9 = arith.mulf %6, %8 : vector<128x16xf32>
    %c0_10 = arith.constant 0 : index
    %c0_11 = arith.constant 0 : index
    %10 = vector.load %arg7[%c0_10, %c0_11] : memref<1x16xf32, #tpu.memory_space<vmem>>, vector<1x16xf32>
    %11 = vector.broadcast %10 : vector<1x16xf32> to vector<128x16xf32>
    %12 = arith.addf %9, %11 : vector<128x16xf32>
    %13 = arith.negf %12 : vector<128x16xf32>
    %14 = math.exp %13 : vector<128x16xf32>
    %cst_12 = arith.constant 1.000000e+00 : f32
    %15 = vector.broadcast %cst_12 : f32 to vector<128x16xf32>
    %16 = arith.addf %15, %14 : vector<128x16xf32>
    %17 = arith.divf %15, %16 : vector<128x16xf32>
    %18 = arith.mulf %12, %17 : vector<128x16xf32>
    %19 = arith.truncf %18 : vector<128x16xf32> to vector<128x16xbf16>
    %c0_13 = arith.constant 0 : index
    %c0_14 = arith.constant 0 : index
    %20 = vector.load %arg8[%c0_13, %c0_14] : memref<128x16xbf16, #tpu.memory_space<vmem>>, vector<128x16xbf16>
    tpu.vector_store %arg8[%c0_13, %c0_14], %19 {strides = array<i32>} : memref<128x16xbf16, #tpu.memory_space<vmem>>, vector<128x16xbf16>,
    return
  }
  func.func @transform_0(%arg0: i32, %arg1: i32) -> (i32, i32) {
    %c0_i32 = arith.constant 0 : i32
    %c0_i32_0 = arith.constant 0 : i32
    return %arg0, %c0_i32 : i32, i32
  }
  func.func @transform_1(%arg0: i32, %arg1: i32) -> (i32, i32) {
    %c0_i32 = arith.constant 0 : i32
    %c0_i32_0 = arith.constant 0 : i32
    return %arg0, %c0_i32 : i32, i32
  }
  func.func @transform_2(%arg0: i32, %arg1: i32) -> (i32, i32) {
    %c0_i32 = arith.constant 0 : i32
    %c0_i32_0 = arith.constant 0 : i32
    return %c0_i32, %arg1 : i32, i32
  }
  func.func @transform_3(%arg0: i32, %arg1: i32) -> (i32, i32) {
    %c0_i32 = arith.constant 0 : i32
    %c0_i32_0 = arith.constant 0 : i32
    return %c0_i32, %arg1 : i32, i32
  }
  func.func @transform_4(%arg0: i32, %arg1: i32) -> (i32, i32) {
    %c0_i32 = arith.constant 0 : i32
    %c0_i32_0 = arith.constant 0 : i32
    return %c0_i32, %arg1 : i32, i32
  }
  func.func @transform_5(%arg0: i32, %arg1: i32) -> (i32, i32) {
    %c0_i32 = arith.constant 0 : i32
    %c0_i32_0 = arith.constant 0 : i32
    return %c0_i32, %arg1 : i32, i32
  }
  func.func @transform_6(%arg0: i32, %arg1: i32) -> (i32, i32) {
    %c0_i32 = arith.constant 0 : i32
    return %arg0, %arg1 : i32, i32
  }
}

module attributes {stable_mosaic.version = 11 : i64} {
  func.func @kernel(%arg0: i32, %arg1: i32, %arg2: memref<128x8xbf16, #tpu.memory_space<vmem>>, %arg3: memref<8x8xbf16, #tpu.memory_space<vmem>>, %arg4: memref<1x8xf32, #tpu.memory_space<vmem>>, %arg5: memref<1x8xf32, #tpu.memory_space<vmem>>, %arg6: memref<128x8xbf16, #tpu.memory_space<vmem>>) attributes {dimension_semantics = [#tpu.dimension_semantics<parallel>, #tpu.dimension_semantics<parallel>], iteration_bounds = array<i64: 1, 1>, scalar_prefetch = 0 : i64, scratch_operands = 0 : i64, tpu.core_type = #tpu.core_type<tc>, window_params = [{transform_indices = @transform_0, window_bounds = array<i64: 128, 8>}, {transform_indices = @transform_1, window_bounds = array<i64: 8, 8>}, {transform_indices = @transform_2, window_bounds = array<i64: 1, 8>}, {transform_indices = @transform_3, window_bounds = array<i64: 1, 8>}, {transform_indices = @transform_4, window_bounds = array<i64: 128, 8>}]} {
    %c0 = arith.constant 0 : index
    %c0_0 = arith.constant 0 : index
    %0 = vector.load %arg2[%c0, %c0_0] : memref<128x8xbf16, #tpu.memory_space<vmem>>, vector<128x8xbf16>
    %c0_1 = arith.constant 0 : index
    %c0_2 = arith.constant 0 : index
    %1 = vector.load %arg3[%c0_1, %c0_2] : memref<8x8xbf16, #tpu.memory_space<vmem>>, vector<8x8xbf16>
    %cst = arith.constant dense<0.000000e+00> : vector<128x8xf32>
    %2 = tpu.matmul %0, %1, %cst {dimension_numbers = #tpu.dot_dimension_numbers<[1], [0], [0], [1], [0, 0, 1, 1], [], []>} : vector<128x8xbf16>, vector<8x8xbf16>, vector<128x8xf32> -> vector<128x8xf32>
    %c0_3 = arith.constant 0 : index
    %c0_4 = arith.constant 0 : index
    %3 = vector.load %arg4[%c0_3, %c0_4] : memref<1x8xf32, #tpu.memory_space<vmem>>, vector<1x8xf32>
    %4 = vector.broadcast %3 : vector<1x8xf32> to vector<128x8xf32>
    %5 = arith.mulf %2, %4 : vector<128x8xf32>
    %c0_5 = arith.constant 0 : index
    %c0_6 = arith.constant 0 : index
    %6 = vector.load %arg5[%c0_5, %c0_6] : memref<1x8xf32, #tpu.memory_space<vmem>>, vector<1x8xf32>
    %7 = vector.broadcast %6 : vector<1x8xf32> to vector<128x8xf32>
    %8 = arith.addf %5, %7 : vector<128x8xf32>
    %9 = arith.negf %8 : vector<128x8xf32>
    %10 = math.exp %9 : vector<128x8xf32>
    %cst_7 = arith.constant 1.000000e+00 : f32
    %11 = vector.broadcast %cst_7 : f32 to vector<128x8xf32>
    %12 = arith.addf %11, %10 : vector<128x8xf32>
    %13 = arith.divf %11, %12 : vector<128x8xf32>
    %14 = arith.mulf %8, %13 : vector<128x8xf32>
    %15 = arith.truncf %14 : vector<128x8xf32> to vector<128x8xbf16>
    %c0_8 = arith.constant 0 : index
    %c0_9 = arith.constant 0 : index
    %16 = vector.load %arg6[%c0_8, %c0_9] : memref<128x8xbf16, #tpu.memory_space<vmem>>, vector<128x8xbf16>
    tpu.vector_store %arg6[%c0_8, %c0_9], %15 {strides = array<i32>} : memref<128x8xbf16, #tpu.memory_space<vmem>>, vector<128x8xbf16>,
    return
  }
  func.func @transform_0(%arg0: i32, %arg1: i32) -> (i32, i32) {
    %c0_i32 = arith.constant 0 : i32
    %c0_i32_0 = arith.constant 0 : i32
    return %arg0, %c0_i32 : i32, i32
  }
  func.func @transform_1(%arg0: i32, %arg1: i32) -> (i32, i32) {
    %c0_i32 = arith.constant 0 : i32
    %c0_i32_0 = arith.constant 0 : i32
    return %c0_i32, %arg1 : i32, i32
  }
  func.func @transform_2(%arg0: i32, %arg1: i32) -> (i32, i32) {
    %c0_i32 = arith.constant 0 : i32
    %c0_i32_0 = arith.constant 0 : i32
    return %c0_i32, %arg1 : i32, i32
  }
  func.func @transform_3(%arg0: i32, %arg1: i32) -> (i32, i32) {
    %c0_i32 = arith.constant 0 : i32
    %c0_i32_0 = arith.constant 0 : i32
    return %c0_i32, %arg1 : i32, i32
  }
  func.func @transform_4(%arg0: i32, %arg1: i32) -> (i32, i32) {
    %c0_i32 = arith.constant 0 : i32
    return %arg0, %arg1 : i32, i32
  }
}

module attributes {stable_mosaic.version = 11 : i64} {
  func.func @kernel(%arg0: i32, %arg1: i32, %arg2: memref<128x8xbf16, #tpu.memory_space<vmem>>, %arg3: memref<128x8xbf16, #tpu.memory_space<vmem>>, %arg4: memref<8x16xbf16, #tpu.memory_space<vmem>>, %arg5: memref<8x16xbf16, #tpu.memory_space<vmem>>, %arg6: memref<1x16xf32, #tpu.memory_space<vmem>>, %arg7: memref<1x16xf32, #tpu.memory_space<vmem>>, %arg8: memref<128x16xbf16, #tpu.memory_space<vmem>>) attributes {dimension_semantics = [#tpu.dimension_semantics<parallel>, #tpu.dimension_semantics<parallel>], iteration_bounds = array<i64: 1, 1>, scalar_prefetch = 0 : i64, scratch_operands = 0 : i64, tpu.core_type = #tpu.core_type<tc>, window_params = [{transform_indices = @transform_0, window_bounds = array<i64: 128, 8>}, {transform_indices = @transform_1, window_bounds = array<i64: 128, 8>}, {transform_indices = @transform_2, window_bounds = array<i64: 8, 16>}, {transform_indices = @transform_3, window_bounds = array<i64: 8, 16>}, {transform_indices = @transform_4, window_bounds = array<i64: 1, 16>}, {transform_indices = @transform_5, window_bounds = array<i64: 1, 16>}, {transform_indices = @transform_6, window_bounds = array<i64: 128, 16>}]} {
    %c0 = arith.constant 0 : index
    %c0_0 = arith.constant 0 : index
    %0 = vector.load %arg2[%c0, %c0_0] : memref<128x8xbf16, #tpu.memory_space<vmem>>, vector<128x8xbf16>
    %c0_1 = arith.constant 0 : index
    %c0_2 = arith.constant 0 : index
    %1 = vector.load %arg4[%c0_1, %c0_2] : memref<8x16xbf16, #tpu.memory_space<vmem>>, vector<8x16xbf16>
    %cst = arith.constant dense<0.000000e+00> : vector<128x16xf32>
    %2 = tpu.matmul %0, %1, %cst {dimension_numbers = #tpu.dot_dimension_numbers<[1], [0], [0], [1], [0, 0, 1, 1], [], []>} : vector<128x8xbf16>, vector<8x16xbf16>, vector<128x16xf32> -> vector<128x16xf32>
    %c0_3 = arith.constant 0 : index
    %c0_4 = arith.constant 0 : index
    %3 = vector.load %arg3[%c0_3, %c0_4] : memref<128x8xbf16, #tpu.memory_space<vmem>>, vector<128x8xbf16>
    %c0_5 = arith.constant 0 : index
    %c0_6 = arith.constant 0 : index
    %4 = vector.load %arg5[%c0_5, %c0_6] : memref<8x16xbf16, #tpu.memory_space<vmem>>, vector<8x16xbf16>
    %cst_7 = arith.constant dense<0.000000e+00> : vector<128x16xf32>
    %5 = tpu.matmul %3, %4, %cst_7 {dimension_numbers = #tpu.dot_dimension_numbers<[1], [0], [0], [1], [0, 0, 1, 1], [], []>} : vector<128x8xbf16>, vector<8x16xbf16>, vector<128x16xf32> -> vector<128x16xf32>
    %6 = arith.addf %2, %5 : vector<128x16xf32>
    %c0_8 = arith.constant 0 : index
    %c0_9 = arith.constant 0 : index
    %7 = vector.load %arg6[%c0_8, %c0_9] : memref<1x16xf32, #tpu.memory_space<vmem>>, vector<1x16xf32>
    %8 = vector.broadcast %7 : vector<1x16xf32> to vector<128x16xf32>
    %9 = arith.mulf %6, %8 : vector<128x16xf32>
    %c0_10 = arith.constant 0 : index
    %c0_11 = arith.constant 0 : index
    %10 = vector.load %arg7[%c0_10, %c0_11] : memref<1x16xf32, #tpu.memory_space<vmem>>, vector<1x16xf32>
    %11 = vector.broadcast %10 : vector<1x16xf32> to vector<128x16xf32>
    %12 = arith.addf %9, %11 : vector<128x16xf32>
    %13 = arith.negf %12 : vector<128x16xf32>
    %14 = math.exp %13 : vector<128x16xf32>
    %cst_12 = arith.constant 1.000000e+00 : f32
    %15 = vector.broadcast %cst_12 : f32 to vector<128x16xf32>
    %16 = arith.addf %15, %14 : vector<128x16xf32>
    %17 = arith.divf %15, %16 : vector<128x16xf32>
    %18 = arith.mulf %12, %17 : vector<128x16xf32>
    %19 = arith.truncf %18 : vector<128x16xf32> to vector<128x16xbf16>
    %c0_13 = arith.constant 0 : index
    %c0_14 = arith.constant 0 : index
    %20 = vector.load %arg8[%c0_13, %c0_14] : memref<128x16xbf16, #tpu.memory_space<vmem>>, vector<128x16xbf16>
    tpu.vector_store %arg8[%c0_13, %c0_14], %19 {strides = array<i32>} : memref<128x16xbf16, #tpu.memory_space<vmem>>, vector<128x16xbf16>,
    return
  }
  func.func @transform_0(%arg0: i32, %arg1: i32) -> (i32, i32) {
    %c0_i32 = arith.constant 0 : i32
    %c0_i32_0 = arith.constant 0 : i32
    return %arg0, %c0_i32 : i32, i32
  }
  func.func @transform_1(%arg0: i32, %arg1: i32) -> (i32, i32) {
    %c0_i32 = arith.constant 0 : i32
    %c0_i32_0 = arith.constant 0 : i32
    return %arg0, %c0_i32 : i32, i32
  }
  func.func @transform_2(%arg0: i32, %arg1: i32) -> (i32, i32) {
    %c0_i32 = arith.constant 0 : i32
    %c0_i32_0 = arith.constant 0 : i32
    return %c0_i32, %arg1 : i32, i32
  }
  func.func @transform_3(%arg0: i32, %arg1: i32) -> (i32, i32) {
    %c0_i32 = arith.constant 0 : i32
    %c0_i32_0 = arith.constant 0 : i32
    return %c0_i32, %arg1 : i32, i32
  }
  func.func @transform_4(%arg0: i32, %arg1: i32) -> (i32, i32) {
    %c0_i32 = arith.constant 0 : i32
    %c0_i32_0 = arith.constant 0 : i32
    return %c0_i32, %arg1 : i32, i32
  }
  func.func @transform_5(%arg0: i32, %arg1: i32) -> (i32, i32) {
    %c0_i32 = arith.constant 0 : i32
    %c0_i32_0 = arith.constant 0 : i32
    return %c0_i32, %arg1 : i32, i32
  }
  func.func @transform_6(%arg0: i32, %arg1: i32) -> (i32, i32) {
    %c0_i32 = arith.constant 0 : i32
    return %arg0, %arg1 : i32, i32
  }
}

module attributes {stable_mosaic.version = 11 : i64} {
  func.func @kernel(%arg0: i32, %arg1: i32, %arg2: memref<128x72xbf16, #tpu.memory_space<vmem>>, %arg3: memref<72x8xbf16, #tpu.memory_space<vmem>>, %arg4: memref<1x8xf32, #tpu.memory_space<vmem>>, %arg5: memref<1x8xf32, #tpu.memory_space<vmem>>, %arg6: memref<128x8xbf16, #tpu.memory_space<vmem>>, %arg7: memref<128x8xbf16, #tpu.memory_space<vmem>>) attributes {dimension_semantics = [#tpu.dimension_semantics<parallel>, #tpu.dimension_semantics<parallel>], iteration_bounds = array<i64: 1, 1>, scalar_prefetch = 0 : i64, scratch_operands = 0 : i64, tpu.core_type = #tpu.core_type<tc>, window_params = [{transform_indices = @transform_0, window_bounds = array<i64: 128, 72>}, {transform_indices = @transform_1, window_bounds = array<i64: 72, 8>}, {transform_indices = @transform_2, window_bounds = array<i64: 1, 8>}, {transform_indices = @transform_3, window_bounds = array<i64: 1, 8>}, {transform_indices = @transform_4, window_bounds = array<i64: 128, 8>}, {transform_indices = @transform_5, window_bounds = array<i64: 128, 8>}]} {
    %c0 = arith.constant 0 : index
    %c0_0 = arith.constant 0 : index
    %0 = vector.load %arg2[%c0, %c0_0] : memref<128x72xbf16, #tpu.memory_space<vmem>>, vector<128x72xbf16>
    %c0_1 = arith.constant 0 : index
    %c0_2 = arith.constant 0 : index
    %1 = vector.load %arg3[%c0_1, %c0_2] : memref<72x8xbf16, #tpu.memory_space<vmem>>, vector<72x8xbf16>
    %cst = arith.constant dense<0.000000e+00> : vector<128x8xf32>
    %2 = tpu.matmul %0, %1, %cst {dimension_numbers = #tpu.dot_dimension_numbers<[1], [0], [0], [1], [0, 0, 1, 1], [], []>} : vector<128x72xbf16>, vector<72x8xbf16>, vector<128x8xf32> -> vector<128x8xf32>
    %c0_3 = arith.constant 0 : index
    %c0_4 = arith.constant 0 : index
    %3 = vector.load %arg4[%c0_3, %c0_4] : memref<1x8xf32, #tpu.memory_space<vmem>>, vector<1x8xf32>
    %4 = vector.broadcast %3 : vector<1x8xf32> to vector<128x8xf32>
    %5 = arith.mulf %2, %4 : vector<128x8xf32>
    %c0_5 = arith.constant 0 : index
    %c0_6 = arith.constant 0 : index
    %6 = vector.load %arg5[%c0_5, %c0_6] : memref<1x8xf32, #tpu.memory_space<vmem>>, vector<1x8xf32>
    %7 = vector.broadcast %6 : vector<1x8xf32> to vector<128x8xf32>
    %8 = arith.addf %5, %7 : vector<128x8xf32>
    %9 = arith.negf %8 : vector<128x8xf32>
    %10 = math.exp %9 : vector<128x8xf32>
    %cst_7 = arith.constant 1.000000e+00 : f32
    %11 = vector.broadcast %cst_7 : f32 to vector<128x8xf32>
    %12 = arith.addf %11, %10 : vector<128x8xf32>
    %13 = arith.divf %11, %12 : vector<128x8xf32>
    %14 = arith.mulf %8, %13 : vector<128x8xf32>
    %c0_8 = arith.constant 0 : index
    %c0_9 = arith.constant 0 : index
    %15 = vector.load %arg6[%c0_8, %c0_9] : memref<128x8xbf16, #tpu.memory_space<vmem>>, vector<128x8xbf16>
    %16 = arith.extf %15 : vector<128x8xbf16> to vector<128x8xf32>
    %17 = arith.addf %14, %16 : vector<128x8xf32>
    %18 = arith.truncf %17 : vector<128x8xf32> to vector<128x8xbf16>
    %c0_10 = arith.constant 0 : index
    %c0_11 = arith.constant 0 : index
    %19 = vector.load %arg7[%c0_10, %c0_11] : memref<128x8xbf16, #tpu.memory_space<vmem>>, vector<128x8xbf16>
    tpu.vector_store %arg7[%c0_10, %c0_11], %18 {strides = array<i32>} : memref<128x8xbf16, #tpu.memory_space<vmem>>, vector<128x8xbf16>,
    return
  }
  func.func @transform_0(%arg0: i32, %arg1: i32) -> (i32, i32) {
    %c0_i32 = arith.constant 0 : i32
    %c0_i32_0 = arith.constant 0 : i32
    return %arg0, %c0_i32 : i32, i32
  }
  func.func @transform_1(%arg0: i32, %arg1: i32) -> (i32, i32) {
    %c0_i32 = arith.constant 0 : i32
    %c0_i32_0 = arith.constant 0 : i32
    return %c0_i32, %arg1 : i32, i32
  }
  func.func @transform_2(%arg0: i32, %arg1: i32) -> (i32, i32) {
    %c0_i32 = arith.constant 0 : i32
    %c0_i32_0 = arith.constant 0 : i32
    return %c0_i32, %arg1 : i32, i32
  }
  func.func @transform_3(%arg0: i32, %arg1: i32) -> (i32, i32) {
    %c0_i32 = arith.constant 0 : i32
    %c0_i32_0 = arith.constant 0 : i32
    return %c0_i32, %arg1 : i32, i32
  }
  func.func @transform_4(%arg0: i32, %arg1: i32) -> (i32, i32) {
    %c0_i32 = arith.constant 0 : i32
    return %arg0, %arg1 : i32, i32
  }
  func.func @transform_5(%arg0: i32, %arg1: i32) -> (i32, i32) {
    %c0_i32 = arith.constant 0 : i32
    return %arg0, %arg1 : i32, i32
  }
}

module attributes {stable_mosaic.version = 11 : i64} {
  func.func @kernel(%arg0: i32, %arg1: i32, %arg2: memref<128x16xbf16, #tpu.memory_space<vmem>>, %arg3: memref<16x8xbf16, #tpu.memory_space<vmem>>, %arg4: memref<1x8xf32, #tpu.memory_space<vmem>>, %arg5: memref<1x8xf32, #tpu.memory_space<vmem>>, %arg6: memref<128x8xbf16, #tpu.memory_space<vmem>>) attributes {dimension_semantics = [#tpu.dimension_semantics<parallel>, #tpu.dimension_semantics<parallel>], iteration_bounds = array<i64: 1, 1>, scalar_prefetch = 0 : i64, scratch_operands = 0 : i64, tpu.core_type = #tpu.core_type<tc>, window_params = [{transform_indices = @transform_0, window_bounds = array<i64: 128, 16>}, {transform_indices = @transform_1, window_bounds = array<i64: 16, 8>}, {transform_indices = @transform_2, window_bounds = array<i64: 1, 8>}, {transform_indices = @transform_3, window_bounds = array<i64: 1, 8>}, {transform_indices = @transform_4, window_bounds = array<i64: 128, 8>}]} {
    %c0 = arith.constant 0 : index
    %c0_0 = arith.constant 0 : index
    %0 = vector.load %arg2[%c0, %c0_0] : memref<128x16xbf16, #tpu.memory_space<vmem>>, vector<128x16xbf16>
    %c0_1 = arith.constant 0 : index
    %c0_2 = arith.constant 0 : index
    %1 = vector.load %arg3[%c0_1, %c0_2] : memref<16x8xbf16, #tpu.memory_space<vmem>>, vector<16x8xbf16>
    %cst = arith.constant dense<0.000000e+00> : vector<128x8xf32>
    %2 = tpu.matmul %0, %1, %cst {dimension_numbers = #tpu.dot_dimension_numbers<[1], [0], [0], [1], [0, 0, 1, 1], [], []>} : vector<128x16xbf16>, vector<16x8xbf16>, vector<128x8xf32> -> vector<128x8xf32>
    %c0_3 = arith.constant 0 : index
    %c0_4 = arith.constant 0 : index
    %3 = vector.load %arg4[%c0_3, %c0_4] : memref<1x8xf32, #tpu.memory_space<vmem>>, vector<1x8xf32>
    %4 = vector.broadcast %3 : vector<1x8xf32> to vector<128x8xf32>
    %5 = arith.mulf %2, %4 : vector<128x8xf32>
    %c0_5 = arith.constant 0 : index
    %c0_6 = arith.constant 0 : index
    %6 = vector.load %arg5[%c0_5, %c0_6] : memref<1x8xf32, #tpu.memory_space<vmem>>, vector<1x8xf32>
    %7 = vector.broadcast %6 : vector<1x8xf32> to vector<128x8xf32>
    %8 = arith.addf %5, %7 : vector<128x8xf32>
    %9 = arith.negf %8 : vector<128x8xf32>
    %10 = math.exp %9 : vector<128x8xf32>
    %cst_7 = arith.constant 1.000000e+00 : f32
    %11 = vector.broadcast %cst_7 : f32 to vector<128x8xf32>
    %12 = arith.addf %11, %10 : vector<128x8xf32>
    %13 = arith.divf %11, %12 : vector<128x8xf32>
    %14 = arith.mulf %8, %13 : vector<128x8xf32>
    %15 = arith.truncf %14 : vector<128x8xf32> to vector<128x8xbf16>
    %c0_8 = arith.constant 0 : index
    %c0_9 = arith.constant 0 : index
    %16 = vector.load %arg6[%c0_8, %c0_9] : memref<128x8xbf16, #tpu.memory_space<vmem>>, vector<128x8xbf16>
    tpu.vector_store %arg6[%c0_8, %c0_9], %15 {strides = array<i32>} : memref<128x8xbf16, #tpu.memory_space<vmem>>, vector<128x8xbf16>,
    return
  }
  func.func @transform_0(%arg0: i32, %arg1: i32) -> (i32, i32) {
    %c0_i32 = arith.constant 0 : i32
    %c0_i32_0 = arith.constant 0 : i32
    return %arg0, %c0_i32 : i32, i32
  }
  func.func @transform_1(%arg0: i32, %arg1: i32) -> (i32, i32) {
    %c0_i32 = arith.constant 0 : i32
    %c0_i32_0 = arith.constant 0 : i32
    return %c0_i32, %arg1 : i32, i32
  }
  func.func @transform_2(%arg0: i32, %arg1: i32) -> (i32, i32) {
    %c0_i32 = arith.constant 0 : i32
    %c0_i32_0 = arith.constant 0 : i32
    return %c0_i32, %arg1 : i32, i32
  }
  func.func @transform_3(%arg0: i32, %arg1: i32) -> (i32, i32) {
    %c0_i32 = arith.constant 0 : i32
    %c0_i32_0 = arith.constant 0 : i32
    return %c0_i32, %arg1 : i32, i32
  }
  func.func @transform_4(%arg0: i32, %arg1: i32) -> (i32, i32) {
    %c0_i32 = arith.constant 0 : i32
    return %arg0, %arg1 : i32, i32
  }
}

module attributes {stable_mosaic.version = 11 : i64} {
  func.func @kernel(%arg0: i32, %arg1: i32, %arg2: memref<256x8xbf16, #tpu.memory_space<vmem>>, %arg3: memref<256x8xbf16, #tpu.memory_space<vmem>>, %arg4: memref<8x8xbf16, #tpu.memory_space<vmem>>, %arg5: memref<8x8xbf16, #tpu.memory_space<vmem>>, %arg6: memref<1x8xf32, #tpu.memory_space<vmem>>, %arg7: memref<1x8xf32, #tpu.memory_space<vmem>>, %arg8: memref<256x8xbf16, #tpu.memory_space<vmem>>) attributes {dimension_semantics = [#tpu.dimension_semantics<parallel>, #tpu.dimension_semantics<parallel>], iteration_bounds = array<i64: 2, 1>, scalar_prefetch = 0 : i64, scratch_operands = 0 : i64, tpu.core_type = #tpu.core_type<tc>, window_params = [{transform_indices = @transform_0, window_bounds = array<i64: 256, 8>}, {transform_indices = @transform_1, window_bounds = array<i64: 256, 8>}, {transform_indices = @transform_2, window_bounds = array<i64: 8, 8>}, {transform_indices = @transform_3, window_bounds = array<i64: 8, 8>}, {transform_indices = @transform_4, window_bounds = array<i64: 1, 8>}, {transform_indices = @transform_5, window_bounds = array<i64: 1, 8>}, {transform_indices = @transform_6, window_bounds = array<i64: 256, 8>}]} {
    %c0 = arith.constant 0 : index
    %c0_0 = arith.constant 0 : index
    %0 = vector.load %arg2[%c0, %c0_0] : memref<256x8xbf16, #tpu.memory_space<vmem>>, vector<256x8xbf16>
    %c0_1 = arith.constant 0 : index
    %c0_2 = arith.constant 0 : index
    %1 = vector.load %arg4[%c0_1, %c0_2] : memref<8x8xbf16, #tpu.memory_space<vmem>>, vector<8x8xbf16>
    %cst = arith.constant dense<0.000000e+00> : vector<256x8xf32>
    %2 = tpu.matmul %0, %1, %cst {dimension_numbers = #tpu.dot_dimension_numbers<[1], [0], [0], [1], [0, 0, 1, 1], [], []>} : vector<256x8xbf16>, vector<8x8xbf16>, vector<256x8xf32> -> vector<256x8xf32>
    %c0_3 = arith.constant 0 : index
    %c0_4 = arith.constant 0 : index
    %3 = vector.load %arg3[%c0_3, %c0_4] : memref<256x8xbf16, #tpu.memory_space<vmem>>, vector<256x8xbf16>
    %c0_5 = arith.constant 0 : index
    %c0_6 = arith.constant 0 : index
    %4 = vector.load %arg5[%c0_5, %c0_6] : memref<8x8xbf16, #tpu.memory_space<vmem>>, vector<8x8xbf16>
    %cst_7 = arith.constant dense<0.000000e+00> : vector<256x8xf32>
    %5 = tpu.matmul %3, %4, %cst_7 {dimension_numbers = #tpu.dot_dimension_numbers<[1], [0], [0], [1], [0, 0, 1, 1], [], []>} : vector<256x8xbf16>, vector<8x8xbf16>, vector<256x8xf32> -> vector<256x8xf32>
    %6 = arith.addf %2, %5 : vector<256x8xf32>
    %c0_8 = arith.constant 0 : index
    %c0_9 = arith.constant 0 : index
    %7 = vector.load %arg6[%c0_8, %c0_9] : memref<1x8xf32, #tpu.memory_space<vmem>>, vector<1x8xf32>
    %8 = vector.broadcast %7 : vector<1x8xf32> to vector<256x8xf32>
    %9 = arith.mulf %6, %8 : vector<256x8xf32>
    %c0_10 = arith.constant 0 : index
    %c0_11 = arith.constant 0 : index
    %10 = vector.load %arg7[%c0_10, %c0_11] : memref<1x8xf32, #tpu.memory_space<vmem>>, vector<1x8xf32>
    %11 = vector.broadcast %10 : vector<1x8xf32> to vector<256x8xf32>
    %12 = arith.addf %9, %11 : vector<256x8xf32>
    %13 = arith.negf %12 : vector<256x8xf32>
    %14 = math.exp %13 : vector<256x8xf32>
    %cst_12 = arith.constant 1.000000e+00 : f32
    %15 = vector.broadcast %cst_12 : f32 to vector<256x8xf32>
    %16 = arith.addf %15, %14 : vector<256x8xf32>
    %17 = arith.divf %15, %16 : vector<256x8xf32>
    %18 = arith.mulf %12, %17 : vector<256x8xf32>
    %19 = arith.truncf %18 : vector<256x8xf32> to vector<256x8xbf16>
    %c0_13 = arith.constant 0 : index
    %c0_14 = arith.constant 0 : index
    %20 = vector.load %arg8[%c0_13, %c0_14] : memref<256x8xbf16, #tpu.memory_space<vmem>>, vector<256x8xbf16>
    tpu.vector_store %arg8[%c0_13, %c0_14], %19 {strides = array<i32>} : memref<256x8xbf16, #tpu.memory_space<vmem>>, vector<256x8xbf16>,
    return
  }
  func.func @transform_0(%arg0: i32, %arg1: i32) -> (i32, i32) {
    %c0_i32 = arith.constant 0 : i32
    %c0_i32_0 = arith.constant 0 : i32
    return %arg0, %c0_i32 : i32, i32
  }
  func.func @transform_1(%arg0: i32, %arg1: i32) -> (i32, i32) {
    %c0_i32 = arith.constant 0 : i32
    %c0_i32_0 = arith.constant 0 : i32
    return %arg0, %c0_i32 : i32, i32
  }
  func.func @transform_2(%arg0: i32, %arg1: i32) -> (i32, i32) {
    %c0_i32 = arith.constant 0 : i32
    %c0_i32_0 = arith.constant 0 : i32
    return %c0_i32, %arg1 : i32, i32
  }
  func.func @transform_3(%arg0: i32, %arg1: i32) -> (i32, i32) {
    %c0_i32 = arith.constant 0 : i32
    %c0_i32_0 = arith.constant 0 : i32
    return %c0_i32, %arg1 : i32, i32
  }
  func.func @transform_4(%arg0: i32, %arg1: i32) -> (i32, i32) {
    %c0_i32 = arith.constant 0 : i32
    %c0_i32_0 = arith.constant 0 : i32
    return %c0_i32, %arg1 : i32, i32
  }
  func.func @transform_5(%arg0: i32, %arg1: i32) -> (i32, i32) {
    %c0_i32 = arith.constant 0 : i32
    %c0_i32_0 = arith.constant 0 : i32
    return %c0_i32, %arg1 : i32, i32
  }
  func.func @transform_6(%arg0: i32, %arg1: i32) -> (i32, i32) {
    %c0_i32 = arith.constant 0 : i32
    return %arg0, %arg1 : i32, i32
  }
}

module attributes {stable_mosaic.version = 11 : i64} {
  func.func @kernel(%arg0: i32, %arg1: i32, %arg2: memref<256x4xbf16, #tpu.memory_space<vmem>>, %arg3: memref<4x4xbf16, #tpu.memory_space<vmem>>, %arg4: memref<1x4xf32, #tpu.memory_space<vmem>>, %arg5: memref<1x4xf32, #tpu.memory_space<vmem>>, %arg6: memref<256x4xbf16, #tpu.memory_space<vmem>>) attributes {dimension_semantics = [#tpu.dimension_semantics<parallel>, #tpu.dimension_semantics<parallel>], iteration_bounds = array<i64: 2, 1>, scalar_prefetch = 0 : i64, scratch_operands = 0 : i64, tpu.core_type = #tpu.core_type<tc>, window_params = [{transform_indices = @transform_0, window_bounds = array<i64: 256, 4>}, {transform_indices = @transform_1, window_bounds = array<i64: 4, 4>}, {transform_indices = @transform_2, window_bounds = array<i64: 1, 4>}, {transform_indices = @transform_3, window_bounds = array<i64: 1, 4>}, {transform_indices = @transform_4, window_bounds = array<i64: 256, 4>}]} {
    %c0 = arith.constant 0 : index
    %c0_0 = arith.constant 0 : index
    %0 = vector.load %arg2[%c0, %c0_0] : memref<256x4xbf16, #tpu.memory_space<vmem>>, vector<256x4xbf16>
    %c0_1 = arith.constant 0 : index
    %c0_2 = arith.constant 0 : index
    %1 = vector.load %arg3[%c0_1, %c0_2] : memref<4x4xbf16, #tpu.memory_space<vmem>>, vector<4x4xbf16>
    %cst = arith.constant dense<0.000000e+00> : vector<256x4xf32>
    %2 = tpu.matmul %0, %1, %cst {dimension_numbers = #tpu.dot_dimension_numbers<[1], [0], [0], [1], [0, 0, 1, 1], [], []>} : vector<256x4xbf16>, vector<4x4xbf16>, vector<256x4xf32> -> vector<256x4xf32>
    %c0_3 = arith.constant 0 : index
    %c0_4 = arith.constant 0 : index
    %3 = vector.load %arg4[%c0_3, %c0_4] : memref<1x4xf32, #tpu.memory_space<vmem>>, vector<1x4xf32>
    %4 = vector.broadcast %3 : vector<1x4xf32> to vector<256x4xf32>
    %5 = arith.mulf %2, %4 : vector<256x4xf32>
    %c0_5 = arith.constant 0 : index
    %c0_6 = arith.constant 0 : index
    %6 = vector.load %arg5[%c0_5, %c0_6] : memref<1x4xf32, #tpu.memory_space<vmem>>, vector<1x4xf32>
    %7 = vector.broadcast %6 : vector<1x4xf32> to vector<256x4xf32>
    %8 = arith.addf %5, %7 : vector<256x4xf32>
    %9 = arith.negf %8 : vector<256x4xf32>
    %10 = math.exp %9 : vector<256x4xf32>
    %cst_7 = arith.constant 1.000000e+00 : f32
    %11 = vector.broadcast %cst_7 : f32 to vector<256x4xf32>
    %12 = arith.addf %11, %10 : vector<256x4xf32>
    %13 = arith.divf %11, %12 : vector<256x4xf32>
    %14 = arith.mulf %8, %13 : vector<256x4xf32>
    %15 = arith.truncf %14 : vector<256x4xf32> to vector<256x4xbf16>
    %c0_8 = arith.constant 0 : index
    %c0_9 = arith.constant 0 : index
    %16 = vector.load %arg6[%c0_8, %c0_9] : memref<256x4xbf16, #tpu.memory_space<vmem>>, vector<256x4xbf16>
    tpu.vector_store %arg6[%c0_8, %c0_9], %15 {strides = array<i32>} : memref<256x4xbf16, #tpu.memory_space<vmem>>, vector<256x4xbf16>,
    return
  }
  func.func @transform_0(%arg0: i32, %arg1: i32) -> (i32, i32) {
    %c0_i32 = arith.constant 0 : i32
    %c0_i32_0 = arith.constant 0 : i32
    return %arg0, %c0_i32 : i32, i32
  }
  func.func @transform_1(%arg0: i32, %arg1: i32) -> (i32, i32) {
    %c0_i32 = arith.constant 0 : i32
    %c0_i32_0 = arith.constant 0 : i32
    return %c0_i32, %arg1 : i32, i32
  }
  func.func @transform_2(%arg0: i32, %arg1: i32) -> (i32, i32) {
    %c0_i32 = arith.constant 0 : i32
    %c0_i32_0 = arith.constant 0 : i32
    return %c0_i32, %arg1 : i32, i32
  }
  func.func @transform_3(%arg0: i32, %arg1: i32) -> (i32, i32) {
    %c0_i32 = arith.constant 0 : i32
    %c0_i32_0 = arith.constant 0 : i32
    return %c0_i32, %arg1 : i32, i32
  }
  func.func @transform_4(%arg0: i32, %arg1: i32) -> (i32, i32) {
    %c0_i32 = arith.constant 0 : i32
    return %arg0, %arg1 : i32, i32
  }
}

module attributes {stable_mosaic.version = 11 : i64} {
  func.func @kernel(%arg0: i32, %arg1: i32, %arg2: memref<256x36xbf16, #tpu.memory_space<vmem>>, %arg3: memref<36x4xbf16, #tpu.memory_space<vmem>>, %arg4: memref<1x4xf32, #tpu.memory_space<vmem>>, %arg5: memref<1x4xf32, #tpu.memory_space<vmem>>, %arg6: memref<256x4xbf16, #tpu.memory_space<vmem>>, %arg7: memref<256x4xbf16, #tpu.memory_space<vmem>>) attributes {dimension_semantics = [#tpu.dimension_semantics<parallel>, #tpu.dimension_semantics<parallel>], iteration_bounds = array<i64: 2, 1>, scalar_prefetch = 0 : i64, scratch_operands = 0 : i64, tpu.core_type = #tpu.core_type<tc>, window_params = [{transform_indices = @transform_0, window_bounds = array<i64: 256, 36>}, {transform_indices = @transform_1, window_bounds = array<i64: 36, 4>}, {transform_indices = @transform_2, window_bounds = array<i64: 1, 4>}, {transform_indices = @transform_3, window_bounds = array<i64: 1, 4>}, {transform_indices = @transform_4, window_bounds = array<i64: 256, 4>}, {transform_indices = @transform_5, window_bounds = array<i64: 256, 4>}]} {
    %c0 = arith.constant 0 : index
    %c0_0 = arith.constant 0 : index
    %0 = vector.load %arg2[%c0, %c0_0] : memref<256x36xbf16, #tpu.memory_space<vmem>>, vector<256x36xbf16>
    %c0_1 = arith.constant 0 : index
    %c0_2 = arith.constant 0 : index
    %1 = vector.load %arg3[%c0_1, %c0_2] : memref<36x4xbf16, #tpu.memory_space<vmem>>, vector<36x4xbf16>
    %cst = arith.constant dense<0.000000e+00> : vector<256x4xf32>
    %2 = tpu.matmul %0, %1, %cst {dimension_numbers = #tpu.dot_dimension_numbers<[1], [0], [0], [1], [0, 0, 1, 1], [], []>} : vector<256x36xbf16>, vector<36x4xbf16>, vector<256x4xf32> -> vector<256x4xf32>
    %c0_3 = arith.constant 0 : index
    %c0_4 = arith.constant 0 : index
    %3 = vector.load %arg4[%c0_3, %c0_4] : memref<1x4xf32, #tpu.memory_space<vmem>>, vector<1x4xf32>
    %4 = vector.broadcast %3 : vector<1x4xf32> to vector<256x4xf32>
    %5 = arith.mulf %2, %4 : vector<256x4xf32>
    %c0_5 = arith.constant 0 : index
    %c0_6 = arith.constant 0 : index
    %6 = vector.load %arg5[%c0_5, %c0_6] : memref<1x4xf32, #tpu.memory_space<vmem>>, vector<1x4xf32>
    %7 = vector.broadcast %6 : vector<1x4xf32> to vector<256x4xf32>
    %8 = arith.addf %5, %7 : vector<256x4xf32>
    %9 = arith.negf %8 : vector<256x4xf32>
    %10 = math.exp %9 : vector<256x4xf32>
    %cst_7 = arith.constant 1.000000e+00 : f32
    %11 = vector.broadcast %cst_7 : f32 to vector<256x4xf32>
    %12 = arith.addf %11, %10 : vector<256x4xf32>
    %13 = arith.divf %11, %12 : vector<256x4xf32>
    %14 = arith.mulf %8, %13 : vector<256x4xf32>
    %c0_8 = arith.constant 0 : index
    %c0_9 = arith.constant 0 : index
    %15 = vector.load %arg6[%c0_8, %c0_9] : memref<256x4xbf16, #tpu.memory_space<vmem>>, vector<256x4xbf16>
    %16 = arith.extf %15 : vector<256x4xbf16> to vector<256x4xf32>
    %17 = arith.addf %14, %16 : vector<256x4xf32>
    %18 = arith.truncf %17 : vector<256x4xf32> to vector<256x4xbf16>
    %c0_10 = arith.constant 0 : index
    %c0_11 = arith.constant 0 : index
    %19 = vector.load %arg7[%c0_10, %c0_11] : memref<256x4xbf16, #tpu.memory_space<vmem>>, vector<256x4xbf16>
    tpu.vector_store %arg7[%c0_10, %c0_11], %18 {strides = array<i32>} : memref<256x4xbf16, #tpu.memory_space<vmem>>, vector<256x4xbf16>,
    return
  }
  func.func @transform_0(%arg0: i32, %arg1: i32) -> (i32, i32) {
    %c0_i32 = arith.constant 0 : i32
    %c0_i32_0 = arith.constant 0 : i32
    return %arg0, %c0_i32 : i32, i32
  }
  func.func @transform_1(%arg0: i32, %arg1: i32) -> (i32, i32) {
    %c0_i32 = arith.constant 0 : i32
    %c0_i32_0 = arith.constant 0 : i32
    return %c0_i32, %arg1 : i32, i32
  }
  func.func @transform_2(%arg0: i32, %arg1: i32) -> (i32, i32) {
    %c0_i32 = arith.constant 0 : i32
    %c0_i32_0 = arith.constant 0 : i32
    return %c0_i32, %arg1 : i32, i32
  }
  func.func @transform_3(%arg0: i32, %arg1: i32) -> (i32, i32) {
    %c0_i32 = arith.constant 0 : i32
    %c0_i32_0 = arith.constant 0 : i32
    return %c0_i32, %arg1 : i32, i32
  }
  func.func @transform_4(%arg0: i32, %arg1: i32) -> (i32, i32) {
    %c0_i32 = arith.constant 0 : i32
    return %arg0, %arg1 : i32, i32
  }
  func.func @transform_5(%arg0: i32, %arg1: i32) -> (i32, i32) {
    %c0_i32 = arith.constant 0 : i32
    return %arg0, %arg1 : i32, i32
  }
}

module attributes {stable_mosaic.version = 11 : i64} {
  func.func @kernel(%arg0: i32, %arg1: i32, %arg2: memref<256x4xbf16, #tpu.memory_space<vmem>>, %arg3: memref<256x4xbf16, #tpu.memory_space<vmem>>, %arg4: memref<4x8xbf16, #tpu.memory_space<vmem>>, %arg5: memref<4x8xbf16, #tpu.memory_space<vmem>>, %arg6: memref<1x8xf32, #tpu.memory_space<vmem>>, %arg7: memref<1x8xf32, #tpu.memory_space<vmem>>, %arg8: memref<256x8xbf16, #tpu.memory_space<vmem>>) attributes {dimension_semantics = [#tpu.dimension_semantics<parallel>, #tpu.dimension_semantics<parallel>], iteration_bounds = array<i64: 2, 1>, scalar_prefetch = 0 : i64, scratch_operands = 0 : i64, tpu.core_type = #tpu.core_type<tc>, window_params = [{transform_indices = @transform_0, window_bounds = array<i64: 256, 4>}, {transform_indices = @transform_1, window_bounds = array<i64: 256, 4>}, {transform_indices = @transform_2, window_bounds = array<i64: 4, 8>}, {transform_indices = @transform_3, window_bounds = array<i64: 4, 8>}, {transform_indices = @transform_4, window_bounds = array<i64: 1, 8>}, {transform_indices = @transform_5, window_bounds = array<i64: 1, 8>}, {transform_indices = @transform_6, window_bounds = array<i64: 256, 8>}]} {
    %c0 = arith.constant 0 : index
    %c0_0 = arith.constant 0 : index
    %0 = vector.load %arg2[%c0, %c0_0] : memref<256x4xbf16, #tpu.memory_space<vmem>>, vector<256x4xbf16>
    %c0_1 = arith.constant 0 : index
    %c0_2 = arith.constant 0 : index
    %1 = vector.load %arg4[%c0_1, %c0_2] : memref<4x8xbf16, #tpu.memory_space<vmem>>, vector<4x8xbf16>
    %cst = arith.constant dense<0.000000e+00> : vector<256x8xf32>
    %2 = tpu.matmul %0, %1, %cst {dimension_numbers = #tpu.dot_dimension_numbers<[1], [0], [0], [1], [0, 0, 1, 1], [], []>} : vector<256x4xbf16>, vector<4x8xbf16>, vector<256x8xf32> -> vector<256x8xf32>
    %c0_3 = arith.constant 0 : index
    %c0_4 = arith.constant 0 : index
    %3 = vector.load %arg3[%c0_3, %c0_4] : memref<256x4xbf16, #tpu.memory_space<vmem>>, vector<256x4xbf16>
    %c0_5 = arith.constant 0 : index
    %c0_6 = arith.constant 0 : index
    %4 = vector.load %arg5[%c0_5, %c0_6] : memref<4x8xbf16, #tpu.memory_space<vmem>>, vector<4x8xbf16>
    %cst_7 = arith.constant dense<0.000000e+00> : vector<256x8xf32>
    %5 = tpu.matmul %3, %4, %cst_7 {dimension_numbers = #tpu.dot_dimension_numbers<[1], [0], [0], [1], [0, 0, 1, 1], [], []>} : vector<256x4xbf16>, vector<4x8xbf16>, vector<256x8xf32> -> vector<256x8xf32>
    %6 = arith.addf %2, %5 : vector<256x8xf32>
    %c0_8 = arith.constant 0 : index
    %c0_9 = arith.constant 0 : index
    %7 = vector.load %arg6[%c0_8, %c0_9] : memref<1x8xf32, #tpu.memory_space<vmem>>, vector<1x8xf32>
    %8 = vector.broadcast %7 : vector<1x8xf32> to vector<256x8xf32>
    %9 = arith.mulf %6, %8 : vector<256x8xf32>
    %c0_10 = arith.constant 0 : index
    %c0_11 = arith.constant 0 : index
    %10 = vector.load %arg7[%c0_10, %c0_11] : memref<1x8xf32, #tpu.memory_space<vmem>>, vector<1x8xf32>
    %11 = vector.broadcast %10 : vector<1x8xf32> to vector<256x8xf32>
    %12 = arith.addf %9, %11 : vector<256x8xf32>
    %13 = arith.negf %12 : vector<256x8xf32>
    %14 = math.exp %13 : vector<256x8xf32>
    %cst_12 = arith.constant 1.000000e+00 : f32
    %15 = vector.broadcast %cst_12 : f32 to vector<256x8xf32>
    %16 = arith.addf %15, %14 : vector<256x8xf32>
    %17 = arith.divf %15, %16 : vector<256x8xf32>
    %18 = arith.mulf %12, %17 : vector<256x8xf32>
    %19 = arith.truncf %18 : vector<256x8xf32> to vector<256x8xbf16>
    %c0_13 = arith.constant 0 : index
    %c0_14 = arith.constant 0 : index
    %20 = vector.load %arg8[%c0_13, %c0_14] : memref<256x8xbf16, #tpu.memory_space<vmem>>, vector<256x8xbf16>
    tpu.vector_store %arg8[%c0_13, %c0_14], %19 {strides = array<i32>} : memref<256x8xbf16, #tpu.memory_space<vmem>>, vector<256x8xbf16>,
    return
  }
  func.func @transform_0(%arg0: i32, %arg1: i32) -> (i32, i32) {
    %c0_i32 = arith.constant 0 : i32
    %c0_i32_0 = arith.constant 0 : i32
    return %arg0, %c0_i32 : i32, i32
  }
  func.func @transform_1(%arg0: i32, %arg1: i32) -> (i32, i32) {
    %c0_i32 = arith.constant 0 : i32
    %c0_i32_0 = arith.constant 0 : i32
    return %arg0, %c0_i32 : i32, i32
  }
  func.func @transform_2(%arg0: i32, %arg1: i32) -> (i32, i32) {
    %c0_i32 = arith.constant 0 : i32
    %c0_i32_0 = arith.constant 0 : i32
    return %c0_i32, %arg1 : i32, i32
  }
  func.func @transform_3(%arg0: i32, %arg1: i32) -> (i32, i32) {
    %c0_i32 = arith.constant 0 : i32
    %c0_i32_0 = arith.constant 0 : i32
    return %c0_i32, %arg1 : i32, i32
  }
  func.func @transform_4(%arg0: i32, %arg1: i32) -> (i32, i32) {
    %c0_i32 = arith.constant 0 : i32
    %c0_i32_0 = arith.constant 0 : i32
    return %c0_i32, %arg1 : i32, i32
  }
  func.func @transform_5(%arg0: i32, %arg1: i32) -> (i32, i32) {
    %c0_i32 = arith.constant 0 : i32
    %c0_i32_0 = arith.constant 0 : i32
    return %c0_i32, %arg1 : i32, i32
  }
  func.func @transform_6(%arg0: i32, %arg1: i32) -> (i32, i32) {
    %c0_i32 = arith.constant 0 : i32
    return %arg0, %arg1 : i32, i32
  }
}

module attributes {stable_mosaic.version = 11 : i64} {
  func.func @kernel(%arg0: i32, %arg1: i32, %arg2: memref<128x72xbf16, #tpu.memory_space<vmem>>, %arg3: memref<72x8xbf16, #tpu.memory_space<vmem>>, %arg4: memref<1x8xf32, #tpu.memory_space<vmem>>, %arg5: memref<1x8xf32, #tpu.memory_space<vmem>>, %arg6: memref<128x8xbf16, #tpu.memory_space<vmem>>) attributes {dimension_semantics = [#tpu.dimension_semantics<parallel>, #tpu.dimension_semantics<parallel>], iteration_bounds = array<i64: 1, 1>, scalar_prefetch = 0 : i64, scratch_operands = 0 : i64, tpu.core_type = #tpu.core_type<tc>, window_params = [{transform_indices = @transform_0, window_bounds = array<i64: 128, 72>}, {transform_indices = @transform_1, window_bounds = array<i64: 72, 8>}, {transform_indices = @transform_2, window_bounds = array<i64: 1, 8>}, {transform_indices = @transform_3, window_bounds = array<i64: 1, 8>}, {transform_indices = @transform_4, window_bounds = array<i64: 128, 8>}]} {
    %c0 = arith.constant 0 : index
    %c0_0 = arith.constant 0 : index
    %0 = vector.load %arg2[%c0, %c0_0] : memref<128x72xbf16, #tpu.memory_space<vmem>>, vector<128x72xbf16>
    %c0_1 = arith.constant 0 : index
    %c0_2 = arith.constant 0 : index
    %1 = vector.load %arg3[%c0_1, %c0_2] : memref<72x8xbf16, #tpu.memory_space<vmem>>, vector<72x8xbf16>
    %cst = arith.constant dense<0.000000e+00> : vector<128x8xf32>
    %2 = tpu.matmul %0, %1, %cst {dimension_numbers = #tpu.dot_dimension_numbers<[1], [0], [0], [1], [0, 0, 1, 1], [], []>} : vector<128x72xbf16>, vector<72x8xbf16>, vector<128x8xf32> -> vector<128x8xf32>
    %c0_3 = arith.constant 0 : index
    %c0_4 = arith.constant 0 : index
    %3 = vector.load %arg4[%c0_3, %c0_4] : memref<1x8xf32, #tpu.memory_space<vmem>>, vector<1x8xf32>
    %4 = vector.broadcast %3 : vector<1x8xf32> to vector<128x8xf32>
    %5 = arith.mulf %2, %4 : vector<128x8xf32>
    %c0_5 = arith.constant 0 : index
    %c0_6 = arith.constant 0 : index
    %6 = vector.load %arg5[%c0_5, %c0_6] : memref<1x8xf32, #tpu.memory_space<vmem>>, vector<1x8xf32>
    %7 = vector.broadcast %6 : vector<1x8xf32> to vector<128x8xf32>
    %8 = arith.addf %5, %7 : vector<128x8xf32>
    %9 = arith.negf %8 : vector<128x8xf32>
    %10 = math.exp %9 : vector<128x8xf32>
    %cst_7 = arith.constant 1.000000e+00 : f32
    %11 = vector.broadcast %cst_7 : f32 to vector<128x8xf32>
    %12 = arith.addf %11, %10 : vector<128x8xf32>
    %13 = arith.divf %11, %12 : vector<128x8xf32>
    %14 = arith.mulf %8, %13 : vector<128x8xf32>
    %15 = arith.truncf %14 : vector<128x8xf32> to vector<128x8xbf16>
    %c0_8 = arith.constant 0 : index
    %c0_9 = arith.constant 0 : index
    %16 = vector.load %arg6[%c0_8, %c0_9] : memref<128x8xbf16, #tpu.memory_space<vmem>>, vector<128x8xbf16>
    tpu.vector_store %arg6[%c0_8, %c0_9], %15 {strides = array<i32>} : memref<128x8xbf16, #tpu.memory_space<vmem>>, vector<128x8xbf16>,
    return
  }
  func.func @transform_0(%arg0: i32, %arg1: i32) -> (i32, i32) {
    %c0_i32 = arith.constant 0 : i32
    %c0_i32_0 = arith.constant 0 : i32
    return %arg0, %c0_i32 : i32, i32
  }
  func.func @transform_1(%arg0: i32, %arg1: i32) -> (i32, i32) {
    %c0_i32 = arith.constant 0 : i32
    %c0_i32_0 = arith.constant 0 : i32
    return %c0_i32, %arg1 : i32, i32
  }
  func.func @transform_2(%arg0: i32, %arg1: i32) -> (i32, i32) {
    %c0_i32 = arith.constant 0 : i32
    %c0_i32_0 = arith.constant 0 : i32
    return %c0_i32, %arg1 : i32, i32
  }
  func.func @transform_3(%arg0: i32, %arg1: i32) -> (i32, i32) {
    %c0_i32 = arith.constant 0 : i32
    %c0_i32_0 = arith.constant 0 : i32
    return %c0_i32, %arg1 : i32, i32
  }
  func.func @transform_4(%arg0: i32, %arg1: i32) -> (i32, i32) {
    %c0_i32 = arith.constant 0 : i32
    return %arg0, %arg1 : i32, i32
  }
}

module attributes {stable_mosaic.version = 11 : i64} {
  func.func @kernel(%arg0: i32, %arg1: i32, %arg2: memref<32x144xbf16, #tpu.memory_space<vmem>>, %arg3: memref<144x16xbf16, #tpu.memory_space<vmem>>, %arg4: memref<1x16xf32, #tpu.memory_space<vmem>>, %arg5: memref<1x16xf32, #tpu.memory_space<vmem>>, %arg6: memref<32x16xbf16, #tpu.memory_space<vmem>>) attributes {dimension_semantics = [#tpu.dimension_semantics<parallel>, #tpu.dimension_semantics<parallel>], iteration_bounds = array<i64: 1, 1>, scalar_prefetch = 0 : i64, scratch_operands = 0 : i64, tpu.core_type = #tpu.core_type<tc>, window_params = [{transform_indices = @transform_0, window_bounds = array<i64: 32, 144>}, {transform_indices = @transform_1, window_bounds = array<i64: 144, 16>}, {transform_indices = @transform_2, window_bounds = array<i64: 1, 16>}, {transform_indices = @transform_3, window_bounds = array<i64: 1, 16>}, {transform_indices = @transform_4, window_bounds = array<i64: 32, 16>}]} {
    %c0 = arith.constant 0 : index
    %c0_0 = arith.constant 0 : index
    %0 = vector.load %arg2[%c0, %c0_0] : memref<32x144xbf16, #tpu.memory_space<vmem>>, vector<32x144xbf16>
    %c0_1 = arith.constant 0 : index
    %c0_2 = arith.constant 0 : index
    %1 = vector.load %arg3[%c0_1, %c0_2] : memref<144x16xbf16, #tpu.memory_space<vmem>>, vector<144x16xbf16>
    %cst = arith.constant dense<0.000000e+00> : vector<32x16xf32>
    %2 = tpu.matmul %0, %1, %cst {dimension_numbers = #tpu.dot_dimension_numbers<[1], [0], [0], [1], [0, 0, 1, 1], [], []>} : vector<32x144xbf16>, vector<144x16xbf16>, vector<32x16xf32> -> vector<32x16xf32>
    %c0_3 = arith.constant 0 : index
    %c0_4 = arith.constant 0 : index
    %3 = vector.load %arg4[%c0_3, %c0_4] : memref<1x16xf32, #tpu.memory_space<vmem>>, vector<1x16xf32>
    %4 = vector.broadcast %3 : vector<1x16xf32> to vector<32x16xf32>
    %5 = arith.mulf %2, %4 : vector<32x16xf32>
    %c0_5 = arith.constant 0 : index
    %c0_6 = arith.constant 0 : index
    %6 = vector.load %arg5[%c0_5, %c0_6] : memref<1x16xf32, #tpu.memory_space<vmem>>, vector<1x16xf32>
    %7 = vector.broadcast %6 : vector<1x16xf32> to vector<32x16xf32>
    %8 = arith.addf %5, %7 : vector<32x16xf32>
    %9 = arith.negf %8 : vector<32x16xf32>
    %10 = math.exp %9 : vector<32x16xf32>
    %cst_7 = arith.constant 1.000000e+00 : f32
    %11 = vector.broadcast %cst_7 : f32 to vector<32x16xf32>
    %12 = arith.addf %11, %10 : vector<32x16xf32>
    %13 = arith.divf %11, %12 : vector<32x16xf32>
    %14 = arith.mulf %8, %13 : vector<32x16xf32>
    %15 = arith.truncf %14 : vector<32x16xf32> to vector<32x16xbf16>
    %c0_8 = arith.constant 0 : index
    %c0_9 = arith.constant 0 : index
    %16 = vector.load %arg6[%c0_8, %c0_9] : memref<32x16xbf16, #tpu.memory_space<vmem>>, vector<32x16xbf16>
    tpu.vector_store %arg6[%c0_8, %c0_9], %15 {strides = array<i32>} : memref<32x16xbf16, #tpu.memory_space<vmem>>, vector<32x16xbf16>,
    return
  }
  func.func @transform_0(%arg0: i32, %arg1: i32) -> (i32, i32) {
    %c0_i32 = arith.constant 0 : i32
    %c0_i32_0 = arith.constant 0 : i32
    return %arg0, %c0_i32 : i32, i32
  }
  func.func @transform_1(%arg0: i32, %arg1: i32) -> (i32, i32) {
    %c0_i32 = arith.constant 0 : i32
    %c0_i32_0 = arith.constant 0 : i32
    return %c0_i32, %arg1 : i32, i32
  }
  func.func @transform_2(%arg0: i32, %arg1: i32) -> (i32, i32) {
    %c0_i32 = arith.constant 0 : i32
    %c0_i32_0 = arith.constant 0 : i32
    return %c0_i32, %arg1 : i32, i32
  }
  func.func @transform_3(%arg0: i32, %arg1: i32) -> (i32, i32) {
    %c0_i32 = arith.constant 0 : i32
    %c0_i32_0 = arith.constant 0 : i32
    return %c0_i32, %arg1 : i32, i32
  }
  func.func @transform_4(%arg0: i32, %arg1: i32) -> (i32, i32) {
    %c0_i32 = arith.constant 0 : i32
    return %arg0, %arg1 : i32, i32
  }
}

module attributes {stable_mosaic.version = 11 : i64} {
  func.func @kernel(%arg0: i32, %arg1: i32, %arg2: memref<32x16xbf16, #tpu.memory_space<vmem>>, %arg3: memref<32x16xbf16, #tpu.memory_space<vmem>>, %arg4: memref<16x32xbf16, #tpu.memory_space<vmem>>, %arg5: memref<16x32xbf16, #tpu.memory_space<vmem>>, %arg6: memref<1x32xf32, #tpu.memory_space<vmem>>, %arg7: memref<1x32xf32, #tpu.memory_space<vmem>>, %arg8: memref<32x32xbf16, #tpu.memory_space<vmem>>) attributes {dimension_semantics = [#tpu.dimension_semantics<parallel>, #tpu.dimension_semantics<parallel>], iteration_bounds = array<i64: 1, 1>, scalar_prefetch = 0 : i64, scratch_operands = 0 : i64, tpu.core_type = #tpu.core_type<tc>, window_params = [{transform_indices = @transform_0, window_bounds = array<i64: 32, 16>}, {transform_indices = @transform_1, window_bounds = array<i64: 32, 16>}, {transform_indices = @transform_2, window_bounds = array<i64: 16, 32>}, {transform_indices = @transform_3, window_bounds = array<i64: 16, 32>}, {transform_indices = @transform_4, window_bounds = array<i64: 1, 32>}, {transform_indices = @transform_5, window_bounds = array<i64: 1, 32>}, {transform_indices = @transform_6, window_bounds = array<i64: 32, 32>}]} {
    %c0 = arith.constant 0 : index
    %c0_0 = arith.constant 0 : index
    %0 = vector.load %arg2[%c0, %c0_0] : memref<32x16xbf16, #tpu.memory_space<vmem>>, vector<32x16xbf16>
    %c0_1 = arith.constant 0 : index
    %c0_2 = arith.constant 0 : index
    %1 = vector.load %arg4[%c0_1, %c0_2] : memref<16x32xbf16, #tpu.memory_space<vmem>>, vector<16x32xbf16>
    %cst = arith.constant dense<0.000000e+00> : vector<32x32xf32>
    %2 = tpu.matmul %0, %1, %cst {dimension_numbers = #tpu.dot_dimension_numbers<[1], [0], [0], [1], [0, 0, 1, 1], [], []>} : vector<32x16xbf16>, vector<16x32xbf16>, vector<32x32xf32> -> vector<32x32xf32>
    %c0_3 = arith.constant 0 : index
    %c0_4 = arith.constant 0 : index
    %3 = vector.load %arg3[%c0_3, %c0_4] : memref<32x16xbf16, #tpu.memory_space<vmem>>, vector<32x16xbf16>
    %c0_5 = arith.constant 0 : index
    %c0_6 = arith.constant 0 : index
    %4 = vector.load %arg5[%c0_5, %c0_6] : memref<16x32xbf16, #tpu.memory_space<vmem>>, vector<16x32xbf16>
    %cst_7 = arith.constant dense<0.000000e+00> : vector<32x32xf32>
    %5 = tpu.matmul %3, %4, %cst_7 {dimension_numbers = #tpu.dot_dimension_numbers<[1], [0], [0], [1], [0, 0, 1, 1], [], []>} : vector<32x16xbf16>, vector<16x32xbf16>, vector<32x32xf32> -> vector<32x32xf32>
    %6 = arith.addf %2, %5 : vector<32x32xf32>
    %c0_8 = arith.constant 0 : index
    %c0_9 = arith.constant 0 : index
    %7 = vector.load %arg6[%c0_8, %c0_9] : memref<1x32xf32, #tpu.memory_space<vmem>>, vector<1x32xf32>
    %8 = vector.broadcast %7 : vector<1x32xf32> to vector<32x32xf32>
    %9 = arith.mulf %6, %8 : vector<32x32xf32>
    %c0_10 = arith.constant 0 : index
    %c0_11 = arith.constant 0 : index
    %10 = vector.load %arg7[%c0_10, %c0_11] : memref<1x32xf32, #tpu.memory_space<vmem>>, vector<1x32xf32>
    %11 = vector.broadcast %10 : vector<1x32xf32> to vector<32x32xf32>
    %12 = arith.addf %9, %11 : vector<32x32xf32>
    %13 = arith.negf %12 : vector<32x32xf32>
    %14 = math.exp %13 : vector<32x32xf32>
    %cst_12 = arith.constant 1.000000e+00 : f32
    %15 = vector.broadcast %cst_12 : f32 to vector<32x32xf32>
    %16 = arith.addf %15, %14 : vector<32x32xf32>
    %17 = arith.divf %15, %16 : vector<32x32xf32>
    %18 = arith.mulf %12, %17 : vector<32x32xf32>
    %19 = arith.truncf %18 : vector<32x32xf32> to vector<32x32xbf16>
    %c0_13 = arith.constant 0 : index
    %c0_14 = arith.constant 0 : index
    %20 = vector.load %arg8[%c0_13, %c0_14] : memref<32x32xbf16, #tpu.memory_space<vmem>>, vector<32x32xbf16>
    tpu.vector_store %arg8[%c0_13, %c0_14], %19 {strides = array<i32>} : memref<32x32xbf16, #tpu.memory_space<vmem>>, vector<32x32xbf16>,
    return
  }
  func.func @transform_0(%arg0: i32, %arg1: i32) -> (i32, i32) {
    %c0_i32 = arith.constant 0 : i32
    %c0_i32_0 = arith.constant 0 : i32
    return %arg0, %c0_i32 : i32, i32
  }
  func.func @transform_1(%arg0: i32, %arg1: i32) -> (i32, i32) {
    %c0_i32 = arith.constant 0 : i32
    %c0_i32_0 = arith.constant 0 : i32
    return %arg0, %c0_i32 : i32, i32
  }
  func.func @transform_2(%arg0: i32, %arg1: i32) -> (i32, i32) {
    %c0_i32 = arith.constant 0 : i32
    %c0_i32_0 = arith.constant 0 : i32
    return %c0_i32, %arg1 : i32, i32
  }
  func.func @transform_3(%arg0: i32, %arg1: i32) -> (i32, i32) {
    %c0_i32 = arith.constant 0 : i32
    %c0_i32_0 = arith.constant 0 : i32
    return %c0_i32, %arg1 : i32, i32
  }
  func.func @transform_4(%arg0: i32, %arg1: i32) -> (i32, i32) {
    %c0_i32 = arith.constant 0 : i32
    %c0_i32_0 = arith.constant 0 : i32
    return %c0_i32, %arg1 : i32, i32
  }
  func.func @transform_5(%arg0: i32, %arg1: i32) -> (i32, i32) {
    %c0_i32 = arith.constant 0 : i32
    %c0_i32_0 = arith.constant 0 : i32
    return %c0_i32, %arg1 : i32, i32
  }
  func.func @transform_6(%arg0: i32, %arg1: i32) -> (i32, i32) {
    %c0_i32 = arith.constant 0 : i32
    return %arg0, %arg1 : i32, i32
  }
}

module attributes {stable_mosaic.version = 11 : i64} {
  func.func @kernel(%arg0: i32, %arg1: i32, %arg2: memref<32x16xbf16, #tpu.memory_space<vmem>>, %arg3: memref<16x16xbf16, #tpu.memory_space<vmem>>, %arg4: memref<1x16xf32, #tpu.memory_space<vmem>>, %arg5: memref<1x16xf32, #tpu.memory_space<vmem>>, %arg6: memref<32x16xbf16, #tpu.memory_space<vmem>>) attributes {dimension_semantics = [#tpu.dimension_semantics<parallel>, #tpu.dimension_semantics<parallel>], iteration_bounds = array<i64: 1, 1>, scalar_prefetch = 0 : i64, scratch_operands = 0 : i64, tpu.core_type = #tpu.core_type<tc>, window_params = [{transform_indices = @transform_0, window_bounds = array<i64: 32, 16>}, {transform_indices = @transform_1, window_bounds = array<i64: 16, 16>}, {transform_indices = @transform_2, window_bounds = array<i64: 1, 16>}, {transform_indices = @transform_3, window_bounds = array<i64: 1, 16>}, {transform_indices = @transform_4, window_bounds = array<i64: 32, 16>}]} {
    %c0 = arith.constant 0 : index
    %c0_0 = arith.constant 0 : index
    %0 = vector.load %arg2[%c0, %c0_0] : memref<32x16xbf16, #tpu.memory_space<vmem>>, vector<32x16xbf16>
    %c0_1 = arith.constant 0 : index
    %c0_2 = arith.constant 0 : index
    %1 = vector.load %arg3[%c0_1, %c0_2] : memref<16x16xbf16, #tpu.memory_space<vmem>>, vector<16x16xbf16>
    %cst = arith.constant dense<0.000000e+00> : vector<32x16xf32>
    %2 = tpu.matmul %0, %1, %cst {dimension_numbers = #tpu.dot_dimension_numbers<[1], [0], [0], [1], [0, 0, 1, 1], [], []>} : vector<32x16xbf16>, vector<16x16xbf16>, vector<32x16xf32> -> vector<32x16xf32>
    %c0_3 = arith.constant 0 : index
    %c0_4 = arith.constant 0 : index
    %3 = vector.load %arg4[%c0_3, %c0_4] : memref<1x16xf32, #tpu.memory_space<vmem>>, vector<1x16xf32>
    %4 = vector.broadcast %3 : vector<1x16xf32> to vector<32x16xf32>
    %5 = arith.mulf %2, %4 : vector<32x16xf32>
    %c0_5 = arith.constant 0 : index
    %c0_6 = arith.constant 0 : index
    %6 = vector.load %arg5[%c0_5, %c0_6] : memref<1x16xf32, #tpu.memory_space<vmem>>, vector<1x16xf32>
    %7 = vector.broadcast %6 : vector<1x16xf32> to vector<32x16xf32>
    %8 = arith.addf %5, %7 : vector<32x16xf32>
    %9 = arith.negf %8 : vector<32x16xf32>
    %10 = math.exp %9 : vector<32x16xf32>
    %cst_7 = arith.constant 1.000000e+00 : f32
    %11 = vector.broadcast %cst_7 : f32 to vector<32x16xf32>
    %12 = arith.addf %11, %10 : vector<32x16xf32>
    %13 = arith.divf %11, %12 : vector<32x16xf32>
    %14 = arith.mulf %8, %13 : vector<32x16xf32>
    %15 = arith.truncf %14 : vector<32x16xf32> to vector<32x16xbf16>
    %c0_8 = arith.constant 0 : index
    %c0_9 = arith.constant 0 : index
    %16 = vector.load %arg6[%c0_8, %c0_9] : memref<32x16xbf16, #tpu.memory_space<vmem>>, vector<32x16xbf16>
    tpu.vector_store %arg6[%c0_8, %c0_9], %15 {strides = array<i32>} : memref<32x16xbf16, #tpu.memory_space<vmem>>, vector<32x16xbf16>,
    return
  }
  func.func @transform_0(%arg0: i32, %arg1: i32) -> (i32, i32) {
    %c0_i32 = arith.constant 0 : i32
    %c0_i32_0 = arith.constant 0 : i32
    return %arg0, %c0_i32 : i32, i32
  }
  func.func @transform_1(%arg0: i32, %arg1: i32) -> (i32, i32) {
    %c0_i32 = arith.constant 0 : i32
    %c0_i32_0 = arith.constant 0 : i32
    return %c0_i32, %arg1 : i32, i32
  }
  func.func @transform_2(%arg0: i32, %arg1: i32) -> (i32, i32) {
    %c0_i32 = arith.constant 0 : i32
    %c0_i32_0 = arith.constant 0 : i32
    return %c0_i32, %arg1 : i32, i32
  }
  func.func @transform_3(%arg0: i32, %arg1: i32) -> (i32, i32) {
    %c0_i32 = arith.constant 0 : i32
    %c0_i32_0 = arith.constant 0 : i32
    return %c0_i32, %arg1 : i32, i32
  }
  func.func @transform_4(%arg0: i32, %arg1: i32) -> (i32, i32) {
    %c0_i32 = arith.constant 0 : i32
    return %arg0, %arg1 : i32, i32
  }
}

module attributes {stable_mosaic.version = 11 : i64} {
  func.func @kernel(%arg0: i32, %arg1: i32, %arg2: memref<32x16xbf16, #tpu.memory_space<vmem>>, %arg3: memref<32x16xbf16, #tpu.memory_space<vmem>>, %arg4: memref<16x32xbf16, #tpu.memory_space<vmem>>, %arg5: memref<16x32xbf16, #tpu.memory_space<vmem>>, %arg6: memref<1x32xf32, #tpu.memory_space<vmem>>, %arg7: memref<1x32xf32, #tpu.memory_space<vmem>>, %arg8: memref<32x32xbf16, #tpu.memory_space<vmem>>) attributes {dimension_semantics = [#tpu.dimension_semantics<parallel>, #tpu.dimension_semantics<parallel>], iteration_bounds = array<i64: 1, 1>, scalar_prefetch = 0 : i64, scratch_operands = 0 : i64, tpu.core_type = #tpu.core_type<tc>, window_params = [{transform_indices = @transform_0, window_bounds = array<i64: 32, 16>}, {transform_indices = @transform_1, window_bounds = array<i64: 32, 16>}, {transform_indices = @transform_2, window_bounds = array<i64: 16, 32>}, {transform_indices = @transform_3, window_bounds = array<i64: 16, 32>}, {transform_indices = @transform_4, window_bounds = array<i64: 1, 32>}, {transform_indices = @transform_5, window_bounds = array<i64: 1, 32>}, {transform_indices = @transform_6, window_bounds = array<i64: 32, 32>}]} {
    %c0 = arith.constant 0 : index
    %c0_0 = arith.constant 0 : index
    %0 = vector.load %arg2[%c0, %c0_0] : memref<32x16xbf16, #tpu.memory_space<vmem>>, vector<32x16xbf16>
    %c0_1 = arith.constant 0 : index
    %c0_2 = arith.constant 0 : index
    %1 = vector.load %arg4[%c0_1, %c0_2] : memref<16x32xbf16, #tpu.memory_space<vmem>>, vector<16x32xbf16>
    %cst = arith.constant dense<0.000000e+00> : vector<32x32xf32>
    %2 = tpu.matmul %0, %1, %cst {dimension_numbers = #tpu.dot_dimension_numbers<[1], [0], [0], [1], [0, 0, 1, 1], [], []>} : vector<32x16xbf16>, vector<16x32xbf16>, vector<32x32xf32> -> vector<32x32xf32>
    %c0_3 = arith.constant 0 : index
    %c0_4 = arith.constant 0 : index
    %3 = vector.load %arg3[%c0_3, %c0_4] : memref<32x16xbf16, #tpu.memory_space<vmem>>, vector<32x16xbf16>
    %c0_5 = arith.constant 0 : index
    %c0_6 = arith.constant 0 : index
    %4 = vector.load %arg5[%c0_5, %c0_6] : memref<16x32xbf16, #tpu.memory_space<vmem>>, vector<16x32xbf16>
    %cst_7 = arith.constant dense<0.000000e+00> : vector<32x32xf32>
    %5 = tpu.matmul %3, %4, %cst_7 {dimension_numbers = #tpu.dot_dimension_numbers<[1], [0], [0], [1], [0, 0, 1, 1], [], []>} : vector<32x16xbf16>, vector<16x32xbf16>, vector<32x32xf32> -> vector<32x32xf32>
    %6 = arith.addf %2, %5 : vector<32x32xf32>
    %c0_8 = arith.constant 0 : index
    %c0_9 = arith.constant 0 : index
    %7 = vector.load %arg6[%c0_8, %c0_9] : memref<1x32xf32, #tpu.memory_space<vmem>>, vector<1x32xf32>
    %8 = vector.broadcast %7 : vector<1x32xf32> to vector<32x32xf32>
    %9 = arith.mulf %6, %8 : vector<32x32xf32>
    %c0_10 = arith.constant 0 : index
    %c0_11 = arith.constant 0 : index
    %10 = vector.load %arg7[%c0_10, %c0_11] : memref<1x32xf32, #tpu.memory_space<vmem>>, vector<1x32xf32>
    %11 = vector.broadcast %10 : vector<1x32xf32> to vector<32x32xf32>
    %12 = arith.addf %9, %11 : vector<32x32xf32>
    %13 = arith.negf %12 : vector<32x32xf32>
    %14 = math.exp %13 : vector<32x32xf32>
    %cst_12 = arith.constant 1.000000e+00 : f32
    %15 = vector.broadcast %cst_12 : f32 to vector<32x32xf32>
    %16 = arith.addf %15, %14 : vector<32x32xf32>
    %17 = arith.divf %15, %16 : vector<32x32xf32>
    %18 = arith.mulf %12, %17 : vector<32x32xf32>
    %19 = arith.truncf %18 : vector<32x32xf32> to vector<32x32xbf16>
    %c0_13 = arith.constant 0 : index
    %c0_14 = arith.constant 0 : index
    %20 = vector.load %arg8[%c0_13, %c0_14] : memref<32x32xbf16, #tpu.memory_space<vmem>>, vector<32x32xbf16>
    tpu.vector_store %arg8[%c0_13, %c0_14], %19 {strides = array<i32>} : memref<32x32xbf16, #tpu.memory_space<vmem>>, vector<32x32xbf16>,
    return
  }
  func.func @transform_0(%arg0: i32, %arg1: i32) -> (i32, i32) {
    %c0_i32 = arith.constant 0 : i32
    %c0_i32_0 = arith.constant 0 : i32
    return %arg0, %c0_i32 : i32, i32
  }
  func.func @transform_1(%arg0: i32, %arg1: i32) -> (i32, i32) {
    %c0_i32 = arith.constant 0 : i32
    %c0_i32_0 = arith.constant 0 : i32
    return %arg0, %c0_i32 : i32, i32
  }
  func.func @transform_2(%arg0: i32, %arg1: i32) -> (i32, i32) {
    %c0_i32 = arith.constant 0 : i32
    %c0_i32_0 = arith.constant 0 : i32
    return %c0_i32, %arg1 : i32, i32
  }
  func.func @transform_3(%arg0: i32, %arg1: i32) -> (i32, i32) {
    %c0_i32 = arith.constant 0 : i32
    %c0_i32_0 = arith.constant 0 : i32
    return %c0_i32, %arg1 : i32, i32
  }
  func.func @transform_4(%arg0: i32, %arg1: i32) -> (i32, i32) {
    %c0_i32 = arith.constant 0 : i32
    %c0_i32_0 = arith.constant 0 : i32
    return %c0_i32, %arg1 : i32, i32
  }
  func.func @transform_5(%arg0: i32, %arg1: i32) -> (i32, i32) {
    %c0_i32 = arith.constant 0 : i32
    %c0_i32_0 = arith.constant 0 : i32
    return %c0_i32, %arg1 : i32, i32
  }
  func.func @transform_6(%arg0: i32, %arg1: i32) -> (i32, i32) {
    %c0_i32 = arith.constant 0 : i32
    return %arg0, %arg1 : i32, i32
  }
}

module attributes {stable_mosaic.version = 11 : i64} {
  func.func @kernel(%arg0: i32, %arg1: i32, %arg2: memref<32x144xbf16, #tpu.memory_space<vmem>>, %arg3: memref<144x16xbf16, #tpu.memory_space<vmem>>, %arg4: memref<1x16xf32, #tpu.memory_space<vmem>>, %arg5: memref<1x16xf32, #tpu.memory_space<vmem>>, %arg6: memref<32x16xbf16, #tpu.memory_space<vmem>>, %arg7: memref<32x16xbf16, #tpu.memory_space<vmem>>) attributes {dimension_semantics = [#tpu.dimension_semantics<parallel>, #tpu.dimension_semantics<parallel>], iteration_bounds = array<i64: 1, 1>, scalar_prefetch = 0 : i64, scratch_operands = 0 : i64, tpu.core_type = #tpu.core_type<tc>, window_params = [{transform_indices = @transform_0, window_bounds = array<i64: 32, 144>}, {transform_indices = @transform_1, window_bounds = array<i64: 144, 16>}, {transform_indices = @transform_2, window_bounds = array<i64: 1, 16>}, {transform_indices = @transform_3, window_bounds = array<i64: 1, 16>}, {transform_indices = @transform_4, window_bounds = array<i64: 32, 16>}, {transform_indices = @transform_5, window_bounds = array<i64: 32, 16>}]} {
    %c0 = arith.constant 0 : index
    %c0_0 = arith.constant 0 : index
    %0 = vector.load %arg2[%c0, %c0_0] : memref<32x144xbf16, #tpu.memory_space<vmem>>, vector<32x144xbf16>
    %c0_1 = arith.constant 0 : index
    %c0_2 = arith.constant 0 : index
    %1 = vector.load %arg3[%c0_1, %c0_2] : memref<144x16xbf16, #tpu.memory_space<vmem>>, vector<144x16xbf16>
    %cst = arith.constant dense<0.000000e+00> : vector<32x16xf32>
    %2 = tpu.matmul %0, %1, %cst {dimension_numbers = #tpu.dot_dimension_numbers<[1], [0], [0], [1], [0, 0, 1, 1], [], []>} : vector<32x144xbf16>, vector<144x16xbf16>, vector<32x16xf32> -> vector<32x16xf32>
    %c0_3 = arith.constant 0 : index
    %c0_4 = arith.constant 0 : index
    %3 = vector.load %arg4[%c0_3, %c0_4] : memref<1x16xf32, #tpu.memory_space<vmem>>, vector<1x16xf32>
    %4 = vector.broadcast %3 : vector<1x16xf32> to vector<32x16xf32>
    %5 = arith.mulf %2, %4 : vector<32x16xf32>
    %c0_5 = arith.constant 0 : index
    %c0_6 = arith.constant 0 : index
    %6 = vector.load %arg5[%c0_5, %c0_6] : memref<1x16xf32, #tpu.memory_space<vmem>>, vector<1x16xf32>
    %7 = vector.broadcast %6 : vector<1x16xf32> to vector<32x16xf32>
    %8 = arith.addf %5, %7 : vector<32x16xf32>
    %9 = arith.negf %8 : vector<32x16xf32>
    %10 = math.exp %9 : vector<32x16xf32>
    %cst_7 = arith.constant 1.000000e+00 : f32
    %11 = vector.broadcast %cst_7 : f32 to vector<32x16xf32>
    %12 = arith.addf %11, %10 : vector<32x16xf32>
    %13 = arith.divf %11, %12 : vector<32x16xf32>
    %14 = arith.mulf %8, %13 : vector<32x16xf32>
    %c0_8 = arith.constant 0 : index
    %c0_9 = arith.constant 0 : index
    %15 = vector.load %arg6[%c0_8, %c0_9] : memref<32x16xbf16, #tpu.memory_space<vmem>>, vector<32x16xbf16>
    %16 = arith.extf %15 : vector<32x16xbf16> to vector<32x16xf32>
    %17 = arith.addf %14, %16 : vector<32x16xf32>
    %18 = arith.truncf %17 : vector<32x16xf32> to vector<32x16xbf16>
    %c0_10 = arith.constant 0 : index
    %c0_11 = arith.constant 0 : index
    %19 = vector.load %arg7[%c0_10, %c0_11] : memref<32x16xbf16, #tpu.memory_space<vmem>>, vector<32x16xbf16>
    tpu.vector_store %arg7[%c0_10, %c0_11], %18 {strides = array<i32>} : memref<32x16xbf16, #tpu.memory_space<vmem>>, vector<32x16xbf16>,
    return
  }
  func.func @transform_0(%arg0: i32, %arg1: i32) -> (i32, i32) {
    %c0_i32 = arith.constant 0 : i32
    %c0_i32_0 = arith.constant 0 : i32
    return %arg0, %c0_i32 : i32, i32
  }
  func.func @transform_1(%arg0: i32, %arg1: i32) -> (i32, i32) {
    %c0_i32 = arith.constant 0 : i32
    %c0_i32_0 = arith.constant 0 : i32
    return %c0_i32, %arg1 : i32, i32
  }
  func.func @transform_2(%arg0: i32, %arg1: i32) -> (i32, i32) {
    %c0_i32 = arith.constant 0 : i32
    %c0_i32_0 = arith.constant 0 : i32
    return %c0_i32, %arg1 : i32, i32
  }
  func.func @transform_3(%arg0: i32, %arg1: i32) -> (i32, i32) {
    %c0_i32 = arith.constant 0 : i32
    %c0_i32_0 = arith.constant 0 : i32
    return %c0_i32, %arg1 : i32, i32
  }
  func.func @transform_4(%arg0: i32, %arg1: i32) -> (i32, i32) {
    %c0_i32 = arith.constant 0 : i32
    return %arg0, %arg1 : i32, i32
  }
  func.func @transform_5(%arg0: i32, %arg1: i32) -> (i32, i32) {
    %c0_i32 = arith.constant 0 : i32
    return %arg0, %arg1 : i32, i32
  }
}

</mosaic_0001>

<bundles_post_ra>
// kernel: panet_forward.36
= control target key start
LH: loop header
LB: loop body
LE: loop exit
PB: predicated region body
PF: predicated region fallthrough
CT: control target
= control target key end

     0   :  { %vm48_vm0 = vcmask 261120   ;;  %vm170_vm1 = vcmask 125952   ;;  %s286_s1 = inlined_call_operand.vmem [shape: bf16[32,16], index: 1, kind: input, shape index: {}]   ;;  %s287_s0 = inlined_call_operand.vmem [shape: bf16[32,32], index: 0, kind: input, shape index: {}]   ;;  %s288_s2 = inlined_call_operand.vmem [shape: f32[1,16], index: 2, kind: input, shape index: {}]   ;;  %s289_s3 = inlined_call_operand.vmem [shape: f32[1,16], index: 3, kind: input, shape index: {}]   ;;  %s290_s4 = inlined_call_operand.vmem [shape: bf16[32,16], index: 4, kind: output, shape index: {}]  }
   0x1   :  { %v211_v0 = vld [vmem:[%s286_s1 + $0x8] sm:$0xff]   ;;  %v212_v1 = vld [vmem:[%s286_s1] sm:$0xff]  }
   0x2   :  { %203 = vmatprep.subr.bf16.mxu0 %v211_v0  ;;  %v213_v2 = vld [vmem:[%s287_s0] sm:$0xff]   ;;  %v214_v3 = vld [vmem:[%s287_s0 + $0x8] sm:$0xff]  }
   0x3   :  { %204 = vmatpush3.bf16.msra.mxu0 %v211_v0  ;;  %207 = vmatprep.mubr.msk.bf16.mxu0 %vm48_vm0, %v213_v2  ;;  %v185_v4 = vld [vmem:[%s288_s2] ss:$0 sm:$0xff] }
   0x4   :  { %205 = vmatprep.subr.bf16.mxu0 %v212_v1  ;;  %v186_v6 = vld [vmem:[%s289_s3] ss:$0 sm:$0xff] }
   0x7   :  { %206 = vmatpush3.bf16.msra.mxu0 %v212_v1 }
   0xa   :  { %208 = vmatmul.mubr.msk.bf16.vlgmr.msra.gmra.mxu0 %vm48_vm0, %v214_v3 }
  0xca   :  { %v209_v5 = vpop.f32.mrf.mxu0 }
  0xcb   :  { %v113_v7 = vmul.f32 %v209_v5, %v185_v4 }
  0xcc   :  { %v89_v8 = vpop.f32.mrf.mxu0 }
  0xcd   :  { %v124_v9 = vadd.f32 %v186_v6, %v113_v7  ;;  %v111_v10 = vmul.f32 %v185_v4, %v89_v8 }
  0xce   :  { %v210_v11 = vpop.f32.mrf.mxu0 }
  0xcf   :  { %v189_v12 = vmul.f32 -1.442695, %v124_v9  ;;  %v122_v13 = vadd.f32 %v186_v6, %v111_v10  ;;  %v114_v14 = vmul.f32 %v210_v11, %v185_v4 }
  0xd0   :  { %v92_v15 = vpop.f32.mrf.mxu0 }
  0xd1   :  { %215 = vpow2.f32 %v189_v12  ;;  %v187_v16 = vmul.f32 -1.442695, %v122_v13  ;;  %v125_v17 = vadd.f32 %v186_v6, %v114_v14  ;;  %v112_v18 = vmul.f32 %v185_v4, %v92_v15 }
  0xd3   :  { %217 = vpow2.f32 %v187_v16  ;;  %v190_v19 = vmul.f32 -1.442695, %v125_v17  ;;  %v123_v20 = vadd.f32 %v186_v6, %v112_v18 }
  0xd5   :  { %219 = vpow2.f32 %v190_v19  ;;  %v188_v21 = vmul.f32 -1.442695, %v123_v20 }
  0xd7   :  { %221 = vpow2.f32 %v188_v21 }
  0xde   :  { %v216_v22 = vpop.eup %215 }
  0xdf   :  { %v140_v23 = vadd.f32 1.0, %v216_v22 }
  0xe0   :  { %v218_v24 = vpop.eup %217 }
  0xe1   :  { %223 = vrcp.f32 %v140_v23  ;;  %v138_v25 = vadd.f32 1.0, %v218_v24 }
  0xe2   :  { %v220_v26 = vpop.eup %219 }
  0xe3   :  { %225 = vrcp.f32 %v138_v25  ;;  %v141_v27 = vadd.f32 1.0, %v220_v26 }
  0xe4   :  { %v222_v28 = vpop.eup %221 }
  0xe5   :  { %227 = vrcp.f32 %v141_v27  ;;  %v139_v29 = vadd.f32 1.0, %v222_v28 }
  0xe7   :  { %229 = vrcp.f32 %v139_v29 }
  0xee   :  { %v224_v30 = vpop.eup %223 }
  0xef   :  { %v152_v31 = vmul.f32 %v224_v30, %v124_v9 }
  0xf0   :  { %v226_v32 = vpop.eup %225 }
  0xf1   :  { %v197_v33 = vpack.c.bf16 %v152_v31, %v152_v31  ;;  %v150_v34 = vmul.f32 %v226_v32, %v122_v13 }
  0xf2   :  { %v228_v35 = vpop.eup %227 }
  0xf3   :  { %173 = vst.msk [vmem:[%s290_s4 + $0x8] sm:$0xf] %vm170_vm1, %v197_v33  ;;  %v195_v36 = vpack.c.bf16 %v150_v34, %v150_v34  ;;  %v153_v37 = vmul.f32 %v228_v35, %v125_v17 }
  0xf4   :  { %v230_v38 = vpop.eup %229 }
  0xf5   :  { %171 = vst.msk [vmem:[%s290_s4] sm:$0xf] %vm170_vm1, %v195_v36  ;;  %v198_v39 = vpack.c.bf16 %v153_v37, %v153_v37  ;;  %v151_v40 = vmul.f32 %v230_v38, %v123_v20 }
  0xf7   :  { %174 = vst.msk [vmem:[%s290_s4 + $0xc] sm:$0xf] %vm170_vm1, %v198_v39  ;;  %v196_v41 = vpack.c.bf16 %v151_v40, %v151_v40 }
  0xf9   :  { %172 = vst.msk [vmem:[%s290_s4 + $0x4] sm:$0xf] %vm170_vm1, %v196_v41 }

// kernel: panet_forward.38
= control target key start
LH: loop header
LB: loop body
LE: loop exit
PB: predicated region body
PF: predicated region fallthrough
CT: control target
= control target key end

     0   :  { %vm100_vm0 = vcmask 1043456   ;;  %vm75_vm1 = vcmask 64512   ;;  %vm423_vm2 = vcmask 60416   ;;  %s843_s1 = inlined_call_operand.vmem [shape: bf16[8,8], index: 1, kind: input, shape index: {}]   ;;  %s844_s0 = inlined_call_operand.vmem [shape: bf16[128,8], index: 0, kind: input, shape index: {}]   ;;  %s845_s2 = inlined_call_operand.vmem [shape: f32[1,8], index: 2, kind: input, shape index: {}]   ;;  %s846_s3 = inlined_call_operand.vmem [shape: f32[1,8], index: 3, kind: input, shape index: {}]   ;;  %s847_s4 = inlined_call_operand.vmem [shape: bf16[128,8], index: 4, kind: output, shape index: {}]  }
   0x1   :  { %v34_v0 = vld [vmem:[%s843_s1] sm:$0xf]  ;;  %v543_v4 = vld [vmem:[%s844_s0 + $0x8] sm:$0xff]   ;;  %v545_v6 = vld [vmem:[%s844_s0 + $0x10] sm:$0xff]  }
   0x2   :  { %539 = vmatprep.subr.msk.bf16.mxu0 %vm100_vm0, %v34_v0  ;;  %540 = vmatprep.subr.msk.bf16.mxu1 %vm100_vm0, %v34_v0  ;;  %v102_v1 = vsel %vm100_vm0, %v34_v0, 0  ;;  %v541_v2 = vld [vmem:[%s844_s0] sm:$0xff]   ;;  %v544_v5 = vld [vmem:[%s844_s0 + $0x28] sm:$0xff]   ;;  %v546_v7 = vld [vmem:[%s844_s0 + $0x30] sm:$0xff]  }
   0x3   :  { %520 = vmatpush3.bf16.msra.mxu0 %v102_v1  ;;  %538 = vmatpush3.bf16.msra.mxu1 %v102_v1  ;;  %v542_v3 = vld [vmem:[%s844_s0 + $0x20] sm:$0xff]   ;;  %v547_v8 = vld [vmem:[%s844_s0 + $0x18] sm:$0xff]  }
   0x4   :  { %521 = vmatprep.mubr.msk.bf16.mxu0 %vm75_vm1, %v541_v2  ;;  %529 = vmatprep.mubr.msk.bf16.mxu1 %vm75_vm1, %v542_v3  ;;  %v548_v9 = vld [vmem:[%s844_s0 + $0x38] sm:$0xff]   ;;  %v676_v10 = vld [vmem:[%s845_s2] ss:$0 sm:$0xff] }
   0x5   :  { %v681_v12 = vld [vmem:[%s846_s3] ss:$0 sm:$0xff] }
   0x6   :  { %522 = vmatmul.mubr.msk.bf16.vlgmr.msra.gmra.mxu0 %vm75_vm1, %v543_v4  ;;  %530 = vmatmul.mubr.msk.bf16.vlgmr.msra.gmra.mxu1 %vm75_vm1, %v544_v5 }
   0x7   :  { %525 = vmatprep.mubr.msk.bf16.mxu0 %vm75_vm1, %v545_v6  ;;  %533 = vmatprep.mubr.msk.bf16.mxu1 %vm75_vm1, %v546_v7 }
   0xe   :  { %526 = vmatmul.mubr.msk.bf16.gmra.mxu0 %vm75_vm1, %v547_v8  ;;  %534 = vmatmul.mubr.msk.bf16.gmra.mxu1 %vm75_vm1, %v548_v9 }
  0xc6   :  { %v523_v11 = vpop.f32.mrf.mxu0  ;;  %v531_v14 = vpop.f32.mrf.mxu1 }
  0xc7   :  { %v210_v13 = vmul.f32 %v523_v11, %v676_v10  ;;  %v218_v15 = vmul.f32 %v531_v14, %v676_v10 }
  0xc8   :  { %v138_v16 = vpop.f32.mrf.mxu0  ;;  %v170_v19 = vpop.f32.mrf.mxu1 }
  0xc9   :  { %v686_v17 = vadd.f32 %v681_v12, %v210_v13  ;;  %v208_v18 = vmul.f32 %v676_v10, %v138_v16  ;;  %v690_v20 = vadd.f32 %v681_v12, %v218_v15  ;;  %v216_v21 = vmul.f32 %v676_v10, %v170_v19 }
  0xca   :  { %v524_v22 = vpop.f32.mrf.mxu0  ;;  %v532_v26 = vpop.f32.mrf.mxu1 }
  0xcb   :  { %v464_v23 = vmul.f32 -1.442695, %v686_v17  ;;  %v695_v24 = vadd.f32 %v681_v12, %v208_v18  ;;  %v211_v25 = vmul.f32 %v524_v22, %v676_v10  ;;  %v472_v27 = vmul.f32 -1.442695, %v690_v20 }
  0xcc   :  { %v700_v28 = vadd.f32 %v681_v12, %v216_v21  ;;  %v219_v29 = vmul.f32 %v532_v26, %v676_v10  ;;  %v141_v30 = vpop.f32.mrf.mxu0  ;;  %v173_v34 = vpop.f32.mrf.mxu1 }
  0xcd   :  { %549 = vpow2.f32 %v464_v23  ;;  %v462_v31 = vmul.f32 -1.442695, %v695_v24  ;;  %v705_v32 = vadd.f32 %v681_v12, %v211_v25  ;;  %v209_v33 = vmul.f32 %v676_v10, %v141_v30 }
  0xce   :  { %551 = vpow2.f32 %v472_v27  ;;  %v470_v35 = vmul.f32 -1.442695, %v700_v28  ;;  %v710_v36 = vadd.f32 %v681_v12, %v219_v29  ;;  %v217_v37 = vmul.f32 %v676_v10, %v173_v34  ;;  %v527_v38 = vpop.f32.mrf.mxu0  ;;  %v535_v42 = vpop.f32.mrf.mxu1 }
  0xcf   :  { %553 = vpow2.f32 %v462_v31  ;;  %v465_v39 = vmul.f32 -1.442695, %v705_v32  ;;  %v715_v40 = vadd.f32 %v681_v12, %v209_v33  ;;  %v214_v41 = vmul.f32 %v527_v38, %v676_v10 }
  0xd0   :  { %555 = vpow2.f32 %v470_v35  ;;  %v473_v43 = vmul.f32 -1.442695, %v710_v36  ;;  %v720_v44 = vadd.f32 %v681_v12, %v217_v37  ;;  %v222_v45 = vmul.f32 %v535_v42, %v676_v10  ;;  %v154_v46 = vpop.f32.mrf.mxu0  ;;  %v186_v50 = vpop.f32.mrf.mxu1 }
  0xd1   :  { %557 = vpow2.f32 %v465_v39  ;;  %v463_v47 = vmul.f32 -1.442695, %v715_v40  ;;  %v725_v48 = vadd.f32 %v681_v12, %v214_v41  ;;  %v212_v49 = vmul.f32 %v676_v10, %v154_v46 }
  0xd2   :  { %559 = vpow2.f32 %v473_v43  ;;  %v471_v51 = vmul.f32 -1.442695, %v720_v44  ;;  %v730_v52 = vadd.f32 %v681_v12, %v222_v45  ;;  %v220_v53 = vmul.f32 %v676_v10, %v186_v50  ;;  %v528_v54 = vpop.f32.mrf.mxu0  ;;  %v536_v58 = vpop.f32.mrf.mxu1 }
  0xd3   :  { %561 = vpow2.f32 %v463_v47  ;;  %v468_v55 = vmul.f32 -1.442695, %v725_v48  ;;  %v735_v56 = vadd.f32 %v681_v12, %v212_v49  ;;  %v215_v57 = vmul.f32 %v528_v54, %v676_v10 }
  0xd4   :  { %563 = vpow2.f32 %v471_v51  ;;  %v476_v59 = vmul.f32 -1.442695, %v730_v52  ;;  %v740_v60 = vadd.f32 %v681_v12, %v220_v53  ;;  %v223_v61 = vmul.f32 %v536_v58, %v676_v10  ;;  %v157_v62 = vpop.f32.mrf.mxu0  ;;  %v189_v2 = vpop.f32.mrf.mxu1 }
  0xd5   :  { %565 = vpow2.f32 %v468_v55  ;;  %v466_v63 = vmul.f32 -1.442695, %v735_v56  ;;  %v745_v0 = vadd.f32 %v681_v12, %v215_v57  ;;  %v213_v1 = vmul.f32 %v676_v10, %v157_v62 }
  0xd6   :  { %567 = vpow2.f32 %v476_v59  ;;  %v474_v3 = vmul.f32 -1.442695, %v740_v60  ;;  %v750_v4 = vadd.f32 %v681_v12, %v223_v61  ;;  %v221_v5 = vmul.f32 %v676_v10, %v189_v2 }
  0xd7   :  { %569 = vpow2.f32 %v466_v63  ;;  %v469_v6 = vmul.f32 -1.442695, %v745_v0  ;;  %v755_v7 = vadd.f32 %v681_v12, %v213_v1 }
  0xd8   :  { %571 = vpow2.f32 %v474_v3  ;;  %v477_v8 = vmul.f32 -1.442695, %v750_v4  ;;  %v759_v9 = vadd.f32 %v681_v12, %v221_v5 }
  0xd9   :  { %573 = vpow2.f32 %v469_v6  ;;  %v467_v11 = vmul.f32 -1.442695, %v755_v7 }
  0xda   :  { %v550_v13 = vpop.eup %549  ;;  %575 = vpow2.f32 %v477_v8  ;;  %v475_v14 = vmul.f32 -1.442695, %v759_v9 }
  0xdb   :  { %v552_v10 = vpop.eup %551  ;;  %v297_v15 = vadd.f32 1.0, %v550_v13  ;;  %577 = vpow2.f32 %v467_v11 }
  0xdc   :  { %v554_v16 = vpop.eup %553  ;;  %v305_v18 = vadd.f32 1.0, %v552_v10  ;;  %579 = vpow2.f32 %v475_v14 }
  0xdd   :  { %v556_v19 = vpop.eup %555  ;;  %581 = vrcp.f32 %v297_v15  ;;  %v295_v21 = vadd.f32 1.0, %v554_v16 }
  0xde   :  { %v558_v22 = vpop.eup %557  ;;  %583 = vrcp.f32 %v305_v18  ;;  %v303_v12 = vadd.f32 1.0, %v556_v19 }
  0xdf   :  { %v560_v23 = vpop.eup %559  ;;  %585 = vrcp.f32 %v295_v21  ;;  %v298_v25 = vadd.f32 1.0, %v558_v22 }
  0xe0   :  { %v562_v26 = vpop.eup %561  ;;  %587 = vrcp.f32 %v303_v12  ;;  %v306_v27 = vadd.f32 1.0, %v560_v23 }
  0xe1   :  { %v564_v29 = vpop.eup %563  ;;  %589 = vrcp.f32 %v298_v25  ;;  %v296_v30 = vadd.f32 1.0, %v562_v26 }
  0xe2   :  { %v566_v31 = vpop.eup %565  ;;  %591 = vrcp.f32 %v306_v27  ;;  %v304_v33 = vadd.f32 1.0, %v564_v29 }
  0xe3   :  { %v568_v34 = vpop.eup %567  ;;  %593 = vrcp.f32 %v296_v30  ;;  %v301_v35 = vadd.f32 1.0, %v566_v31 }
  0xe4   :  { %v570_v37 = vpop.eup %569  ;;  %595 = vrcp.f32 %v304_v33  ;;  %v309_v38 = vadd.f32 1.0, %v568_v34 }
  0xe5   :  { %v572_v39 = vpop.eup %571  ;;  %597 = vrcp.f32 %v301_v35  ;;  %v299_v41 = vadd.f32 1.0, %v570_v37 }
  0xe6   :  { %v574_v42 = vpop.eup %573  ;;  %599 = vrcp.f32 %v309_v38  ;;  %v307_v43 = vadd.f32 1.0, %v572_v39 }
  0xe7   :  { %v576_v45 = vpop.eup %575  ;;  %601 = vrcp.f32 %v299_v41  ;;  %v302_v46 = vadd.f32 1.0, %v574_v42 }
  0xe8   :  { %v578_v47 = vpop.eup %577  ;;  %603 = vrcp.f32 %v307_v43  ;;  %v310_v49 = vadd.f32 1.0, %v576_v45 }
  0xe9   :  { %v580_v50 = vpop.eup %579  ;;  %605 = vrcp.f32 %v302_v46  ;;  %v300_v51 = vadd.f32 1.0, %v578_v47 }
  0xea   :  { %v582_v53 = vpop.eup %581  ;;  %607 = vrcp.f32 %v310_v49  ;;  %v308_v54 = vadd.f32 1.0, %v580_v50 }
  0xeb   :  { %v584_v55 = vpop.eup %583  ;;  %v345_v57 = vmul.f32 %v582_v53, %v686_v17  ;;  %609 = vrcp.f32 %v300_v51 }
  0xec   :  { %v586_v58 = vpop.eup %585  ;;  %v353_v59 = vmul.f32 %v584_v55, %v690_v20  ;;  %611 = vrcp.f32 %v308_v54 }
  0xed   :  { %v588_v61 = vpop.eup %587  ;;  %v496_v62 = vpack.c.bf16 %v345_v57, %v345_v57  ;;  %v343_v63 = vmul.f32 %v586_v58, %v695_v24 }
  0xee   :  { %v590_v1 = vpop.eup %589  ;;  %v504_v2 = vpack.c.bf16 %v353_v59, %v353_v59  ;;  %v351_v3 = vmul.f32 %v588_v61, %v700_v28 }
  0xef   :  { %v592_v5 = vpop.eup %591  ;;  %426 = vst.msk [vmem:[%s847_s4 + $0x8] sm:$0xf] %vm423_vm2, %v496_v62  ;;  %v494_v17 = vpack.c.bf16 %v343_v63, %v343_v63  ;;  %v346_v6 = vmul.f32 %v590_v1, %v705_v32 }
  0xf0   :  { %v594_v8 = vpop.eup %593  ;;  %434 = vst.msk [vmem:[%s847_s4 + $0x28] sm:$0xf] %vm423_vm2, %v504_v2  ;;  %v502_v20 = vpack.c.bf16 %v351_v3, %v351_v3  ;;  %v354_v24 = vmul.f32 %v592_v5, %v710_v36 }
  0xf1   :  { %v596_v11 = vpop.eup %595  ;;  %424 = vst.msk [vmem:[%s847_s4] sm:$0xf] %vm423_vm2, %v494_v17  ;;  %v497_v28 = vpack.c.bf16 %v346_v6, %v346_v6  ;;  %v344_v13 = vmul.f32 %v594_v8, %v715_v40 }
  0xf2   :  { %v598_v14 = vpop.eup %597  ;;  %432 = vst.msk [vmem:[%s847_s4 + $0x20] sm:$0xf] %vm423_vm2, %v502_v20  ;;  %v505_v32 = vpack.c.bf16 %v354_v24, %v354_v24  ;;  %v352_v10 = vmul.f32 %v596_v11, %v720_v44 }
  0xf3   :  { %v600_v15 = vpop.eup %599  ;;  %427 = vst.msk [vmem:[%s847_s4 + $0xc] sm:$0xf] %vm423_vm2, %v497_v28  ;;  %v495_v36 = vpack.c.bf16 %v344_v13, %v344_v13  ;;  %v349_v16 = vmul.f32 %v598_v14, %v725_v48 }
  0xf4   :  { %v602_v18 = vpop.eup %601  ;;  %435 = vst.msk [vmem:[%s847_s4 + $0x2c] sm:$0xf] %vm423_vm2, %v505_v32  ;;  %v503_v40 = vpack.c.bf16 %v352_v10, %v352_v10  ;;  %v357_v19 = vmul.f32 %v600_v15, %v730_v52 }
  0xf5   :  { %v604_v21 = vpop.eup %603  ;;  %425 = vst.msk [vmem:[%s847_s4 + $0x4] sm:$0xf] %vm423_vm2, %v495_v36  ;;  %v500_v44 = vpack.c.bf16 %v349_v16, %v349_v16  ;;  %v347_v22 = vmul.f32 %v602_v18, %v735_v56 }
  0xf6   :  { %v606_v12 = vpop.eup %605  ;;  %433 = vst.msk [vmem:[%s847_s4 + $0x24] sm:$0xf] %vm423_vm2, %v503_v40  ;;  %v508_v48 = vpack.c.bf16 %v357_v19, %v357_v19  ;;  %v355_v23 = vmul.f32 %v604_v21, %v740_v60 }
  0xf7   :  { %v608_v25 = vpop.eup %607  ;;  %430 = vst.msk [vmem:[%s847_s4 + $0x18] sm:$0xf] %vm423_vm2, %v500_v44  ;;  %v498_v52 = vpack.c.bf16 %v347_v22, %v347_v22  ;;  %v350_v26 = vmul.f32 %v606_v12, %v745_v0 }
  0xf8   :  { %v610_v27 = vpop.eup %609  ;;  %438 = vst.msk [vmem:[%s847_s4 + $0x38] sm:$0xf] %vm423_vm2, %v508_v48  ;;  %v506_v56 = vpack.c.bf16 %v355_v23, %v355_v23  ;;  %v358_v29 = vmul.f32 %v608_v25, %v750_v4 }
  0xf9   :  { %v612_v30 = vpop.eup %611  ;;  %428 = vst.msk [vmem:[%s847_s4 + $0x10] sm:$0xf] %vm423_vm2, %v498_v52  ;;  %v501_v60 = vpack.c.bf16 %v350_v26, %v350_v26  ;;  %v348_v31 = vmul.f32 %v610_v27, %v755_v7 }
  0xfa   :  { %436 = vst.msk [vmem:[%s847_s4 + $0x30] sm:$0xf] %vm423_vm2, %v506_v56  ;;  %v509_v0 = vpack.c.bf16 %v358_v29, %v358_v29  ;;  %v356_v33 = vmul.f32 %v612_v30, %v759_v9 }
  0xfb   :  { %431 = vst.msk [vmem:[%s847_s4 + $0x1c] sm:$0xf] %vm423_vm2, %v501_v60  ;;  %v499_v4 = vpack.c.bf16 %v348_v31, %v348_v31 }
  0xfc   :  { %439 = vst.msk [vmem:[%s847_s4 + $0x3c] sm:$0xf] %vm423_vm2, %v509_v0  ;;  %v507_v7 = vpack.c.bf16 %v356_v33, %v356_v33 }
  0xfd   :  { %429 = vst.msk [vmem:[%s847_s4 + $0x14] sm:$0xf] %vm423_vm2, %v499_v4 }
  0xfe   :  { %437 = vst.msk [vmem:[%s847_s4 + $0x34] sm:$0xf] %vm423_vm2, %v507_v7 }

// kernel: panet_forward.37
= control target key start
LH: loop header
LB: loop body
LE: loop exit
PB: predicated region body
PF: predicated region fallthrough
CT: control target
= control target key end

     0   :  { %vm106_vm0 = vcmask 130048   ;;  %vm617_vm1 = vcmask 125952   ;;  %s1133_s3 = inlined_call_operand.vmem [shape: bf16[16,16], index: 3, kind: input, shape index: {}]   ;;  %s1134_s2 = inlined_call_operand.vmem [shape: bf16[16,16], index: 2, kind: input, shape index: {}]   ;;  %s1135_s1 = inlined_call_operand.vmem [shape: bf16[128,16], index: 1, kind: input, shape index: {}]   ;;  %s1136_s0 = inlined_call_operand.vmem [shape: bf16[128,16], index: 0, kind: input, shape index: {}]   ;;  %s1137_s4 = inlined_call_operand.vmem [shape: f32[1,16], index: 4, kind: input, shape index: {}]   ;;  %s1138_s5 = inlined_call_operand.vmem [shape: f32[1,16], index: 5, kind: input, shape index: {}]   ;;  %s1139_s6 = inlined_call_operand.vmem [shape: bf16[128,16], index: 6, kind: output, shape index: {}]  }
   0x1   :  { %v776_v0 = vld [vmem:[%s1133_s3] sm:$0xff]   ;;  %v780_v4 = vld [vmem:[%s1135_s1 + $0x8] sm:$0xff]   ;;  %v782_v6 = vld [vmem:[%s1135_s1 + $0x10] sm:$0xff]  }
   0x2   :  { %v777_v1 = vld [vmem:[%s1134_s2] sm:$0xff]   ;;  %740 = vmatprep.subr.bf16.mxu0 %v776_v0  ;;  %v781_v5 = vld [vmem:[%s1136_s0 + $0x8] sm:$0xff]   ;;  %v783_v7 = vld [vmem:[%s1136_s0 + $0x10] sm:$0xff]  }
   0x3   :  { %v778_v2 = vld [vmem:[%s1135_s1] sm:$0xff]   ;;  %758 = vmatprep.subr.bf16.mxu1 %v777_v1  ;;  %741 = vmatpush3.bf16.msra.mxu0 %v776_v0  ;;  %v784_v8 = vld [vmem:[%s1135_s1 + $0x18] sm:$0xff]   ;;  %v788_v12 = vld [vmem:[%s1135_s1 + $0x28] sm:$0xff]  }
   0x4   :  { %v779_v3 = vld [vmem:[%s1136_s0] sm:$0xff]   ;;  %759 = vmatpush3.bf16.msra.mxu1 %v777_v1  ;;  %742 = vmatprep.mubr.msk.bf16.mxu0 %vm106_vm0, %v778_v2  ;;  %v785_v9 = vld [vmem:[%s1136_s0 + $0x18] sm:$0xff]   ;;  %v789_v13 = vld [vmem:[%s1136_s0 + $0x28] sm:$0xff]  }
   0x5   :  { %760 = vmatprep.mubr.msk.bf16.mxu1 %vm106_vm0, %v779_v3  ;;  %v786_v10 = vld [vmem:[%s1135_s1 + $0x20] sm:$0xff]   ;;  %v790_v14 = vld [vmem:[%s1135_s1 + $0x30] sm:$0xff]   ;;  %v792_v16 = vld [vmem:[%s1135_s1 + $0x38] sm:$0xff]  }
   0x6   :  { %743 = vmatmul.mubr.msk.bf16.vlgmr.msra.gmra.mxu0 %vm106_vm0, %v780_v4  ;;  %v787_v11 = vld [vmem:[%s1136_s0 + $0x20] sm:$0xff]   ;;  %v791_v15 = vld [vmem:[%s1136_s0 + $0x30] sm:$0xff]   ;;  %v793_v17 = vld [vmem:[%s1136_s0 + $0x38] sm:$0xff]  }
   0x7   :  { %761 = vmatmul.mubr.msk.bf16.vlgmr.msra.gmra.mxu1 %vm106_vm0, %v781_v5  ;;  %746 = vmatprep.mubr.msk.bf16.mxu0 %vm106_vm0, %v782_v6  ;;  %v966_v20 = vld [vmem:[%s1137_s4] ss:$0 sm:$0xff] }
   0x8   :  { %764 = vmatprep.mubr.msk.bf16.mxu1 %vm106_vm0, %v783_v7  ;;  %v971_v23 = vld [vmem:[%s1138_s5] ss:$0 sm:$0xff] }
   0xe   :  { %747 = vmatmul.mubr.msk.bf16.gmra.mxu0 %vm106_vm0, %v784_v8 }
   0xf   :  { %765 = vmatmul.mubr.msk.bf16.gmra.mxu1 %vm106_vm0, %v785_v9  ;;  %750 = vmatprep.mubr.msk.bf16.mxu0 %vm106_vm0, %v786_v10 }
  0x10   :  { %768 = vmatprep.mubr.msk.bf16.mxu1 %vm106_vm0, %v787_v11 }
  0x16   :  { %751 = vmatmul.mubr.msk.bf16.gmra.mxu0 %vm106_vm0, %v788_v12 }
  0x17   :  { %769 = vmatmul.mubr.msk.bf16.gmra.mxu1 %vm106_vm0, %v789_v13  ;;  %754 = vmatprep.mubr.msk.bf16.mxu0 %vm106_vm0, %v790_v14 }
  0x18   :  { %772 = vmatprep.mubr.msk.bf16.mxu1 %vm106_vm0, %v791_v15 }
  0x1e   :  { %755 = vmatmul.mubr.msk.bf16.gmra.mxu0 %vm106_vm0, %v792_v16 }
  0x1f   :  { %773 = vmatmul.mubr.msk.bf16.gmra.mxu1 %vm106_vm0, %v793_v17 }
  0xc6   :  { %v744_v18 = vpop.f32.mrf.mxu0 }
  0xc7   :  { %v762_v19 = vpop.f32.mrf.mxu1 }
  0xc8   :  { %v341_v21 = vadd.f32 %v762_v19, %v744_v18  ;;  %v165_v22 = vpop.f32.mrf.mxu0 }
  0xc9   :  { %v332_v24 = vpop.f32.mrf.mxu1 }
  0xca   :  { %v404_v25 = vmul.f32 %v966_v20, %v341_v21  ;;  %v333_v26 = vadd.f32 %v332_v24, %v165_v22  ;;  %v745_v27 = vpop.f32.mrf.mxu0 }
  0xcb   :  { %v763_v28 = vpop.f32.mrf.mxu1 }
  0xcc   :  { %v975_v29 = vadd.f32 %v971_v23, %v404_v25  ;;  %v402_v30 = vmul.f32 %v966_v20, %v333_v26  ;;  %v344_v31 = vadd.f32 %v763_v28, %v745_v27  ;;  %v168_v32 = vpop.f32.mrf.mxu0 }
  0xcd   :  { %v335_v33 = vpop.f32.mrf.mxu1 }
  0xce   :  { %v676_v34 = vmul.f32 -1.442695, %v975_v29  ;;  %v980_v35 = vadd.f32 %v971_v23, %v402_v30  ;;  %v405_v36 = vmul.f32 %v966_v20, %v344_v31  ;;  %v336_v37 = vadd.f32 %v335_v33, %v168_v32  ;;  %v748_v38 = vpop.f32.mrf.mxu0 }
  0xcf   :  { %v766_v39 = vpop.f32.mrf.mxu1 }
  0xd0   :  { %794 = vpow2.f32 %v676_v34  ;;  %v674_v40 = vmul.f32 -1.442695, %v980_v35  ;;  %v985_v41 = vadd.f32 %v971_v23, %v405_v36  ;;  %v403_v42 = vmul.f32 %v966_v20, %v336_v37  ;;  %v181_v43 = vpop.f32.mrf.mxu0 }
  0xd1   :  { %v357_v44 = vadd.f32 %v766_v39, %v748_v38  ;;  %v348_v45 = vpop.f32.mrf.mxu1 }
  0xd2   :  { %796 = vpow2.f32 %v674_v40  ;;  %v677_v46 = vmul.f32 -1.442695, %v985_v41  ;;  %v990_v47 = vadd.f32 %v971_v23, %v403_v42  ;;  %v349_v48 = vadd.f32 %v348_v45, %v181_v43  ;;  %v749_v49 = vpop.f32.mrf.mxu0 }
  0xd3   :  { %v408_v50 = vmul.f32 %v966_v20, %v357_v44  ;;  %v767_v51 = vpop.f32.mrf.mxu1 }
  0xd4   :  { %798 = vpow2.f32 %v677_v46  ;;  %v675_v52 = vmul.f32 -1.442695, %v990_v47  ;;  %v406_v53 = vmul.f32 %v966_v20, %v349_v48  ;;  %v360_v54 = vadd.f32 %v767_v51, %v749_v49  ;;  %v184_v55 = vpop.f32.mrf.mxu0 }
  0xd5   :  { %v996_v56 = vadd.f32 %v971_v23, %v408_v50  ;;  %v351_v57 = vpop.f32.mrf.mxu1 }
  0xd6   :  { %800 = vpow2.f32 %v675_v52  ;;  %v999_v58 = vadd.f32 %v971_v23, %v406_v53  ;;  %v409_v59 = vmul.f32 %v966_v20, %v360_v54  ;;  %v352_v60 = vadd.f32 %v351_v57, %v184_v55  ;;  %v752_v61 = vpop.f32.mrf.mxu0 }
  0xd7   :  { %v680_v62 = vmul.f32 -1.442695, %v996_v56  ;;  %v770_v63 = vpop.f32.mrf.mxu1 }
  0xd8   :  { %v678_v0 = vmul.f32 -1.442695, %v999_v58  ;;  %v1005_v1 = vadd.f32 %v971_v23, %v409_v59  ;;  %v407_v2 = vmul.f32 %v966_v20, %v352_v60  ;;  %v373_v3 = vadd.f32 %v770_v63, %v752_v61  ;;  %v197_v4 = vpop.f32.mrf.mxu0 }
  0xd9   :  { %802 = vpow2.f32 %v680_v62  ;;  %v364_v5 = vpop.f32.mrf.mxu1 }
  0xda   :  { %804 = vpow2.f32 %v678_v0  ;;  %v681_v6 = vmul.f32 -1.442695, %v1005_v1  ;;  %v1010_v7 = vadd.f32 %v971_v23, %v407_v2  ;;  %v412_v8 = vmul.f32 %v966_v20, %v373_v3  ;;  %v753_v9 = vpop.f32.mrf.mxu0 }
  0xdb   :  { %v365_v10 = vadd.f32 %v364_v5, %v197_v4  ;;  %v771_v11 = vpop.f32.mrf.mxu1 }
  0xdc   :  { %806 = vpow2.f32 %v681_v6  ;;  %v679_v12 = vmul.f32 -1.442695, %v1010_v7  ;;  %v1015_v13 = vadd.f32 %v971_v23, %v412_v8  ;;  %v376_v14 = vadd.f32 %v771_v11, %v753_v9  ;;  %v200_v15 = vpop.f32.mrf.mxu0 }
  0xdd   :  { %v795_v16 = vpop.eup %794  ;;  %v410_v17 = vmul.f32 %v966_v20, %v365_v10  ;;  %v367_v18 = vpop.f32.mrf.mxu1 }
  0xde   :  { %v491_v19 = vadd.f32 1.0, %v795_v16  ;;  %808 = vpow2.f32 %v679_v12  ;;  %v684_v21 = vmul.f32 -1.442695, %v1015_v13  ;;  %v413_v22 = vmul.f32 %v966_v20, %v376_v14  ;;  %v756_v24 = vpop.f32.mrf.mxu0 }
  0xdf   :  { %v797_v25 = vpop.eup %796  ;;  %v1021_v26 = vadd.f32 %v971_v23, %v410_v17  ;;  %v368_v27 = vadd.f32 %v367_v18, %v200_v15  ;;  %v774_v28 = vpop.f32.mrf.mxu1 }
  0xe0   :  { %810 = vrcp.f32 %v491_v19  ;;  %v489_v30 = vadd.f32 1.0, %v797_v25  ;;  %v1024_v31 = vadd.f32 %v971_v23, %v413_v22  ;;  %v389_v32 = vadd.f32 %v774_v28, %v756_v24  ;;  %v213_v33 = vpop.f32.mrf.mxu0 }
  0xe1   :  { %v799_v34 = vpop.eup %798  ;;  %812 = vpow2.f32 %v684_v21  ;;  %v682_v36 = vmul.f32 -1.442695, %v1021_v26  ;;  %v411_v37 = vmul.f32 %v966_v20, %v368_v27  ;;  %v380_v38 = vpop.f32.mrf.mxu1 }
  0xe2   :  { %814 = vrcp.f32 %v489_v30  ;;  %v492_v39 = vadd.f32 1.0, %v799_v34  ;;  %v685_v40 = vmul.f32 -1.442695, %v1024_v31  ;;  %v416_v42 = vmul.f32 %v966_v20, %v389_v32  ;;  %v757_v43 = vpop.f32.mrf.mxu0 }
  0xe3   :  { %v801_v44 = vpop.eup %800  ;;  %816 = vpow2.f32 %v682_v36  ;;  %v1031_v45 = vadd.f32 %v971_v23, %v411_v37  ;;  %v381_v46 = vadd.f32 %v380_v38, %v213_v33  ;;  %v775_v48 = vpop.f32.mrf.mxu1 }
  0xe4   :  { %818 = vrcp.f32 %v492_v39  ;;  %v490_v49 = vadd.f32 1.0, %v801_v44  ;;  %v1034_v50 = vadd.f32 %v971_v23, %v416_v42  ;;  %v392_v51 = vadd.f32 %v775_v48, %v757_v43  ;;  %v216_v52 = vpop.f32.mrf.mxu0 }
  0xe5   :  { %820 = vpow2.f32 %v685_v40  ;;  %v683_v53 = vmul.f32 -1.442695, %v1031_v45  ;;  %v414_v54 = vmul.f32 %v966_v20, %v381_v46  ;;  %v383_v55 = vpop.f32.mrf.mxu1 }
  0xe6   :  { %v803_v57 = vpop.eup %802  ;;  %822 = vrcp.f32 %v490_v49  ;;  %v688_v59 = vmul.f32 -1.442695, %v1034_v50  ;;  %v417_v60 = vmul.f32 %v966_v20, %v392_v51  ;;  %v384_v61 = vadd.f32 %v383_v55, %v216_v52 }
  0xe7   :  { %v805_v62 = vpop.eup %804  ;;  %v495_v63 = vadd.f32 1.0, %v803_v57  ;;  %824 = vpow2.f32 %v683_v53  ;;  %v1041_v0 = vadd.f32 %v971_v23, %v414_v54 }
  0xe8   :  { %v493_v2 = vadd.f32 1.0, %v805_v62  ;;  %826 = vpow2.f32 %v688_v59  ;;  %v1044_v3 = vadd.f32 %v971_v23, %v417_v60  ;;  %v415_v4 = vmul.f32 %v966_v20, %v384_v61 }
  0xe9   :  { %v807_v5 = vpop.eup %806  ;;  %828 = vrcp.f32 %v495_v63  ;;  %v686_v6 = vmul.f32 -1.442695, %v1041_v0 }
  0xea   :  { %830 = vrcp.f32 %v493_v2  ;;  %v496_v8 = vadd.f32 1.0, %v807_v5  ;;  %v689_v9 = vmul.f32 -1.442695, %v1044_v3  ;;  %v1050_v10 = vadd.f32 %v971_v23, %v415_v4 }
  0xeb   :  { %v809_v11 = vpop.eup %808  ;;  %832 = vpow2.f32 %v686_v6 }
  0xec   :  { %834 = vrcp.f32 %v496_v8  ;;  %v494_v12 = vadd.f32 1.0, %v809_v11  ;;  %v687_v14 = vmul.f32 -1.442695, %v1050_v10 }
  0xed   :  { %v811_v15 = vpop.eup %810  ;;  %836 = vpow2.f32 %v689_v9 }
  0xee   :  { %v813_v20 = vpop.eup %812  ;;  %v539_v16 = vmul.f32 %v811_v15, %v975_v29  ;;  %838 = vrcp.f32 %v494_v12 }
  0xef   :  { %v815_v17 = vpop.eup %814  ;;  %v499_v18 = vadd.f32 1.0, %v813_v20  ;;  %840 = vpow2.f32 %v687_v14 }
  0xf0   :  { %v817_v19 = vpop.eup %816  ;;  %v708_v21 = vpack.c.bf16 %v539_v16, %v539_v16  ;;  %v537_v23 = vmul.f32 %v815_v17, %v980_v35 }
  0xf1   :  { %v819_v22 = vpop.eup %818  ;;  %842 = vrcp.f32 %v499_v18  ;;  %v497_v24 = vadd.f32 1.0, %v817_v19 }
  0xf2   :  { %v821_v25 = vpop.eup %820  ;;  %620 = vst.msk [vmem:[%s1139_s6 + $0x8] sm:$0xf] %vm617_vm1, %v708_v21  ;;  %v706_v27 = vpack.c.bf16 %v537_v23, %v537_v23  ;;  %v540_v29 = vmul.f32 %v819_v22, %v985_v41 }
  0xf3   :  { %v823_v28 = vpop.eup %822  ;;  %844 = vrcp.f32 %v497_v24  ;;  %v500_v30 = vadd.f32 1.0, %v821_v25 }
  0xf4   :  { %v825_v32 = vpop.eup %824  ;;  %618 = vst.msk [vmem:[%s1139_s6] sm:$0xf] %vm617_vm1, %v706_v27  ;;  %v709_v35 = vpack.c.bf16 %v540_v29, %v540_v29  ;;  %v538_v33 = vmul.f32 %v823_v28, %v990_v47 }
  0xf5   :  { %v827_v34 = vpop.eup %826  ;;  %846 = vrcp.f32 %v500_v30  ;;  %v498_v36 = vadd.f32 1.0, %v825_v32 }
  0xf6   :  { %v829_v37 = vpop.eup %828  ;;  %621 = vst.msk [vmem:[%s1139_s6 + $0xc] sm:$0xf] %vm617_vm1, %v709_v35  ;;  %v707_v41 = vpack.c.bf16 %v538_v33, %v538_v33  ;;  %v503_v38 = vadd.f32 1.0, %v827_v34 }
  0xf7   :  { %v831_v39 = vpop.eup %830  ;;  %v543_v40 = vmul.f32 %v829_v37, %v996_v56  ;;  %848 = vrcp.f32 %v498_v36 }
  0xf8   :  { %v833_v42 = vpop.eup %832  ;;  %619 = vst.msk [vmem:[%s1139_s6 + $0x4] sm:$0xf] %vm617_vm1, %v707_v41  ;;  %v541_v47 = vmul.f32 %v831_v39, %v999_v58  ;;  %850 = vrcp.f32 %v503_v38 }
  0xf9   :  { %v835_v43 = vpop.eup %834  ;;  %v712_v44 = vpack.c.bf16 %v543_v40, %v543_v40  ;;  %v501_v46 = vadd.f32 1.0, %v833_v42 }
  0xfa   :  { %v837_v48 = vpop.eup %836  ;;  %v710_v49 = vpack.c.bf16 %v541_v47, %v541_v47  ;;  %v544_v51 = vmul.f32 %v835_v43, %v1005_v1 }
  0xfb   :  { %v839_v52 = vpop.eup %838  ;;  %624 = vst.msk [vmem:[%s1139_s6 + $0x18] sm:$0xf] %vm617_vm1, %v712_v44  ;;  %852 = vrcp.f32 %v501_v46  ;;  %v504_v56 = vadd.f32 1.0, %v837_v48 }
  0xfc   :  { %v841_v53 = vpop.eup %840  ;;  %622 = vst.msk [vmem:[%s1139_s6 + $0x10] sm:$0xf] %vm617_vm1, %v710_v49  ;;  %v713_v58 = vpack.c.bf16 %v544_v51, %v544_v51  ;;  %v542_v54 = vmul.f32 %v839_v52, %v1010_v7 }
  0xfd   :  { %854 = vrcp.f32 %v504_v56  ;;  %v502_v55 = vadd.f32 1.0, %v841_v53 }
  0xfe   :  { %v843_v1 = vpop.eup %842  ;;  %625 = vst.msk [vmem:[%s1139_s6 + $0x1c] sm:$0xf] %vm617_vm1, %v713_v58  ;;  %v711_v57 = vpack.c.bf16 %v542_v54, %v542_v54 }
  0xff   :  { %v547_v59 = vmul.f32 %v843_v1, %v1015_v13  ;;  %856 = vrcp.f32 %v502_v55 }
 0x100   :  { %v845_v60 = vpop.eup %844  ;;  %623 = vst.msk [vmem:[%s1139_s6 + $0x14] sm:$0xf] %vm617_vm1, %v711_v57 }
 0x101   :  { %v716_v61 = vpack.c.bf16 %v547_v59, %v547_v59  ;;  %v545_v7 = vmul.f32 %v845_v60, %v1021_v26 }
 0x102   :  { %v847_v62 = vpop.eup %846 }
 0x103   :  { %628 = vst.msk [vmem:[%s1139_s6 + $0x28] sm:$0xf] %vm617_vm1, %v716_v61  ;;  %v714_v63 = vpack.c.bf16 %v545_v7, %v545_v7  ;;  %v548_v2 = vmul.f32 %v847_v62, %v1024_v31 }
 0x104   :  { %v849_v13 = vpop.eup %848 }
 0x105   :  { %v851_v4 = vpop.eup %850  ;;  %626 = vst.msk [vmem:[%s1139_s6 + $0x20] sm:$0xf] %vm617_vm1, %v714_v63  ;;  %v717_v5 = vpack.c.bf16 %v548_v2, %v548_v2  ;;  %v546_v6 = vmul.f32 %v849_v13, %v1031_v45 }
 0x106   :  { %v551_v26 = vmul.f32 %v851_v4, %v1034_v50 }
 0x107   :  { %629 = vst.msk [vmem:[%s1139_s6 + $0x2c] sm:$0xf] %vm617_vm1, %v717_v5  ;;  %v715_v8 = vpack.c.bf16 %v546_v6, %v546_v6 }
 0x108   :  { %v853_v9 = vpop.eup %852  ;;  %v720_v31 = vpack.c.bf16 %v551_v26, %v551_v26 }
 0x109   :  { %627 = vst.msk [vmem:[%s1139_s6 + $0x24] sm:$0xf] %vm617_vm1, %v715_v8  ;;  %v549_v11 = vmul.f32 %v853_v9, %v1041_v0 }
 0x10a   :  { %v855_v12 = vpop.eup %854  ;;  %632 = vst.msk [vmem:[%s1139_s6 + $0x38] sm:$0xf] %vm617_vm1, %v720_v31 }
 0x10b   :  { %v718_v45 = vpack.c.bf16 %v549_v11, %v549_v11  ;;  %v552_v50 = vmul.f32 %v855_v12, %v1044_v3 }
 0x10c   :  { %v857_v14 = vpop.eup %856 }
 0x10d   :  { %630 = vst.msk [vmem:[%s1139_s6 + $0x30] sm:$0xf] %vm617_vm1, %v718_v45  ;;  %v721_v15 = vpack.c.bf16 %v552_v50, %v552_v50  ;;  %v550_v20 = vmul.f32 %v857_v14, %v1050_v10 }
 0x10f   :  { %633 = vst.msk [vmem:[%s1139_s6 + $0x3c] sm:$0xf] %vm617_vm1, %v721_v15  ;;  %v719_v0 = vpack.c.bf16 %v550_v20, %v550_v20 }
 0x111   :  { %631 = vst.msk [vmem:[%s1139_s6 + $0x34] sm:$0xf] %vm617_vm1, %v719_v0 }

// kernel: panet_forward.44
= control target key start
LH: loop header
LB: loop body
LE: loop exit
PB: predicated region body
PF: predicated region fallthrough
CT: control target
= control target key end

     0   :  { %vm123_vm0 = vcmask 1043456   ;;  %vm98_vm1 = vcmask 64512   ;;  %vm610_vm2 = vcmask 125952   ;;  %s1124_s3 = inlined_call_operand.vmem [shape: bf16[8,16], index: 3, kind: input, shape index: {}]   ;;  %s1125_s2 = inlined_call_operand.vmem [shape: bf16[8,16], index: 2, kind: input, shape index: {}]   ;;  %s1126_s1 = inlined_call_operand.vmem [shape: bf16[128,8], index: 1, kind: input, shape index: {}]   ;;  %s1127_s0 = inlined_call_operand.vmem [shape: bf16[128,8], index: 0, kind: input, shape index: {}]   ;;  %s1128_s4 = inlined_call_operand.vmem [shape: f32[1,16], index: 4, kind: input, shape index: {}]   ;;  %s1129_s5 = inlined_call_operand.vmem [shape: f32[1,16], index: 5, kind: input, shape index: {}]   ;;  %s1130_s6 = inlined_call_operand.vmem [shape: bf16[128,16], index: 6, kind: output, shape index: {}]  }
   0x1   :  { %v57_v0 = vld [vmem:[%s1124_s3] sm:$0xf]  ;;  %v771_v6 = vld [vmem:[%s1126_s1 + $0x8] sm:$0xff]   ;;  %v773_v8 = vld [vmem:[%s1126_s1 + $0x10] sm:$0xff]  }
   0x2   :  { %v40_v1 = vld [vmem:[%s1125_s2] sm:$0xf]  ;;  %767 = vmatprep.subr.msk.bf16.mxu0 %vm123_vm0, %v57_v0  ;;  %v125_v2 = vsel %vm123_vm0, %v57_v0, 0  ;;  %v772_v7 = vld [vmem:[%s1127_s0 + $0x8] sm:$0xff]   ;;  %v774_v9 = vld [vmem:[%s1127_s0 + $0x10] sm:$0xff]  }
   0x3   :  { %768 = vmatprep.subr.msk.bf16.mxu1 %vm123_vm0, %v40_v1  ;;  %v289_v3 = vsel %vm123_vm0, %v40_v1, 0  ;;  %v769_v4 = vld [vmem:[%s1126_s1] sm:$0xff]   ;;  %732 = vmatpush3.bf16.msra.mxu0 %v125_v2  ;;  %v775_v10 = vld [vmem:[%s1126_s1 + $0x18] sm:$0xff]   ;;  %v779_v14 = vld [vmem:[%s1126_s1 + $0x28] sm:$0xff]  }
   0x4   :  { %v770_v5 = vld [vmem:[%s1127_s0] sm:$0xff]   ;;  %750 = vmatpush3.bf16.msra.mxu1 %v289_v3  ;;  %733 = vmatprep.mubr.msk.bf16.mxu0 %vm98_vm1, %v769_v4  ;;  %v776_v11 = vld [vmem:[%s1127_s0 + $0x18] sm:$0xff]   ;;  %v780_v15 = vld [vmem:[%s1127_s0 + $0x28] sm:$0xff]  }
   0x5   :  { %751 = vmatprep.mubr.msk.bf16.mxu1 %vm98_vm1, %v770_v5  ;;  %v777_v12 = vld [vmem:[%s1126_s1 + $0x20] sm:$0xff]   ;;  %v781_v16 = vld [vmem:[%s1126_s1 + $0x30] sm:$0xff]   ;;  %v783_v18 = vld [vmem:[%s1126_s1 + $0x38] sm:$0xff]  }
   0x6   :  { %734 = vmatmul.mubr.msk.bf16.vlgmr.msra.gmra.mxu0 %vm98_vm1, %v771_v6  ;;  %v778_v13 = vld [vmem:[%s1127_s0 + $0x20] sm:$0xff]   ;;  %v782_v17 = vld [vmem:[%s1127_s0 + $0x30] sm:$0xff]   ;;  %v784_v19 = vld [vmem:[%s1127_s0 + $0x38] sm:$0xff]  }
   0x7   :  { %752 = vmatmul.mubr.msk.bf16.vlgmr.msra.gmra.mxu1 %vm98_vm1, %v772_v7  ;;  %737 = vmatprep.mubr.msk.bf16.mxu0 %vm98_vm1, %v773_v8  ;;  %v957_v22 = vld [vmem:[%s1128_s4] ss:$0 sm:$0xff] }
   0x8   :  { %755 = vmatprep.mubr.msk.bf16.mxu1 %vm98_vm1, %v774_v9  ;;  %v962_v25 = vld [vmem:[%s1129_s5] ss:$0 sm:$0xff] }
   0xe   :  { %738 = vmatmul.mubr.msk.bf16.gmra.mxu0 %vm98_vm1, %v775_v10 }
   0xf   :  { %756 = vmatmul.mubr.msk.bf16.gmra.mxu1 %vm98_vm1, %v776_v11  ;;  %741 = vmatprep.mubr.msk.bf16.mxu0 %vm98_vm1, %v777_v12 }
  0x10   :  { %759 = vmatprep.mubr.msk.bf16.mxu1 %vm98_vm1, %v778_v13 }
  0x16   :  { %742 = vmatmul.mubr.msk.bf16.gmra.mxu0 %vm98_vm1, %v779_v14 }
  0x17   :  { %760 = vmatmul.mubr.msk.bf16.gmra.mxu1 %vm98_vm1, %v780_v15  ;;  %745 = vmatprep.mubr.msk.bf16.mxu0 %vm98_vm1, %v781_v16 }
  0x18   :  { %763 = vmatprep.mubr.msk.bf16.mxu1 %vm98_vm1, %v782_v17 }
  0x1e   :  { %746 = vmatmul.mubr.msk.bf16.gmra.mxu0 %vm98_vm1, %v783_v18 }
  0x1f   :  { %764 = vmatmul.mubr.msk.bf16.gmra.mxu1 %vm98_vm1, %v784_v19 }
  0xc6   :  { %v735_v20 = vpop.f32.mrf.mxu0 }
  0xc7   :  { %v753_v21 = vpop.f32.mrf.mxu1 }
  0xc8   :  { %v334_v23 = vadd.f32 %v753_v21, %v735_v20  ;;  %v161_v24 = vpop.f32.mrf.mxu0 }
  0xc9   :  { %v325_v26 = vpop.f32.mrf.mxu1 }
  0xca   :  { %v397_v27 = vmul.f32 %v957_v22, %v334_v23  ;;  %v326_v28 = vadd.f32 %v325_v26, %v161_v24  ;;  %v736_v29 = vpop.f32.mrf.mxu0 }
  0xcb   :  { %v754_v30 = vpop.f32.mrf.mxu1 }
  0xcc   :  { %v966_v31 = vadd.f32 %v962_v25, %v397_v27  ;;  %v395_v32 = vmul.f32 %v957_v22, %v326_v28  ;;  %v337_v33 = vadd.f32 %v754_v30, %v736_v29  ;;  %v164_v34 = vpop.f32.mrf.mxu0 }
  0xcd   :  { %v328_v35 = vpop.f32.mrf.mxu1 }
  0xce   :  { %v667_v36 = vmul.f32 -1.442695, %v966_v31  ;;  %v971_v37 = vadd.f32 %v962_v25, %v395_v32  ;;  %v398_v38 = vmul.f32 %v957_v22, %v337_v33  ;;  %v329_v39 = vadd.f32 %v328_v35, %v164_v34  ;;  %v739_v40 = vpop.f32.mrf.mxu0 }
  0xcf   :  { %v757_v41 = vpop.f32.mrf.mxu1 }
  0xd0   :  { %785 = vpow2.f32 %v667_v36  ;;  %v665_v42 = vmul.f32 -1.442695, %v971_v37  ;;  %v976_v43 = vadd.f32 %v962_v25, %v398_v38  ;;  %v396_v44 = vmul.f32 %v957_v22, %v329_v39  ;;  %v177_v45 = vpop.f32.mrf.mxu0 }
  0xd1   :  { %v350_v46 = vadd.f32 %v757_v41, %v739_v40  ;;  %v341_v47 = vpop.f32.mrf.mxu1 }
  0xd2   :  { %787 = vpow2.f32 %v665_v42  ;;  %v668_v48 = vmul.f32 -1.442695, %v976_v43  ;;  %v981_v49 = vadd.f32 %v962_v25, %v396_v44  ;;  %v342_v50 = vadd.f32 %v341_v47, %v177_v45  ;;  %v740_v51 = vpop.f32.mrf.mxu0 }
  0xd3   :  { %v401_v52 = vmul.f32 %v957_v22, %v350_v46  ;;  %v758_v53 = vpop.f32.mrf.mxu1 }
  0xd4   :  { %789 = vpow2.f32 %v668_v48  ;;  %v666_v54 = vmul.f32 -1.442695, %v981_v49  ;;  %v399_v55 = vmul.f32 %v957_v22, %v342_v50  ;;  %v353_v56 = vadd.f32 %v758_v53, %v740_v51  ;;  %v180_v57 = vpop.f32.mrf.mxu0 }
  0xd5   :  { %v987_v58 = vadd.f32 %v962_v25, %v401_v52  ;;  %v344_v59 = vpop.f32.mrf.mxu1 }
  0xd6   :  { %791 = vpow2.f32 %v666_v54  ;;  %v990_v60 = vadd.f32 %v962_v25, %v399_v55  ;;  %v402_v61 = vmul.f32 %v957_v22, %v353_v56  ;;  %v345_v62 = vadd.f32 %v344_v59, %v180_v57  ;;  %v743_v63 = vpop.f32.mrf.mxu0 }
  0xd7   :  { %v671_v0 = vmul.f32 -1.442695, %v987_v58  ;;  %v761_v1 = vpop.f32.mrf.mxu1 }
  0xd8   :  { %v669_v2 = vmul.f32 -1.442695, %v990_v60  ;;  %v996_v3 = vadd.f32 %v962_v25, %v402_v61  ;;  %v400_v4 = vmul.f32 %v957_v22, %v345_v62  ;;  %v366_v5 = vadd.f32 %v761_v1, %v743_v63  ;;  %v193_v6 = vpop.f32.mrf.mxu0 }
  0xd9   :  { %793 = vpow2.f32 %v671_v0  ;;  %v357_v7 = vpop.f32.mrf.mxu1 }
  0xda   :  { %795 = vpow2.f32 %v669_v2  ;;  %v672_v8 = vmul.f32 -1.442695, %v996_v3  ;;  %v1001_v9 = vadd.f32 %v962_v25, %v400_v4  ;;  %v405_v10 = vmul.f32 %v957_v22, %v366_v5  ;;  %v744_v11 = vpop.f32.mrf.mxu0 }
  0xdb   :  { %v358_v12 = vadd.f32 %v357_v7, %v193_v6  ;;  %v762_v13 = vpop.f32.mrf.mxu1 }
  0xdc   :  { %797 = vpow2.f32 %v672_v8  ;;  %v670_v14 = vmul.f32 -1.442695, %v1001_v9  ;;  %v1006_v15 = vadd.f32 %v962_v25, %v405_v10  ;;  %v369_v16 = vadd.f32 %v762_v13, %v744_v11  ;;  %v196_v17 = vpop.f32.mrf.mxu0 }
  0xdd   :  { %v786_v18 = vpop.eup %785  ;;  %v403_v19 = vmul.f32 %v957_v22, %v358_v12  ;;  %v360_v20 = vpop.f32.mrf.mxu1 }
  0xde   :  { %v484_v21 = vadd.f32 1.0, %v786_v18  ;;  %799 = vpow2.f32 %v670_v14  ;;  %v675_v23 = vmul.f32 -1.442695, %v1006_v15  ;;  %v406_v24 = vmul.f32 %v957_v22, %v369_v16  ;;  %v747_v26 = vpop.f32.mrf.mxu0 }
  0xdf   :  { %v788_v27 = vpop.eup %787  ;;  %v1012_v28 = vadd.f32 %v962_v25, %v403_v19  ;;  %v361_v29 = vadd.f32 %v360_v20, %v196_v17  ;;  %v765_v30 = vpop.f32.mrf.mxu1 }
  0xe0   :  { %801 = vrcp.f32 %v484_v21  ;;  %v482_v32 = vadd.f32 1.0, %v788_v27  ;;  %v1015_v33 = vadd.f32 %v962_v25, %v406_v24  ;;  %v382_v34 = vadd.f32 %v765_v30, %v747_v26  ;;  %v209_v35 = vpop.f32.mrf.mxu0 }
  0xe1   :  { %v790_v36 = vpop.eup %789  ;;  %803 = vpow2.f32 %v675_v23  ;;  %v673_v38 = vmul.f32 -1.442695, %v1012_v28  ;;  %v404_v39 = vmul.f32 %v957_v22, %v361_v29  ;;  %v373_v40 = vpop.f32.mrf.mxu1 }
  0xe2   :  { %805 = vrcp.f32 %v482_v32  ;;  %v485_v41 = vadd.f32 1.0, %v790_v36  ;;  %v676_v42 = vmul.f32 -1.442695, %v1015_v33  ;;  %v409_v44 = vmul.f32 %v957_v22, %v382_v34  ;;  %v748_v45 = vpop.f32.mrf.mxu0 }
  0xe3   :  { %v792_v46 = vpop.eup %791  ;;  %807 = vpow2.f32 %v673_v38  ;;  %v1022_v47 = vadd.f32 %v962_v25, %v404_v39  ;;  %v374_v48 = vadd.f32 %v373_v40, %v209_v35  ;;  %v766_v50 = vpop.f32.mrf.mxu1 }
  0xe4   :  { %809 = vrcp.f32 %v485_v41  ;;  %v483_v51 = vadd.f32 1.0, %v792_v46  ;;  %v1025_v52 = vadd.f32 %v962_v25, %v409_v44  ;;  %v385_v53 = vadd.f32 %v766_v50, %v748_v45  ;;  %v212_v54 = vpop.f32.mrf.mxu0 }
  0xe5   :  { %811 = vpow2.f32 %v676_v42  ;;  %v674_v55 = vmul.f32 -1.442695, %v1022_v47  ;;  %v407_v56 = vmul.f32 %v957_v22, %v374_v48  ;;  %v376_v57 = vpop.f32.mrf.mxu1 }
  0xe6   :  { %v794_v59 = vpop.eup %793  ;;  %813 = vrcp.f32 %v483_v51  ;;  %v679_v61 = vmul.f32 -1.442695, %v1025_v52  ;;  %v410_v62 = vmul.f32 %v957_v22, %v385_v53  ;;  %v377_v63 = vadd.f32 %v376_v57, %v212_v54 }
  0xe7   :  { %v796_v0 = vpop.eup %795  ;;  %v488_v1 = vadd.f32 1.0, %v794_v59  ;;  %815 = vpow2.f32 %v674_v55  ;;  %v1032_v2 = vadd.f32 %v962_v25, %v407_v56 }
  0xe8   :  { %v486_v4 = vadd.f32 1.0, %v796_v0  ;;  %817 = vpow2.f32 %v679_v61  ;;  %v1035_v5 = vadd.f32 %v962_v25, %v410_v62  ;;  %v408_v6 = vmul.f32 %v957_v22, %v377_v63 }
  0xe9   :  { %v798_v7 = vpop.eup %797  ;;  %819 = vrcp.f32 %v488_v1  ;;  %v677_v8 = vmul.f32 -1.442695, %v1032_v2 }
  0xea   :  { %821 = vrcp.f32 %v486_v4  ;;  %v489_v10 = vadd.f32 1.0, %v798_v7  ;;  %v680_v11 = vmul.f32 -1.442695, %v1035_v5  ;;  %v1041_v12 = vadd.f32 %v962_v25, %v408_v6 }
  0xeb   :  { %v800_v13 = vpop.eup %799  ;;  %823 = vpow2.f32 %v677_v8 }
  0xec   :  { %825 = vrcp.f32 %v489_v10  ;;  %v487_v14 = vadd.f32 1.0, %v800_v13  ;;  %v678_v16 = vmul.f32 -1.442695, %v1041_v12 }
  0xed   :  { %v802_v17 = vpop.eup %801  ;;  %827 = vpow2.f32 %v680_v11 }
  0xee   :  { %v804_v22 = vpop.eup %803  ;;  %v532_v18 = vmul.f32 %v802_v17, %v966_v31  ;;  %829 = vrcp.f32 %v487_v14 }
  0xef   :  { %v806_v19 = vpop.eup %805  ;;  %v492_v20 = vadd.f32 1.0, %v804_v22  ;;  %831 = vpow2.f32 %v678_v16 }
  0xf0   :  { %v808_v21 = vpop.eup %807  ;;  %v699_v23 = vpack.c.bf16 %v532_v18, %v532_v18  ;;  %v530_v25 = vmul.f32 %v806_v19, %v971_v37 }
  0xf1   :  { %v810_v24 = vpop.eup %809  ;;  %833 = vrcp.f32 %v492_v20  ;;  %v490_v26 = vadd.f32 1.0, %v808_v21 }
  0xf2   :  { %v812_v27 = vpop.eup %811  ;;  %613 = vst.msk [vmem:[%s1130_s6 + $0x8] sm:$0xf] %vm610_vm2, %v699_v23  ;;  %v697_v29 = vpack.c.bf16 %v530_v25, %v530_v25  ;;  %v533_v31 = vmul.f32 %v810_v24, %v976_v43 }
  0xf3   :  { %v814_v30 = vpop.eup %813  ;;  %835 = vrcp.f32 %v490_v26  ;;  %v493_v32 = vadd.f32 1.0, %v812_v27 }
  0xf4   :  { %v816_v34 = vpop.eup %815  ;;  %611 = vst.msk [vmem:[%s1130_s6] sm:$0xf] %vm610_vm2, %v697_v29  ;;  %v700_v37 = vpack.c.bf16 %v533_v31, %v533_v31  ;;  %v531_v35 = vmul.f32 %v814_v30, %v981_v49 }
  0xf5   :  { %v818_v36 = vpop.eup %817  ;;  %837 = vrcp.f32 %v493_v32  ;;  %v491_v38 = vadd.f32 1.0, %v816_v34 }
  0xf6   :  { %v820_v39 = vpop.eup %819  ;;  %614 = vst.msk [vmem:[%s1130_s6 + $0xc] sm:$0xf] %vm610_vm2, %v700_v37  ;;  %v698_v43 = vpack.c.bf16 %v531_v35, %v531_v35  ;;  %v496_v40 = vadd.f32 1.0, %v818_v36 }
  0xf7   :  { %v822_v41 = vpop.eup %821  ;;  %v536_v42 = vmul.f32 %v820_v39, %v987_v58  ;;  %839 = vrcp.f32 %v491_v38 }
  0xf8   :  { %v824_v44 = vpop.eup %823  ;;  %612 = vst.msk [vmem:[%s1130_s6 + $0x4] sm:$0xf] %vm610_vm2, %v698_v43  ;;  %v534_v49 = vmul.f32 %v822_v41, %v990_v60  ;;  %841 = vrcp.f32 %v496_v40 }
  0xf9   :  { %v826_v45 = vpop.eup %825  ;;  %v703_v46 = vpack.c.bf16 %v536_v42, %v536_v42  ;;  %v494_v48 = vadd.f32 1.0, %v824_v44 }
  0xfa   :  { %v828_v50 = vpop.eup %827  ;;  %v701_v51 = vpack.c.bf16 %v534_v49, %v534_v49  ;;  %v537_v53 = vmul.f32 %v826_v45, %v996_v3 }
  0xfb   :  { %v830_v54 = vpop.eup %829  ;;  %617 = vst.msk [vmem:[%s1130_s6 + $0x18] sm:$0xf] %vm610_vm2, %v703_v46  ;;  %843 = vrcp.f32 %v494_v48  ;;  %v497_v58 = vadd.f32 1.0, %v828_v50 }
  0xfc   :  { %v832_v55 = vpop.eup %831  ;;  %615 = vst.msk [vmem:[%s1130_s6 + $0x10] sm:$0xf] %vm610_vm2, %v701_v51  ;;  %v704_v60 = vpack.c.bf16 %v537_v53, %v537_v53  ;;  %v535_v56 = vmul.f32 %v830_v54, %v1001_v9 }
  0xfd   :  { %845 = vrcp.f32 %v497_v58  ;;  %v495_v57 = vadd.f32 1.0, %v832_v55 }
  0xfe   :  { %v834_v3 = vpop.eup %833  ;;  %618 = vst.msk [vmem:[%s1130_s6 + $0x1c] sm:$0xf] %vm610_vm2, %v704_v60  ;;  %v702_v59 = vpack.c.bf16 %v535_v56, %v535_v56 }
  0xff   :  { %v540_v61 = vmul.f32 %v834_v3, %v1006_v15  ;;  %847 = vrcp.f32 %v495_v57 }
 0x100   :  { %v836_v62 = vpop.eup %835  ;;  %616 = vst.msk [vmem:[%s1130_s6 + $0x14] sm:$0xf] %vm610_vm2, %v702_v59 }
 0x101   :  { %v707_v63 = vpack.c.bf16 %v540_v61, %v540_v61  ;;  %v538_v9 = vmul.f32 %v836_v62, %v1012_v28 }
 0x102   :  { %v838_v0 = vpop.eup %837 }
 0x103   :  { %621 = vst.msk [vmem:[%s1130_s6 + $0x28] sm:$0xf] %vm610_vm2, %v707_v63  ;;  %v705_v1 = vpack.c.bf16 %v538_v9, %v538_v9  ;;  %v541_v4 = vmul.f32 %v838_v0, %v1015_v33 }
 0x104   :  { %v840_v15 = vpop.eup %839 }
 0x105   :  { %v842_v6 = vpop.eup %841  ;;  %619 = vst.msk [vmem:[%s1130_s6 + $0x20] sm:$0xf] %vm610_vm2, %v705_v1  ;;  %v708_v7 = vpack.c.bf16 %v541_v4, %v541_v4  ;;  %v539_v8 = vmul.f32 %v840_v15, %v1022_v47 }
 0x106   :  { %v544_v28 = vmul.f32 %v842_v6, %v1025_v52 }
 0x107   :  { %622 = vst.msk [vmem:[%s1130_s6 + $0x2c] sm:$0xf] %vm610_vm2, %v708_v7  ;;  %v706_v10 = vpack.c.bf16 %v539_v8, %v539_v8 }
 0x108   :  { %v844_v11 = vpop.eup %843  ;;  %v711_v33 = vpack.c.bf16 %v544_v28, %v544_v28 }
 0x109   :  { %620 = vst.msk [vmem:[%s1130_s6 + $0x24] sm:$0xf] %vm610_vm2, %v706_v10  ;;  %v542_v13 = vmul.f32 %v844_v11, %v1032_v2 }
 0x10a   :  { %v846_v14 = vpop.eup %845  ;;  %625 = vst.msk [vmem:[%s1130_s6 + $0x38] sm:$0xf] %vm610_vm2, %v711_v33 }
 0x10b   :  { %v709_v47 = vpack.c.bf16 %v542_v13, %v542_v13  ;;  %v545_v52 = vmul.f32 %v846_v14, %v1035_v5 }
 0x10c   :  { %v848_v16 = vpop.eup %847 }
 0x10d   :  { %623 = vst.msk [vmem:[%s1130_s6 + $0x30] sm:$0xf] %vm610_vm2, %v709_v47  ;;  %v712_v17 = vpack.c.bf16 %v545_v52, %v545_v52  ;;  %v543_v22 = vmul.f32 %v848_v16, %v1041_v12 }
 0x10f   :  { %626 = vst.msk [vmem:[%s1130_s6 + $0x3c] sm:$0xf] %vm610_vm2, %v712_v17  ;;  %v710_v2 = vpack.c.bf16 %v543_v22, %v543_v22 }
 0x111   :  { %624 = vst.msk [vmem:[%s1130_s6 + $0x34] sm:$0xf] %vm610_vm2, %v710_v2 }

// kernel: panet_forward.39
= control target key start
LH: loop header
LB: loop body
LE: loop exit
PB: predicated region body
PF: predicated region fallthrough
CT: control target
= control target key end

     0   :  { %vm138_vm0 = vcmask 1043456   ;;  %vm113_vm1 = vcmask 588800   ;;  %vm509_vm2 = vcmask 60416   ;;  %s1051_s1 = inlined_call_operand.vmem [shape: bf16[72,8], index: 1, kind: input, shape index: {}]   ;;  %s1052_s0 = inlined_call_operand.vmem [shape: bf16[128,72], index: 0, kind: input, shape index: {}]   ;;  %s1053_s2 = inlined_call_operand.vmem [shape: f32[1,8], index: 2, kind: input, shape index: {}]   ;;  %s1054_s3 = inlined_call_operand.vmem [shape: f32[1,8], index: 3, kind: input, shape index: {}]   ;;  %s1055_s4 = inlined_call_operand.vmem [shape: bf16[128,8], index: 4, kind: input, shape index: {}]   ;;  %s1056_s5 = inlined_call_operand.vmem [shape: bf16[128,8], index: 5, kind: output, shape index: {}]  }
   0x1   :  { %v691_v0 = vld [vmem:[%s1051_s1 + $0x20] ss:$0 sps:$4 sm:$0xff]   ;;  %v692_v1 = vld [vmem:[%s1051_s1 + $0x18] sm:$0xff]   ;;  %v693_v3 = vld [vmem:[%s1051_s1 + $0x10] sm:$0xff]  }
   0x2   :  { %689 = vmatprep.subr.msk.bf16.mxu0 %vm138_vm0, %v691_v0  ;;  %690 = vmatprep.subr.msk.bf16.mxu1 %vm138_vm0, %v691_v0  ;;  %v140_v2 = vsel %vm138_vm0, %v691_v0, 0  ;;  %v696_v4 = vld [vmem:[%s1052_s0] sm:$0xff]   ;;  %v694_v6 = vld [vmem:[%s1051_s1 + $0x8] sm:$0xff]   ;;  %v700_v10 = vld [vmem:[%s1052_s0 + $0x10] sm:$0xff]  }
   0x3   :  { %654 = vmatpush3.bf16.msra.mxu0 %v140_v2  ;;  %684 = vmatpush3.bf16.msra.mxu1 %v140_v2  ;;  %v697_v5 = vld [vmem:[%s1052_s0 + $0x20] sm:$0xff]   ;;  %v698_v8 = vld [vmem:[%s1052_s0 + $0x8] sm:$0xff]   ;;  %v701_v11 = vld [vmem:[%s1052_s0 + $0x30] sm:$0xff]  }
   0x4   :  { %655 = vmatprep.subr.bf16.mxu0 %v692_v1  ;;  %680 = vmatprep.subr.bf16.mxu1 %v692_v1  ;;  %v695_v7 = vld [vmem:[%s1051_s1] sm:$0xff]   ;;  %v699_v9 = vld [vmem:[%s1052_s0 + $0x28] sm:$0xff]   ;;  %v702_v12 = vld [vmem:[%s1052_s0 + $0x18] sm:$0xff]  }
   0x5   :  { %663 = vmatprep.mubr.msk.bf16.mxu0 %vm113_vm1, %v696_v4  ;;  %671 = vmatprep.mubr.msk.bf16.mxu1 %vm113_vm1, %v697_v5  ;;  %v703_v13 = vld [vmem:[%s1052_s0 + $0x38] sm:$0xff]   ;;  %v848_v14 = vld [vmem:[%s1053_s2] ss:$0 sm:$0xff] }
   0x6   :  { %v853_v16 = vld [vmem:[%s1054_s3] ss:$0 sm:$0xff] }
   0x7   :  { %656 = vmatpush3.bf16.msra.mxu0 %v692_v1  ;;  %685 = vmatpush3.bf16.msra.mxu1 %v692_v1 }
   0x8   :  { %657 = vmatprep.subr.bf16.mxu0 %v693_v3  ;;  %681 = vmatprep.subr.bf16.mxu1 %v693_v3 }
   0xb   :  { %658 = vmatpush3.bf16.msra.mxu0 %v693_v3  ;;  %686 = vmatpush3.bf16.msra.mxu1 %v693_v3 }
   0xc   :  { %659 = vmatprep.subr.bf16.mxu0 %v694_v6  ;;  %682 = vmatprep.subr.bf16.mxu1 %v694_v6 }
   0xf   :  { %660 = vmatpush3.bf16.msra.mxu0 %v694_v6  ;;  %687 = vmatpush3.bf16.msra.mxu1 %v694_v6 }
  0x10   :  { %661 = vmatprep.subr.bf16.mxu0 %v695_v7  ;;  %683 = vmatprep.subr.bf16.mxu1 %v695_v7 }
  0x13   :  { %662 = vmatpush3.bf16.msra.mxu0 %v695_v7  ;;  %688 = vmatpush3.bf16.msra.mxu1 %v695_v7 }
  0x16   :  { %664 = vmatmul.mubr.msk.bf16.vlgmr.msra.gmra.mxu0 %vm113_vm1, %v698_v8  ;;  %672 = vmatmul.mubr.msk.bf16.vlgmr.msra.gmra.mxu1 %vm113_vm1, %v699_v9 }
  0x17   :  { %667 = vmatprep.mubr.msk.bf16.mxu0 %vm113_vm1, %v700_v10  ;;  %675 = vmatprep.mubr.msk.bf16.mxu1 %vm113_vm1, %v701_v11 }
  0x1e   :  { %668 = vmatmul.mubr.msk.bf16.gmra.mxu0 %vm113_vm1, %v702_v12  ;;  %676 = vmatmul.mubr.msk.bf16.gmra.mxu1 %vm113_vm1, %v703_v13 }
  0xd6   :  { %v665_v15 = vpop.f32.mrf.mxu0  ;;  %v673_v17 = vpop.f32.mrf.mxu1 }
  0xd7   :  { %v248_v18 = vmul.f32 %v665_v15, %v848_v14  ;;  %v256_v19 = vmul.f32 %v673_v17, %v848_v14 }
  0xd8   :  { %v176_v20 = vpop.f32.mrf.mxu0  ;;  %v208_v21 = vpop.f32.mrf.mxu1 }
  0xd9   :  { %v858_v22 = vadd.f32 %v853_v16, %v248_v18  ;;  %v861_v23 = vadd.f32 %v853_v16, %v256_v19  ;;  %v246_v24 = vmul.f32 %v848_v14, %v176_v20  ;;  %v254_v25 = vmul.f32 %v848_v14, %v208_v21 }
  0xda   :  { %v666_v26 = vpop.f32.mrf.mxu0  ;;  %v674_v27 = vpop.f32.mrf.mxu1 }
  0xdb   :  { %v555_v28 = vmul.f32 -1.442695, %v858_v22  ;;  %v563_v29 = vmul.f32 -1.442695, %v861_v23  ;;  %v868_v30 = vadd.f32 %v853_v16, %v246_v24  ;;  %v871_v31 = vadd.f32 %v853_v16, %v254_v25 }
  0xdc   :  { %v249_v32 = vmul.f32 %v666_v26, %v848_v14  ;;  %v257_v33 = vmul.f32 %v674_v27, %v848_v14  ;;  %v179_v34 = vpop.f32.mrf.mxu0  ;;  %v211_v35 = vpop.f32.mrf.mxu1 }
  0xdd   :  { %704 = vpow2.f32 %v555_v28  ;;  %v553_v36 = vmul.f32 -1.442695, %v868_v30  ;;  %v561_v37 = vmul.f32 -1.442695, %v871_v31  ;;  %v247_v38 = vmul.f32 %v848_v14, %v179_v34 }
  0xde   :  { %706 = vpow2.f32 %v563_v29  ;;  %v879_v39 = vadd.f32 %v853_v16, %v249_v32  ;;  %v882_v40 = vadd.f32 %v853_v16, %v257_v33  ;;  %v255_v41 = vmul.f32 %v848_v14, %v211_v35  ;;  %v669_v42 = vpop.f32.mrf.mxu0  ;;  %v677_v43 = vpop.f32.mrf.mxu1 }
  0xdf   :  { %708 = vpow2.f32 %v553_v36  ;;  %v886_v44 = vadd.f32 %v853_v16, %v247_v38  ;;  %v252_v45 = vmul.f32 %v669_v42, %v848_v14  ;;  %v260_v46 = vmul.f32 %v677_v43, %v848_v14 }
  0xe0   :  { %710 = vpow2.f32 %v561_v37  ;;  %v556_v47 = vmul.f32 -1.442695, %v879_v39  ;;  %v564_v48 = vmul.f32 -1.442695, %v882_v40  ;;  %v893_v49 = vadd.f32 %v853_v16, %v255_v41  ;;  %v192_v50 = vpop.f32.mrf.mxu0  ;;  %v224_v51 = vpop.f32.mrf.mxu1 }
  0xe1   :  { %v554_v52 = vmul.f32 -1.442695, %v886_v44  ;;  %v897_v53 = vadd.f32 %v853_v16, %v252_v45  ;;  %v900_v54 = vadd.f32 %v853_v16, %v260_v46  ;;  %v250_v55 = vmul.f32 %v848_v14, %v192_v50  ;;  %v633_v45 = vld [vmem:[%s1055_s4 + $0x8] sm:$0xff]  }
  0xe2   :  { %712 = vpow2.f32 %v556_v47  ;;  %v562_v56 = vmul.f32 -1.442695, %v893_v49  ;;  %v258_v57 = vmul.f32 %v848_v14, %v224_v51  ;;  %v670_v58 = vpop.f32.mrf.mxu0  ;;  %v678_v59 = vpop.f32.mrf.mxu1 }
  0xe3   :  { %714 = vpow2.f32 %v564_v48  ;;  %v559_v60 = vmul.f32 -1.442695, %v897_v53  ;;  %v567_v61 = vmul.f32 -1.442695, %v900_v54  ;;  %v908_v62 = vadd.f32 %v853_v16, %v250_v55  ;;  %v637_v48 = vld [vmem:[%s1055_s4 + $0x28] sm:$0xff]  }
  0xe4   :  { %716 = vpow2.f32 %v554_v52  ;;  %v911_v63 = vadd.f32 %v853_v16, %v258_v57  ;;  %v253_v0 = vmul.f32 %v670_v58, %v848_v14  ;;  %v261_v1 = vmul.f32 %v678_v59, %v848_v14  ;;  %v195_v2 = vpop.f32.mrf.mxu0  ;;  %v227_v3 = vpop.f32.mrf.mxu1  ;;  %v944_v52 = vld [vmem:[%s1055_s4] sm:$0xff]  }
  0xe5   :  { %718 = vpow2.f32 %v562_v56  ;;  %v557_v4 = vmul.f32 -1.442695, %v908_v62  ;;  %v251_v5 = vmul.f32 %v848_v14, %v195_v2  ;;  %v259_v6 = vmul.f32 %v848_v14, %v227_v3  ;;  %v949_v58 = vld [vmem:[%s1055_s4 + $0x20] sm:$0xff]  }
  0xe6   :  { %720 = vpow2.f32 %v559_v60  ;;  %v565_v7 = vmul.f32 -1.442695, %v911_v63  ;;  %v920_v8 = vadd.f32 %v853_v16, %v253_v0  ;;  %v923_v9 = vadd.f32 %v853_v16, %v261_v1 }
  0xe7   :  { %722 = vpow2.f32 %v567_v61  ;;  %v926_v10 = vadd.f32 %v853_v16, %v251_v5  ;;  %v932_v14 = vadd.f32 %v853_v16, %v259_v6  ;;  %v607_v57 = vunpack.c.l.bf16 %v633_v45 }
  0xe8   :  { %724 = vpow2.f32 %v557_v4  ;;  %v560_v11 = vmul.f32 -1.442695, %v920_v8  ;;  %v568_v12 = vmul.f32 -1.442695, %v923_v9  ;;  %v623_v61 = vunpack.c.l.bf16 %v637_v48 }
  0xe9   :  { %726 = vpow2.f32 %v565_v7  ;;  %v558_v13 = vmul.f32 -1.442695, %v926_v10  ;;  %v566_v25 = vmul.f32 -1.442695, %v932_v14  ;;  %v603_v3 = vunpack.c.l.bf16 %v944_v52 }
  0xea   :  { %v705_v15 = vpop.eup %704  ;;  %728 = vpow2.f32 %v560_v11  ;;  %v619_v6 = vunpack.c.l.bf16 %v949_v58 }
  0xeb   :  { %v707_v17 = vpop.eup %706  ;;  %v335_v18 = vadd.f32 1.0, %v705_v15  ;;  %730 = vpow2.f32 %v568_v12 }
  0xec   :  { %v709_v19 = vpop.eup %708  ;;  %v343_v20 = vadd.f32 1.0, %v707_v17  ;;  %732 = vpow2.f32 %v558_v13 }
  0xed   :  { %v711_v21 = vpop.eup %710  ;;  %734 = vrcp.f32 %v335_v18  ;;  %v333_v24 = vadd.f32 1.0, %v709_v19  ;;  %v608_v18 = vunpack.c.h.bf16 %v633_v45 }
  0xee   :  { %736 = vrcp.f32 %v343_v20  ;;  %v341_v26 = vadd.f32 1.0, %v711_v21  ;;  %v624_v21 = vunpack.c.h.bf16 %v637_v48 }
  0xef   :  { %v713_v27 = vpop.eup %712  ;;  %738 = vrcp.f32 %v333_v24 }
  0xf0   :  { %v715_v28 = vpop.eup %714  ;;  %740 = vrcp.f32 %v341_v26  ;;  %v336_v16 = vadd.f32 1.0, %v713_v27 }
  0xf1   :  { %v717_v29 = vpop.eup %716  ;;  %v344_v32 = vadd.f32 1.0, %v715_v28  ;;  %742 = vpow2.f32 %v566_v25  ;;  %v604_v28 = vunpack.c.h.bf16 %v944_v52 }
  0xf2   :  { %v719_v33 = vpop.eup %718  ;;  %744 = vrcp.f32 %v336_v16  ;;  %v334_v34 = vadd.f32 1.0, %v717_v29 }
  0xf3   :  { %v721_v35 = vpop.eup %720  ;;  %746 = vrcp.f32 %v344_v32  ;;  %v342_v36 = vadd.f32 1.0, %v719_v33  ;;  %v620_v33 = vunpack.c.h.bf16 %v949_v58 }
  0xf4   :  { %v723_v37 = vpop.eup %722  ;;  %748 = vrcp.f32 %v334_v34  ;;  %v339_v38 = vadd.f32 1.0, %v721_v35 }
  0xf5   :  { %v725_v41 = vpop.eup %724  ;;  %750 = vrcp.f32 %v342_v36  ;;  %v347_v42 = vadd.f32 1.0, %v723_v37 }
  0xf6   :  { %v727_v43 = vpop.eup %726  ;;  %752 = vrcp.f32 %v339_v38  ;;  %v337_v46 = vadd.f32 1.0, %v725_v41 }
  0xf7   :  { %v729_v47 = vpop.eup %728  ;;  %754 = vrcp.f32 %v347_v42  ;;  %v345_v50 = vadd.f32 1.0, %v727_v43 }
  0xf8   :  { %v731_v51 = vpop.eup %730  ;;  %756 = vrcp.f32 %v337_v46  ;;  %v340_v55 = vadd.f32 1.0, %v729_v47 }
  0xf9   :  { %v733_v56 = vpop.eup %732  ;;  %758 = vrcp.f32 %v345_v50  ;;  %v348_v59 = vadd.f32 1.0, %v731_v51 }
  0xfa   :  { %v735_v60 = vpop.eup %734  ;;  %760 = vrcp.f32 %v340_v55  ;;  %v338_v0 = vadd.f32 1.0, %v733_v56 }
  0xfb   :  { %v737_v1 = vpop.eup %736  ;;  %v383_v2 = vmul.f32 %v735_v60, %v858_v22  ;;  %762 = vrcp.f32 %v348_v59 }
  0xfc   :  { %v739_v4 = vpop.eup %738  ;;  %v391_v5 = vmul.f32 %v737_v1, %v861_v23  ;;  %764 = vrcp.f32 %v338_v0  ;;  %v960_v23 = vld [vmem:[%s1055_s4 + $0x18] sm:$0xff]  }
  0xfd   :  { %v741_v7 = vpop.eup %740  ;;  %v431_v11 = vadd.f32 %v607_v57, %v383_v2  ;;  %v381_v12 = vmul.f32 %v739_v4, %v868_v30  ;;  %v615_v38 = vunpack.c.l.bf16 %v960_v23 }
  0xfe   :  { %v743_v13 = vpop.eup %742  ;;  %v439_v15 = vadd.f32 %v623_v61, %v391_v5  ;;  %v389_v17 = vmul.f32 %v741_v7, %v871_v31  ;;  %v639_v31 = vld [vmem:[%s1055_s4 + $0x38] sm:$0xff]   ;;  %v616_v61 = vunpack.c.h.bf16 %v960_v23 }
  0xff   :  { %v745_v22 = vpop.eup %744  ;;  %v587_v19 = vpack.c.bf16 %v431_v11, %v431_v11  ;;  %v429_v20 = vadd.f32 %v603_v3, %v381_v12  ;;  %v346_v24 = vadd.f32 1.0, %v743_v13  ;;  %v631_v45 = vunpack.c.l.bf16 %v639_v31 }
 0x100   :  { %v747_v25 = vpop.eup %746  ;;  %v595_v26 = vpack.c.bf16 %v439_v15, %v439_v15  ;;  %v437_v27 = vadd.f32 %v619_v6, %v389_v17  ;;  %v384_v30 = vmul.f32 %v745_v22, %v879_v39  ;;  %v634_v39 = vld [vmem:[%s1055_s4 + $0x10] sm:$0xff]   ;;  %v632_v2 = vunpack.c.h.bf16 %v639_v31 }
 0x101   :  { %v749_v16 = vpop.eup %748  ;;  %512 = vst.msk [vmem:[%s1056_s5 + $0x8] sm:$0xf] %vm509_vm2, %v587_v19  ;;  %v585_v29 = vpack.c.bf16 %v429_v20, %v429_v20  ;;  %v392_v32 = vmul.f32 %v747_v25, %v882_v40  ;;  %766 = vrcp.f32 %v346_v24  ;;  %v638_v40 = vld [vmem:[%s1055_s4 + $0x30] sm:$0xff]   ;;  %v611_v50 = vunpack.c.l.bf16 %v634_v39 }
 0x102   :  { %v751_v34 = vpop.eup %750  ;;  %520 = vst.msk [vmem:[%s1056_s5 + $0x28] sm:$0xf] %vm509_vm2, %v595_v26  ;;  %v593_v35 = vpack.c.bf16 %v437_v27, %v437_v27  ;;  %v432_v36 = vadd.f32 %v608_v18, %v384_v30  ;;  %v382_v37 = vmul.f32 %v749_v16, %v886_v44  ;;  %v627_v57 = vunpack.c.l.bf16 %v638_v40 }
 0x103   :  { %v753_v41 = vpop.eup %752  ;;  %510 = vst.msk [vmem:[%s1056_s5] sm:$0xf] %vm509_vm2, %v585_v29  ;;  %v440_v42 = vadd.f32 %v624_v21, %v392_v32  ;;  %v390_v43 = vmul.f32 %v751_v34, %v893_v49  ;;  %v612_v6 = vunpack.c.h.bf16 %v634_v39  ;;  %v628_v19 = vunpack.c.h.bf16 %v638_v40 }
 0x104   :  { %v755_v46 = vpop.eup %754  ;;  %518 = vst.msk [vmem:[%s1056_s5 + $0x20] sm:$0xf] %vm509_vm2, %v593_v35  ;;  %v588_v44 = vpack.c.bf16 %v432_v36, %v432_v36  ;;  %v430_v47 = vadd.f32 %v604_v28, %v382_v37  ;;  %v387_v48 = vmul.f32 %v753_v41, %v897_v53 }
 0x105   :  { %v757_v51 = vpop.eup %756  ;;  %v596_v52 = vpack.c.bf16 %v440_v42, %v440_v42  ;;  %v438_v55 = vadd.f32 %v620_v33, %v390_v43  ;;  %v395_v56 = vmul.f32 %v755_v46, %v900_v54 }
 0x106   :  { %v759_v58 = vpop.eup %758  ;;  %513 = vst.msk [vmem:[%s1056_s5 + $0xc] sm:$0xf] %vm509_vm2, %v588_v44  ;;  %v586_v49 = vpack.c.bf16 %v430_v47, %v430_v47  ;;  %v435_v59 = vadd.f32 %v615_v38, %v387_v48  ;;  %v385_v60 = vmul.f32 %v757_v51, %v908_v62 }
 0x107   :  { %v761_v53 = vpop.eup %760  ;;  %521 = vst.msk [vmem:[%s1056_s5 + $0x2c] sm:$0xf] %vm509_vm2, %v596_v52  ;;  %v594_v54 = vpack.c.bf16 %v438_v55, %v438_v55  ;;  %v443_v0 = vadd.f32 %v631_v45, %v395_v56  ;;  %v393_v1 = vmul.f32 %v759_v58, %v911_v63 }
 0x108   :  { %v763_v3 = vpop.eup %762  ;;  %511 = vst.msk [vmem:[%s1056_s5 + $0x4] sm:$0xf] %vm509_vm2, %v586_v49  ;;  %v591_v62 = vpack.c.bf16 %v435_v59, %v435_v59  ;;  %v433_v4 = vadd.f32 %v611_v50, %v385_v60  ;;  %v388_v5 = vmul.f32 %v761_v53, %v920_v8 }
 0x109   :  { %v765_v7 = vpop.eup %764  ;;  %519 = vst.msk [vmem:[%s1056_s5 + $0x24] sm:$0xf] %vm509_vm2, %v594_v54  ;;  %v599_v11 = vpack.c.bf16 %v443_v0, %v443_v0  ;;  %v441_v63 = vadd.f32 %v627_v57, %v393_v1  ;;  %v396_v12 = vmul.f32 %v763_v3, %v923_v9 }
 0x10a   :  { %516 = vst.msk [vmem:[%s1056_s5 + $0x18] sm:$0xf] %vm509_vm2, %v591_v62  ;;  %v589_v13 = vpack.c.bf16 %v433_v4, %v433_v4  ;;  %v436_v15 = vadd.f32 %v616_v61, %v388_v5  ;;  %v386_v8 = vmul.f32 %v765_v7, %v926_v10 }
 0x10b   :  { %524 = vst.msk [vmem:[%s1056_s5 + $0x38] sm:$0xf] %vm509_vm2, %v599_v11  ;;  %v597_v17 = vpack.c.bf16 %v441_v63, %v441_v63  ;;  %v444_v18 = vadd.f32 %v632_v2, %v396_v12 }
 0x10c   :  { %514 = vst.msk [vmem:[%s1056_s5 + $0x10] sm:$0xf] %vm509_vm2, %v589_v13  ;;  %v592_v9 = vpack.c.bf16 %v436_v15, %v436_v15  ;;  %v434_v22 = vadd.f32 %v612_v6, %v386_v8 }
 0x10d   :  { %522 = vst.msk [vmem:[%s1056_s5 + $0x30] sm:$0xf] %vm509_vm2, %v597_v17  ;;  %v600_v10 = vpack.c.bf16 %v444_v18, %v444_v18 }
 0x10e   :  { %v767_v20 = vpop.eup %766  ;;  %517 = vst.msk [vmem:[%s1056_s5 + $0x1c] sm:$0xf] %vm509_vm2, %v592_v9  ;;  %v590_v21 = vpack.c.bf16 %v434_v22, %v434_v22 }
 0x10f   :  { %525 = vst.msk [vmem:[%s1056_s5 + $0x3c] sm:$0xf] %vm509_vm2, %v600_v10  ;;  %v394_v23 = vmul.f32 %v767_v20, %v932_v14 }
 0x110   :  { %515 = vst.msk [vmem:[%s1056_s5 + $0x14] sm:$0xf] %vm509_vm2, %v590_v21 }
 0x111   :  { %v442_v24 = vadd.f32 %v628_v19, %v394_v23 }
 0x113   :  { %v598_v25 = vpack.c.bf16 %v442_v24, %v442_v24 }
 0x115   :  { %523 = vst.msk [vmem:[%s1056_s5 + $0x34] sm:$0xf] %vm509_vm2, %v598_v25 }

// kernel: panet_forward.45
= control target key start
LH: loop header
LB: loop body
LE: loop exit
PB: predicated region body
PF: predicated region fallthrough
CT: control target
= control target key end

     0   :  { %vm82_vm0 = vcmask 130048   ;;  %vm426_vm1 = vcmask 60416   ;;  %s846_s1 = inlined_call_operand.vmem [shape: bf16[16,8], index: 1, kind: input, shape index: {}]   ;;  %s847_s0 = inlined_call_operand.vmem [shape: bf16[128,16], index: 0, kind: input, shape index: {}]   ;;  %s848_s2 = inlined_call_operand.vmem [shape: f32[1,8], index: 2, kind: input, shape index: {}]   ;;  %s849_s3 = inlined_call_operand.vmem [shape: f32[1,8], index: 3, kind: input, shape index: {}]   ;;  %s850_s4 = inlined_call_operand.vmem [shape: bf16[128,8], index: 4, kind: output, shape index: {}]  }
   0x1   :  { %v543_v0 = vld [vmem:[%s846_s1] sm:$0xff]   ;;  %v546_v3 = vld [vmem:[%s847_s0 + $0x8] sm:$0xff]   ;;  %v548_v5 = vld [vmem:[%s847_s0 + $0x10] sm:$0xff]  }
   0x2   :  { %v544_v1 = vld [vmem:[%s847_s0] sm:$0xff]   ;;  %523 = vmatprep.subr.bf16.mxu0 %v543_v0  ;;  %541 = vmatprep.subr.bf16.mxu1 %v543_v0  ;;  %v547_v4 = vld [vmem:[%s847_s0 + $0x28] sm:$0xff]   ;;  %v549_v6 = vld [vmem:[%s847_s0 + $0x30] sm:$0xff]  }
   0x3   :  { %v545_v2 = vld [vmem:[%s847_s0 + $0x20] sm:$0xff]   ;;  %524 = vmatpush3.bf16.msra.mxu0 %v543_v0  ;;  %542 = vmatpush3.bf16.msra.mxu1 %v543_v0  ;;  %v550_v7 = vld [vmem:[%s847_s0 + $0x18] sm:$0xff]  }
   0x4   :  { %525 = vmatprep.mubr.msk.bf16.mxu0 %vm82_vm0, %v544_v1  ;;  %533 = vmatprep.mubr.msk.bf16.mxu1 %vm82_vm0, %v545_v2  ;;  %v551_v8 = vld [vmem:[%s847_s0 + $0x38] sm:$0xff]   ;;  %v679_v9 = vld [vmem:[%s848_s2] ss:$0 sm:$0xff] }
   0x5   :  { %v684_v11 = vld [vmem:[%s849_s3] ss:$0 sm:$0xff] }
   0x6   :  { %526 = vmatmul.mubr.msk.bf16.vlgmr.msra.gmra.mxu0 %vm82_vm0, %v546_v3  ;;  %534 = vmatmul.mubr.msk.bf16.vlgmr.msra.gmra.mxu1 %vm82_vm0, %v547_v4 }
   0x7   :  { %529 = vmatprep.mubr.msk.bf16.mxu0 %vm82_vm0, %v548_v5  ;;  %537 = vmatprep.mubr.msk.bf16.mxu1 %vm82_vm0, %v549_v6 }
   0xe   :  { %530 = vmatmul.mubr.msk.bf16.gmra.mxu0 %vm82_vm0, %v550_v7  ;;  %538 = vmatmul.mubr.msk.bf16.gmra.mxu1 %vm82_vm0, %v551_v8 }
  0xc6   :  { %v527_v10 = vpop.f32.mrf.mxu0  ;;  %v535_v12 = vpop.f32.mrf.mxu1 }
  0xc7   :  { %v213_v13 = vmul.f32 %v527_v10, %v679_v9  ;;  %v221_v14 = vmul.f32 %v535_v12, %v679_v9 }
  0xc8   :  { %v141_v15 = vpop.f32.mrf.mxu0  ;;  %v173_v16 = vpop.f32.mrf.mxu1 }
  0xc9   :  { %v689_v17 = vadd.f32 %v684_v11, %v213_v13  ;;  %v692_v18 = vadd.f32 %v684_v11, %v221_v14  ;;  %v211_v19 = vmul.f32 %v679_v9, %v141_v15  ;;  %v219_v20 = vmul.f32 %v679_v9, %v173_v16 }
  0xca   :  { %v528_v21 = vpop.f32.mrf.mxu0  ;;  %v536_v22 = vpop.f32.mrf.mxu1 }
  0xcb   :  { %v468_v23 = vmul.f32 -1.442695, %v689_v17  ;;  %v476_v24 = vmul.f32 -1.442695, %v692_v18  ;;  %v699_v25 = vadd.f32 %v684_v11, %v211_v19  ;;  %v702_v26 = vadd.f32 %v684_v11, %v219_v20 }
  0xcc   :  { %v214_v27 = vmul.f32 %v528_v21, %v679_v9  ;;  %v222_v28 = vmul.f32 %v536_v22, %v679_v9  ;;  %v144_v29 = vpop.f32.mrf.mxu0  ;;  %v176_v30 = vpop.f32.mrf.mxu1 }
  0xcd   :  { %552 = vpow2.f32 %v468_v23  ;;  %v466_v31 = vmul.f32 -1.442695, %v699_v25  ;;  %v474_v32 = vmul.f32 -1.442695, %v702_v26  ;;  %v212_v33 = vmul.f32 %v679_v9, %v144_v29 }
  0xce   :  { %554 = vpow2.f32 %v476_v24  ;;  %v710_v34 = vadd.f32 %v684_v11, %v214_v27  ;;  %v713_v35 = vadd.f32 %v684_v11, %v222_v28  ;;  %v220_v36 = vmul.f32 %v679_v9, %v176_v30  ;;  %v531_v37 = vpop.f32.mrf.mxu0  ;;  %v539_v38 = vpop.f32.mrf.mxu1 }
  0xcf   :  { %556 = vpow2.f32 %v466_v31  ;;  %v717_v39 = vadd.f32 %v684_v11, %v212_v33  ;;  %v217_v40 = vmul.f32 %v531_v37, %v679_v9  ;;  %v225_v41 = vmul.f32 %v539_v38, %v679_v9 }
  0xd0   :  { %558 = vpow2.f32 %v474_v32  ;;  %v469_v42 = vmul.f32 -1.442695, %v710_v34  ;;  %v477_v43 = vmul.f32 -1.442695, %v713_v35  ;;  %v724_v44 = vadd.f32 %v684_v11, %v220_v36  ;;  %v157_v45 = vpop.f32.mrf.mxu0  ;;  %v189_v46 = vpop.f32.mrf.mxu1 }
  0xd1   :  { %v467_v47 = vmul.f32 -1.442695, %v717_v39  ;;  %v728_v48 = vadd.f32 %v684_v11, %v217_v40  ;;  %v731_v49 = vadd.f32 %v684_v11, %v225_v41  ;;  %v215_v50 = vmul.f32 %v679_v9, %v157_v45 }
  0xd2   :  { %560 = vpow2.f32 %v469_v42  ;;  %v475_v51 = vmul.f32 -1.442695, %v724_v44  ;;  %v223_v52 = vmul.f32 %v679_v9, %v189_v46  ;;  %v532_v53 = vpop.f32.mrf.mxu0  ;;  %v540_v54 = vpop.f32.mrf.mxu1 }
  0xd3   :  { %562 = vpow2.f32 %v477_v43  ;;  %v472_v55 = vmul.f32 -1.442695, %v728_v48  ;;  %v480_v56 = vmul.f32 -1.442695, %v731_v49  ;;  %v739_v57 = vadd.f32 %v684_v11, %v215_v50 }
  0xd4   :  { %564 = vpow2.f32 %v467_v47  ;;  %v742_v58 = vadd.f32 %v684_v11, %v223_v52  ;;  %v218_v59 = vmul.f32 %v532_v53, %v679_v9  ;;  %v226_v60 = vmul.f32 %v540_v54, %v679_v9  ;;  %v160_v61 = vpop.f32.mrf.mxu0  ;;  %v192_v62 = vpop.f32.mrf.mxu1 }
  0xd5   :  { %566 = vpow2.f32 %v475_v51  ;;  %v470_v63 = vmul.f32 -1.442695, %v739_v57  ;;  %v216_v0 = vmul.f32 %v679_v9, %v160_v61  ;;  %v224_v1 = vmul.f32 %v679_v9, %v192_v62 }
  0xd6   :  { %568 = vpow2.f32 %v472_v55  ;;  %v478_v2 = vmul.f32 -1.442695, %v742_v58  ;;  %v751_v3 = vadd.f32 %v684_v11, %v218_v59  ;;  %v754_v4 = vadd.f32 %v684_v11, %v226_v60 }
  0xd7   :  { %570 = vpow2.f32 %v480_v56  ;;  %v757_v5 = vadd.f32 %v684_v11, %v216_v0  ;;  %v763_v9 = vadd.f32 %v684_v11, %v224_v1 }
  0xd8   :  { %572 = vpow2.f32 %v470_v63  ;;  %v473_v6 = vmul.f32 -1.442695, %v751_v3  ;;  %v481_v7 = vmul.f32 -1.442695, %v754_v4 }
  0xd9   :  { %574 = vpow2.f32 %v478_v2  ;;  %v471_v8 = vmul.f32 -1.442695, %v757_v5  ;;  %v479_v20 = vmul.f32 -1.442695, %v763_v9 }
  0xda   :  { %v553_v10 = vpop.eup %552  ;;  %576 = vpow2.f32 %v473_v6 }
  0xdb   :  { %v555_v12 = vpop.eup %554  ;;  %v300_v13 = vadd.f32 1.0, %v553_v10  ;;  %578 = vpow2.f32 %v481_v7 }
  0xdc   :  { %v557_v14 = vpop.eup %556  ;;  %v308_v15 = vadd.f32 1.0, %v555_v12  ;;  %580 = vpow2.f32 %v471_v8 }
  0xdd   :  { %v559_v16 = vpop.eup %558  ;;  %582 = vrcp.f32 %v300_v13  ;;  %v298_v19 = vadd.f32 1.0, %v557_v14 }
  0xde   :  { %584 = vrcp.f32 %v308_v15  ;;  %v306_v21 = vadd.f32 1.0, %v559_v16 }
  0xdf   :  { %v561_v22 = vpop.eup %560  ;;  %586 = vrcp.f32 %v298_v19 }
  0xe0   :  { %v563_v23 = vpop.eup %562  ;;  %588 = vrcp.f32 %v306_v21  ;;  %v301_v11 = vadd.f32 1.0, %v561_v22 }
  0xe1   :  { %v565_v24 = vpop.eup %564  ;;  %v309_v27 = vadd.f32 1.0, %v563_v23  ;;  %590 = vpow2.f32 %v479_v20 }
  0xe2   :  { %v567_v28 = vpop.eup %566  ;;  %592 = vrcp.f32 %v301_v11  ;;  %v299_v29 = vadd.f32 1.0, %v565_v24 }
  0xe3   :  { %v569_v30 = vpop.eup %568  ;;  %594 = vrcp.f32 %v309_v27  ;;  %v307_v31 = vadd.f32 1.0, %v567_v28 }
  0xe4   :  { %v571_v32 = vpop.eup %570  ;;  %596 = vrcp.f32 %v299_v29  ;;  %v304_v33 = vadd.f32 1.0, %v569_v30 }
  0xe5   :  { %v573_v36 = vpop.eup %572  ;;  %598 = vrcp.f32 %v307_v31  ;;  %v312_v37 = vadd.f32 1.0, %v571_v32 }
  0xe6   :  { %v575_v38 = vpop.eup %574  ;;  %600 = vrcp.f32 %v304_v33  ;;  %v302_v40 = vadd.f32 1.0, %v573_v36 }
  0xe7   :  { %v577_v41 = vpop.eup %576  ;;  %602 = vrcp.f32 %v312_v37  ;;  %v310_v42 = vadd.f32 1.0, %v575_v38 }
  0xe8   :  { %v579_v43 = vpop.eup %578  ;;  %604 = vrcp.f32 %v302_v40  ;;  %v305_v45 = vadd.f32 1.0, %v577_v41 }
  0xe9   :  { %v581_v46 = vpop.eup %580  ;;  %606 = vrcp.f32 %v310_v42  ;;  %v313_v47 = vadd.f32 1.0, %v579_v43 }
  0xea   :  { %v583_v50 = vpop.eup %582  ;;  %608 = vrcp.f32 %v305_v45  ;;  %v303_v51 = vadd.f32 1.0, %v581_v46 }
  0xeb   :  { %v585_v52 = vpop.eup %584  ;;  %v348_v53 = vmul.f32 %v583_v50, %v689_v17  ;;  %610 = vrcp.f32 %v313_v47 }
  0xec   :  { %v587_v54 = vpop.eup %586  ;;  %v356_v55 = vmul.f32 %v585_v52, %v692_v18  ;;  %612 = vrcp.f32 %v303_v51 }
  0xed   :  { %v589_v56 = vpop.eup %588  ;;  %v500_v59 = vpack.c.bf16 %v348_v53, %v348_v53  ;;  %v346_v60 = vmul.f32 %v587_v54, %v699_v25 }
  0xee   :  { %v591_v61 = vpop.eup %590  ;;  %v508_v62 = vpack.c.bf16 %v356_v55, %v356_v55  ;;  %v354_v63 = vmul.f32 %v589_v56, %v702_v26 }
  0xef   :  { %v593_v0 = vpop.eup %592  ;;  %429 = vst.msk [vmem:[%s850_s4 + $0x8] sm:$0xf] %vm426_vm1, %v500_v59  ;;  %v498_v17 = vpack.c.bf16 %v346_v60, %v346_v60  ;;  %v311_v1 = vadd.f32 1.0, %v591_v61 }
  0xf0   :  { %v595_v2 = vpop.eup %594  ;;  %437 = vst.msk [vmem:[%s850_s4 + $0x28] sm:$0xf] %vm426_vm1, %v508_v62  ;;  %v506_v18 = vpack.c.bf16 %v354_v63, %v354_v63  ;;  %v349_v25 = vmul.f32 %v593_v0, %v710_v34 }
  0xf1   :  { %v597_v6 = vpop.eup %596  ;;  %427 = vst.msk [vmem:[%s850_s4] sm:$0xf] %vm426_vm1, %v498_v17  ;;  %v357_v26 = vmul.f32 %v595_v2, %v713_v35  ;;  %614 = vrcp.f32 %v311_v1 }
  0xf2   :  { %v599_v7 = vpop.eup %598  ;;  %435 = vst.msk [vmem:[%s850_s4 + $0x20] sm:$0xf] %vm426_vm1, %v506_v18  ;;  %v501_v8 = vpack.c.bf16 %v349_v25, %v349_v25  ;;  %v347_v10 = vmul.f32 %v597_v6, %v717_v39 }
  0xf3   :  { %v601_v12 = vpop.eup %600  ;;  %v509_v34 = vpack.c.bf16 %v357_v26, %v357_v26  ;;  %v355_v13 = vmul.f32 %v599_v7, %v724_v44 }
  0xf4   :  { %v603_v14 = vpop.eup %602  ;;  %430 = vst.msk [vmem:[%s850_s4 + $0xc] sm:$0xf] %vm426_vm1, %v501_v8  ;;  %v499_v35 = vpack.c.bf16 %v347_v10, %v347_v10  ;;  %v352_v15 = vmul.f32 %v601_v12, %v728_v48 }
  0xf5   :  { %v605_v16 = vpop.eup %604  ;;  %438 = vst.msk [vmem:[%s850_s4 + $0x2c] sm:$0xf] %vm426_vm1, %v509_v34  ;;  %v507_v39 = vpack.c.bf16 %v355_v13, %v355_v13  ;;  %v360_v19 = vmul.f32 %v603_v14, %v731_v49 }
  0xf6   :  { %v607_v20 = vpop.eup %606  ;;  %428 = vst.msk [vmem:[%s850_s4 + $0x4] sm:$0xf] %vm426_vm1, %v499_v35  ;;  %v504_v44 = vpack.c.bf16 %v352_v15, %v352_v15  ;;  %v350_v21 = vmul.f32 %v605_v16, %v739_v57 }
  0xf7   :  { %v609_v22 = vpop.eup %608  ;;  %436 = vst.msk [vmem:[%s850_s4 + $0x24] sm:$0xf] %vm426_vm1, %v507_v39  ;;  %v512_v48 = vpack.c.bf16 %v360_v19, %v360_v19  ;;  %v358_v23 = vmul.f32 %v607_v20, %v742_v58 }
  0xf8   :  { %v611_v11 = vpop.eup %610  ;;  %433 = vst.msk [vmem:[%s850_s4 + $0x18] sm:$0xf] %vm426_vm1, %v504_v44  ;;  %v502_v49 = vpack.c.bf16 %v350_v21, %v350_v21  ;;  %v353_v24 = vmul.f32 %v609_v22, %v751_v3 }
  0xf9   :  { %v613_v27 = vpop.eup %612  ;;  %441 = vst.msk [vmem:[%s850_s4 + $0x38] sm:$0xf] %vm426_vm1, %v512_v48  ;;  %v510_v57 = vpack.c.bf16 %v358_v23, %v358_v23  ;;  %v361_v28 = vmul.f32 %v611_v11, %v754_v4 }
  0xfa   :  { %431 = vst.msk [vmem:[%s850_s4 + $0x10] sm:$0xf] %vm426_vm1, %v502_v49  ;;  %v505_v58 = vpack.c.bf16 %v353_v24, %v353_v24  ;;  %v351_v29 = vmul.f32 %v613_v27, %v757_v5 }
  0xfb   :  { %439 = vst.msk [vmem:[%s850_s4 + $0x30] sm:$0xf] %vm426_vm1, %v510_v57  ;;  %v513_v3 = vpack.c.bf16 %v361_v28, %v361_v28 }
  0xfc   :  { %434 = vst.msk [vmem:[%s850_s4 + $0x1c] sm:$0xf] %vm426_vm1, %v505_v58  ;;  %v503_v4 = vpack.c.bf16 %v351_v29, %v351_v29 }
  0xfd   :  { %442 = vst.msk [vmem:[%s850_s4 + $0x3c] sm:$0xf] %vm426_vm1, %v513_v3 }
  0xfe   :  { %v615_v30 = vpop.eup %614  ;;  %432 = vst.msk [vmem:[%s850_s4 + $0x14] sm:$0xf] %vm426_vm1, %v503_v4 }
  0xff   :  { %v359_v5 = vmul.f32 %v615_v30, %v763_v9 }
 0x101   :  { %v511_v31 = vpack.c.bf16 %v359_v5, %v359_v5 }
 0x103   :  { %440 = vst.msk [vmem:[%s850_s4 + $0x34] sm:$0xf] %vm426_vm1, %v511_v31 }

// kernel: panet_forward.46
= control target key start
LH: loop header
LB: loop body
LE: loop exit
PB: predicated region body
PF: predicated region fallthrough
CT: control target
= control target key end

     0   :  { %s2142_s21 = smov 0   ;;  %s2144_s22 = smov 0   ;;  %s2525_s0 = inlined_call_operand.vmem [shape: bf16[512,8], index: 0, kind: input, shape index: {}]   ;;  %s2526_s1 = inlined_call_operand.vmem [shape: bf16[512,8], index: 1, kind: input, shape index: {}]   ;;  %s2527_s2 = inlined_call_operand.vmem [shape: bf16[8,8], index: 2, kind: input, shape index: {}]   ;;  %s2528_s3 = inlined_call_operand.vmem [shape: bf16[8,8], index: 3, kind: input, shape index: {}]   ;;  %s2529_s4 = inlined_call_operand.vmem [shape: f32[1,8], index: 4, kind: input, shape index: {}]   ;;  %s2530_s5 = inlined_call_operand.vmem [shape: f32[1,8], index: 5, kind: input, shape index: {}]   ;;  %s2531_s6 = inlined_call_operand.vmem [shape: bf16[512,8], index: 6, kind: output, shape index: {}]  }
   0x1   :  { %s2146_s23 = smov 0  }
   0x2 LB: > { %s28_s24 = sadd.s32 1, %s2101_s22  ;;  %p1624_p0 = scmp.ge.s32.totalorder %s2105_s23, 1  ;;  %s2105_s23 = sphi %s2146_s23, %s16_s23   ;;  %s2101_s22 = sphi %s2144_s22, %s2533_s22   ;;  %s2097_s21 = sphi %s2142_s21, %s2532_s21  }
   0x3   : > { %p30_p1 = scmp.ge.s32.totalorder %s28_s24, 2  ;;  %p272_p2 = scmp.lt.s32.totalorder %s2105_s23, 3 }
   0x5   : > { %s2535_s24 = smov (%p30_p1, %s28_s24), 0  ;;  %p273_p3 = pnand %p1624_p0, %p272_p2 }
   0x6   : > { %s1625_s29 = sshll.u32 (!%p273_p3), %s2097_s21, 5 }
   0x7   : > { %276 = sbr.rel (%p273_p3) target bundleno = 322 (0x142), region = 44  ;;  %p325_p4 = scmp.lt.s32.totalorder (!%p273_p3), %s1625_s29, 63 }
   0xc   : > { %v425_v0 = vld [vmem:[%s2528_s3] sm:$0xf]  ;;  %vm555_vm0 = vcmask 1043456   ;;  %s2537_s29 = smov (!%p325_p4, %s1625_s29), 63  ;;  %vm506_vm1 = vcmask 64512   ;;  %vm1442_vm2 = vcmask 60416  }
   0xd   : > { %v392_v1 = vld [vmem:[%s2527_s2] sm:$0xf]  ;;  %1897 = vmatprep.subr.msk.bf16.mxu0 %vm555_vm0, %v425_v0  ;;  %v557_v2 = vsel %vm555_vm0, %v425_v0, 0  ;;  %s2166_s30 = sshll.u32 %s2537_s29, 2 }
   0xe   : > { %1898 = vmatprep.subr.msk.bf16.mxu1 %vm555_vm0, %v392_v1  ;;  %v849_v3 = vsel %vm555_vm0, %v392_v1, 0  ;;  %1830 = vmatpush3.bf16.msra.mxu0 %v557_v2  ;;  %s2172_s9 = scalar_lea.vmem %s2526_s1, %s2166_s30  ;;  %s2179_s12 = scalar_lea.vmem %s2525_s0, %s2166_s30  ;;  %v2247_v38 = vld [vmem:[%s2529_s4] ss:$0 sm:$0xff] }
   0xf   : > { %1864 = vmatpush3.bf16.msra.mxu1 %v849_v3  ;;  %v1923_v4 = vld [vmem:[%s2172_s9] sm:$0xff]   ;;  %v1925_v6 = vld [vmem:[%s2172_s9 + $0x8] sm:$0xff]   ;;  %v1927_v8 = vld [vmem:[%s2172_s9 + $0x10] sm:$0xff]   ;;  %s2345_s19 = scalar_lea.vmem %s2531_s6, %s2166_s30 }
  0x10   : > { %v1924_v5 = vld [vmem:[%s2179_s12] sm:$0xff]   ;;  %1831 = vmatprep.mubr.msk.bf16.mxu0 %vm506_vm1, %v1923_v4  ;;  %v1926_v7 = vld [vmem:[%s2179_s12 + $0x8] sm:$0xff]   ;;  %v1928_v9 = vld [vmem:[%s2179_s12 + $0x10] sm:$0xff]  }
  0x11   : > { %1865 = vmatprep.mubr.msk.bf16.mxu1 %vm506_vm1, %v1924_v5  ;;  %1832 = vmatmul.mubr.msk.bf16.vlgmr.msra.gmra.mxu0 %vm506_vm1, %v1925_v6  ;;  %v1929_v10 = vld [vmem:[%s2172_s9 + $0x18] sm:$0xff]   ;;  %v1931_v12 = vld [vmem:[%s2172_s9 + $0x20] sm:$0xff]   ;;  %v1933_v14 = vld [vmem:[%s2172_s9 + $0x28] sm:$0xff]  }
  0x12   : > { %1866 = vmatmul.mubr.msk.bf16.vlgmr.msra.gmra.mxu1 %vm506_vm1, %v1926_v7  ;;  %1835 = vmatprep.mubr.msk.bf16.mxu0 %vm506_vm1, %v1927_v8  ;;  %v1930_v11 = vld [vmem:[%s2179_s12 + $0x18] sm:$0xff]   ;;  %v1932_v13 = vld [vmem:[%s2179_s12 + $0x20] sm:$0xff]   ;;  %v1934_v15 = vld [vmem:[%s2179_s12 + $0x28] sm:$0xff]  }
  0x13   : > { %1869 = vmatprep.mubr.msk.bf16.mxu1 %vm506_vm1, %v1928_v9  ;;  %v1935_v16 = vld [vmem:[%s2172_s9 + $0x30] sm:$0xff]   ;;  %v1937_v18 = vld [vmem:[%s2172_s9 + $0x38] sm:$0xff]   ;;  %v1939_v20 = vld [vmem:[%s2172_s9 + $0x40] sm:$0xff]  }
  0x14   : > { %v1936_v17 = vld [vmem:[%s2179_s12 + $0x30] sm:$0xff]   ;;  %v1938_v19 = vld [vmem:[%s2179_s12 + $0x38] sm:$0xff]   ;;  %v1940_v21 = vld [vmem:[%s2179_s12 + $0x40] sm:$0xff]  }
  0x15   : > { %v1941_v22 = vld [vmem:[%s2172_s9 + $0x48] sm:$0xff]   ;;  %v1943_v24 = vld [vmem:[%s2172_s9 + $0x50] sm:$0xff]   ;;  %v1945_v26 = vld [vmem:[%s2172_s9 + $0x58] sm:$0xff]  }
  0x16   : > { %v1942_v23 = vld [vmem:[%s2179_s12 + $0x48] sm:$0xff]   ;;  %v1944_v25 = vld [vmem:[%s2179_s12 + $0x50] sm:$0xff]   ;;  %v1946_v27 = vld [vmem:[%s2179_s12 + $0x58] sm:$0xff]  }
  0x17   : > { %v1947_v28 = vld [vmem:[%s2172_s9 + $0x60] sm:$0xff]   ;;  %v1949_v30 = vld [vmem:[%s2172_s9 + $0x68] sm:$0xff]   ;;  %v1951_v32 = vld [vmem:[%s2172_s9 + $0x70] sm:$0xff]  }
  0x18   : > { %v1948_v29 = vld [vmem:[%s2179_s12 + $0x60] sm:$0xff]   ;;  %v1950_v31 = vld [vmem:[%s2179_s12 + $0x68] sm:$0xff]   ;;  %v1952_v33 = vld [vmem:[%s2179_s12 + $0x70] sm:$0xff]  }
  0x19   : > { %1836 = vmatmul.mubr.msk.bf16.gmra.mxu0 %vm506_vm1, %v1929_v10  ;;  %v1953_v34 = vld [vmem:[%s2172_s9 + $0x78] sm:$0xff]   ;;  %v2252_v41 = vld [vmem:[%s2530_s5] ss:$0 sm:$0xff] }
  0x1a   : > { %1870 = vmatmul.mubr.msk.bf16.gmra.mxu1 %vm506_vm1, %v1930_v11  ;;  %1839 = vmatprep.mubr.msk.bf16.mxu0 %vm506_vm1, %v1931_v12  ;;  %v1954_v35 = vld [vmem:[%s2179_s12 + $0x78] sm:$0xff]  }
  0x1b   : > { %1873 = vmatprep.mubr.msk.bf16.mxu1 %vm506_vm1, %v1932_v13 }
  0x21   : > { %1840 = vmatmul.mubr.msk.bf16.gmra.mxu0 %vm506_vm1, %v1933_v14 }
  0x22   : > { %1874 = vmatmul.mubr.msk.bf16.gmra.mxu1 %vm506_vm1, %v1934_v15  ;;  %1843 = vmatprep.mubr.msk.bf16.mxu0 %vm506_vm1, %v1935_v16 }
  0x23   : > { %1877 = vmatprep.mubr.msk.bf16.mxu1 %vm506_vm1, %v1936_v17 }
  0x29   : > { %1844 = vmatmul.mubr.msk.bf16.gmra.mxu0 %vm506_vm1, %v1937_v18 }
  0x2a   : > { %1878 = vmatmul.mubr.msk.bf16.gmra.mxu1 %vm506_vm1, %v1938_v19  ;;  %1847 = vmatprep.mubr.msk.bf16.mxu0 %vm506_vm1, %v1939_v20 }
  0x2b   : > { %1881 = vmatprep.mubr.msk.bf16.mxu1 %vm506_vm1, %v1940_v21 }
  0x31   : > { %1848 = vmatmul.mubr.msk.bf16.gmra.mxu0 %vm506_vm1, %v1941_v22 }
  0x32   : > { %1882 = vmatmul.mubr.msk.bf16.gmra.mxu1 %vm506_vm1, %v1942_v23  ;;  %1851 = vmatprep.mubr.msk.bf16.mxu0 %vm506_vm1, %v1943_v24 }
  0x33   : > { %1885 = vmatprep.mubr.msk.bf16.mxu1 %vm506_vm1, %v1944_v25 }
  0x39   : > { %1852 = vmatmul.mubr.msk.bf16.gmra.mxu0 %vm506_vm1, %v1945_v26 }
  0x3a   : > { %1886 = vmatmul.mubr.msk.bf16.gmra.mxu1 %vm506_vm1, %v1946_v27  ;;  %1855 = vmatprep.mubr.msk.bf16.mxu0 %vm506_vm1, %v1947_v28 }
  0x3b   : > { %1889 = vmatprep.mubr.msk.bf16.mxu1 %vm506_vm1, %v1948_v29 }
  0x41   : > { %1856 = vmatmul.mubr.msk.bf16.gmra.mxu0 %vm506_vm1, %v1949_v30 }
  0x42   : > { %1890 = vmatmul.mubr.msk.bf16.gmra.mxu1 %vm506_vm1, %v1950_v31  ;;  %1859 = vmatprep.mubr.msk.bf16.mxu0 %vm506_vm1, %v1951_v32 }
  0x43   : > { %1893 = vmatprep.mubr.msk.bf16.mxu1 %vm506_vm1, %v1952_v33 }
  0x49   : > { %1860 = vmatmul.mubr.msk.bf16.gmra.mxu0 %vm506_vm1, %v1953_v34 }
  0x4a   : > { %1894 = vmatmul.mubr.msk.bf16.gmra.mxu1 %vm506_vm1, %v1954_v35 }
  0xd1   : > { %v1833_v36 = vpop.f32.mrf.mxu0 }
  0xd2   : > { %v1867_v37 = vpop.f32.mrf.mxu1 }
  0xd3   : > { %v894_v39 = vadd.f32 %v1867_v37, %v1833_v36  ;;  %v593_v40 = vpop.f32.mrf.mxu0 }
  0xd4   : > { %v885_v42 = vpop.f32.mrf.mxu1 }
  0xd5   : > { %v1021_v43 = vmul.f32 %v2247_v38, %v894_v39  ;;  %v886_v44 = vadd.f32 %v885_v42, %v593_v40  ;;  %v1834_v45 = vpop.f32.mrf.mxu0 }
  0xd6   : > { %v1868_v46 = vpop.f32.mrf.mxu1 }
  0xd7   : > { %v2256_v47 = vadd.f32 %v2252_v41, %v1021_v43  ;;  %v1019_v48 = vmul.f32 %v2247_v38, %v886_v44  ;;  %v897_v49 = vadd.f32 %v1868_v46, %v1834_v45  ;;  %v596_v50 = vpop.f32.mrf.mxu0 }
  0xd8   : > { %v888_v51 = vpop.f32.mrf.mxu1 }
  0xd9   : > { %v1699_v52 = vmul.f32 -1.442695, %v2256_v47  ;;  %v2261_v53 = vadd.f32 %v2252_v41, %v1019_v48  ;;  %v1022_v54 = vmul.f32 %v2247_v38, %v897_v49  ;;  %v889_v55 = vadd.f32 %v888_v51, %v596_v50  ;;  %v1837_v56 = vpop.f32.mrf.mxu0 }
  0xda   : > { %v1871_v57 = vpop.f32.mrf.mxu1 }
  0xdb   : > { %1955 = vpow2.f32 %v1699_v52  ;;  %v1697_v58 = vmul.f32 -1.442695, %v2261_v53  ;;  %v2266_v59 = vadd.f32 %v2252_v41, %v1022_v54  ;;  %v1020_v60 = vmul.f32 %v2247_v38, %v889_v55  ;;  %v609_v61 = vpop.f32.mrf.mxu0 }
  0xdc   : > { %v910_v62 = vadd.f32 %v1871_v57, %v1837_v56  ;;  %v901_v63 = vpop.f32.mrf.mxu1 }
  0xdd   : > { %1957 = vpow2.f32 %v1697_v58  ;;  %v1700_v0 = vmul.f32 -1.442695, %v2266_v59  ;;  %v2271_v1 = vadd.f32 %v2252_v41, %v1020_v60  ;;  %v902_v2 = vadd.f32 %v901_v63, %v609_v61  ;;  %v1838_v3 = vpop.f32.mrf.mxu0 }
  0xde   : > { %v1025_v4 = vmul.f32 %v2247_v38, %v910_v62  ;;  %v1872_v5 = vpop.f32.mrf.mxu1 }
  0xdf   : > { %1959 = vpow2.f32 %v1700_v0  ;;  %v1698_v6 = vmul.f32 -1.442695, %v2271_v1  ;;  %v1023_v7 = vmul.f32 %v2247_v38, %v902_v2  ;;  %v913_v8 = vadd.f32 %v1872_v5, %v1838_v3  ;;  %v612_v9 = vpop.f32.mrf.mxu0 }
  0xe0   : > { %v2277_v10 = vadd.f32 %v2252_v41, %v1025_v4  ;;  %v904_v11 = vpop.f32.mrf.mxu1 }
  0xe1   : > { %1961 = vpow2.f32 %v1698_v6  ;;  %v2280_v12 = vadd.f32 %v2252_v41, %v1023_v7  ;;  %v1026_v13 = vmul.f32 %v2247_v38, %v913_v8  ;;  %v905_v14 = vadd.f32 %v904_v11, %v612_v9  ;;  %v1841_v15 = vpop.f32.mrf.mxu0 }
  0xe2   : > { %v1703_v16 = vmul.f32 -1.442695, %v2277_v10  ;;  %v1875_v17 = vpop.f32.mrf.mxu1 }
  0xe3   : > { %v1701_v18 = vmul.f32 -1.442695, %v2280_v12  ;;  %v2286_v19 = vadd.f32 %v2252_v41, %v1026_v13  ;;  %v1024_v20 = vmul.f32 %v2247_v38, %v905_v14  ;;  %v926_v21 = vadd.f32 %v1875_v17, %v1841_v15  ;;  %v625_v22 = vpop.f32.mrf.mxu0 }
  0xe4   : > { %1963 = vpow2.f32 %v1703_v16  ;;  %v917_v23 = vpop.f32.mrf.mxu1 }
  0xe5   : > { %1965 = vpow2.f32 %v1701_v18  ;;  %v1704_v24 = vmul.f32 -1.442695, %v2286_v19  ;;  %v2291_v25 = vadd.f32 %v2252_v41, %v1024_v20  ;;  %v1029_v26 = vmul.f32 %v2247_v38, %v926_v21  ;;  %v1842_v27 = vpop.f32.mrf.mxu0 }
  0xe6   : > { %v918_v28 = vadd.f32 %v917_v23, %v625_v22  ;;  %v1876_v29 = vpop.f32.mrf.mxu1 }
  0xe7   : > { %1967 = vpow2.f32 %v1704_v24  ;;  %v1702_v30 = vmul.f32 -1.442695, %v2291_v25  ;;  %v2296_v31 = vadd.f32 %v2252_v41, %v1029_v26  ;;  %v929_v32 = vadd.f32 %v1876_v29, %v1842_v27  ;;  %v628_v33 = vpop.f32.mrf.mxu0 }
  0xe8   : > { %v1956_v34 = vpop.eup %1955  ;;  %v1027_v35 = vmul.f32 %v2247_v38, %v918_v28  ;;  %v920_v36 = vpop.f32.mrf.mxu1 }
  0xe9   : > { %v1188_v37 = vadd.f32 1.0, %v1956_v34  ;;  %1969 = vpow2.f32 %v1702_v30  ;;  %v1707_v39 = vmul.f32 -1.442695, %v2296_v31  ;;  %v1030_v40 = vmul.f32 %v2247_v38, %v929_v32  ;;  %v1845_v42 = vpop.f32.mrf.mxu0 }
  0xea   : > { %v1958_v43 = vpop.eup %1957  ;;  %v2302_v44 = vadd.f32 %v2252_v41, %v1027_v35  ;;  %v921_v45 = vadd.f32 %v920_v36, %v628_v33  ;;  %v1879_v46 = vpop.f32.mrf.mxu1 }
  0xeb   : > { %1971 = vrcp.f32 %v1188_v37  ;;  %v1186_v48 = vadd.f32 1.0, %v1958_v43  ;;  %v2305_v49 = vadd.f32 %v2252_v41, %v1030_v40  ;;  %v942_v50 = vadd.f32 %v1879_v46, %v1845_v42  ;;  %v641_v51 = vpop.f32.mrf.mxu0 }
  0xec   : > { %v1960_v52 = vpop.eup %1959  ;;  %1973 = vpow2.f32 %v1707_v39  ;;  %v1705_v54 = vmul.f32 -1.442695, %v2302_v44  ;;  %v1028_v55 = vmul.f32 %v2247_v38, %v921_v45  ;;  %v933_v56 = vpop.f32.mrf.mxu1 }
  0xed   : > { %1975 = vrcp.f32 %v1186_v48  ;;  %v1189_v57 = vadd.f32 1.0, %v1960_v52  ;;  %v1708_v58 = vmul.f32 -1.442695, %v2305_v49  ;;  %v1033_v60 = vmul.f32 %v2247_v38, %v942_v50  ;;  %v1846_v61 = vpop.f32.mrf.mxu0 }
  0xee   : > { %v1962_v62 = vpop.eup %1961  ;;  %1977 = vpow2.f32 %v1705_v54  ;;  %v2312_v63 = vadd.f32 %v2252_v41, %v1028_v55  ;;  %v934_v0 = vadd.f32 %v933_v56, %v641_v51  ;;  %v1880_v2 = vpop.f32.mrf.mxu1 }
  0xef   : > { %1979 = vrcp.f32 %v1189_v57  ;;  %v1187_v3 = vadd.f32 1.0, %v1962_v62  ;;  %v2315_v4 = vadd.f32 %v2252_v41, %v1033_v60  ;;  %v945_v5 = vadd.f32 %v1880_v2, %v1846_v61  ;;  %v644_v6 = vpop.f32.mrf.mxu0 }
  0xf0   : > { %1981 = vpow2.f32 %v1708_v58  ;;  %v1706_v7 = vmul.f32 -1.442695, %v2312_v63  ;;  %v1031_v8 = vmul.f32 %v2247_v38, %v934_v0  ;;  %v936_v9 = vpop.f32.mrf.mxu1 }
  0xf1   : > { %v1964_v11 = vpop.eup %1963  ;;  %1983 = vrcp.f32 %v1187_v3  ;;  %v1711_v13 = vmul.f32 -1.442695, %v2315_v4  ;;  %v1034_v14 = vmul.f32 %v2247_v38, %v945_v5  ;;  %v937_v15 = vadd.f32 %v936_v9, %v644_v6  ;;  %v1849_v16 = vpop.f32.mrf.mxu0 }
  0xf2   : > { %v1966_v17 = vpop.eup %1965  ;;  %v1192_v18 = vadd.f32 1.0, %v1964_v11  ;;  %1985 = vpow2.f32 %v1706_v7  ;;  %v2322_v20 = vadd.f32 %v2252_v41, %v1031_v8  ;;  %v1883_v21 = vpop.f32.mrf.mxu1 }
  0xf3   : > { %v1190_v22 = vadd.f32 1.0, %v1966_v17  ;;  %1987 = vpow2.f32 %v1711_v13  ;;  %v2325_v23 = vadd.f32 %v2252_v41, %v1034_v14  ;;  %v1032_v24 = vmul.f32 %v2247_v38, %v937_v15  ;;  %v657_v26 = vpop.f32.mrf.mxu0 }
  0xf4   : > { %v1968_v27 = vpop.eup %1967  ;;  %1989 = vrcp.f32 %v1192_v18  ;;  %v1709_v28 = vmul.f32 -1.442695, %v2322_v20  ;;  %v958_v29 = vadd.f32 %v1883_v21, %v1849_v16  ;;  %v949_v30 = vpop.f32.mrf.mxu1 }
  0xf5   : > { %1991 = vrcp.f32 %v1190_v22  ;;  %v1193_v32 = vadd.f32 1.0, %v1968_v27  ;;  %v1712_v33 = vmul.f32 -1.442695, %v2325_v23  ;;  %v2331_v34 = vadd.f32 %v2252_v41, %v1032_v24  ;;  %v1850_v35 = vpop.f32.mrf.mxu0 }
  0xf6   : > { %v1970_v36 = vpop.eup %1969  ;;  %1993 = vpow2.f32 %v1709_v28  ;;  %v1037_v37 = vmul.f32 %v2247_v38, %v958_v29  ;;  %v950_v39 = vadd.f32 %v949_v30, %v657_v26  ;;  %v1884_v40 = vpop.f32.mrf.mxu1 }
  0xf7   : > { %1995 = vrcp.f32 %v1193_v32  ;;  %v1191_v42 = vadd.f32 1.0, %v1970_v36  ;;  %v1710_v43 = vmul.f32 -1.442695, %v2331_v34  ;;  %v961_v45 = vadd.f32 %v1884_v40, %v1850_v35  ;;  %v660_v46 = vpop.f32.mrf.mxu0 }
  0xf8   : > { %v1972_v48 = vpop.eup %1971  ;;  %1997 = vpow2.f32 %v1712_v33  ;;  %v2336_v50 = vadd.f32 %v2252_v41, %v1037_v37  ;;  %v1035_v51 = vmul.f32 %v2247_v38, %v950_v39  ;;  %v952_v52 = vpop.f32.mrf.mxu1 }
  0xf9   : > { %v1974_v54 = vpop.eup %1973  ;;  %v1284_v55 = vmul.f32 %v1972_v48, %v2256_v47  ;;  %1999 = vrcp.f32 %v1191_v42  ;;  %v1038_v56 = vmul.f32 %v2247_v38, %v961_v45  ;;  %v953_v57 = vadd.f32 %v952_v52, %v660_v46  ;;  %v1853_v58 = vpop.f32.mrf.mxu0 }
  0xfa   : > { %v1976_v60 = vpop.eup %1975  ;;  %v1196_v61 = vadd.f32 1.0, %v1974_v54  ;;  %2001 = vpow2.f32 %v1710_v43  ;;  %v1715_v62 = vmul.f32 -1.442695, %v2336_v50  ;;  %v2349_v0 = vadd.f32 %v2252_v41, %v1035_v51  ;;  %v1887_v47 = vpop.f32.mrf.mxu1 }
  0xfb   : > { %v1978_v2 = vpop.eup %1977  ;;  %v1765_v3 = vpack.c.bf16 %v1284_v55, %v1284_v55  ;;  %v1282_v5 = vmul.f32 %v1976_v60, %v2261_v53  ;;  %v2353_v6 = vadd.f32 %v2252_v41, %v1038_v56  ;;  %v1036_v7 = vmul.f32 %v2247_v38, %v953_v57  ;;  %v673_v8 = vpop.f32.mrf.mxu0 }
  0xfc   : > { %v1980_v9 = vpop.eup %1979  ;;  %2003 = vrcp.f32 %v1196_v61  ;;  %v1194_v11 = vadd.f32 1.0, %v1978_v2  ;;  %v1713_v13 = vmul.f32 -1.442695, %v2349_v0  ;;  %v974_v14 = vadd.f32 %v1887_v47, %v1853_v58  ;;  %v965_v15 = vpop.f32.mrf.mxu1 }
  0xfd   : > { %v1982_v16 = vpop.eup %1981  ;;  %1445 = vst.msk [vmem:[%s2345_s19 + $0x8] sm:$0xf] %vm1442_vm2, %v1765_v3  ;;  %v1763_v17 = vpack.c.bf16 %v1282_v5, %v1282_v5  ;;  %v1285_v53 = vmul.f32 %v1980_v9, %v2266_v59  ;;  %2005 = vpow2.f32 %v1715_v62  ;;  %v1716_v18 = vmul.f32 -1.442695, %v2353_v6  ;;  %v1854_v21 = vpop.f32.mrf.mxu0 }
  0xfe   : > { %v1984_v22 = vpop.eup %1983  ;;  %2007 = vrcp.f32 %v1194_v11  ;;  %v1197_v24 = vadd.f32 1.0, %v1982_v16  ;;  %v2362_v26 = vadd.f32 %v2252_v41, %v1036_v7  ;;  %v1041_v27 = vmul.f32 %v2247_v38, %v974_v14  ;;  %v1888_v28 = vpop.f32.mrf.mxu1 }
  0xff   : > { %v1986_v29 = vpop.eup %1985  ;;  %1443 = vst.msk [vmem:[%s2345_s19] sm:$0xf] %vm1442_vm2, %v1763_v17  ;;  %v1766_v30 = vpack.c.bf16 %v1285_v53, %v1285_v53  ;;  %v1283_v59 = vmul.f32 %v1984_v22, %v2271_v1  ;;  %2009 = vpow2.f32 %v1713_v13  ;;  %v966_v32 = vadd.f32 %v965_v15, %v673_v8  ;;  %v676_v33 = vpop.f32.mrf.mxu0 }
 0x100   : > { %v1988_v35 = vpop.eup %1987  ;;  %2011 = vrcp.f32 %v1197_v24  ;;  %v1195_v36 = vadd.f32 1.0, %v1986_v29  ;;  %v1714_v37 = vmul.f32 -1.442695, %v2362_v26  ;;  %v2370_v39 = vadd.f32 %v2252_v41, %v1041_v27  ;;  %v968_v40 = vpop.f32.mrf.mxu1 }
 0x101   : > { %v1990_v42 = vpop.eup %1989  ;;  %1446 = vst.msk [vmem:[%s2345_s19 + $0xc] sm:$0xf] %vm1442_vm2, %v1766_v30  ;;  %v1764_v43 = vpack.c.bf16 %v1283_v59, %v1283_v59  ;;  %v1200_v45 = vadd.f32 1.0, %v1988_v35  ;;  %2013 = vpow2.f32 %v1716_v18  ;;  %v1039_v1 = vmul.f32 %v2247_v38, %v966_v32  ;;  %v1857_v46 = vpop.f32.mrf.mxu0 }
 0x102   : > { %v1992_v48 = vpop.eup %1991  ;;  %v1288_v51 = vmul.f32 %v1990_v42, %v2277_v10  ;;  %2015 = vrcp.f32 %v1195_v36  ;;  %v1719_v52 = vmul.f32 -1.442695, %v2370_v39  ;;  %v977_v54 = vadd.f32 %v1888_v28, %v1854_v21  ;;  %v1891_v55 = vpop.f32.mrf.mxu1 }
 0x103   : > { %v1994_v56 = vpop.eup %1993  ;;  %1444 = vst.msk [vmem:[%s2345_s19 + $0x4] sm:$0xf] %vm1442_vm2, %v1764_v43  ;;  %v1286_v57 = vmul.f32 %v1992_v48, %v2280_v12  ;;  %2017 = vrcp.f32 %v1200_v45  ;;  %v2381_v58 = vadd.f32 %v2252_v41, %v1039_v1  ;;  %v969_v60 = vadd.f32 %v968_v40, %v676_v33  ;;  %v689_v61 = vpop.f32.mrf.mxu0 }
 0x104   : > { %v1996_v62 = vpop.eup %1995  ;;  %v1769_v47 = vpack.c.bf16 %v1288_v51, %v1288_v51  ;;  %v1198_v10 = vadd.f32 1.0, %v1994_v56  ;;  %2019 = vpow2.f32 %v1714_v37  ;;  %v1042_v2 = vmul.f32 %v2247_v38, %v977_v54  ;;  %v981_v3 = vpop.f32.mrf.mxu1 }
 0x105   : > { %v1998_v5 = vpop.eup %1997  ;;  %v1767_v7 = vpack.c.bf16 %v1286_v57, %v1286_v57  ;;  %v1289_v8 = vmul.f32 %v1996_v62, %v2286_v19  ;;  %2021 = vpow2.f32 %v1719_v52  ;;  %v1717_v12 = vmul.f32 -1.442695, %v2381_v58  ;;  %v1858_v9 = vpop.f32.mrf.mxu0 }
 0x106   : > { %v2000_v11 = vpop.eup %1999  ;;  %1449 = vst.msk [vmem:[%s2345_s19 + $0x18] sm:$0xf] %vm1442_vm2, %v1769_v47  ;;  %2023 = vrcp.f32 %v1198_v10  ;;  %v1201_v13 = vadd.f32 1.0, %v1998_v5  ;;  %v2389_v14 = vadd.f32 %v2252_v41, %v1042_v2  ;;  %v1040_v15 = vmul.f32 %v2247_v38, %v969_v60  ;;  %v1892_v16 = vpop.f32.mrf.mxu1 }
 0x107   : > { %v2002_v17 = vpop.eup %2001  ;;  %1447 = vst.msk [vmem:[%s2345_s19 + $0x10] sm:$0xf] %vm1442_vm2, %v1767_v7  ;;  %v1770_v19 = vpack.c.bf16 %v1289_v8, %v1289_v8  ;;  %v1287_v53 = vmul.f32 %v2000_v11, %v2291_v25  ;;  %2025 = vpow2.f32 %v1717_v12  ;;  %v990_v18 = vadd.f32 %v1891_v55, %v1857_v46  ;;  %v692_v21 = vpop.f32.mrf.mxu0 }
 0x108   : > { %2027 = vrcp.f32 %v1201_v13  ;;  %v1199_v22 = vadd.f32 1.0, %v2002_v17  ;;  %v1720_v24 = vmul.f32 -1.442695, %v2389_v14  ;;  %v2397_v27 = vadd.f32 %v2252_v41, %v1040_v15  ;;  %v984_v28 = vpop.f32.mrf.mxu1 }
 0x109   : > { %v2004_v29 = vpop.eup %2003  ;;  %1450 = vst.msk [vmem:[%s2345_s19 + $0x1c] sm:$0xf] %vm1442_vm2, %v1770_v19  ;;  %v1768_v30 = vpack.c.bf16 %v1287_v53, %v1287_v53  ;;  %v1045_v59 = vmul.f32 %v2247_v38, %v990_v18  ;;  %v982_v32 = vadd.f32 %v981_v3, %v689_v61  ;;  %v993_v25 = vadd.f32 %v1892_v16, %v1858_v9  ;;  %v1861_v33 = vpop.f32.mrf.mxu0 }
 0x10a   : > { %v2006_v35 = vpop.eup %2005  ;;  %v1292_v36 = vmul.f32 %v2004_v29, %v2296_v31  ;;  %2029 = vrcp.f32 %v1199_v22  ;;  %v1718_v37 = vmul.f32 -1.442695, %v2397_v27  ;;  %v985_v40 = vadd.f32 %v984_v28, %v692_v21  ;;  %v1895_v42 = vpop.f32.mrf.mxu1 }
 0x10b   : > { %v2008_v43 = vpop.eup %2007  ;;  %1448 = vst.msk [vmem:[%s2345_s19 + $0x14] sm:$0xf] %vm1442_vm2, %v1768_v30  ;;  %v1204_v45 = vadd.f32 1.0, %v2006_v35  ;;  %2031 = vpow2.f32 %v1720_v24  ;;  %v2407_v1 = vadd.f32 %v2252_v41, %v1045_v59  ;;  %v1043_v46 = vmul.f32 %v2247_v38, %v982_v32  ;;  %v705_v48 = vpop.f32.mrf.mxu0 }
 0x10c   : > { %v2010_v51 = vpop.eup %2009  ;;  %v1773_v52 = vpack.c.bf16 %v1292_v36, %v1292_v36  ;;  %v1290_v31 = vmul.f32 %v2008_v43, %v2302_v44  ;;  %2033 = vpow2.f32 %v1718_v37  ;;  %v1046_v54 = vmul.f32 %v2247_v38, %v993_v25  ;;  %v997_v55 = vpop.f32.mrf.mxu1 }
 0x10d   : > { %v2012_v56 = vpop.eup %2011  ;;  %2035 = vrcp.f32 %v1204_v45  ;;  %v1202_v57 = vadd.f32 1.0, %v2010_v51  ;;  %v1723_v60 = vmul.f32 -1.442695, %v2407_v1  ;;  %v2414_v61 = vadd.f32 %v2252_v41, %v1043_v46  ;;  %v1862_v3 = vpop.f32.mrf.mxu0 }
 0x10e   : > { %v2014_v62 = vpop.eup %2013  ;;  %1453 = vst.msk [vmem:[%s2345_s19 + $0x28] sm:$0xf] %vm1442_vm2, %v1773_v52  ;;  %v1771_v47 = vpack.c.bf16 %v1290_v31, %v1290_v31  ;;  %v1293_v10 = vmul.f32 %v2012_v56, %v2305_v49  ;;  %v2420_v44 = vadd.f32 %v2252_v41, %v1046_v54  ;;  %v1044_v2 = vmul.f32 %v2247_v38, %v985_v40  ;;  %v1896_v5 = vpop.f32.mrf.mxu1 }
 0x10f   : > { %v2016_v7 = vpop.eup %2015  ;;  %2037 = vrcp.f32 %v1202_v57  ;;  %v1205_v8 = vadd.f32 1.0, %v2014_v62  ;;  %v1721_v12 = vmul.f32 -1.442695, %v2414_v61  ;;  %v1006_v9 = vadd.f32 %v1895_v42, %v1861_v33  ;;  %v708_v24 = vpop.f32.mrf.mxu0 }
 0x110   : > { %v2018_v11 = vpop.eup %2017  ;;  %1451 = vst.msk [vmem:[%s2345_s19 + $0x20] sm:$0xf] %vm1442_vm2, %v1771_v47  ;;  %v1774_v13 = vpack.c.bf16 %v1293_v10, %v1293_v10  ;;  %v1291_v49 = vmul.f32 %v2016_v7, %v2312_v63  ;;  %2039 = vpow2.f32 %v1723_v60  ;;  %v1724_v15 = vmul.f32 -1.442695, %v2420_v44  ;;  %v1000_v28 = vpop.f32.mrf.mxu1 }
 0x111   : > { %v2020_v16 = vpop.eup %2019  ;;  %v1296_v17 = vmul.f32 %v2018_v11, %v2315_v4  ;;  %2041 = vrcp.f32 %v1205_v8  ;;  %v2430_v19 = vadd.f32 %v2252_v41, %v1044_v2  ;;  %v1049_v53 = vmul.f32 %v2247_v38, %v1006_v9 }
 0x112   : > { %v2022_v18 = vpop.eup %2021  ;;  %1454 = vst.msk [vmem:[%s2345_s19 + $0x2c] sm:$0xf] %vm1442_vm2, %v1774_v13  ;;  %v1772_v21 = vpack.c.bf16 %v1291_v49, %v1291_v49  ;;  %v1203_v22 = vadd.f32 1.0, %v2020_v16  ;;  %2043 = vpow2.f32 %v1721_v12  ;;  %v998_v63 = vadd.f32 %v997_v55, %v705_v48 }
 0x113   : > { %v2024_v29 = vpop.eup %2023  ;;  %v1777_v30 = vpack.c.bf16 %v1296_v17, %v1296_v17  ;;  %v1208_v4 = vadd.f32 1.0, %v2022_v18  ;;  %2045 = vpow2.f32 %v1724_v15  ;;  %v1722_v59 = vmul.f32 -1.442695, %v2430_v19 }
 0x114   : > { %v2026_v32 = vpop.eup %2025  ;;  %1452 = vst.msk [vmem:[%s2345_s19 + $0x24] sm:$0xf] %vm1442_vm2, %v1772_v21  ;;  %v1294_v25 = vmul.f32 %v2024_v29, %v2322_v20  ;;  %2047 = vrcp.f32 %v1203_v22  ;;  %v2440_v33 = vadd.f32 %v2252_v41, %v1049_v53  ;;  %v1047_v35 = vmul.f32 %v2247_v38, %v998_v63 }
 0x115   : > { %v2028_v36 = vpop.eup %2027  ;;  %1457 = vst.msk [vmem:[%s2345_s19 + $0x38] sm:$0xf] %vm1442_vm2, %v1777_v30  ;;  %2049 = vrcp.f32 %v1208_v4  ;;  %v1206_v37 = vadd.f32 1.0, %v2026_v32  ;;  %v1009_v40 = vadd.f32 %v1896_v5, %v1862_v3  ;;  %v1001_v42 = vadd.f32 %v1000_v28, %v708_v24 }
 0x116   : > { %v1775_v43 = vpack.c.bf16 %v1294_v25, %v1294_v25  ;;  %v1297_v45 = vmul.f32 %v2028_v36, %v2325_v23  ;;  %2051 = vpow2.f32 %v1722_v59  ;;  %v1727_v20 = vmul.f32 -1.442695, %v2440_v33 }
 0x117   : > { %v2030_v46 = vpop.eup %2029  ;;  %2053 = vrcp.f32 %v1206_v37  ;;  %v2448_v48 = vadd.f32 %v2252_v41, %v1047_v35  ;;  %v1050_v51 = vmul.f32 %v2247_v38, %v1009_v40  ;;  %v1048_v52 = vmul.f32 %v2247_v38, %v1001_v42 }
 0x118   : > { %v2032_v31 = vpop.eup %2031  ;;  %1455 = vst.msk [vmem:[%s2345_s19 + $0x30] sm:$0xf] %vm1442_vm2, %v1775_v43  ;;  %v1778_v54 = vpack.c.bf16 %v1297_v45, %v1297_v45  ;;  %v1295_v55 = vmul.f32 %v2030_v46, %v2331_v34  ;;  %2055 = vpow2.f32 %v1727_v20 }
 0x119   : > { %v2034_v23 = vpop.eup %2033  ;;  %v1209_v56 = vadd.f32 1.0, %v2032_v31  ;;  %v1725_v57 = vmul.f32 -1.442695, %v2448_v48  ;;  %v2457_v60 = vadd.f32 %v2252_v41, %v1050_v51  ;;  %v2460_v62 = vadd.f32 %v2252_v41, %v1048_v52 }
 0x11a   : > { %v2036_v47 = vpop.eup %2035  ;;  %1458 = vst.msk [vmem:[%s2345_s19 + $0x3c] sm:$0xf] %vm1442_vm2, %v1778_v54  ;;  %v1776_v38 = vpack.c.bf16 %v1295_v55, %v1295_v55  ;;  %v1207_v10 = vadd.f32 1.0, %v2034_v23 }
 0x11b   : > { %v1300_v34 = vmul.f32 %v2036_v47, %v2336_v50  ;;  %2057 = vrcp.f32 %v1209_v56  ;;  %v1728_v2 = vmul.f32 -1.442695, %v2457_v60  ;;  %v1726_v3 = vmul.f32 -1.442695, %v2460_v62 }
 0x11c   : > { %v2038_v5 = vpop.eup %2037  ;;  %1456 = vst.msk [vmem:[%s2345_s19 + $0x34] sm:$0xf] %vm1442_vm2, %v1776_v38  ;;  %2059 = vrcp.f32 %v1207_v10 }
 0x11d   : > { %v2040_v7 = vpop.eup %2039  ;;  %v1781_v41 = vpack.c.bf16 %v1300_v34, %v1300_v34  ;;  %v1298_v8 = vmul.f32 %v2038_v5, %v2349_v0  ;;  %2061 = vpow2.f32 %v1725_v57 }
 0x11e   : > { %v2042_v12 = vpop.eup %2041  ;;  %v1212_v9 = vadd.f32 1.0, %v2040_v7  ;;  %2063 = vpow2.f32 %v1728_v2 }
 0x11f   : > { %v2044_v11 = vpop.eup %2043  ;;  %1461 = vst.msk [vmem:[%s2345_s19 + $0x48] sm:$0xf] %vm1442_vm2, %v1781_v41  ;;  %v1779_v50 = vpack.c.bf16 %v1298_v8, %v1298_v8  ;;  %v1301_v13 = vmul.f32 %v2042_v12, %v2353_v6  ;;  %2065 = vpow2.f32 %v1726_v3 }
 0x120   : > { %v2046_v49 = vpop.eup %2045  ;;  %2067 = vrcp.f32 %v1212_v9  ;;  %v1210_v15 = vadd.f32 1.0, %v2044_v11 }
 0x121   : > { %v2048_v16 = vpop.eup %2047  ;;  %1459 = vst.msk [vmem:[%s2345_s19 + $0x40] sm:$0xf] %vm1442_vm2, %v1779_v50  ;;  %v1782_v0 = vpack.c.bf16 %v1301_v13, %v1301_v13  ;;  %v1213_v17 = vadd.f32 1.0, %v2046_v49 }
 0x122   : > { %v2050_v53 = vpop.eup %2049  ;;  %v1299_v18 = vmul.f32 %v2048_v16, %v2362_v26  ;;  %2069 = vrcp.f32 %v1210_v15 }
 0x123   : > { %v2052_v21 = vpop.eup %2051  ;;  %1462 = vst.msk [vmem:[%s2345_s19 + $0x4c] sm:$0xf] %vm1442_vm2, %v1782_v0  ;;  %v1304_v6 = vmul.f32 %v2050_v53, %v2370_v39  ;;  %2071 = vrcp.f32 %v1213_v17 }
 0x124   : > { %v2054_v22 = vpop.eup %2053  ;;  %v1780_v63 = vpack.c.bf16 %v1299_v18, %v1299_v18  ;;  %v1211_v24 = vadd.f32 1.0, %v2052_v21 }
 0x125   : > { %v2056_v28 = vpop.eup %2055  ;;  %v1785_v29 = vpack.c.bf16 %v1304_v6, %v1304_v6  ;;  %v1302_v30 = vmul.f32 %v2054_v22, %v2381_v58 }
 0x126   : > { %1460 = vst.msk [vmem:[%s2345_s19 + $0x44] sm:$0xf] %vm1442_vm2, %v1780_v63  ;;  %2073 = vrcp.f32 %v1211_v24  ;;  %v1216_v4 = vadd.f32 1.0, %v2056_v28 }
 0x127   : > { %1465 = vst.msk [vmem:[%s2345_s19 + $0x58] sm:$0xf] %vm1442_vm2, %v1785_v29  ;;  %v1783_v26 = vpack.c.bf16 %v1302_v30, %v1302_v30 }
 0x128   : > { %v2058_v59 = vpop.eup %2057  ;;  %2075 = vrcp.f32 %v1216_v4 }
 0x129   : > { %v2060_v39 = vpop.eup %2059  ;;  %1463 = vst.msk [vmem:[%s2345_s19 + $0x50] sm:$0xf] %vm1442_vm2, %v1783_v26  ;;  %v1305_v32 = vmul.f32 %v2058_v59, %v2389_v14 }
 0x12a   : > { %v2062_v25 = vpop.eup %2061  ;;  %v1303_v35 = vmul.f32 %v2060_v39, %v2397_v27 }
 0x12b   : > { %v2064_v58 = vpop.eup %2063  ;;  %v1786_v36 = vpack.c.bf16 %v1305_v32, %v1305_v32  ;;  %v1214_v37 = vadd.f32 1.0, %v2062_v25 }
 0x12c   : > { %v2066_v40 = vpop.eup %2065  ;;  %v1784_v42 = vpack.c.bf16 %v1303_v35, %v1303_v35  ;;  %v1217_v43 = vadd.f32 1.0, %v2064_v58 }
 0x12d   : > { %v2068_v45 = vpop.eup %2067  ;;  %1466 = vst.msk [vmem:[%s2345_s19 + $0x5c] sm:$0xf] %vm1442_vm2, %v1786_v36  ;;  %2077 = vrcp.f32 %v1214_v37  ;;  %v1215_v20 = vadd.f32 1.0, %v2066_v40 }
 0x12e   : > { %1464 = vst.msk [vmem:[%s2345_s19 + $0x54] sm:$0xf] %vm1442_vm2, %v1784_v42  ;;  %v1308_v14 = vmul.f32 %v2068_v45, %v2407_v1  ;;  %2079 = vrcp.f32 %v1217_v43 }
 0x12f   : > { %v2070_v27 = vpop.eup %2069  ;;  %2081 = vrcp.f32 %v1215_v20 }
 0x130   : > { %v2072_v46 = vpop.eup %2071  ;;  %v1789_v51 = vpack.c.bf16 %v1308_v14, %v1308_v14  ;;  %v1306_v52 = vmul.f32 %v2070_v27, %v2414_v61 }
 0x131   : > { %v1309_v31 = vmul.f32 %v2072_v46, %v2420_v44 }
 0x132   : > { %1469 = vst.msk [vmem:[%s2345_s19 + $0x68] sm:$0xf] %vm1442_vm2, %v1789_v51  ;;  %v1787_v54 = vpack.c.bf16 %v1306_v52, %v1306_v52 }
 0x133   : > { %v2074_v55 = vpop.eup %2073  ;;  %v1790_v23 = vpack.c.bf16 %v1309_v31, %v1309_v31 }
 0x134   : > { %1467 = vst.msk [vmem:[%s2345_s19 + $0x60] sm:$0xf] %vm1442_vm2, %v1787_v54  ;;  %v1307_v1 = vmul.f32 %v2074_v55, %v2430_v19 }
 0x135   : > { %v2076_v56 = vpop.eup %2075  ;;  %1470 = vst.msk [vmem:[%s2345_s19 + $0x6c] sm:$0xf] %vm1442_vm2, %v1790_v23 }
 0x136   : > { %v1788_v57 = vpack.c.bf16 %v1307_v1, %v1307_v1  ;;  %v1312_v61 = vmul.f32 %v2076_v56, %v2440_v33 }
 0x138   : > { %1468 = vst.msk [vmem:[%s2345_s19 + $0x64] sm:$0xf] %vm1442_vm2, %v1788_v57  ;;  %v1793_v44 = vpack.c.bf16 %v1312_v61, %v1312_v61 }
 0x13a   : > { %v2078_v47 = vpop.eup %2077  ;;  %1473 = vst.msk [vmem:[%s2345_s19 + $0x78] sm:$0xf] %vm1442_vm2, %v1793_v44 }
 0x13b   : > { %v2080_v38 = vpop.eup %2079  ;;  %v1310_v10 = vmul.f32 %v2078_v47, %v2448_v48 }
 0x13c   : > { %v2082_v34 = vpop.eup %2081  ;;  %v1313_v19 = vmul.f32 %v2080_v38, %v2457_v60 }
 0x13d   : > { %v1791_v2 = vpack.c.bf16 %v1310_v10, %v1310_v10  ;;  %v1311_v3 = vmul.f32 %v2082_v34, %v2460_v62 }
 0x13e   : > { %v1794_v5 = vpack.c.bf16 %v1313_v19, %v1313_v19 }
 0x13f   : > { %1471 = vst.msk [vmem:[%s2345_s19 + $0x70] sm:$0xf] %vm1442_vm2, %v1791_v2  ;;  %v1792_v7 = vpack.c.bf16 %v1311_v3, %v1311_v3 }
 0x140   : > { %1474 = vst.msk [vmem:[%s2345_s19 + $0x7c] sm:$0xf] %vm1442_vm2, %v1794_v5 }
 0x141   : > { %1472 = vst.msk [vmem:[%s2345_s19 + $0x74] sm:$0xf] %vm1442_vm2, %v1792_v7 }
 0x142 PF: > { %s16_s23 = sadd.s32 1, %s2105_s23   ;;  %s2532_s21 = smov %s2101_s22 }
 0x143   : > { %p13_p5 = scmp.ge.s32.totalorder %s16_s23, 4   ;;  %s2533_s22 = smov %s2535_s24 }
 0x145   :  { %15 = sbr.rel (!%p13_p5) target bundleno = 2 (0x2), region = 89 }

// kernel: panet_forward.47
= control target key start
LH: loop header
LB: loop body
LE: loop exit
PB: predicated region body
PF: predicated region fallthrough
CT: control target
= control target key end

     0   :  { %s1587_s15 = smov 0   ;;  %s1589_s16 = smov 0   ;;  %s1953_s0 = inlined_call_operand.vmem [shape: bf16[512,4], index: 0, kind: input, shape index: {}]   ;;  %s1954_s1 = inlined_call_operand.vmem [shape: bf16[4,4], index: 1, kind: input, shape index: {}]   ;;  %s1955_s2 = inlined_call_operand.vmem [shape: f32[1,4], index: 2, kind: input, shape index: {}]   ;;  %s1956_s3 = inlined_call_operand.vmem [shape: f32[1,4], index: 3, kind: input, shape index: {}]   ;;  %s1957_s4 = inlined_call_operand.vmem [shape: bf16[512,4], index: 4, kind: output, shape index: {}]  }
   0x1   :  { %s1591_s17 = smov 0  }
   0x2 LB: > { %s26_s18 = sadd.s32 1, %s1556_s16  ;;  %p1178_p0 = scmp.ge.s32.totalorder %s1560_s17, 1  ;;  %s1560_s17 = sphi %s1591_s17, %s14_s17   ;;  %s1556_s16 = sphi %s1589_s16, %s1959_s16   ;;  %s1552_s15 = sphi %s1587_s15, %s1958_s15  }
   0x3   : > { %p28_p1 = scmp.ge.s32.totalorder %s26_s18, 2  ;;  %p202_p2 = scmp.lt.s32.totalorder %s1560_s17, 3 }
   0x5   : > { %s1961_s18 = smov (%p28_p1, %s26_s18), 0  ;;  %p203_p3 = pnand %p1178_p0, %p202_p2 }
   0x6   : > { %s1179_s21 = sshll.u32 (!%p203_p3), %s1552_s15, 5 }
   0x7   : > { %206 = sbr.rel (%p203_p3) target bundleno = 298 (0x12a), region = 36  ;;  %p242_p4 = scmp.lt.s32.totalorder (!%p203_p3), %s1179_s21, 63 }
   0xc   : > { %v299_v0 = vld [vmem:[%s1954_s1] sm:$0x3]  ;;  %vm429_vm0 = vcmask 1041408   ;;  %s1963_s21 = smov (!%p242_p4, %s1179_s21), 63  ;;  %vm380_vm1 = vcmask 31744   ;;  %vm1024_vm2 = vcmask 27648  }
   0xd   : > { %1368 = vmatprep.subr.msk.bf16.mxu0 %vm429_vm0, %v299_v0  ;;  %1369 = vmatprep.subr.msk.bf16.mxu1 %vm429_vm0, %v299_v0  ;;  %v431_v1 = vsel %vm429_vm0, %v299_v0, 0  ;;  %s1180_s22 = sshll.u32 %s1963_s21, 2  ;;  %v1653_v18 = vld [vmem:[%s1955_s2] ss:$0 sm:$0xff] }
   0xe   : > { %1333 = vmatpush3.bf16.msra.mxu0 %v431_v1  ;;  %1367 = vmatpush3.bf16.msra.mxu1 %v431_v1  ;;  %s1616_s25 = scalar_lea.vmem %s1953_s0, %s1180_s22  ;;  %v1658_v20 = vld [vmem:[%s1956_s3] ss:$0 sm:$0xff]  ;;  %s1814_s6 = scalar_lea.vmem %s1957_s4, %s1180_s22 }
   0xf   : > { %v1394_v2 = vld [vmem:[%s1616_s25] sm:$0xff]   ;;  %v1396_v4 = vld [vmem:[%s1616_s25 + $0x8] sm:$0xff]   ;;  %v1398_v6 = vld [vmem:[%s1616_s25 + $0x10] sm:$0xff]  }
  0x10   : > { %v1395_v3 = vld [vmem:[%s1616_s25 + $0x40] sm:$0xff]   ;;  %1334 = vmatprep.mubr.msk.bf16.mxu0 %vm380_vm1, %v1394_v2  ;;  %v1397_v5 = vld [vmem:[%s1616_s25 + $0x48] sm:$0xff]   ;;  %v1399_v7 = vld [vmem:[%s1616_s25 + $0x50] sm:$0xff]  }
  0x11   : > { %1350 = vmatprep.mubr.msk.bf16.mxu1 %vm380_vm1, %v1395_v3  ;;  %1335 = vmatmul.mubr.msk.bf16.vlgmr.msra.gmra.mxu0 %vm380_vm1, %v1396_v4  ;;  %v1400_v8 = vld [vmem:[%s1616_s25 + $0x18] sm:$0xff]   ;;  %v1402_v10 = vld [vmem:[%s1616_s25 + $0x20] sm:$0xff]   ;;  %v1404_v12 = vld [vmem:[%s1616_s25 + $0x28] sm:$0xff]  }
  0x12   : > { %1351 = vmatmul.mubr.msk.bf16.vlgmr.msra.gmra.mxu1 %vm380_vm1, %v1397_v5  ;;  %1338 = vmatprep.mubr.msk.bf16.mxu0 %vm380_vm1, %v1398_v6  ;;  %v1401_v9 = vld [vmem:[%s1616_s25 + $0x58] sm:$0xff]   ;;  %v1403_v11 = vld [vmem:[%s1616_s25 + $0x60] sm:$0xff]   ;;  %v1405_v13 = vld [vmem:[%s1616_s25 + $0x68] sm:$0xff]  }
  0x13   : > { %1354 = vmatprep.mubr.msk.bf16.mxu1 %vm380_vm1, %v1399_v7  ;;  %v1406_v14 = vld [vmem:[%s1616_s25 + $0x30] sm:$0xff]   ;;  %v1408_v16 = vld [vmem:[%s1616_s25 + $0x38] sm:$0xff]  }
  0x14   : > { %v1407_v15 = vld [vmem:[%s1616_s25 + $0x70] sm:$0xff]   ;;  %v1409_v17 = vld [vmem:[%s1616_s25 + $0x78] sm:$0xff]  }
  0x19   : > { %1339 = vmatmul.mubr.msk.bf16.gmra.mxu0 %vm380_vm1, %v1400_v8 }
  0x1a   : > { %1355 = vmatmul.mubr.msk.bf16.gmra.mxu1 %vm380_vm1, %v1401_v9  ;;  %1342 = vmatprep.mubr.msk.bf16.mxu0 %vm380_vm1, %v1402_v10 }
  0x1b   : > { %1358 = vmatprep.mubr.msk.bf16.mxu1 %vm380_vm1, %v1403_v11 }
  0x21   : > { %1343 = vmatmul.mubr.msk.bf16.gmra.mxu0 %vm380_vm1, %v1404_v12 }
  0x22   : > { %1359 = vmatmul.mubr.msk.bf16.gmra.mxu1 %vm380_vm1, %v1405_v13  ;;  %1346 = vmatprep.mubr.msk.bf16.mxu0 %vm380_vm1, %v1406_v14 }
  0x23   : > { %1362 = vmatprep.mubr.msk.bf16.mxu1 %vm380_vm1, %v1407_v15 }
  0x29   : > { %1347 = vmatmul.mubr.msk.bf16.gmra.mxu0 %vm380_vm1, %v1408_v16 }
  0x2a   : > { %1363 = vmatmul.mubr.msk.bf16.gmra.mxu1 %vm380_vm1, %v1409_v17 }
  0xd1   : > { %v1336_v19 = vpop.f32.mrf.mxu0 }
  0xd2   : > { %v603_v21 = vmul.f32 %v1336_v19, %v1653_v18  ;;  %v1352_v22 = vpop.f32.mrf.mxu1 }
  0xd3   : > { %v619_v23 = vmul.f32 %v1352_v22, %v1653_v18  ;;  %v467_v24 = vpop.f32.mrf.mxu0 }
  0xd4   : > { %v1663_v25 = vadd.f32 %v1658_v20, %v603_v21  ;;  %v601_v26 = vmul.f32 %v1653_v18, %v467_v24  ;;  %v531_v27 = vpop.f32.mrf.mxu1 }
  0xd5   : > { %v1667_v28 = vadd.f32 %v1658_v20, %v619_v23  ;;  %v617_v29 = vmul.f32 %v1653_v18, %v531_v27  ;;  %v1337_v30 = vpop.f32.mrf.mxu0 }
  0xd6   : > { %v1219_v31 = vmul.f32 -1.442695, %v1663_v25  ;;  %v1672_v32 = vadd.f32 %v1658_v20, %v601_v26  ;;  %v604_v33 = vmul.f32 %v1337_v30, %v1653_v18  ;;  %v1353_v34 = vpop.f32.mrf.mxu1 }
  0xd7   : > { %v1235_v35 = vmul.f32 -1.442695, %v1667_v28  ;;  %v1677_v36 = vadd.f32 %v1658_v20, %v617_v29  ;;  %v620_v37 = vmul.f32 %v1353_v34, %v1653_v18  ;;  %v470_v38 = vpop.f32.mrf.mxu0 }
  0xd8   : > { %1410 = vpow2.f32 %v1219_v31  ;;  %v1217_v39 = vmul.f32 -1.442695, %v1672_v32  ;;  %v1682_v40 = vadd.f32 %v1658_v20, %v604_v33  ;;  %v602_v41 = vmul.f32 %v1653_v18, %v470_v38  ;;  %v534_v42 = vpop.f32.mrf.mxu1 }
  0xd9   : > { %1412 = vpow2.f32 %v1235_v35  ;;  %v1233_v43 = vmul.f32 -1.442695, %v1677_v36  ;;  %v1687_v44 = vadd.f32 %v1658_v20, %v620_v37  ;;  %v618_v45 = vmul.f32 %v1653_v18, %v534_v42  ;;  %v1340_v46 = vpop.f32.mrf.mxu0 }
  0xda   : > { %1414 = vpow2.f32 %v1217_v39  ;;  %v1220_v47 = vmul.f32 -1.442695, %v1682_v40  ;;  %v1692_v48 = vadd.f32 %v1658_v20, %v602_v41  ;;  %v607_v49 = vmul.f32 %v1340_v46, %v1653_v18  ;;  %v1356_v50 = vpop.f32.mrf.mxu1 }
  0xdb   : > { %1416 = vpow2.f32 %v1233_v43  ;;  %v1236_v51 = vmul.f32 -1.442695, %v1687_v44  ;;  %v1697_v52 = vadd.f32 %v1658_v20, %v618_v45  ;;  %v623_v53 = vmul.f32 %v1356_v50, %v1653_v18  ;;  %v483_v54 = vpop.f32.mrf.mxu0 }
  0xdc   : > { %1418 = vpow2.f32 %v1220_v47  ;;  %v1218_v55 = vmul.f32 -1.442695, %v1692_v48  ;;  %v1702_v56 = vadd.f32 %v1658_v20, %v607_v49  ;;  %v605_v57 = vmul.f32 %v1653_v18, %v483_v54  ;;  %v547_v58 = vpop.f32.mrf.mxu1 }
  0xdd   : > { %1420 = vpow2.f32 %v1236_v51  ;;  %v1234_v59 = vmul.f32 -1.442695, %v1697_v52  ;;  %v1707_v60 = vadd.f32 %v1658_v20, %v623_v53  ;;  %v621_v61 = vmul.f32 %v1653_v18, %v547_v58  ;;  %v1341_v62 = vpop.f32.mrf.mxu0 }
  0xde   : > { %1422 = vpow2.f32 %v1218_v55  ;;  %v1223_v63 = vmul.f32 -1.442695, %v1702_v56  ;;  %v1712_v0 = vadd.f32 %v1658_v20, %v605_v57  ;;  %v608_v1 = vmul.f32 %v1341_v62, %v1653_v18  ;;  %v1357_v2 = vpop.f32.mrf.mxu1 }
  0xdf   : > { %1424 = vpow2.f32 %v1234_v59  ;;  %v1239_v3 = vmul.f32 -1.442695, %v1707_v60  ;;  %v1717_v4 = vadd.f32 %v1658_v20, %v621_v61  ;;  %v624_v5 = vmul.f32 %v1357_v2, %v1653_v18  ;;  %v486_v6 = vpop.f32.mrf.mxu0 }
  0xe0   : > { %1426 = vpow2.f32 %v1223_v63  ;;  %v1221_v7 = vmul.f32 -1.442695, %v1712_v0  ;;  %v1722_v8 = vadd.f32 %v1658_v20, %v608_v1  ;;  %v606_v9 = vmul.f32 %v1653_v18, %v486_v6  ;;  %v550_v10 = vpop.f32.mrf.mxu1 }
  0xe1   : > { %1428 = vpow2.f32 %v1239_v3  ;;  %v1237_v11 = vmul.f32 -1.442695, %v1717_v4  ;;  %v1727_v12 = vadd.f32 %v1658_v20, %v624_v5  ;;  %v622_v13 = vmul.f32 %v1653_v18, %v550_v10  ;;  %v1344_v14 = vpop.f32.mrf.mxu0 }
  0xe2   : > { %1430 = vpow2.f32 %v1221_v7  ;;  %v1224_v15 = vmul.f32 -1.442695, %v1722_v8  ;;  %v1732_v16 = vadd.f32 %v1658_v20, %v606_v9  ;;  %v611_v17 = vmul.f32 %v1344_v14, %v1653_v18  ;;  %v1360_v19 = vpop.f32.mrf.mxu1 }
  0xe3   : > { %1432 = vpow2.f32 %v1237_v11  ;;  %v1240_v21 = vmul.f32 -1.442695, %v1727_v12  ;;  %v1737_v22 = vadd.f32 %v1658_v20, %v622_v13  ;;  %v627_v23 = vmul.f32 %v1360_v19, %v1653_v18  ;;  %v499_v24 = vpop.f32.mrf.mxu0 }
  0xe4   : > { %1434 = vpow2.f32 %v1224_v15  ;;  %v1222_v26 = vmul.f32 -1.442695, %v1732_v16  ;;  %v609_v27 = vmul.f32 %v1653_v18, %v499_v24  ;;  %v563_v29 = vpop.f32.mrf.mxu1  ;;  %v1745_v38 = vadd.f32 %v1658_v20, %v611_v17 }
  0xe5   : > { %v1411_v30 = vpop.eup %1410  ;;  %1436 = vpow2.f32 %v1240_v21  ;;  %v1238_v31 = vmul.f32 -1.442695, %v1737_v22  ;;  %v625_v33 = vmul.f32 %v1653_v18, %v563_v29  ;;  %v1345_v34 = vpop.f32.mrf.mxu0  ;;  %v1748_v43 = vadd.f32 %v1658_v20, %v627_v23 }
  0xe6   : > { %v1413_v35 = vpop.eup %1412  ;;  %v770_v37 = vadd.f32 1.0, %v1411_v30  ;;  %1438 = vpow2.f32 %v1222_v26  ;;  %v1361_v39 = vpop.f32.mrf.mxu1  ;;  %v1751_v49 = vadd.f32 %v1658_v20, %v609_v27  ;;  %v1757_v59 = vmul.f32 -1.442695, %v1745_v38 }
  0xe7   : > { %v1415_v41 = vpop.eup %1414  ;;  %v786_v42 = vadd.f32 1.0, %v1413_v35  ;;  %1440 = vpow2.f32 %v1238_v31  ;;  %v502_v45 = vpop.f32.mrf.mxu0  ;;  %v1754_v54 = vadd.f32 %v1658_v20, %v625_v33  ;;  %v612_v61 = vmul.f32 %v1345_v34, %v1653_v18 }
  0xe8   : > { %v1417_v46 = vpop.eup %1416  ;;  %1442 = vrcp.f32 %v770_v37  ;;  %v768_v47 = vadd.f32 1.0, %v1415_v41  ;;  %v566_v50 = vpop.f32.mrf.mxu1  ;;  %v1761_v2 = vmul.f32 -1.442695, %v1748_v43  ;;  %v628_v3 = vmul.f32 %v1361_v39, %v1653_v18 }
  0xe9   : > { %v1419_v51 = vpop.eup %1418  ;;  %1444 = vrcp.f32 %v786_v42  ;;  %v784_v53 = vadd.f32 1.0, %v1417_v46  ;;  %v1348_v55 = vpop.f32.mrf.mxu0  ;;  %v1765_v7 = vmul.f32 -1.442695, %v1751_v49  ;;  %v610_v9 = vmul.f32 %v1653_v18, %v502_v45 }
  0xea   : > { %v1421_v57 = vpop.eup %1420  ;;  %1446 = vrcp.f32 %v768_v47  ;;  %v771_v58 = vadd.f32 1.0, %v1419_v51  ;;  %v1364_v62 = vpop.f32.mrf.mxu1  ;;  %v1769_v13 = vmul.f32 -1.442695, %v1754_v54  ;;  %v626_v14 = vmul.f32 %v1653_v18, %v566_v50 }
  0xeb   : > { %v1423_v63 = vpop.eup %1422  ;;  %1448 = vrcp.f32 %v784_v53  ;;  %v787_v1 = vadd.f32 1.0, %v1421_v57  ;;  %v515_v15 = vpop.f32.mrf.mxu0  ;;  %v1773_v21 = vadd.f32 %v1658_v20, %v612_v61  ;;  %v615_v23 = vmul.f32 %v1348_v55, %v1653_v18 }
  0xec   : > { %v1425_v5 = vpop.eup %1424  ;;  %1450 = vrcp.f32 %v771_v58  ;;  %v769_v6 = vadd.f32 1.0, %v1423_v63  ;;  %v579_v24 = vpop.f32.mrf.mxu1  ;;  %v1777_v29 = vadd.f32 %v1658_v20, %v628_v3  ;;  %v631_v30 = vmul.f32 %v1364_v62, %v1653_v18 }
  0xed   : > { %v1427_v10 = vpop.eup %1426  ;;  %1452 = vrcp.f32 %v787_v1  ;;  %v785_v11 = vadd.f32 1.0, %v1425_v5  ;;  %v1781_v34 = vadd.f32 %v1658_v20, %v610_v9  ;;  %v613_v35 = vmul.f32 %v1653_v18, %v515_v15  ;;  %v1349_v58 = vpop.f32.mrf.mxu0 }
  0xee   : > { %v1429_v17 = vpop.eup %1428  ;;  %1454 = vrcp.f32 %v769_v6  ;;  %v774_v19 = vadd.f32 1.0, %v1427_v10  ;;  %v1785_v41 = vadd.f32 %v1658_v20, %v626_v14  ;;  %v629_v42 = vmul.f32 %v1653_v18, %v579_v24  ;;  %v1365_v3 = vpop.f32.mrf.mxu1 }
  0xef   : > { %v1431_v26 = vpop.eup %1430  ;;  %1456 = vrcp.f32 %v785_v11  ;;  %v790_v27 = vadd.f32 1.0, %v1429_v17  ;;  %v1789_v47 = vadd.f32 %v1658_v20, %v615_v23  ;;  %v1792_v50 = vadd.f32 %v1658_v20, %v631_v30 }
  0xf0   : > { %v1433_v31 = vpop.eup %1432  ;;  %1458 = vrcp.f32 %v774_v19  ;;  %v772_v33 = vadd.f32 1.0, %v1431_v26  ;;  %v1228_v55 = vmul.f32 -1.442695, %v1773_v21  ;;  %v1796_v57 = vadd.f32 %v1658_v20, %v613_v35  ;;  %v518_v26 = vpop.f32.mrf.mxu0 }
  0xf1   : > { %v1435_v37 = vpop.eup %1434  ;;  %1460 = vrcp.f32 %v790_v27  ;;  %v788_v39 = vadd.f32 1.0, %v1433_v31  ;;  %v1244_v63 = vmul.f32 -1.442695, %v1777_v29  ;;  %v1800_v1 = vadd.f32 %v1658_v20, %v629_v42  ;;  %v582_v35 = vpop.f32.mrf.mxu1 }
  0xf2   : > { %v1437_v45 = vpop.eup %1436  ;;  %1462 = vrcp.f32 %v772_v33  ;;  %v775_v46 = vadd.f32 1.0, %v1435_v37  ;;  %v1226_v9 = vmul.f32 -1.442695, %v1781_v34  ;;  %v1242_v10 = vmul.f32 -1.442695, %v1785_v41 }
  0xf3   : > { %v1439_v51 = vpop.eup %1438  ;;  %1464 = vrcp.f32 %v788_v39  ;;  %v791_v53 = vadd.f32 1.0, %v1437_v45  ;;  %v1231_v15 = vmul.f32 -1.442695, %v1789_v47  ;;  %v1807_v17 = vmul.f32 -1.442695, %v1792_v50 }
  0xf4   : > { %v1441_v61 = vpop.eup %1440  ;;  %1466 = vrcp.f32 %v775_v46  ;;  %v773_v62 = vadd.f32 1.0, %v1439_v51  ;;  %v1818_v24 = vmul.f32 -1.442695, %v1796_v57  ;;  %v1824_v33 = vmul.f32 -1.442695, %v1800_v1 }
  0xf5   : > { %v1443_v5 = vpop.eup %1442  ;;  %1468 = vrcp.f32 %v791_v53  ;;  %v789_v6 = vadd.f32 1.0, %v1441_v61  ;;  %v632_v42 = vmul.f32 %v1365_v3, %v1653_v18 }
  0xf6   : > { %v1445_v11 = vpop.eup %1444  ;;  %v866_v14 = vmul.f32 %v1443_v5, %v1663_v25  ;;  %1470 = vrcp.f32 %v773_v62  ;;  %v616_v25 = vmul.f32 %v1349_v58, %v1653_v18 }
  0xf7   : > { %v1447_v19 = vpop.eup %1446  ;;  %v882_v23 = vmul.f32 %v1445_v11, %v1667_v28  ;;  %1472 = vrcp.f32 %v789_v6 }
  0xf8   : > { %v1449_v27 = vpop.eup %1448  ;;  %v1285_v30 = vpack.c.bf16 %v866_v14, %v866_v14  ;;  %v864_v31 = vmul.f32 %v1447_v19, %v1672_v32  ;;  %1474 = vpow2.f32 %v1757_v59  ;;  %v614_v59 = vmul.f32 %v1653_v18, %v518_v26 }
  0xf9   : > { %v1451_v28 = vpop.eup %1450  ;;  %v1301_v37 = vpack.c.bf16 %v882_v23, %v882_v23  ;;  %v880_v39 = vmul.f32 %v1449_v27, %v1677_v36  ;;  %1476 = vpow2.f32 %v1761_v2  ;;  %v630_v2 = vmul.f32 %v1653_v18, %v582_v35 }
  0xfa   : > { %v1453_v45 = vpop.eup %1452  ;;  %1027 = vst.msk [vmem:[%s1814_s6 + $0x8] sm:$0xf] %vm1024_vm2, %v1285_v30  ;;  %v1283_v32 = vpack.c.bf16 %v864_v31, %v864_v31  ;;  %v867_v46 = vmul.f32 %v1451_v28, %v1682_v40  ;;  %1478 = vpow2.f32 %v1765_v7  ;;  %v1843_v7 = vadd.f32 %v1658_v20, %v616_v25 }
  0xfb   : > { %v1455_v51 = vpop.eup %1454  ;;  %1043 = vst.msk [vmem:[%s1814_s6 + $0x48] sm:$0xf] %vm1024_vm2, %v1301_v37  ;;  %v1299_v36 = vpack.c.bf16 %v880_v39, %v880_v39  ;;  %v883_v53 = vmul.f32 %v1453_v45, %v1687_v44  ;;  %1480 = vpow2.f32 %v1769_v13  ;;  %v1849_v18 = vadd.f32 %v1658_v20, %v632_v42 }
  0xfc   : > { %v1457_v58 = vpop.eup %1456  ;;  %1025 = vst.msk [vmem:[%s1814_s6] sm:$0xf] %vm1024_vm2, %v1283_v32  ;;  %v1286_v40 = vpack.c.bf16 %v867_v46, %v867_v46  ;;  %v865_v61 = vmul.f32 %v1455_v51, %v1692_v48  ;;  %1482 = vpow2.f32 %v1228_v55  ;;  %v1855_v5 = vadd.f32 %v1658_v20, %v614_v59 }
  0xfd   : > { %v1459_v62 = vpop.eup %1458  ;;  %1041 = vst.msk [vmem:[%s1814_s6 + $0x40] sm:$0xf] %vm1024_vm2, %v1299_v36  ;;  %v1302_v44 = vpack.c.bf16 %v883_v53, %v883_v53  ;;  %v881_v3 = vmul.f32 %v1457_v58, %v1697_v52  ;;  %1484 = vpow2.f32 %v1244_v63  ;;  %v1861_v11 = vadd.f32 %v1658_v20, %v630_v2 }
  0xfe   : > { %v1461_v13 = vpop.eup %1460  ;;  %1028 = vst.msk [vmem:[%s1814_s6 + $0xc] sm:$0xf] %vm1024_vm2, %v1286_v40  ;;  %v1284_v48 = vpack.c.bf16 %v865_v61, %v865_v61  ;;  %v870_v55 = vmul.f32 %v1459_v62, %v1702_v56  ;;  %1486 = vpow2.f32 %v1226_v9  ;;  %v1232_v19 = vmul.f32 -1.442695, %v1843_v7 }
  0xff   : > { %v1463_v6 = vpop.eup %1462  ;;  %1044 = vst.msk [vmem:[%s1814_s6 + $0x4c] sm:$0xf] %vm1024_vm2, %v1302_v44  ;;  %v1300_v52 = vpack.c.bf16 %v881_v3, %v881_v3  ;;  %v886_v63 = vmul.f32 %v1461_v13, %v1707_v60  ;;  %1488 = vpow2.f32 %v1242_v10  ;;  %v1248_v20 = vmul.f32 -1.442695, %v1849_v18 }
 0x100   : > { %v1465_v14 = vpop.eup %1464  ;;  %1026 = vst.msk [vmem:[%s1814_s6 + $0x4] sm:$0xf] %vm1024_vm2, %v1284_v48  ;;  %v1289_v56 = vpack.c.bf16 %v870_v55, %v870_v55  ;;  %v868_v9 = vmul.f32 %v1463_v6, %v1712_v0  ;;  %1490 = vpow2.f32 %v1231_v15  ;;  %v1230_v15 = vmul.f32 -1.442695, %v1855_v5 }
 0x101   : > { %v1467_v23 = vpop.eup %1466  ;;  %1042 = vst.msk [vmem:[%s1814_s6 + $0x44] sm:$0xf] %vm1024_vm2, %v1300_v52  ;;  %v1305_v25 = vpack.c.bf16 %v886_v63, %v886_v63  ;;  %v884_v60 = vmul.f32 %v1465_v14, %v1717_v4  ;;  %1492 = vpow2.f32 %v1807_v17  ;;  %v1246_v30 = vmul.f32 -1.442695, %v1861_v11 }
 0x102   : > { %v1469_v10 = vpop.eup %1468  ;;  %1031 = vst.msk [vmem:[%s1814_s6 + $0x18] sm:$0xf] %vm1024_vm2, %v1289_v56  ;;  %v1287_v26 = vpack.c.bf16 %v868_v9, %v868_v9  ;;  %v871_v0 = vmul.f32 %v1467_v23, %v1722_v8  ;;  %1494 = vpow2.f32 %v1818_v24 }
 0x103   : > { %v1471_v27 = vpop.eup %1470  ;;  %1047 = vst.msk [vmem:[%s1814_s6 + $0x58] sm:$0xf] %vm1024_vm2, %v1305_v25  ;;  %v1303_v4 = vpack.c.bf16 %v884_v60, %v884_v60  ;;  %v887_v17 = vmul.f32 %v1469_v10, %v1727_v12  ;;  %1496 = vpow2.f32 %v1824_v33 }
 0x104   : > { %v1473_v31 = vpop.eup %1472  ;;  %1029 = vst.msk [vmem:[%s1814_s6 + $0x10] sm:$0xf] %vm1024_vm2, %v1287_v26  ;;  %v1290_v8 = vpack.c.bf16 %v871_v0, %v871_v0  ;;  %v869_v24 = vmul.f32 %v1471_v27, %v1732_v16  ;;  %1498 = vpow2.f32 %v1232_v19 }
 0x105   : > { %v1475_v35 = vpop.eup %1474  ;;  %1045 = vst.msk [vmem:[%s1814_s6 + $0x50] sm:$0xf] %vm1024_vm2, %v1303_v4  ;;  %v1306_v28 = vpack.c.bf16 %v887_v17, %v887_v17  ;;  %v885_v37 = vmul.f32 %v1473_v31, %v1737_v22  ;;  %1500 = vpow2.f32 %v1248_v20 }
 0x106   : > { %v1477_v12 = vpop.eup %1476  ;;  %1032 = vst.msk [vmem:[%s1814_s6 + $0x1c] sm:$0xf] %vm1024_vm2, %v1290_v8  ;;  %v1288_v33 = vpack.c.bf16 %v869_v24, %v869_v24  ;;  %v778_v39 = vadd.f32 1.0, %v1475_v35  ;;  %1502 = vpow2.f32 %v1230_v15 }
 0x107   : > { %v1479_v42 = vpop.eup %1478  ;;  %1048 = vst.msk [vmem:[%s1814_s6 + $0x5c] sm:$0xf] %vm1024_vm2, %v1306_v28  ;;  %v1304_v16 = vpack.c.bf16 %v885_v37, %v885_v37  ;;  %v794_v45 = vadd.f32 1.0, %v1477_v12  ;;  %1504 = vpow2.f32 %v1246_v30 }
 0x108   : > { %v1481_v32 = vpop.eup %1480  ;;  %1030 = vst.msk [vmem:[%s1814_s6 + $0x14] sm:$0xf] %vm1024_vm2, %v1288_v33  ;;  %1506 = vrcp.f32 %v778_v39  ;;  %v776_v46 = vadd.f32 1.0, %v1479_v42 }
 0x109   : > { %v1483_v22 = vpop.eup %1482  ;;  %1046 = vst.msk [vmem:[%s1814_s6 + $0x54] sm:$0xf] %vm1024_vm2, %v1304_v16  ;;  %1508 = vrcp.f32 %v794_v45  ;;  %v792_v59 = vadd.f32 1.0, %v1481_v32 }
 0x10a   : > { %v1485_v51 = vpop.eup %1484  ;;  %1510 = vrcp.f32 %v776_v46  ;;  %v779_v36 = vadd.f32 1.0, %v1483_v22 }
 0x10b   : > { %v1487_v53 = vpop.eup %1486  ;;  %1512 = vrcp.f32 %v792_v59  ;;  %v795_v2 = vadd.f32 1.0, %v1485_v51 }
 0x10c   : > { %v1489_v58 = vpop.eup %1488  ;;  %1514 = vrcp.f32 %v779_v36  ;;  %v777_v40 = vadd.f32 1.0, %v1487_v53 }
 0x10d   : > { %v1491_v61 = vpop.eup %1490  ;;  %1516 = vrcp.f32 %v795_v2  ;;  %v793_v62 = vadd.f32 1.0, %v1489_v58 }
 0x10e   : > { %v1493_v44 = vpop.eup %1492  ;;  %1518 = vrcp.f32 %v777_v40  ;;  %v782_v3 = vadd.f32 1.0, %v1491_v61 }
 0x10f   : > { %v1495_v13 = vpop.eup %1494  ;;  %1520 = vrcp.f32 %v793_v62  ;;  %v798_v48 = vadd.f32 1.0, %v1493_v44 }
 0x110   : > { %v1497_v55 = vpop.eup %1496  ;;  %1522 = vrcp.f32 %v782_v3  ;;  %v780_v6 = vadd.f32 1.0, %v1495_v13 }
 0x111   : > { %v1499_v52 = vpop.eup %1498  ;;  %1524 = vrcp.f32 %v798_v48  ;;  %v796_v63 = vadd.f32 1.0, %v1497_v55 }
 0x112   : > { %v1501_v14 = vpop.eup %1500  ;;  %1526 = vrcp.f32 %v780_v6  ;;  %v783_v56 = vadd.f32 1.0, %v1499_v52 }
 0x113   : > { %v1503_v9 = vpop.eup %1502  ;;  %1528 = vrcp.f32 %v796_v63  ;;  %v799_v19 = vadd.f32 1.0, %v1501_v14 }
 0x114   : > { %v1505_v23 = vpop.eup %1504  ;;  %1530 = vrcp.f32 %v783_v56  ;;  %v781_v25 = vadd.f32 1.0, %v1503_v9 }
 0x115   : > { %v1507_v60 = vpop.eup %1506  ;;  %1532 = vrcp.f32 %v799_v19  ;;  %v797_v20 = vadd.f32 1.0, %v1505_v23 }
 0x116   : > { %v1509_v10 = vpop.eup %1508  ;;  %v874_v26 = vmul.f32 %v1507_v60, %v1745_v38  ;;  %1534 = vrcp.f32 %v781_v25 }
 0x117   : > { %v1511_v0 = vpop.eup %1510  ;;  %v890_v15 = vmul.f32 %v1509_v10, %v1748_v43  ;;  %1536 = vrcp.f32 %v797_v20 }
 0x118   : > { %v1513_v27 = vpop.eup %1512  ;;  %v1293_v4 = vpack.c.bf16 %v874_v26, %v874_v26  ;;  %v872_v17 = vmul.f32 %v1511_v0, %v1751_v49 }
 0x119   : > { %v1515_v30 = vpop.eup %1514  ;;  %v1309_v31 = vpack.c.bf16 %v890_v15, %v890_v15  ;;  %v888_v8 = vmul.f32 %v1513_v27, %v1754_v54 }
 0x11a   : > { %v1517_v24 = vpop.eup %1516  ;;  %1035 = vst.msk [vmem:[%s1814_s6 + $0x28] sm:$0xf] %vm1024_vm2, %v1293_v4  ;;  %v1291_v38 = vpack.c.bf16 %v872_v17, %v872_v17  ;;  %v875_v35 = vmul.f32 %v1515_v30, %v1773_v21 }
 0x11b   : > { %v1519_v28 = vpop.eup %1518  ;;  %1051 = vst.msk [vmem:[%s1814_s6 + $0x68] sm:$0xf] %vm1024_vm2, %v1309_v31  ;;  %v1307_v43 = vpack.c.bf16 %v888_v8, %v888_v8  ;;  %v891_v37 = vmul.f32 %v1517_v24, %v1777_v29 }
 0x11c   : > { %v1521_v49 = vpop.eup %1520  ;;  %1033 = vst.msk [vmem:[%s1814_s6 + $0x20] sm:$0xf] %vm1024_vm2, %v1291_v38  ;;  %v1294_v12 = vpack.c.bf16 %v875_v35, %v875_v35  ;;  %v873_v54 = vmul.f32 %v1519_v28, %v1781_v34 }
 0x11d   : > { %v1523_v33 = vpop.eup %1522  ;;  %1049 = vst.msk [vmem:[%s1814_s6 + $0x60] sm:$0xf] %vm1024_vm2, %v1307_v43  ;;  %v1310_v39 = vpack.c.bf16 %v891_v37, %v891_v37  ;;  %v889_v21 = vmul.f32 %v1521_v49, %v1785_v41 }
 0x11e   : > { %v1525_v42 = vpop.eup %1524  ;;  %1036 = vst.msk [vmem:[%s1814_s6 + $0x2c] sm:$0xf] %vm1024_vm2, %v1294_v12  ;;  %v1292_v16 = vpack.c.bf16 %v873_v54, %v873_v54  ;;  %v878_v29 = vmul.f32 %v1523_v33, %v1789_v47 }
 0x11f   : > { %v1527_v45 = vpop.eup %1526  ;;  %1052 = vst.msk [vmem:[%s1814_s6 + $0x6c] sm:$0xf] %vm1024_vm2, %v1310_v39  ;;  %v1308_v32 = vpack.c.bf16 %v889_v21, %v889_v21  ;;  %v894_v34 = vmul.f32 %v1525_v42, %v1792_v50 }
 0x120   : > { %v1529_v46 = vpop.eup %1528  ;;  %1034 = vst.msk [vmem:[%s1814_s6 + $0x24] sm:$0xf] %vm1024_vm2, %v1292_v16  ;;  %v1297_v22 = vpack.c.bf16 %v878_v29, %v878_v29  ;;  %v876_v41 = vmul.f32 %v1527_v45, %v1796_v57 }
 0x121   : > { %v1531_v59 = vpop.eup %1530  ;;  %1050 = vst.msk [vmem:[%s1814_s6 + $0x64] sm:$0xf] %vm1024_vm2, %v1308_v32  ;;  %v1313_v51 = vpack.c.bf16 %v894_v34, %v894_v34  ;;  %v892_v47 = vmul.f32 %v1529_v46, %v1800_v1 }
 0x122   : > { %v1533_v36 = vpop.eup %1532  ;;  %1039 = vst.msk [vmem:[%s1814_s6 + $0x38] sm:$0xf] %vm1024_vm2, %v1297_v22  ;;  %v1295_v50 = vpack.c.bf16 %v876_v41, %v876_v41  ;;  %v879_v53 = vmul.f32 %v1531_v59, %v1843_v7 }
 0x123   : > { %v1535_v2 = vpop.eup %1534  ;;  %1055 = vst.msk [vmem:[%s1814_s6 + $0x78] sm:$0xf] %vm1024_vm2, %v1313_v51  ;;  %v1311_v57 = vpack.c.bf16 %v892_v47, %v892_v47  ;;  %v895_v58 = vmul.f32 %v1533_v36, %v1849_v18 }
 0x124   : > { %v1537_v40 = vpop.eup %1536  ;;  %1037 = vst.msk [vmem:[%s1814_s6 + $0x30] sm:$0xf] %vm1024_vm2, %v1295_v50  ;;  %v1298_v1 = vpack.c.bf16 %v879_v53, %v879_v53  ;;  %v877_v61 = vmul.f32 %v1535_v2, %v1855_v5 }
 0x125   : > { %1053 = vst.msk [vmem:[%s1814_s6 + $0x70] sm:$0xf] %vm1024_vm2, %v1311_v57  ;;  %v1314_v62 = vpack.c.bf16 %v895_v58, %v895_v58  ;;  %v893_v44 = vmul.f32 %v1537_v40, %v1861_v11 }
 0x126   : > { %1040 = vst.msk [vmem:[%s1814_s6 + $0x3c] sm:$0xf] %vm1024_vm2, %v1298_v1  ;;  %v1296_v7 = vpack.c.bf16 %v877_v61, %v877_v61 }
 0x127   : > { %1056 = vst.msk [vmem:[%s1814_s6 + $0x7c] sm:$0xf] %vm1024_vm2, %v1314_v62  ;;  %v1312_v3 = vpack.c.bf16 %v893_v44, %v893_v44 }
 0x128   : > { %1038 = vst.msk [vmem:[%s1814_s6 + $0x34] sm:$0xf] %vm1024_vm2, %v1296_v7 }
 0x129   : > { %1054 = vst.msk [vmem:[%s1814_s6 + $0x74] sm:$0xf] %vm1024_vm2, %v1312_v3 }
 0x12a PF: > { %s14_s17 = sadd.s32 1, %s1560_s17   ;;  %s1958_s15 = smov %s1556_s16 }
 0x12b   : > { %p11_p5 = scmp.ge.s32.totalorder %s14_s17, 4   ;;  %s1959_s16 = smov %s1961_s18 }
 0x12d   :  { %13 = sbr.rel (!%p11_p5) target bundleno = 2 (0x2), region = 75 }

// kernel: panet_forward.48
= control target key start
LH: loop header
LB: loop body
LE: loop exit
PB: predicated region body
PF: predicated region fallthrough
CT: control target
= control target key end

     0   :  { %s1879_s18 = smov 0   ;;  %s1881_s19 = smov 0   ;;  %s2362_s0 = inlined_call_operand.vmem [shape: bf16[512,36], index: 0, kind: input, shape index: {}]   ;;  %s2363_s1 = inlined_call_operand.vmem [shape: bf16[36,4], index: 1, kind: input, shape index: {}]   ;;  %s2364_s2 = inlined_call_operand.vmem [shape: f32[1,4], index: 2, kind: input, shape index: {}]   ;;  %s2365_s3 = inlined_call_operand.vmem [shape: f32[1,4], index: 3, kind: input, shape index: {}]   ;;  %s2366_s4 = inlined_call_operand.vmem [shape: bf16[512,4], index: 4, kind: input, shape index: {}]   ;;  %s2367_s5 = inlined_call_operand.vmem [shape: bf16[512,4], index: 5, kind: output, shape index: {}]  }
   0x1   :  { %s1883_s20 = smov 0  }
   0x2 LB: > { %s27_s21 = sadd.s32 1, %s1843_s19  ;;  %p1368_p0 = scmp.ge.s32.totalorder %s1847_s20, 1  ;;  %s1847_s20 = sphi %s1883_s20, %s15_s20   ;;  %s1843_s19 = sphi %s1881_s19, %s2397_s19   ;;  %s1839_s18 = sphi %s1879_s18, %s2396_s18  }
   0x3   : > { %p29_p1 = scmp.ge.s32.totalorder %s27_s21, 2  ;;  %p243_p2 = scmp.lt.s32.totalorder %s1847_s20, 3 }
   0x5   : > { %s2399_s21 = smov (%p29_p1, %s27_s21), 0  ;;  %p244_p3 = pnand %p1368_p0, %p243_p2 }
   0x7   : > { %247 = sbr.rel (%p244_p3) target bundleno = 317 (0x13d), region = 40 }
   0xc   : > { %v1678_v0 = vld [vmem:[%s2363_s1 + $0x10] ss:$0 sps:$4 sm:$0x33]   ;;  %vm508_vm0 = vcmask 1041408   ;;  %v1679_v1 = vld [vmem:[%s2363_s1 + $0x8] sm:$0xff]   ;;  %s1369_s26 = sshll.u32 %s1839_s18, 5 }
   0xd   : > { %1652 = vmatprep.subr.msk.bf16.mxu0 %vm508_vm0, %v1678_v0  ;;  %1653 = vmatprep.subr.msk.bf16.mxu1 %vm508_vm0, %v1678_v0  ;;  %v510_v2 = vsel %vm508_vm0, %v1678_v0, 0  ;;  %p293_p4 = scmp.lt.s32.totalorder %s1369_s26, 63  ;;  %v1680_v3 = vld [vmem:[%s2363_s1] sm:$0xff]   ;;  %vm459_vm1 = vcmask 293888   ;;  %vm1199_vm2 = vcmask 27648  }
   0xe   : > { %1609 = vmatpush3.bf16.msra.mxu0 %v510_v2  ;;  %1649 = vmatpush3.bf16.msra.mxu1 %v510_v2  ;;  %v1964_v23 = vld [vmem:[%s2364_s2] ss:$0 sm:$0xff] }
   0xf   : > { %1610 = vmatprep.subr.bf16.mxu0 %v1679_v1  ;;  %1647 = vmatprep.subr.bf16.mxu1 %v1679_v1  ;;  %s2401_s26 = smov (!%p293_p4, %s1369_s26), 63  ;;  %v1975_v27 = vld [vmem:[%s2365_s3] ss:$0 sm:$0xff] }
  0x10   : > { %s1906_s29 = sshll.u32 %s2401_s26, 2 }
  0x11   : > { %s1912_s7 = scalar_lea.vmem %s2362_s0, %s1906_s29  ;;  %s1950_s10 = scalar_lea.vmem %s2366_s4, %s1906_s29 }
  0x12   : > { %1611 = vmatpush3.bf16.msra.mxu0 %v1679_v1  ;;  %1650 = vmatpush3.bf16.msra.mxu1 %v1679_v1  ;;  %v1681_v4 = vld [vmem:[%s1912_s7] sm:$0xff]   ;;  %v1683_v6 = vld [vmem:[%s1912_s7 + $0x8] sm:$0xff]   ;;  %v1685_v8 = vld [vmem:[%s1912_s7 + $0x10] sm:$0xff]   ;;  %s2192_s17 = scalar_lea.vmem %s2367_s5, %s1906_s29 }
  0x13   : > { %1612 = vmatprep.subr.bf16.mxu0 %v1680_v3  ;;  %1648 = vmatprep.subr.bf16.mxu1 %v1680_v3  ;;  %v1682_v5 = vld [vmem:[%s1912_s7 + $0x40] sm:$0xff]   ;;  %v1684_v7 = vld [vmem:[%s1912_s7 + $0x48] sm:$0xff]   ;;  %v1686_v9 = vld [vmem:[%s1912_s7 + $0x50] sm:$0xff]  }
  0x14   : > { %1614 = vmatprep.mubr.msk.bf16.mxu0 %vm459_vm1, %v1681_v4  ;;  %1630 = vmatprep.mubr.msk.bf16.mxu1 %vm459_vm1, %v1682_v5  ;;  %v1687_v10 = vld [vmem:[%s1912_s7 + $0x18] sm:$0xff]   ;;  %v1689_v12 = vld [vmem:[%s1912_s7 + $0x20] sm:$0xff]   ;;  %v1691_v14 = vld [vmem:[%s1912_s7 + $0x28] sm:$0xff]  }
  0x15   : > { %v1688_v11 = vld [vmem:[%s1912_s7 + $0x58] sm:$0xff]   ;;  %v1690_v13 = vld [vmem:[%s1912_s7 + $0x60] sm:$0xff]   ;;  %v1692_v15 = vld [vmem:[%s1912_s7 + $0x68] sm:$0xff]  }
  0x16   : > { %1613 = vmatpush3.bf16.msra.mxu0 %v1680_v3  ;;  %1651 = vmatpush3.bf16.msra.mxu1 %v1680_v3  ;;  %v1693_v16 = vld [vmem:[%s1912_s7 + $0x30] sm:$0xff]   ;;  %v1695_v18 = vld [vmem:[%s1912_s7 + $0x38] sm:$0xff]   ;;  %v1953_v20 = vld [vmem:[%s1950_s10 + $0x8] sm:$0xff]  }
  0x17   : > { %v1694_v17 = vld [vmem:[%s1912_s7 + $0x70] sm:$0xff]   ;;  %v1696_v19 = vld [vmem:[%s1912_s7 + $0x78] sm:$0xff]   ;;  %v1956_v21 = vld [vmem:[%s1950_s10 + $0x48] sm:$0xff]  }
  0x18   : > { %v1959_v22 = vld [vmem:[%s1950_s10] sm:$0xff]   ;;  %v1970_v25 = vld [vmem:[%s1950_s10 + $0x18] sm:$0xff]   ;;  %v1988_v37 = vld [vmem:[%s1950_s10 + $0x10] sm:$0xff]  }
  0x19   : > { %1615 = vmatmul.mubr.msk.bf16.vlgmr.msra.gmra.mxu0 %vm459_vm1, %v1683_v6  ;;  %1631 = vmatmul.mubr.msk.bf16.vlgmr.msra.gmra.mxu1 %vm459_vm1, %v1684_v7  ;;  %v1967_v24 = vld [vmem:[%s1950_s10 + $0x40] sm:$0xff]   ;;  %v1985_v36 = vld [vmem:[%s1950_s10 + $0x58] sm:$0xff]   ;;  %v1991_v38 = vld [vmem:[%s1950_s10 + $0x50] sm:$0xff]  }
  0x1a   : > { %1618 = vmatprep.mubr.msk.bf16.mxu0 %vm459_vm1, %v1685_v8  ;;  %1634 = vmatprep.mubr.msk.bf16.mxu1 %vm459_vm1, %v1686_v9 }
  0x21   : > { %1619 = vmatmul.mubr.msk.bf16.gmra.mxu0 %vm459_vm1, %v1687_v10  ;;  %1635 = vmatmul.mubr.msk.bf16.gmra.mxu1 %vm459_vm1, %v1688_v11 }
  0x22   : > { %1622 = vmatprep.mubr.msk.bf16.mxu0 %vm459_vm1, %v1689_v12  ;;  %1638 = vmatprep.mubr.msk.bf16.mxu1 %vm459_vm1, %v1690_v13 }
  0x29   : > { %1623 = vmatmul.mubr.msk.bf16.gmra.mxu0 %vm459_vm1, %v1691_v14  ;;  %1639 = vmatmul.mubr.msk.bf16.gmra.mxu1 %vm459_vm1, %v1692_v15 }
  0x2a   : > { %1626 = vmatprep.mubr.msk.bf16.mxu0 %vm459_vm1, %v1693_v16  ;;  %1642 = vmatprep.mubr.msk.bf16.mxu1 %vm459_vm1, %v1694_v17 }
  0x31   : > { %1627 = vmatmul.mubr.msk.bf16.gmra.mxu0 %vm459_vm1, %v1695_v18  ;;  %1643 = vmatmul.mubr.msk.bf16.gmra.mxu1 %vm459_vm1, %v1696_v19 }
  0xd9   : > { %v1616_v26 = vpop.f32.mrf.mxu0  ;;  %v1632_v29 = vpop.f32.mrf.mxu1 }
  0xda   : > { %v682_v32 = vmul.f32 %v1616_v26, %v1964_v23  ;;  %v698_v33 = vmul.f32 %v1632_v29, %v1964_v23 }
  0xdb   : > { %v546_v39 = vpop.f32.mrf.mxu0  ;;  %v610_v40 = vpop.f32.mrf.mxu1 }
  0xdc   : > { %v1998_v45 = vadd.f32 %v1975_v27, %v682_v32  ;;  %v2001_v46 = vadd.f32 %v1975_v27, %v698_v33  ;;  %v680_v47 = vmul.f32 %v1964_v23, %v546_v39  ;;  %v696_v48 = vmul.f32 %v1964_v23, %v610_v40 }
  0xdd   : > { %v1617_v49 = vpop.f32.mrf.mxu0  ;;  %v1633_v50 = vpop.f32.mrf.mxu1 }
  0xde   : > { %v1414_v55 = vmul.f32 -1.442695, %v1998_v45  ;;  %v1430_v56 = vmul.f32 -1.442695, %v2001_v46  ;;  %v2012_v57 = vadd.f32 %v1975_v27, %v680_v47  ;;  %v2015_v58 = vadd.f32 %v1975_v27, %v696_v48 }
  0xdf   : > { %v683_v59 = vmul.f32 %v1617_v49, %v1964_v23  ;;  %v699_v60 = vmul.f32 %v1633_v50, %v1964_v23  ;;  %v549_v61 = vpop.f32.mrf.mxu0  ;;  %v613_v62 = vpop.f32.mrf.mxu1 }
  0xe0   : > { %1697 = vpow2.f32 %v1414_v55  ;;  %v1412_v1 = vmul.f32 -1.442695, %v2012_v57  ;;  %v1428_v2 = vmul.f32 -1.442695, %v2015_v58  ;;  %v681_v3 = vmul.f32 %v1964_v23, %v549_v61 }
  0xe1   : > { %1699 = vpow2.f32 %v1430_v56  ;;  %v2025_v4 = vadd.f32 %v1975_v27, %v683_v59  ;;  %v2028_v5 = vadd.f32 %v1975_v27, %v699_v60  ;;  %v697_v6 = vmul.f32 %v1964_v23, %v613_v62  ;;  %v1620_v7 = vpop.f32.mrf.mxu0  ;;  %v1636_v8 = vpop.f32.mrf.mxu1 }
  0xe2   : > { %1701 = vpow2.f32 %v1412_v1  ;;  %v2032_v9 = vadd.f32 %v1975_v27, %v681_v3  ;;  %v686_v10 = vmul.f32 %v1620_v7, %v1964_v23  ;;  %v702_v11 = vmul.f32 %v1636_v8, %v1964_v23 }
  0xe3   : > { %1703 = vpow2.f32 %v1428_v2  ;;  %v1415_v12 = vmul.f32 -1.442695, %v2025_v4  ;;  %v1431_v13 = vmul.f32 -1.442695, %v2028_v5  ;;  %v2039_v14 = vadd.f32 %v1975_v27, %v697_v6  ;;  %v562_v15 = vpop.f32.mrf.mxu0  ;;  %v626_v16 = vpop.f32.mrf.mxu1 }
  0xe4   : > { %v1413_v17 = vmul.f32 -1.442695, %v2032_v9  ;;  %v2043_v18 = vadd.f32 %v1975_v27, %v686_v10  ;;  %v2046_v19 = vadd.f32 %v1975_v27, %v702_v11  ;;  %v684_v26 = vmul.f32 %v1964_v23, %v562_v15 }
  0xe5   : > { %1705 = vpow2.f32 %v1415_v12  ;;  %v1429_v29 = vmul.f32 -1.442695, %v2039_v14  ;;  %v700_v32 = vmul.f32 %v1964_v23, %v626_v16  ;;  %v1621_v33 = vpop.f32.mrf.mxu0  ;;  %v1637_v39 = vpop.f32.mrf.mxu1 }
  0xe6   : > { %1707 = vpow2.f32 %v1431_v13  ;;  %v1418_v47 = vmul.f32 -1.442695, %v2043_v18  ;;  %v1434_v48 = vmul.f32 -1.442695, %v2046_v19  ;;  %v2055_v49 = vadd.f32 %v1975_v27, %v684_v26 }
  0xe7   : > { %1709 = vpow2.f32 %v1413_v17  ;;  %v2058_v50 = vadd.f32 %v1975_v27, %v700_v32  ;;  %v687_v55 = vmul.f32 %v1621_v33, %v1964_v23  ;;  %v703_v56 = vmul.f32 %v1637_v39, %v1964_v23  ;;  %v565_v59 = vpop.f32.mrf.mxu0  ;;  %v629_v60 = vpop.f32.mrf.mxu1 }
  0xe8   : > { %1711 = vpow2.f32 %v1429_v29  ;;  %v1416_v61 = vmul.f32 -1.442695, %v2055_v49  ;;  %v685_v62 = vmul.f32 %v1964_v23, %v565_v59  ;;  %v701_v1 = vmul.f32 %v1964_v23, %v629_v60 }
  0xe9   : > { %1713 = vpow2.f32 %v1418_v47  ;;  %v1432_v2 = vmul.f32 -1.442695, %v2058_v50  ;;  %v2067_v3 = vadd.f32 %v1975_v27, %v687_v55  ;;  %v2070_v6 = vadd.f32 %v1975_v27, %v703_v56  ;;  %v1624_v7 = vpop.f32.mrf.mxu0  ;;  %v1640_v8 = vpop.f32.mrf.mxu1 }
  0xea   : > { %1715 = vpow2.f32 %v1434_v48  ;;  %v2073_v10 = vadd.f32 %v1975_v27, %v685_v62  ;;  %v2076_v11 = vadd.f32 %v1975_v27, %v701_v1  ;;  %v690_v12 = vmul.f32 %v1624_v7, %v1964_v23 }
  0xeb   : > { %1717 = vpow2.f32 %v1416_v61  ;;  %v1419_v13 = vmul.f32 -1.442695, %v2067_v3  ;;  %v1435_v15 = vmul.f32 -1.442695, %v2070_v6  ;;  %v706_v16 = vmul.f32 %v1640_v8, %v1964_v23  ;;  %v578_v17 = vpop.f32.mrf.mxu0  ;;  %v642_v26 = vpop.f32.mrf.mxu1 }
  0xec   : > { %1719 = vpow2.f32 %v1432_v2  ;;  %v1417_v29 = vmul.f32 -1.442695, %v2073_v10  ;;  %v1433_v32 = vmul.f32 -1.442695, %v2076_v11  ;;  %v2085_v33 = vadd.f32 %v1975_v27, %v690_v12 }
  0xed   : > { %v1698_v39 = vpop.eup %1697  ;;  %1721 = vpow2.f32 %v1419_v13  ;;  %v2088_v47 = vadd.f32 %v1975_v27, %v706_v16  ;;  %v688_v48 = vmul.f32 %v1964_v23, %v578_v17  ;;  %v704_v55 = vmul.f32 %v1964_v23, %v642_v26  ;;  %v1625_v56 = vpop.f32.mrf.mxu0 }
  0xee   : > { %v1641_v59 = vpop.f32.mrf.mxu1  ;;  %v1700_v60 = vpop.eup %1699  ;;  %v849_v61 = vadd.f32 1.0, %v1698_v39  ;;  %1723 = vpow2.f32 %v1435_v15  ;;  %v2093_v62 = vmul.f32 -1.442695, %v2085_v33  ;;  %v691_v1 = vmul.f32 %v1625_v56, %v1964_v23 }
  0xef   : > { %v1702_v2 = vpop.eup %1701  ;;  %v865_v7 = vadd.f32 1.0, %v1700_v60  ;;  %1725 = vpow2.f32 %v1417_v29  ;;  %v2097_v8 = vmul.f32 -1.442695, %v2088_v47  ;;  %v2100_v12 = vadd.f32 %v1975_v27, %v688_v48  ;;  %v581_v13 = vpop.f32.mrf.mxu0 }
  0xf0   : > { %v645_v16 = vpop.f32.mrf.mxu1  ;;  %v1704_v17 = vpop.eup %1703  ;;  %1727 = vrcp.f32 %v849_v61  ;;  %v847_v26 = vadd.f32 1.0, %v1702_v2  ;;  %v2103_v15 = vadd.f32 %v1975_v27, %v704_v55  ;;  %v2106_v39 = vadd.f32 %v1975_v27, %v691_v1 }
  0xf1   : > { %1729 = vrcp.f32 %v865_v7  ;;  %v863_v56 = vadd.f32 1.0, %v1704_v17  ;;  %v2109_v29 = vmul.f32 -1.442695, %v2100_v12  ;;  %v707_v60 = vmul.f32 %v1641_v59, %v1964_v23  ;;  %v1628_v48 = vpop.f32.mrf.mxu0 }
  0xf2   : > { %v1644_v40 = vpop.f32.mrf.mxu1  ;;  %v1706_v0 = vpop.eup %1705  ;;  %1731 = vrcp.f32 %v847_v26  ;;  %v2113_v61 = vmul.f32 -1.442695, %v2103_v15  ;;  %v2116_v55 = vmul.f32 -1.442695, %v2106_v39  ;;  %v689_v1 = vmul.f32 %v1964_v23, %v581_v13 }
  0xf3   : > { %v1708_v2 = vpop.eup %1707  ;;  %1733 = vrcp.f32 %v863_v56  ;;  %v850_v7 = vadd.f32 1.0, %v1706_v0  ;;  %v2120_v17 = vadd.f32 %v1975_v27, %v707_v60  ;;  %v705_v59 = vmul.f32 %v1964_v23, %v645_v16  ;;  %v594_v63 = vpop.f32.mrf.mxu0 }
  0xf4   : > { %v1710_v54 = vpop.eup %1709  ;;  %v866_v53 = vadd.f32 1.0, %v1708_v2  ;;  %1735 = vpow2.f32 %v1433_v32  ;;  %v2124_v26 = vadd.f32 %v1975_v27, %v689_v1  ;;  %v694_v52 = vmul.f32 %v1628_v48, %v1964_v23  ;;  %v658_v51 = vpop.f32.mrf.mxu1 }
  0xf5   : > { %v1712_v44 = vpop.eup %1711  ;;  %1737 = vrcp.f32 %v850_v7  ;;  %v848_v13 = vadd.f32 1.0, %v1710_v54  ;;  %v2128_v0 = vmul.f32 -1.442695, %v2120_v17  ;;  %v2131_v56 = vadd.f32 %v1975_v27, %v705_v59  ;;  %v1629_v43 = vpop.f32.mrf.mxu0 }
  0xf6   : > { %v1714_v16 = vpop.eup %1713  ;;  %1739 = vrcp.f32 %v866_v53  ;;  %v864_v60 = vadd.f32 1.0, %v1712_v44  ;;  %v2134_v32 = vmul.f32 -1.442695, %v2124_v26  ;;  %v2137_v1 = vadd.f32 %v1975_v27, %v694_v52  ;;  %v1645_v41 = vpop.f32.mrf.mxu1 }
  0xf7   : > { %v1716_v48 = vpop.eup %1715  ;;  %1741 = vrcp.f32 %v848_v13  ;;  %v853_v2 = vadd.f32 1.0, %v1714_v16  ;;  %v2140_v54 = vmul.f32 -1.442695, %v2131_v56  ;;  %v710_v7 = vmul.f32 %v1644_v40, %v1964_v23 }
  0xf8   : > { %2372 = vst [vmem:[#allocation2_spill] sm:$0xff] %v2137_v1  ;;  %v1718_v59 = vpop.eup %1717  ;;  %1743 = vrcp.f32 %v864_v60  ;;  %v869_v42 = vadd.f32 1.0, %v1716_v48  ;;  %v2144_v44 = vmul.f32 -1.442695, %v2137_v1  ;;  %v692_v53 = vmul.f32 %v1964_v23, %v594_v63 }
  0xf9   : > { %v1720_v52 = vpop.eup %1719  ;;  %1745 = vrcp.f32 %v853_v2  ;;  %v851_v13 = vadd.f32 1.0, %v1718_v59  ;;  %v2148_v16 = vadd.f32 %v1975_v27, %v710_v7  ;;  %v708_v35 = vmul.f32 %v1964_v23, %v658_v51  ;;  %v597_v7 = vpop.f32.mrf.mxu0 }
  0xfa   : > { %v1722_v40 = vpop.eup %1721  ;;  %1747 = vrcp.f32 %v869_v42  ;;  %v867_v34 = vadd.f32 1.0, %v1720_v52  ;;  %v2152_v60 = vadd.f32 %v1975_v27, %v692_v53  ;;  %v695_v48 = vmul.f32 %v1629_v43, %v1964_v23  ;;  %v661_v43 = vpop.f32.mrf.mxu1 }
  0xfb   : > { %2373 = vst [vmem:[#allocation3_spill] sm:$0xff] %v2148_v16  ;;  %v1724_v31 = vpop.eup %1723  ;;  %1749 = vrcp.f32 %v851_v13  ;;  %v854_v63 = vadd.f32 1.0, %v1722_v40  ;;  %v2156_v30 = vmul.f32 -1.442695, %v2148_v16  ;;  %v2159_v2 = vadd.f32 %v1975_v27, %v708_v35 }
  0xfc   : > { %2374 = vst [vmem:[#allocation4_spill] sm:$0xff] %v2152_v60  ;;  %v1726_v59 = vpop.eup %1725  ;;  %1751 = vrcp.f32 %v867_v34  ;;  %v870_v51 = vadd.f32 1.0, %v1724_v31  ;;  %v2162_v42 = vmul.f32 -1.442695, %v2152_v60  ;;  %v2165_v53 = vadd.f32 %v1975_v27, %v695_v48 }
  0xfd   : > { %2375 = vst [vmem:[#allocation5_spill] sm:$0xff] %v2159_v2  ;;  %v1728_v52 = vpop.eup %1727  ;;  %1753 = vrcp.f32 %v854_v63  ;;  %v852_v13 = vadd.f32 1.0, %v1726_v59  ;;  %v2168_v40 = vmul.f32 -1.442695, %v2159_v2  ;;  %v711_v35 = vmul.f32 %v1645_v41, %v1964_v23 }
  0xfe   : > { %v1730_v28 = vpop.eup %1729  ;;  %v945_v34 = vmul.f32 %v1728_v52, %v1998_v45  ;;  %1755 = vrcp.f32 %v870_v51  ;;  %v2173_v31 = vmul.f32 -1.442695, %v2165_v53  ;;  %v693_v48 = vmul.f32 %v1964_v23, %v597_v7 }
  0xff   : > { %v1732_v60 = vpop.eup %1731  ;;  %v961_v16 = vmul.f32 %v1730_v28, %v2001_v46  ;;  %1757 = vrcp.f32 %v852_v13  ;;  %v2178_v63 = vadd.f32 %v1975_v27, %v711_v35  ;;  %v709_v59 = vmul.f32 %v1964_v23, %v661_v43 }
 0x100   : > { %v1734_v41 = vpop.eup %1733  ;;  %v2376_v2 = vunpack.c.l.bf16 %v1953_v20  ;;  %v943_v45 = vmul.f32 %v1732_v60, %v2012_v57  ;;  %1759 = vpow2.f32 %v2093_v62  ;;  %v2186_v51 = vadd.f32 %v1975_v27, %v693_v48 }
 0x101   : > { %v1736_v7 = vpop.eup %1735  ;;  %v2377_v28 = vunpack.c.l.bf16 %v1956_v21  ;;  %v959_v46 = vmul.f32 %v1734_v41, %v2015_v58  ;;  %1761 = vpow2.f32 %v2097_v8  ;;  %v2199_v57 = vmul.f32 -1.442695, %v2178_v63 }
 0x102   : > { %v1041_v1 = vadd.f32 %v2376_v2, %v945_v34  ;;  %v1738_v62 = vpop.eup %1737  ;;  %v2378_v2 = vunpack.c.l.bf16 %v1959_v22  ;;  %v868_v52 = vadd.f32 1.0, %v1736_v7  ;;  %1763 = vpow2.f32 %v2109_v29 }
 0x103   : > { %v1057_v23 = vadd.f32 %v2377_v28, %v961_v16  ;;  %v1740_v13 = vpop.eup %1739  ;;  %v2379_v16 = vunpack.c.l.bf16 %v1967_v24  ;;  %v946_v58 = vmul.f32 %v1738_v62, %v2025_v4  ;;  %1765 = vpow2.f32 %v2113_v61 }
 0x104   : > { %v1480_v60 = vpack.c.bf16 %v1041_v1, %v1041_v1  ;;  %v1039_v43 = vadd.f32 %v2378_v2, %v943_v45  ;;  %v1742_v8 = vpop.eup %1741  ;;  %v962_v48 = vmul.f32 %v1740_v13, %v2028_v5  ;;  %1767 = vrcp.f32 %v868_v52 }
 0x105   : > { %v1496_v35 = vpack.c.bf16 %v1057_v23, %v1057_v23  ;;  %v1055_v34 = vadd.f32 %v2379_v16, %v959_v46  ;;  %v2212_v29 = vmul.f32 -1.442695, %v2186_v51  ;;  %v1744_v41 = vpop.eup %1743  ;;  %v2380_v7 = vunpack.c.h.bf16 %v1953_v20 }
 0x106   : > { %1202 = vst.msk [vmem:[%s2192_s17 + $0x8] sm:$0xf] %vm1199_vm2, %v1480_v60  ;;  %v1478_v1 = vpack.c.bf16 %v1039_v43, %v1039_v43  ;;  %v944_v61 = vmul.f32 %v1742_v8, %v2032_v9  ;;  %1769 = vpow2.f32 %v2116_v55  ;;  %v1746_v28 = vpop.eup %1745  ;;  %v2381_v5 = vunpack.c.h.bf16 %v1956_v21 }
 0x107   : > { %1218 = vst.msk [vmem:[%s2192_s17 + $0x48] sm:$0xf] %vm1199_vm2, %v1496_v35  ;;  %v1494_v45 = vpack.c.bf16 %v1055_v34, %v1055_v34  ;;  %v1042_v4 = vadd.f32 %v2380_v7, %v946_v58  ;;  %v960_v46 = vmul.f32 %v1744_v41, %v2039_v14  ;;  %1771 = vpow2.f32 %v2128_v0  ;;  %v1748_v20 = vpop.eup %1747 }
 0x108   : > { %1200 = vst.msk [vmem:[%s2192_s17] sm:$0xf] %vm1199_vm2, %v1478_v1  ;;  %v1058_v23 = vadd.f32 %v2381_v5, %v962_v48  ;;  %v2227_v62 = vadd.f32 %v1975_v27, %v709_v59  ;;  %v2382_v55 = vunpack.c.h.bf16 %v1959_v22  ;;  %v949_v2 = vmul.f32 %v1746_v28, %v2043_v18  ;;  %v1750_v21 = vpop.eup %1749 }
 0x109   : > { %1216 = vst.msk [vmem:[%s2192_s17 + $0x40] sm:$0xf] %vm1199_vm2, %v1494_v45  ;;  %v1481_v9 = vpack.c.bf16 %v1042_v4, %v1042_v4  ;;  %1773 = vpow2.f32 %v2134_v32  ;;  %v2383_v14 = vunpack.c.h.bf16 %v1967_v24  ;;  %v965_v27 = vmul.f32 %v1748_v20, %v2046_v19  ;;  %v1752_v59 = vpop.eup %1751 }
 0x10a   : > { %v1040_v60 = vadd.f32 %v2382_v55, %v944_v61  ;;  %v1497_v43 = vpack.c.bf16 %v1058_v23, %v1058_v23  ;;  %1775 = vpow2.f32 %v2140_v54  ;;  %v2384_v52 = vunpack.c.l.bf16 %v1970_v25  ;;  %v1754_v32 = vpop.eup %1753 }
 0x10b   : > { %v1056_v0 = vadd.f32 %v2383_v14, %v960_v46  ;;  %1203 = vst.msk [vmem:[%s2192_s17 + $0xc] sm:$0xf] %vm1199_vm2, %v1481_v9  ;;  %v947_v18 = vmul.f32 %v1750_v21, %v2055_v49  ;;  %1777 = vpow2.f32 %v2144_v44  ;;  %v2385_v19 = vunpack.c.l.bf16 %v1985_v36  ;;  %v1756_v16 = vpop.eup %1755 }
 0x10c   : > { %v1479_v22 = vpack.c.bf16 %v1040_v60, %v1040_v60  ;;  %v1045_v13 = vadd.f32 %v2384_v52, %v949_v2  ;;  %1219 = vst.msk [vmem:[%s2192_s17 + $0x4c] sm:$0xf] %vm1199_vm2, %v1497_v43  ;;  %v963_v54 = vmul.f32 %v1752_v59, %v2058_v50  ;;  %1779 = vpow2.f32 %v2156_v30  ;;  %v1758_v8 = vpop.eup %1757 }
 0x10d   : > { %v1495_v24 = vpack.c.bf16 %v1056_v0, %v1056_v0  ;;  %v1061_v35 = vadd.f32 %v2385_v19, %v965_v27  ;;  %v2386_v49 = vunpack.c.l.bf16 %v1988_v37  ;;  %v950_v44 = vmul.f32 %v1754_v32, %v2067_v3  ;;  %v1760_v41 = vpop.eup %1759 }
 0x10e   : > { %1201 = vst.msk [vmem:[%s2192_s17 + $0x4] sm:$0xf] %vm1199_vm2, %v1479_v22  ;;  %v1484_v34 = vpack.c.bf16 %v1045_v13, %v1045_v13  ;;  %1781 = vpow2.f32 %v2162_v42  ;;  %v2387_v50 = vunpack.c.l.bf16 %v1991_v38  ;;  %v966_v30 = vmul.f32 %v1756_v16, %v2070_v6  ;;  %v1762_v4 = vpop.eup %1761 }
 0x10f   : > { %v1043_v58 = vadd.f32 %v2386_v49, %v947_v18  ;;  %1217 = vst.msk [vmem:[%s2192_s17 + $0x44] sm:$0xf] %vm1199_vm2, %v1495_v24  ;;  %v1500_v1 = vpack.c.bf16 %v1061_v35, %v1061_v35  ;;  %1783 = vpow2.f32 %v2168_v40  ;;  %v2388_v3 = vunpack.c.h.bf16 %v1970_v25  ;;  %v1764_v5 = vpop.eup %1763  ;;  %v1578_v35 = vld [vmem:[%s1950_s10 + $0x28] sm:$0xff]  }
 0x110   : > { %v1059_v48 = vadd.f32 %v2387_v50, %v963_v54  ;;  %1206 = vst.msk [vmem:[%s2192_s17 + $0x18] sm:$0xf] %vm1199_vm2, %v1484_v34  ;;  %v948_v42 = vmul.f32 %v1758_v8, %v2073_v10  ;;  %1785 = vpow2.f32 %v2173_v31  ;;  %v2389_v6 = vunpack.c.h.bf16 %v1985_v36  ;;  %v1766_v46 = vpop.eup %1765  ;;  %v1586_v34 = vld [vmem:[%s1950_s10 + $0x68] sm:$0xff]  }
 0x111   : > { %v1482_v45 = vpack.c.bf16 %v1043_v58, %v1043_v58  ;;  %v1046_v7 = vadd.f32 %v2388_v3, %v950_v44  ;;  %1222 = vst.msk [vmem:[%s2192_s17 + $0x58] sm:$0xf] %vm1199_vm2, %v1500_v1  ;;  %v857_v40 = vadd.f32 1.0, %v1760_v41  ;;  %1787 = vpow2.f32 %v2199_v57  ;;  %v1768_v9 = vpop.eup %1767  ;;  %v1577_v44 = vld [vmem:[%s1950_s10 + $0x20] sm:$0xff]  }
 0x112   : > { %v1498_v61 = vpack.c.bf16 %v1059_v48, %v1059_v48  ;;  %v1062_v28 = vadd.f32 %v2389_v6, %v966_v30  ;;  %v2390_v23 = vunpack.c.h.bf16 %v1988_v37  ;;  %v873_v31 = vadd.f32 1.0, %v1762_v4  ;;  %v1585_v48 = vld [vmem:[%s1950_s10 + $0x60] sm:$0xff]  }
 0x113   : > { %1204 = vst.msk [vmem:[%s2192_s17 + $0x10] sm:$0xf] %vm1199_vm2, %v1482_v45  ;;  %v1485_v25 = vpack.c.bf16 %v1046_v7, %v1046_v7  ;;  %1789 = vpow2.f32 %v2212_v29  ;;  %v855_v20 = vadd.f32 1.0, %v1764_v5  ;;  %v1441_v57 = vmul.f32 -1.442695, %v2227_v62  ;;  %v1770_v60 = vpop.eup %1769 }
 0x114   : > { %v1044_v10 = vadd.f32 %v2390_v23, %v948_v42  ;;  %1220 = vst.msk [vmem:[%s2192_s17 + $0x50] sm:$0xf] %vm1199_vm2, %v1498_v61  ;;  %v1501_v36 = vpack.c.bf16 %v1062_v28, %v1062_v28  ;;  %1791 = vrcp.f32 %v857_v40  ;;  %v871_v37 = vadd.f32 1.0, %v1766_v46  ;;  %v1772_v2 = vpop.eup %1771 }
 0x115   : > { %1207 = vst.msk [vmem:[%s2192_s17 + $0x1c] sm:$0xf] %vm1199_vm2, %v1485_v25  ;;  %1793 = vrcp.f32 %v873_v31  ;;  %v964_v29 = vmul.f32 %v1768_v9, %v2076_v11  ;;  %v858_v21 = vadd.f32 1.0, %v1770_v60  ;;  %v2391_v14 = vunpack.c.h.bf16 %v1991_v38  ;;  %v2302_v9 = vld [vmem:[%s1950_s10 + $0x38] sm:$0xff]  }
 0x116   : > { %v1483_v55 = vpack.c.bf16 %v1044_v10, %v1044_v10  ;;  %1223 = vst.msk [vmem:[%s2192_s17 + $0x5c] sm:$0xf] %vm1199_vm2, %v1501_v36  ;;  %1795 = vrcp.f32 %v855_v20  ;;  %v1774_v43 = vpop.eup %1773  ;;  %v874_v27 = vadd.f32 1.0, %v1772_v2  ;;  %v1532_v50 = vunpack.c.l.bf16 %v1578_v35  ;;  %v1588_v2 = vld [vmem:[%s1950_s10 + $0x78] sm:$0xff]  }
 0x117   : > { %1797 = vrcp.f32 %v871_v37  ;;  %v1060_v0 = vadd.f32 %v2391_v14, %v964_v29  ;;  %v1776_v59 = vpop.eup %1775  ;;  %v856_v22 = vadd.f32 1.0, %v1774_v43  ;;  %v1564_v45 = vunpack.c.l.bf16 %v1586_v34 }
 0x118   : > { %1205 = vst.msk [vmem:[%s2192_s17 + $0x14] sm:$0xf] %vm1199_vm2, %v1483_v55  ;;  %1799 = vpow2.f32 %v1441_v57  ;;  %v1778_v52 = vpop.eup %1777  ;;  %v872_v13 = vadd.f32 1.0, %v1776_v59  ;;  %v1528_v4 = vunpack.c.l.bf16 %v1577_v44  ;;  %v1560_v28 = vunpack.c.l.bf16 %v1585_v48 }
 0x119   : > { %1801 = vrcp.f32 %v858_v21  ;;  %v1499_v11 = vpack.c.bf16 %v1060_v0, %v1060_v0  ;;  %v1780_v18 = vpop.eup %1779  ;;  %v861_v32 = vadd.f32 1.0, %v1778_v52  ;;  %v1533_v46 = vunpack.c.h.bf16 %v1578_v35  ;;  %v1579_v0 = vld [vmem:[%s1950_s10 + $0x30] sm:$0xff]   ;;  %v2392_v35 = vld [vmem:[#allocation2_spill] sm:$0xff] }
 0x11a   : > { %1803 = vrcp.f32 %v874_v27  ;;  %v877_v38 = vadd.f32 1.0, %v1780_v18  ;;  %v1565_v57 = vunpack.c.h.bf16 %v1586_v34  ;;  %v1529_v29 = vunpack.c.h.bf16 %v1577_v44 }
 0x11b   : > { %1805 = vrcp.f32 %v856_v22  ;;  %v1782_v24 = vpop.eup %1781  ;;  %1221 = vst.msk [vmem:[%s2192_s17 + $0x54] sm:$0xf] %vm1199_vm2, %v1499_v11  ;;  %v1561_v14 = vunpack.c.h.bf16 %v1585_v48  ;;  %v1540_v52 = vunpack.c.l.bf16 %v2302_v9  ;;  %v1587_v11 = vld [vmem:[%s1950_s10 + $0x70] sm:$0xff]  }
 0x11c   : > { %1807 = vrcp.f32 %v872_v13  ;;  %v1784_v19 = vpop.eup %1783  ;;  %v859_v54 = vadd.f32 1.0, %v1782_v24  ;;  %v2394_v48 = vld [vmem:[#allocation4_spill] sm:$0xff] }
 0x11d   : > { %1809 = vrcp.f32 %v861_v32  ;;  %v1786_v16 = vpop.eup %1785  ;;  %v875_v49 = vadd.f32 1.0, %v1784_v19  ;;  %v1572_v32 = vunpack.c.l.bf16 %v1588_v2 }
 0x11e   : > { %1811 = vrcp.f32 %v877_v38  ;;  %v1788_v58 = vpop.eup %1787  ;;  %v862_v8 = vadd.f32 1.0, %v1786_v16 }
 0x11f   : > { %1813 = vrcp.f32 %v859_v54  ;;  %v878_v30 = vadd.f32 1.0, %v1788_v58  ;;  %v2393_v58 = vld [vmem:[#allocation3_spill] sm:$0xff] }
 0x120   : > { %v1790_v1 = vpop.eup %1789  ;;  %1815 = vrcp.f32 %v875_v49 }
 0x121   : > { %v1792_v41 = vpop.eup %1791  ;;  %1817 = vrcp.f32 %v862_v8  ;;  %v860_v3 = vadd.f32 1.0, %v1790_v1  ;;  %v1568_v8 = vunpack.c.l.bf16 %v1587_v11 }
 0x122   : > { %v1794_v7 = vpop.eup %1793  ;;  %v953_v42 = vmul.f32 %v1792_v41, %v2085_v33  ;;  %1819 = vrcp.f32 %v878_v30  ;;  %v1541_v41 = vunpack.c.h.bf16 %v2302_v9 }
 0x123   : > { %v1796_v61 = vpop.eup %1795  ;;  %v969_v6 = vmul.f32 %v1794_v7, %v2088_v47  ;;  %1821 = vrcp.f32 %v860_v3 }
 0x124   : > { %v1798_v40 = vpop.eup %1797  ;;  %v1049_v5 = vadd.f32 %v1532_v50, %v953_v42  ;;  %v951_v25 = vmul.f32 %v1796_v61, %v2100_v12  ;;  %v2395_v42 = vld [vmem:[#allocation5_spill] sm:$0xff]  ;;  %v1573_v61 = vunpack.c.h.bf16 %v1588_v2 }
 0x125   : > { %v1800_v23 = vpop.eup %1799  ;;  %v1065_v10 = vadd.f32 %v1564_v45, %v969_v6  ;;  %v967_v31 = vmul.f32 %v1798_v40, %v2103_v15 }
 0x126   : > { %v1802_v33 = vpop.eup %1801  ;;  %v1488_v36 = vpack.c.bf16 %v1049_v5, %v1049_v5  ;;  %v1047_v20 = vadd.f32 %v1528_v4, %v951_v25  ;;  %v876_v47 = vadd.f32 1.0, %v1800_v23  ;;  %v1537_v25 = vunpack.c.h.bf16 %v1579_v0 }
 0x127   : > { %v1804_v55 = vpop.eup %1803  ;;  %v1504_v37 = vpack.c.bf16 %v1065_v10, %v1065_v10  ;;  %v1063_v60 = vadd.f32 %v1560_v28, %v967_v31  ;;  %v954_v12 = vmul.f32 %v1802_v33, %v2106_v39 }
 0x128   : > { %v1806_v15 = vpop.eup %1805  ;;  %1210 = vst.msk [vmem:[%s2192_s17 + $0x28] sm:$0xf] %vm1199_vm2, %v1488_v36  ;;  %v1486_v21 = vpack.c.bf16 %v1047_v20, %v1047_v20  ;;  %v970_v43 = vmul.f32 %v1804_v55, %v2120_v17  ;;  %1823 = vrcp.f32 %v876_v47  ;;  %v1569_v55 = vunpack.c.h.bf16 %v1587_v11 }
 0x129   : > { %v1808_v27 = vpop.eup %1807  ;;  %1226 = vst.msk [vmem:[%s2192_s17 + $0x68] sm:$0xf] %vm1199_vm2, %v1504_v37  ;;  %v1502_v59 = vpack.c.bf16 %v1063_v60, %v1063_v60  ;;  %v1050_v22 = vadd.f32 %v1533_v46, %v954_v12  ;;  %v952_v39 = vmul.f32 %v1806_v15, %v2124_v26  ;;  %v1536_v26 = vunpack.c.l.bf16 %v1579_v0 }
 0x12a   : > { %v1810_v13 = vpop.eup %1809  ;;  %1208 = vst.msk [vmem:[%s2192_s17 + $0x20] sm:$0xf] %vm1199_vm2, %v1486_v21  ;;  %v1066_v18 = vadd.f32 %v1565_v57, %v970_v43  ;;  %v968_v17 = vmul.f32 %v1808_v27, %v2131_v56 }
 0x12b   : > { %v1812_v24 = vpop.eup %1811  ;;  %1224 = vst.msk [vmem:[%s2192_s17 + $0x60] sm:$0xf] %vm1199_vm2, %v1502_v59  ;;  %v1489_v38 = vpack.c.bf16 %v1050_v22, %v1050_v22  ;;  %v1048_v19 = vadd.f32 %v1529_v29, %v952_v39  ;;  %v957_v54 = vmul.f32 %v1810_v13, %v2392_v35 }
 0x12c   : > { %v1814_v16 = vpop.eup %1813  ;;  %v1505_v34 = vpack.c.bf16 %v1066_v18, %v1066_v18  ;;  %v1064_v49 = vadd.f32 %v1561_v14, %v968_v17  ;;  %v973_v44 = vmul.f32 %v1812_v24, %v2393_v58 }
 0x12d   : > { %v1816_v1 = vpop.eup %1815  ;;  %1211 = vst.msk [vmem:[%s2192_s17 + $0x2c] sm:$0xf] %vm1199_vm2, %v1489_v38  ;;  %v1487_v56 = vpack.c.bf16 %v1048_v19, %v1048_v19  ;;  %v1053_v50 = vadd.f32 %v1540_v52, %v957_v54  ;;  %v955_v30 = vmul.f32 %v1814_v16, %v2394_v48 }
 0x12e   : > { %v1818_v45 = vpop.eup %1817  ;;  %1227 = vst.msk [vmem:[%s2192_s17 + $0x6c] sm:$0xf] %vm1199_vm2, %v1505_v34  ;;  %v1503_v3 = vpack.c.bf16 %v1064_v49, %v1064_v49  ;;  %v1069_v7 = vadd.f32 %v1572_v32, %v973_v44  ;;  %v971_v4 = vmul.f32 %v1816_v1, %v2395_v42 }
 0x12f   : > { %v1820_v6 = vpop.eup %1819  ;;  %1209 = vst.msk [vmem:[%s2192_s17 + $0x24] sm:$0xf] %vm1199_vm2, %v1487_v56  ;;  %v1492_v28 = vpack.c.bf16 %v1053_v50, %v1053_v50  ;;  %v1051_v40 = vadd.f32 %v1536_v26, %v955_v30  ;;  %v958_v5 = vmul.f32 %v1818_v45, %v2165_v53 }
 0x130   : > { %v1822_v23 = vpop.eup %1821  ;;  %1225 = vst.msk [vmem:[%s2192_s17 + $0x64] sm:$0xf] %vm1199_vm2, %v1503_v3  ;;  %v1508_v10 = vpack.c.bf16 %v1069_v7, %v1069_v7  ;;  %v1067_v31 = vadd.f32 %v1568_v8, %v971_v4  ;;  %v974_v46 = vmul.f32 %v1820_v6, %v2178_v63 }
 0x131   : > { %1214 = vst.msk [vmem:[%s2192_s17 + $0x38] sm:$0xf] %vm1199_vm2, %v1492_v28  ;;  %v1490_v33 = vpack.c.bf16 %v1051_v40, %v1051_v40  ;;  %v1054_v36 = vadd.f32 %v1541_v41, %v958_v5  ;;  %v956_v20 = vmul.f32 %v1822_v23, %v2186_v51 }
 0x132   : > { %1230 = vst.msk [vmem:[%s2192_s17 + $0x78] sm:$0xf] %vm1199_vm2, %v1508_v10  ;;  %v1506_v53 = vpack.c.bf16 %v1067_v31, %v1067_v31  ;;  %v1070_v57 = vadd.f32 %v1573_v61, %v974_v46 }
 0x133   : > { %1212 = vst.msk [vmem:[%s2192_s17 + $0x30] sm:$0xf] %vm1199_vm2, %v1490_v33  ;;  %v1493_v9 = vpack.c.bf16 %v1054_v36, %v1054_v36  ;;  %v1052_v47 = vadd.f32 %v1537_v25, %v956_v20 }
 0x134   : > { %1228 = vst.msk [vmem:[%s2192_s17 + $0x70] sm:$0xf] %vm1199_vm2, %v1506_v53  ;;  %v1509_v63 = vpack.c.bf16 %v1070_v57, %v1070_v57 }
 0x135   : > { %v1824_v37 = vpop.eup %1823  ;;  %1215 = vst.msk [vmem:[%s2192_s17 + $0x3c] sm:$0xf] %vm1199_vm2, %v1493_v9  ;;  %v1491_v60 = vpack.c.bf16 %v1052_v47, %v1052_v47 }
 0x136   : > { %1231 = vst.msk [vmem:[%s2192_s17 + $0x7c] sm:$0xf] %vm1199_vm2, %v1509_v63  ;;  %v972_v51 = vmul.f32 %v1824_v37, %v2227_v62 }
 0x137   : > { %1213 = vst.msk [vmem:[%s2192_s17 + $0x34] sm:$0xf] %vm1199_vm2, %v1491_v60 }
 0x138   : > { %v1068_v12 = vadd.f32 %v1569_v55, %v972_v51 }
 0x13a   : > { %v1507_v29 = vpack.c.bf16 %v1068_v12, %v1068_v12 }
 0x13c   : > { %1229 = vst.msk [vmem:[%s2192_s17 + $0x74] sm:$0xf] %vm1199_vm2, %v1507_v29 }
 0x13d PF: > { %s15_s20 = sadd.s32 1, %s1847_s20   ;;  %s2396_s18 = smov %s1843_s19 }
 0x13e   : > { %p12_p5 = scmp.ge.s32.totalorder %s15_s20, 4   ;;  %s2397_s19 = smov %s2399_s21 }
 0x140   :  { %14 = sbr.rel (!%p12_p5) target bundleno = 2 (0x2), region = 82 }

// kernel: panet_forward.53
= control target key start
LH: loop header
LB: loop body
LE: loop exit
PB: predicated region body
PF: predicated region fallthrough
CT: control target
= control target key end

     0   :  { %s2142_s21 = smov 0   ;;  %s2144_s22 = smov 0   ;;  %s2525_s0 = inlined_call_operand.vmem [shape: bf16[512,4], index: 0, kind: input, shape index: {}]   ;;  %s2526_s1 = inlined_call_operand.vmem [shape: bf16[512,4], index: 1, kind: input, shape index: {}]   ;;  %s2527_s2 = inlined_call_operand.vmem [shape: bf16[4,8], index: 2, kind: input, shape index: {}]   ;;  %s2528_s3 = inlined_call_operand.vmem [shape: bf16[4,8], index: 3, kind: input, shape index: {}]   ;;  %s2529_s4 = inlined_call_operand.vmem [shape: f32[1,8], index: 4, kind: input, shape index: {}]   ;;  %s2530_s5 = inlined_call_operand.vmem [shape: f32[1,8], index: 5, kind: input, shape index: {}]   ;;  %s2531_s6 = inlined_call_operand.vmem [shape: bf16[512,8], index: 6, kind: output, shape index: {}]  }
   0x1   :  { %s2146_s23 = smov 0  }
   0x2 LB: > { %s28_s24 = sadd.s32 1, %s2101_s22  ;;  %p1624_p0 = scmp.ge.s32.totalorder %s2105_s23, 1  ;;  %s2105_s23 = sphi %s2146_s23, %s16_s23   ;;  %s2101_s22 = sphi %s2144_s22, %s2533_s22   ;;  %s2097_s21 = sphi %s2142_s21, %s2532_s21  }
   0x3   : > { %p30_p1 = scmp.ge.s32.totalorder %s28_s24, 2  ;;  %p272_p2 = scmp.lt.s32.totalorder %s2105_s23, 3 }
   0x5   : > { %s2535_s24 = smov (%p30_p1, %s28_s24), 0  ;;  %p273_p3 = pnand %p1624_p0, %p272_p2 }
   0x6   : > { %s1625_s29 = sshll.u32 (!%p273_p3), %s2097_s21, 5 }
   0x7   : > { %276 = sbr.rel (%p273_p3) target bundleno = 322 (0x142), region = 44  ;;  %p325_p4 = scmp.lt.s32.totalorder (!%p273_p3), %s1625_s29, 63 }
   0xc   : > { %v425_v0 = vld [vmem:[%s2528_s3] sm:$0x3]  ;;  %vm555_vm0 = vcmask 1041408   ;;  %s2537_s29 = smov (!%p325_p4, %s1625_s29), 63  ;;  %vm506_vm1 = vcmask 31744   ;;  %vm1442_vm2 = vcmask 60416  }
   0xd   : > { %v392_v1 = vld [vmem:[%s2527_s2] sm:$0x3]  ;;  %1897 = vmatprep.subr.msk.bf16.mxu0 %vm555_vm0, %v425_v0  ;;  %v557_v2 = vsel %vm555_vm0, %v425_v0, 0  ;;  %s2166_s30 = sshll.u32 %s2537_s29, 2 }
   0xe   : > { %1898 = vmatprep.subr.msk.bf16.mxu1 %vm555_vm0, %v392_v1  ;;  %v849_v3 = vsel %vm555_vm0, %v392_v1, 0  ;;  %1830 = vmatpush3.bf16.msra.mxu0 %v557_v2  ;;  %s2172_s9 = scalar_lea.vmem %s2526_s1, %s2166_s30  ;;  %s2179_s12 = scalar_lea.vmem %s2525_s0, %s2166_s30  ;;  %v2247_v38 = vld [vmem:[%s2529_s4] ss:$0 sm:$0xff] }
   0xf   : > { %1864 = vmatpush3.bf16.msra.mxu1 %v849_v3  ;;  %v1923_v4 = vld [vmem:[%s2172_s9] sm:$0xff]   ;;  %v1925_v6 = vld [vmem:[%s2172_s9 + $0x8] sm:$0xff]   ;;  %v1927_v8 = vld [vmem:[%s2172_s9 + $0x10] sm:$0xff]   ;;  %s2345_s19 = scalar_lea.vmem %s2531_s6, %s2166_s30 }
  0x10   : > { %v1924_v5 = vld [vmem:[%s2179_s12] sm:$0xff]   ;;  %1831 = vmatprep.mubr.msk.bf16.mxu0 %vm506_vm1, %v1923_v4  ;;  %v1926_v7 = vld [vmem:[%s2179_s12 + $0x8] sm:$0xff]   ;;  %v1928_v9 = vld [vmem:[%s2179_s12 + $0x10] sm:$0xff]  }
  0x11   : > { %1865 = vmatprep.mubr.msk.bf16.mxu1 %vm506_vm1, %v1924_v5  ;;  %1832 = vmatmul.mubr.msk.bf16.vlgmr.msra.gmra.mxu0 %vm506_vm1, %v1925_v6  ;;  %v1929_v10 = vld [vmem:[%s2172_s9 + $0x18] sm:$0xff]   ;;  %v1931_v12 = vld [vmem:[%s2172_s9 + $0x20] sm:$0xff]   ;;  %v1933_v14 = vld [vmem:[%s2172_s9 + $0x28] sm:$0xff]  }
  0x12   : > { %1866 = vmatmul.mubr.msk.bf16.vlgmr.msra.gmra.mxu1 %vm506_vm1, %v1926_v7  ;;  %1835 = vmatprep.mubr.msk.bf16.mxu0 %vm506_vm1, %v1927_v8  ;;  %v1930_v11 = vld [vmem:[%s2179_s12 + $0x18] sm:$0xff]   ;;  %v1932_v13 = vld [vmem:[%s2179_s12 + $0x20] sm:$0xff]   ;;  %v1934_v15 = vld [vmem:[%s2179_s12 + $0x28] sm:$0xff]  }
  0x13   : > { %1869 = vmatprep.mubr.msk.bf16.mxu1 %vm506_vm1, %v1928_v9  ;;  %v1935_v16 = vld [vmem:[%s2172_s9 + $0x30] sm:$0xff]   ;;  %v1937_v18 = vld [vmem:[%s2172_s9 + $0x38] sm:$0xff]   ;;  %v1939_v20 = vld [vmem:[%s2172_s9 + $0x40] sm:$0xff]  }
  0x14   : > { %v1936_v17 = vld [vmem:[%s2179_s12 + $0x30] sm:$0xff]   ;;  %v1938_v19 = vld [vmem:[%s2179_s12 + $0x38] sm:$0xff]   ;;  %v1940_v21 = vld [vmem:[%s2179_s12 + $0x40] sm:$0xff]  }
  0x15   : > { %v1941_v22 = vld [vmem:[%s2172_s9 + $0x48] sm:$0xff]   ;;  %v1943_v24 = vld [vmem:[%s2172_s9 + $0x50] sm:$0xff]   ;;  %v1945_v26 = vld [vmem:[%s2172_s9 + $0x58] sm:$0xff]  }
  0x16   : > { %v1942_v23 = vld [vmem:[%s2179_s12 + $0x48] sm:$0xff]   ;;  %v1944_v25 = vld [vmem:[%s2179_s12 + $0x50] sm:$0xff]   ;;  %v1946_v27 = vld [vmem:[%s2179_s12 + $0x58] sm:$0xff]  }
  0x17   : > { %v1947_v28 = vld [vmem:[%s2172_s9 + $0x60] sm:$0xff]   ;;  %v1949_v30 = vld [vmem:[%s2172_s9 + $0x68] sm:$0xff]   ;;  %v1951_v32 = vld [vmem:[%s2172_s9 + $0x70] sm:$0xff]  }
  0x18   : > { %v1948_v29 = vld [vmem:[%s2179_s12 + $0x60] sm:$0xff]   ;;  %v1950_v31 = vld [vmem:[%s2179_s12 + $0x68] sm:$0xff]   ;;  %v1952_v33 = vld [vmem:[%s2179_s12 + $0x70] sm:$0xff]  }
  0x19   : > { %1836 = vmatmul.mubr.msk.bf16.gmra.mxu0 %vm506_vm1, %v1929_v10  ;;  %v1953_v34 = vld [vmem:[%s2172_s9 + $0x78] sm:$0xff]   ;;  %v2252_v41 = vld [vmem:[%s2530_s5] ss:$0 sm:$0xff] }
  0x1a   : > { %1870 = vmatmul.mubr.msk.bf16.gmra.mxu1 %vm506_vm1, %v1930_v11  ;;  %1839 = vmatprep.mubr.msk.bf16.mxu0 %vm506_vm1, %v1931_v12  ;;  %v1954_v35 = vld [vmem:[%s2179_s12 + $0x78] sm:$0xff]  }
  0x1b   : > { %1873 = vmatprep.mubr.msk.bf16.mxu1 %vm506_vm1, %v1932_v13 }
  0x21   : > { %1840 = vmatmul.mubr.msk.bf16.gmra.mxu0 %vm506_vm1, %v1933_v14 }
  0x22   : > { %1874 = vmatmul.mubr.msk.bf16.gmra.mxu1 %vm506_vm1, %v1934_v15  ;;  %1843 = vmatprep.mubr.msk.bf16.mxu0 %vm506_vm1, %v1935_v16 }
  0x23   : > { %1877 = vmatprep.mubr.msk.bf16.mxu1 %vm506_vm1, %v1936_v17 }
  0x29   : > { %1844 = vmatmul.mubr.msk.bf16.gmra.mxu0 %vm506_vm1, %v1937_v18 }
  0x2a   : > { %1878 = vmatmul.mubr.msk.bf16.gmra.mxu1 %vm506_vm1, %v1938_v19  ;;  %1847 = vmatprep.mubr.msk.bf16.mxu0 %vm506_vm1, %v1939_v20 }
  0x2b   : > { %1881 = vmatprep.mubr.msk.bf16.mxu1 %vm506_vm1, %v1940_v21 }
  0x31   : > { %1848 = vmatmul.mubr.msk.bf16.gmra.mxu0 %vm506_vm1, %v1941_v22 }
  0x32   : > { %1882 = vmatmul.mubr.msk.bf16.gmra.mxu1 %vm506_vm1, %v1942_v23  ;;  %1851 = vmatprep.mubr.msk.bf16.mxu0 %vm506_vm1, %v1943_v24 }
  0x33   : > { %1885 = vmatprep.mubr.msk.bf16.mxu1 %vm506_vm1, %v1944_v25 }
  0x39   : > { %1852 = vmatmul.mubr.msk.bf16.gmra.mxu0 %vm506_vm1, %v1945_v26 }
  0x3a   : > { %1886 = vmatmul.mubr.msk.bf16.gmra.mxu1 %vm506_vm1, %v1946_v27  ;;  %1855 = vmatprep.mubr.msk.bf16.mxu0 %vm506_vm1, %v1947_v28 }
  0x3b   : > { %1889 = vmatprep.mubr.msk.bf16.mxu1 %vm506_vm1, %v1948_v29 }
  0x41   : > { %1856 = vmatmul.mubr.msk.bf16.gmra.mxu0 %vm506_vm1, %v1949_v30 }
  0x42   : > { %1890 = vmatmul.mubr.msk.bf16.gmra.mxu1 %vm506_vm1, %v1950_v31  ;;  %1859 = vmatprep.mubr.msk.bf16.mxu0 %vm506_vm1, %v1951_v32 }
  0x43   : > { %1893 = vmatprep.mubr.msk.bf16.mxu1 %vm506_vm1, %v1952_v33 }
  0x49   : > { %1860 = vmatmul.mubr.msk.bf16.gmra.mxu0 %vm506_vm1, %v1953_v34 }
  0x4a   : > { %1894 = vmatmul.mubr.msk.bf16.gmra.mxu1 %vm506_vm1, %v1954_v35 }
  0xd1   : > { %v1833_v36 = vpop.f32.mrf.mxu0 }
  0xd2   : > { %v1867_v37 = vpop.f32.mrf.mxu1 }
  0xd3   : > { %v894_v39 = vadd.f32 %v1867_v37, %v1833_v36  ;;  %v593_v40 = vpop.f32.mrf.mxu0 }
  0xd4   : > { %v885_v42 = vpop.f32.mrf.mxu1 }
  0xd5   : > { %v1021_v43 = vmul.f32 %v2247_v38, %v894_v39  ;;  %v886_v44 = vadd.f32 %v885_v42, %v593_v40  ;;  %v1834_v45 = vpop.f32.mrf.mxu0 }
  0xd6   : > { %v1868_v46 = vpop.f32.mrf.mxu1 }
  0xd7   : > { %v2256_v47 = vadd.f32 %v2252_v41, %v1021_v43  ;;  %v1019_v48 = vmul.f32 %v2247_v38, %v886_v44  ;;  %v897_v49 = vadd.f32 %v1868_v46, %v1834_v45  ;;  %v596_v50 = vpop.f32.mrf.mxu0 }
  0xd8   : > { %v888_v51 = vpop.f32.mrf.mxu1 }
  0xd9   : > { %v1699_v52 = vmul.f32 -1.442695, %v2256_v47  ;;  %v2261_v53 = vadd.f32 %v2252_v41, %v1019_v48  ;;  %v1022_v54 = vmul.f32 %v2247_v38, %v897_v49  ;;  %v889_v55 = vadd.f32 %v888_v51, %v596_v50  ;;  %v1837_v56 = vpop.f32.mrf.mxu0 }
  0xda   : > { %v1871_v57 = vpop.f32.mrf.mxu1 }
  0xdb   : > { %1955 = vpow2.f32 %v1699_v52  ;;  %v1697_v58 = vmul.f32 -1.442695, %v2261_v53  ;;  %v2266_v59 = vadd.f32 %v2252_v41, %v1022_v54  ;;  %v1020_v60 = vmul.f32 %v2247_v38, %v889_v55  ;;  %v609_v61 = vpop.f32.mrf.mxu0 }
  0xdc   : > { %v910_v62 = vadd.f32 %v1871_v57, %v1837_v56  ;;  %v901_v63 = vpop.f32.mrf.mxu1 }
  0xdd   : > { %1957 = vpow2.f32 %v1697_v58  ;;  %v1700_v0 = vmul.f32 -1.442695, %v2266_v59  ;;  %v2271_v1 = vadd.f32 %v2252_v41, %v1020_v60  ;;  %v902_v2 = vadd.f32 %v901_v63, %v609_v61  ;;  %v1838_v3 = vpop.f32.mrf.mxu0 }
  0xde   : > { %v1025_v4 = vmul.f32 %v2247_v38, %v910_v62  ;;  %v1872_v5 = vpop.f32.mrf.mxu1 }
  0xdf   : > { %1959 = vpow2.f32 %v1700_v0  ;;  %v1698_v6 = vmul.f32 -1.442695, %v2271_v1  ;;  %v1023_v7 = vmul.f32 %v2247_v38, %v902_v2  ;;  %v913_v8 = vadd.f32 %v1872_v5, %v1838_v3  ;;  %v612_v9 = vpop.f32.mrf.mxu0 }
  0xe0   : > { %v2277_v10 = vadd.f32 %v2252_v41, %v1025_v4  ;;  %v904_v11 = vpop.f32.mrf.mxu1 }
  0xe1   : > { %1961 = vpow2.f32 %v1698_v6  ;;  %v2280_v12 = vadd.f32 %v2252_v41, %v1023_v7  ;;  %v1026_v13 = vmul.f32 %v2247_v38, %v913_v8  ;;  %v905_v14 = vadd.f32 %v904_v11, %v612_v9  ;;  %v1841_v15 = vpop.f32.mrf.mxu0 }
  0xe2   : > { %v1703_v16 = vmul.f32 -1.442695, %v2277_v10  ;;  %v1875_v17 = vpop.f32.mrf.mxu1 }
  0xe3   : > { %v1701_v18 = vmul.f32 -1.442695, %v2280_v12  ;;  %v2286_v19 = vadd.f32 %v2252_v41, %v1026_v13  ;;  %v1024_v20 = vmul.f32 %v2247_v38, %v905_v14  ;;  %v926_v21 = vadd.f32 %v1875_v17, %v1841_v15  ;;  %v625_v22 = vpop.f32.mrf.mxu0 }
  0xe4   : > { %1963 = vpow2.f32 %v1703_v16  ;;  %v917_v23 = vpop.f32.mrf.mxu1 }
  0xe5   : > { %1965 = vpow2.f32 %v1701_v18  ;;  %v1704_v24 = vmul.f32 -1.442695, %v2286_v19  ;;  %v2291_v25 = vadd.f32 %v2252_v41, %v1024_v20  ;;  %v1029_v26 = vmul.f32 %v2247_v38, %v926_v21  ;;  %v1842_v27 = vpop.f32.mrf.mxu0 }
  0xe6   : > { %v918_v28 = vadd.f32 %v917_v23, %v625_v22  ;;  %v1876_v29 = vpop.f32.mrf.mxu1 }
  0xe7   : > { %1967 = vpow2.f32 %v1704_v24  ;;  %v1702_v30 = vmul.f32 -1.442695, %v2291_v25  ;;  %v2296_v31 = vadd.f32 %v2252_v41, %v1029_v26  ;;  %v929_v32 = vadd.f32 %v1876_v29, %v1842_v27  ;;  %v628_v33 = vpop.f32.mrf.mxu0 }
  0xe8   : > { %v1956_v34 = vpop.eup %1955  ;;  %v1027_v35 = vmul.f32 %v2247_v38, %v918_v28  ;;  %v920_v36 = vpop.f32.mrf.mxu1 }
  0xe9   : > { %v1188_v37 = vadd.f32 1.0, %v1956_v34  ;;  %1969 = vpow2.f32 %v1702_v30  ;;  %v1707_v39 = vmul.f32 -1.442695, %v2296_v31  ;;  %v1030_v40 = vmul.f32 %v2247_v38, %v929_v32  ;;  %v1845_v42 = vpop.f32.mrf.mxu0 }
  0xea   : > { %v1958_v43 = vpop.eup %1957  ;;  %v2302_v44 = vadd.f32 %v2252_v41, %v1027_v35  ;;  %v921_v45 = vadd.f32 %v920_v36, %v628_v33  ;;  %v1879_v46 = vpop.f32.mrf.mxu1 }
  0xeb   : > { %1971 = vrcp.f32 %v1188_v37  ;;  %v1186_v48 = vadd.f32 1.0, %v1958_v43  ;;  %v2305_v49 = vadd.f32 %v2252_v41, %v1030_v40  ;;  %v942_v50 = vadd.f32 %v1879_v46, %v1845_v42  ;;  %v641_v51 = vpop.f32.mrf.mxu0 }
  0xec   : > { %v1960_v52 = vpop.eup %1959  ;;  %1973 = vpow2.f32 %v1707_v39  ;;  %v1705_v54 = vmul.f32 -1.442695, %v2302_v44  ;;  %v1028_v55 = vmul.f32 %v2247_v38, %v921_v45  ;;  %v933_v56 = vpop.f32.mrf.mxu1 }
  0xed   : > { %1975 = vrcp.f32 %v1186_v48  ;;  %v1189_v57 = vadd.f32 1.0, %v1960_v52  ;;  %v1708_v58 = vmul.f32 -1.442695, %v2305_v49  ;;  %v1033_v60 = vmul.f32 %v2247_v38, %v942_v50  ;;  %v1846_v61 = vpop.f32.mrf.mxu0 }
  0xee   : > { %v1962_v62 = vpop.eup %1961  ;;  %1977 = vpow2.f32 %v1705_v54  ;;  %v2312_v63 = vadd.f32 %v2252_v41, %v1028_v55  ;;  %v934_v0 = vadd.f32 %v933_v56, %v641_v51  ;;  %v1880_v2 = vpop.f32.mrf.mxu1 }
  0xef   : > { %1979 = vrcp.f32 %v1189_v57  ;;  %v1187_v3 = vadd.f32 1.0, %v1962_v62  ;;  %v2315_v4 = vadd.f32 %v2252_v41, %v1033_v60  ;;  %v945_v5 = vadd.f32 %v1880_v2, %v1846_v61  ;;  %v644_v6 = vpop.f32.mrf.mxu0 }
  0xf0   : > { %1981 = vpow2.f32 %v1708_v58  ;;  %v1706_v7 = vmul.f32 -1.442695, %v2312_v63  ;;  %v1031_v8 = vmul.f32 %v2247_v38, %v934_v0  ;;  %v936_v9 = vpop.f32.mrf.mxu1 }
  0xf1   : > { %v1964_v11 = vpop.eup %1963  ;;  %1983 = vrcp.f32 %v1187_v3  ;;  %v1711_v13 = vmul.f32 -1.442695, %v2315_v4  ;;  %v1034_v14 = vmul.f32 %v2247_v38, %v945_v5  ;;  %v937_v15 = vadd.f32 %v936_v9, %v644_v6  ;;  %v1849_v16 = vpop.f32.mrf.mxu0 }
  0xf2   : > { %v1966_v17 = vpop.eup %1965  ;;  %v1192_v18 = vadd.f32 1.0, %v1964_v11  ;;  %1985 = vpow2.f32 %v1706_v7  ;;  %v2322_v20 = vadd.f32 %v2252_v41, %v1031_v8  ;;  %v1883_v21 = vpop.f32.mrf.mxu1 }
  0xf3   : > { %v1190_v22 = vadd.f32 1.0, %v1966_v17  ;;  %1987 = vpow2.f32 %v1711_v13  ;;  %v2325_v23 = vadd.f32 %v2252_v41, %v1034_v14  ;;  %v1032_v24 = vmul.f32 %v2247_v38, %v937_v15  ;;  %v657_v26 = vpop.f32.mrf.mxu0 }
  0xf4   : > { %v1968_v27 = vpop.eup %1967  ;;  %1989 = vrcp.f32 %v1192_v18  ;;  %v1709_v28 = vmul.f32 -1.442695, %v2322_v20  ;;  %v958_v29 = vadd.f32 %v1883_v21, %v1849_v16  ;;  %v949_v30 = vpop.f32.mrf.mxu1 }
  0xf5   : > { %1991 = vrcp.f32 %v1190_v22  ;;  %v1193_v32 = vadd.f32 1.0, %v1968_v27  ;;  %v1712_v33 = vmul.f32 -1.442695, %v2325_v23  ;;  %v2331_v34 = vadd.f32 %v2252_v41, %v1032_v24  ;;  %v1850_v35 = vpop.f32.mrf.mxu0 }
  0xf6   : > { %v1970_v36 = vpop.eup %1969  ;;  %1993 = vpow2.f32 %v1709_v28  ;;  %v1037_v37 = vmul.f32 %v2247_v38, %v958_v29  ;;  %v950_v39 = vadd.f32 %v949_v30, %v657_v26  ;;  %v1884_v40 = vpop.f32.mrf.mxu1 }
  0xf7   : > { %1995 = vrcp.f32 %v1193_v32  ;;  %v1191_v42 = vadd.f32 1.0, %v1970_v36  ;;  %v1710_v43 = vmul.f32 -1.442695, %v2331_v34  ;;  %v961_v45 = vadd.f32 %v1884_v40, %v1850_v35  ;;  %v660_v46 = vpop.f32.mrf.mxu0 }
  0xf8   : > { %v1972_v48 = vpop.eup %1971  ;;  %1997 = vpow2.f32 %v1712_v33  ;;  %v2336_v50 = vadd.f32 %v2252_v41, %v1037_v37  ;;  %v1035_v51 = vmul.f32 %v2247_v38, %v950_v39  ;;  %v952_v52 = vpop.f32.mrf.mxu1 }
  0xf9   : > { %v1974_v54 = vpop.eup %1973  ;;  %v1284_v55 = vmul.f32 %v1972_v48, %v2256_v47  ;;  %1999 = vrcp.f32 %v1191_v42  ;;  %v1038_v56 = vmul.f32 %v2247_v38, %v961_v45  ;;  %v953_v57 = vadd.f32 %v952_v52, %v660_v46  ;;  %v1853_v58 = vpop.f32.mrf.mxu0 }
  0xfa   : > { %v1976_v60 = vpop.eup %1975  ;;  %v1196_v61 = vadd.f32 1.0, %v1974_v54  ;;  %2001 = vpow2.f32 %v1710_v43  ;;  %v1715_v62 = vmul.f32 -1.442695, %v2336_v50  ;;  %v2349_v0 = vadd.f32 %v2252_v41, %v1035_v51  ;;  %v1887_v47 = vpop.f32.mrf.mxu1 }
  0xfb   : > { %v1978_v2 = vpop.eup %1977  ;;  %v1765_v3 = vpack.c.bf16 %v1284_v55, %v1284_v55  ;;  %v1282_v5 = vmul.f32 %v1976_v60, %v2261_v53  ;;  %v2353_v6 = vadd.f32 %v2252_v41, %v1038_v56  ;;  %v1036_v7 = vmul.f32 %v2247_v38, %v953_v57  ;;  %v673_v8 = vpop.f32.mrf.mxu0 }
  0xfc   : > { %v1980_v9 = vpop.eup %1979  ;;  %2003 = vrcp.f32 %v1196_v61  ;;  %v1194_v11 = vadd.f32 1.0, %v1978_v2  ;;  %v1713_v13 = vmul.f32 -1.442695, %v2349_v0  ;;  %v974_v14 = vadd.f32 %v1887_v47, %v1853_v58  ;;  %v965_v15 = vpop.f32.mrf.mxu1 }
  0xfd   : > { %v1982_v16 = vpop.eup %1981  ;;  %1445 = vst.msk [vmem:[%s2345_s19 + $0x8] sm:$0xf] %vm1442_vm2, %v1765_v3  ;;  %v1763_v17 = vpack.c.bf16 %v1282_v5, %v1282_v5  ;;  %v1285_v53 = vmul.f32 %v1980_v9, %v2266_v59  ;;  %2005 = vpow2.f32 %v1715_v62  ;;  %v1716_v18 = vmul.f32 -1.442695, %v2353_v6  ;;  %v1854_v21 = vpop.f32.mrf.mxu0 }
  0xfe   : > { %v1984_v22 = vpop.eup %1983  ;;  %2007 = vrcp.f32 %v1194_v11  ;;  %v1197_v24 = vadd.f32 1.0, %v1982_v16  ;;  %v2362_v26 = vadd.f32 %v2252_v41, %v1036_v7  ;;  %v1041_v27 = vmul.f32 %v2247_v38, %v974_v14  ;;  %v1888_v28 = vpop.f32.mrf.mxu1 }
  0xff   : > { %v1986_v29 = vpop.eup %1985  ;;  %1443 = vst.msk [vmem:[%s2345_s19] sm:$0xf] %vm1442_vm2, %v1763_v17  ;;  %v1766_v30 = vpack.c.bf16 %v1285_v53, %v1285_v53  ;;  %v1283_v59 = vmul.f32 %v1984_v22, %v2271_v1  ;;  %2009 = vpow2.f32 %v1713_v13  ;;  %v966_v32 = vadd.f32 %v965_v15, %v673_v8  ;;  %v676_v33 = vpop.f32.mrf.mxu0 }
 0x100   : > { %v1988_v35 = vpop.eup %1987  ;;  %2011 = vrcp.f32 %v1197_v24  ;;  %v1195_v36 = vadd.f32 1.0, %v1986_v29  ;;  %v1714_v37 = vmul.f32 -1.442695, %v2362_v26  ;;  %v2370_v39 = vadd.f32 %v2252_v41, %v1041_v27  ;;  %v968_v40 = vpop.f32.mrf.mxu1 }
 0x101   : > { %v1990_v42 = vpop.eup %1989  ;;  %1446 = vst.msk [vmem:[%s2345_s19 + $0xc] sm:$0xf] %vm1442_vm2, %v1766_v30  ;;  %v1764_v43 = vpack.c.bf16 %v1283_v59, %v1283_v59  ;;  %v1200_v45 = vadd.f32 1.0, %v1988_v35  ;;  %2013 = vpow2.f32 %v1716_v18  ;;  %v1039_v1 = vmul.f32 %v2247_v38, %v966_v32  ;;  %v1857_v46 = vpop.f32.mrf.mxu0 }
 0x102   : > { %v1992_v48 = vpop.eup %1991  ;;  %v1288_v51 = vmul.f32 %v1990_v42, %v2277_v10  ;;  %2015 = vrcp.f32 %v1195_v36  ;;  %v1719_v52 = vmul.f32 -1.442695, %v2370_v39  ;;  %v977_v54 = vadd.f32 %v1888_v28, %v1854_v21  ;;  %v1891_v55 = vpop.f32.mrf.mxu1 }
 0x103   : > { %v1994_v56 = vpop.eup %1993  ;;  %1444 = vst.msk [vmem:[%s2345_s19 + $0x4] sm:$0xf] %vm1442_vm2, %v1764_v43  ;;  %v1286_v57 = vmul.f32 %v1992_v48, %v2280_v12  ;;  %2017 = vrcp.f32 %v1200_v45  ;;  %v2381_v58 = vadd.f32 %v2252_v41, %v1039_v1  ;;  %v969_v60 = vadd.f32 %v968_v40, %v676_v33  ;;  %v689_v61 = vpop.f32.mrf.mxu0 }
 0x104   : > { %v1996_v62 = vpop.eup %1995  ;;  %v1769_v47 = vpack.c.bf16 %v1288_v51, %v1288_v51  ;;  %v1198_v10 = vadd.f32 1.0, %v1994_v56  ;;  %2019 = vpow2.f32 %v1714_v37  ;;  %v1042_v2 = vmul.f32 %v2247_v38, %v977_v54  ;;  %v981_v3 = vpop.f32.mrf.mxu1 }
 0x105   : > { %v1998_v5 = vpop.eup %1997  ;;  %v1767_v7 = vpack.c.bf16 %v1286_v57, %v1286_v57  ;;  %v1289_v8 = vmul.f32 %v1996_v62, %v2286_v19  ;;  %2021 = vpow2.f32 %v1719_v52  ;;  %v1717_v12 = vmul.f32 -1.442695, %v2381_v58  ;;  %v1858_v9 = vpop.f32.mrf.mxu0 }
 0x106   : > { %v2000_v11 = vpop.eup %1999  ;;  %1449 = vst.msk [vmem:[%s2345_s19 + $0x18] sm:$0xf] %vm1442_vm2, %v1769_v47  ;;  %2023 = vrcp.f32 %v1198_v10  ;;  %v1201_v13 = vadd.f32 1.0, %v1998_v5  ;;  %v2389_v14 = vadd.f32 %v2252_v41, %v1042_v2  ;;  %v1040_v15 = vmul.f32 %v2247_v38, %v969_v60  ;;  %v1892_v16 = vpop.f32.mrf.mxu1 }
 0x107   : > { %v2002_v17 = vpop.eup %2001  ;;  %1447 = vst.msk [vmem:[%s2345_s19 + $0x10] sm:$0xf] %vm1442_vm2, %v1767_v7  ;;  %v1770_v19 = vpack.c.bf16 %v1289_v8, %v1289_v8  ;;  %v1287_v53 = vmul.f32 %v2000_v11, %v2291_v25  ;;  %2025 = vpow2.f32 %v1717_v12  ;;  %v990_v18 = vadd.f32 %v1891_v55, %v1857_v46  ;;  %v692_v21 = vpop.f32.mrf.mxu0 }
 0x108   : > { %2027 = vrcp.f32 %v1201_v13  ;;  %v1199_v22 = vadd.f32 1.0, %v2002_v17  ;;  %v1720_v24 = vmul.f32 -1.442695, %v2389_v14  ;;  %v2397_v27 = vadd.f32 %v2252_v41, %v1040_v15  ;;  %v984_v28 = vpop.f32.mrf.mxu1 }
 0x109   : > { %v2004_v29 = vpop.eup %2003  ;;  %1450 = vst.msk [vmem:[%s2345_s19 + $0x1c] sm:$0xf] %vm1442_vm2, %v1770_v19  ;;  %v1768_v30 = vpack.c.bf16 %v1287_v53, %v1287_v53  ;;  %v1045_v59 = vmul.f32 %v2247_v38, %v990_v18  ;;  %v982_v32 = vadd.f32 %v981_v3, %v689_v61  ;;  %v993_v25 = vadd.f32 %v1892_v16, %v1858_v9  ;;  %v1861_v33 = vpop.f32.mrf.mxu0 }
 0x10a   : > { %v2006_v35 = vpop.eup %2005  ;;  %v1292_v36 = vmul.f32 %v2004_v29, %v2296_v31  ;;  %2029 = vrcp.f32 %v1199_v22  ;;  %v1718_v37 = vmul.f32 -1.442695, %v2397_v27  ;;  %v985_v40 = vadd.f32 %v984_v28, %v692_v21  ;;  %v1895_v42 = vpop.f32.mrf.mxu1 }
 0x10b   : > { %v2008_v43 = vpop.eup %2007  ;;  %1448 = vst.msk [vmem:[%s2345_s19 + $0x14] sm:$0xf] %vm1442_vm2, %v1768_v30  ;;  %v1204_v45 = vadd.f32 1.0, %v2006_v35  ;;  %2031 = vpow2.f32 %v1720_v24  ;;  %v2407_v1 = vadd.f32 %v2252_v41, %v1045_v59  ;;  %v1043_v46 = vmul.f32 %v2247_v38, %v982_v32  ;;  %v705_v48 = vpop.f32.mrf.mxu0 }
 0x10c   : > { %v2010_v51 = vpop.eup %2009  ;;  %v1773_v52 = vpack.c.bf16 %v1292_v36, %v1292_v36  ;;  %v1290_v31 = vmul.f32 %v2008_v43, %v2302_v44  ;;  %2033 = vpow2.f32 %v1718_v37  ;;  %v1046_v54 = vmul.f32 %v2247_v38, %v993_v25  ;;  %v997_v55 = vpop.f32.mrf.mxu1 }
 0x10d   : > { %v2012_v56 = vpop.eup %2011  ;;  %2035 = vrcp.f32 %v1204_v45  ;;  %v1202_v57 = vadd.f32 1.0, %v2010_v51  ;;  %v1723_v60 = vmul.f32 -1.442695, %v2407_v1  ;;  %v2414_v61 = vadd.f32 %v2252_v41, %v1043_v46  ;;  %v1862_v3 = vpop.f32.mrf.mxu0 }
 0x10e   : > { %v2014_v62 = vpop.eup %2013  ;;  %1453 = vst.msk [vmem:[%s2345_s19 + $0x28] sm:$0xf] %vm1442_vm2, %v1773_v52  ;;  %v1771_v47 = vpack.c.bf16 %v1290_v31, %v1290_v31  ;;  %v1293_v10 = vmul.f32 %v2012_v56, %v2305_v49  ;;  %v2420_v44 = vadd.f32 %v2252_v41, %v1046_v54  ;;  %v1044_v2 = vmul.f32 %v2247_v38, %v985_v40  ;;  %v1896_v5 = vpop.f32.mrf.mxu1 }
 0x10f   : > { %v2016_v7 = vpop.eup %2015  ;;  %2037 = vrcp.f32 %v1202_v57  ;;  %v1205_v8 = vadd.f32 1.0, %v2014_v62  ;;  %v1721_v12 = vmul.f32 -1.442695, %v2414_v61  ;;  %v1006_v9 = vadd.f32 %v1895_v42, %v1861_v33  ;;  %v708_v24 = vpop.f32.mrf.mxu0 }
 0x110   : > { %v2018_v11 = vpop.eup %2017  ;;  %1451 = vst.msk [vmem:[%s2345_s19 + $0x20] sm:$0xf] %vm1442_vm2, %v1771_v47  ;;  %v1774_v13 = vpack.c.bf16 %v1293_v10, %v1293_v10  ;;  %v1291_v49 = vmul.f32 %v2016_v7, %v2312_v63  ;;  %2039 = vpow2.f32 %v1723_v60  ;;  %v1724_v15 = vmul.f32 -1.442695, %v2420_v44  ;;  %v1000_v28 = vpop.f32.mrf.mxu1 }
 0x111   : > { %v2020_v16 = vpop.eup %2019  ;;  %v1296_v17 = vmul.f32 %v2018_v11, %v2315_v4  ;;  %2041 = vrcp.f32 %v1205_v8  ;;  %v2430_v19 = vadd.f32 %v2252_v41, %v1044_v2  ;;  %v1049_v53 = vmul.f32 %v2247_v38, %v1006_v9 }
 0x112   : > { %v2022_v18 = vpop.eup %2021  ;;  %1454 = vst.msk [vmem:[%s2345_s19 + $0x2c] sm:$0xf] %vm1442_vm2, %v1774_v13  ;;  %v1772_v21 = vpack.c.bf16 %v1291_v49, %v1291_v49  ;;  %v1203_v22 = vadd.f32 1.0, %v2020_v16  ;;  %2043 = vpow2.f32 %v1721_v12  ;;  %v998_v63 = vadd.f32 %v997_v55, %v705_v48 }
 0x113   : > { %v2024_v29 = vpop.eup %2023  ;;  %v1777_v30 = vpack.c.bf16 %v1296_v17, %v1296_v17  ;;  %v1208_v4 = vadd.f32 1.0, %v2022_v18  ;;  %2045 = vpow2.f32 %v1724_v15  ;;  %v1722_v59 = vmul.f32 -1.442695, %v2430_v19 }
 0x114   : > { %v2026_v32 = vpop.eup %2025  ;;  %1452 = vst.msk [vmem:[%s2345_s19 + $0x24] sm:$0xf] %vm1442_vm2, %v1772_v21  ;;  %v1294_v25 = vmul.f32 %v2024_v29, %v2322_v20  ;;  %2047 = vrcp.f32 %v1203_v22  ;;  %v2440_v33 = vadd.f32 %v2252_v41, %v1049_v53  ;;  %v1047_v35 = vmul.f32 %v2247_v38, %v998_v63 }
 0x115   : > { %v2028_v36 = vpop.eup %2027  ;;  %1457 = vst.msk [vmem:[%s2345_s19 + $0x38] sm:$0xf] %vm1442_vm2, %v1777_v30  ;;  %2049 = vrcp.f32 %v1208_v4  ;;  %v1206_v37 = vadd.f32 1.0, %v2026_v32  ;;  %v1009_v40 = vadd.f32 %v1896_v5, %v1862_v3  ;;  %v1001_v42 = vadd.f32 %v1000_v28, %v708_v24 }
 0x116   : > { %v1775_v43 = vpack.c.bf16 %v1294_v25, %v1294_v25  ;;  %v1297_v45 = vmul.f32 %v2028_v36, %v2325_v23  ;;  %2051 = vpow2.f32 %v1722_v59  ;;  %v1727_v20 = vmul.f32 -1.442695, %v2440_v33 }
 0x117   : > { %v2030_v46 = vpop.eup %2029  ;;  %2053 = vrcp.f32 %v1206_v37  ;;  %v2448_v48 = vadd.f32 %v2252_v41, %v1047_v35  ;;  %v1050_v51 = vmul.f32 %v2247_v38, %v1009_v40  ;;  %v1048_v52 = vmul.f32 %v2247_v38, %v1001_v42 }
 0x118   : > { %v2032_v31 = vpop.eup %2031  ;;  %1455 = vst.msk [vmem:[%s2345_s19 + $0x30] sm:$0xf] %vm1442_vm2, %v1775_v43  ;;  %v1778_v54 = vpack.c.bf16 %v1297_v45, %v1297_v45  ;;  %v1295_v55 = vmul.f32 %v2030_v46, %v2331_v34  ;;  %2055 = vpow2.f32 %v1727_v20 }
 0x119   : > { %v2034_v23 = vpop.eup %2033  ;;  %v1209_v56 = vadd.f32 1.0, %v2032_v31  ;;  %v1725_v57 = vmul.f32 -1.442695, %v2448_v48  ;;  %v2457_v60 = vadd.f32 %v2252_v41, %v1050_v51  ;;  %v2460_v62 = vadd.f32 %v2252_v41, %v1048_v52 }
 0x11a   : > { %v2036_v47 = vpop.eup %2035  ;;  %1458 = vst.msk [vmem:[%s2345_s19 + $0x3c] sm:$0xf] %vm1442_vm2, %v1778_v54  ;;  %v1776_v38 = vpack.c.bf16 %v1295_v55, %v1295_v55  ;;  %v1207_v10 = vadd.f32 1.0, %v2034_v23 }
 0x11b   : > { %v1300_v34 = vmul.f32 %v2036_v47, %v2336_v50  ;;  %2057 = vrcp.f32 %v1209_v56  ;;  %v1728_v2 = vmul.f32 -1.442695, %v2457_v60  ;;  %v1726_v3 = vmul.f32 -1.442695, %v2460_v62 }
 0x11c   : > { %v2038_v5 = vpop.eup %2037  ;;  %1456 = vst.msk [vmem:[%s2345_s19 + $0x34] sm:$0xf] %vm1442_vm2, %v1776_v38  ;;  %2059 = vrcp.f32 %v1207_v10 }
 0x11d   : > { %v2040_v7 = vpop.eup %2039  ;;  %v1781_v41 = vpack.c.bf16 %v1300_v34, %v1300_v34  ;;  %v1298_v8 = vmul.f32 %v2038_v5, %v2349_v0  ;;  %2061 = vpow2.f32 %v1725_v57 }
 0x11e   : > { %v2042_v12 = vpop.eup %2041  ;;  %v1212_v9 = vadd.f32 1.0, %v2040_v7  ;;  %2063 = vpow2.f32 %v1728_v2 }
 0x11f   : > { %v2044_v11 = vpop.eup %2043  ;;  %1461 = vst.msk [vmem:[%s2345_s19 + $0x48] sm:$0xf] %vm1442_vm2, %v1781_v41  ;;  %v1779_v50 = vpack.c.bf16 %v1298_v8, %v1298_v8  ;;  %v1301_v13 = vmul.f32 %v2042_v12, %v2353_v6  ;;  %2065 = vpow2.f32 %v1726_v3 }
 0x120   : > { %v2046_v49 = vpop.eup %2045  ;;  %2067 = vrcp.f32 %v1212_v9  ;;  %v1210_v15 = vadd.f32 1.0, %v2044_v11 }
 0x121   : > { %v2048_v16 = vpop.eup %2047  ;;  %1459 = vst.msk [vmem:[%s2345_s19 + $0x40] sm:$0xf] %vm1442_vm2, %v1779_v50  ;;  %v1782_v0 = vpack.c.bf16 %v1301_v13, %v1301_v13  ;;  %v1213_v17 = vadd.f32 1.0, %v2046_v49 }
 0x122   : > { %v2050_v53 = vpop.eup %2049  ;;  %v1299_v18 = vmul.f32 %v2048_v16, %v2362_v26  ;;  %2069 = vrcp.f32 %v1210_v15 }
 0x123   : > { %v2052_v21 = vpop.eup %2051  ;;  %1462 = vst.msk [vmem:[%s2345_s19 + $0x4c] sm:$0xf] %vm1442_vm2, %v1782_v0  ;;  %v1304_v6 = vmul.f32 %v2050_v53, %v2370_v39  ;;  %2071 = vrcp.f32 %v1213_v17 }
 0x124   : > { %v2054_v22 = vpop.eup %2053  ;;  %v1780_v63 = vpack.c.bf16 %v1299_v18, %v1299_v18  ;;  %v1211_v24 = vadd.f32 1.0, %v2052_v21 }
 0x125   : > { %v2056_v28 = vpop.eup %2055  ;;  %v1785_v29 = vpack.c.bf16 %v1304_v6, %v1304_v6  ;;  %v1302_v30 = vmul.f32 %v2054_v22, %v2381_v58 }
 0x126   : > { %1460 = vst.msk [vmem:[%s2345_s19 + $0x44] sm:$0xf] %vm1442_vm2, %v1780_v63  ;;  %2073 = vrcp.f32 %v1211_v24  ;;  %v1216_v4 = vadd.f32 1.0, %v2056_v28 }
 0x127   : > { %1465 = vst.msk [vmem:[%s2345_s19 + $0x58] sm:$0xf] %vm1442_vm2, %v1785_v29  ;;  %v1783_v26 = vpack.c.bf16 %v1302_v30, %v1302_v30 }
 0x128   : > { %v2058_v59 = vpop.eup %2057  ;;  %2075 = vrcp.f32 %v1216_v4 }
 0x129   : > { %v2060_v39 = vpop.eup %2059  ;;  %1463 = vst.msk [vmem:[%s2345_s19 + $0x50] sm:$0xf] %vm1442_vm2, %v1783_v26  ;;  %v1305_v32 = vmul.f32 %v2058_v59, %v2389_v14 }
 0x12a   : > { %v2062_v25 = vpop.eup %2061  ;;  %v1303_v35 = vmul.f32 %v2060_v39, %v2397_v27 }
 0x12b   : > { %v2064_v58 = vpop.eup %2063  ;;  %v1786_v36 = vpack.c.bf16 %v1305_v32, %v1305_v32  ;;  %v1214_v37 = vadd.f32 1.0, %v2062_v25 }
 0x12c   : > { %v2066_v40 = vpop.eup %2065  ;;  %v1784_v42 = vpack.c.bf16 %v1303_v35, %v1303_v35  ;;  %v1217_v43 = vadd.f32 1.0, %v2064_v58 }
 0x12d   : > { %v2068_v45 = vpop.eup %2067  ;;  %1466 = vst.msk [vmem:[%s2345_s19 + $0x5c] sm:$0xf] %vm1442_vm2, %v1786_v36  ;;  %2077 = vrcp.f32 %v1214_v37  ;;  %v1215_v20 = vadd.f32 1.0, %v2066_v40 }
 0x12e   : > { %1464 = vst.msk [vmem:[%s2345_s19 + $0x54] sm:$0xf] %vm1442_vm2, %v1784_v42  ;;  %v1308_v14 = vmul.f32 %v2068_v45, %v2407_v1  ;;  %2079 = vrcp.f32 %v1217_v43 }
 0x12f   : > { %v2070_v27 = vpop.eup %2069  ;;  %2081 = vrcp.f32 %v1215_v20 }
 0x130   : > { %v2072_v46 = vpop.eup %2071  ;;  %v1789_v51 = vpack.c.bf16 %v1308_v14, %v1308_v14  ;;  %v1306_v52 = vmul.f32 %v2070_v27, %v2414_v61 }
 0x131   : > { %v1309_v31 = vmul.f32 %v2072_v46, %v2420_v44 }
 0x132   : > { %1469 = vst.msk [vmem:[%s2345_s19 + $0x68] sm:$0xf] %vm1442_vm2, %v1789_v51  ;;  %v1787_v54 = vpack.c.bf16 %v1306_v52, %v1306_v52 }
 0x133   : > { %v2074_v55 = vpop.eup %2073  ;;  %v1790_v23 = vpack.c.bf16 %v1309_v31, %v1309_v31 }
 0x134   : > { %1467 = vst.msk [vmem:[%s2345_s19 + $0x60] sm:$0xf] %vm1442_vm2, %v1787_v54  ;;  %v1307_v1 = vmul.f32 %v2074_v55, %v2430_v19 }
 0x135   : > { %v2076_v56 = vpop.eup %2075  ;;  %1470 = vst.msk [vmem:[%s2345_s19 + $0x6c] sm:$0xf] %vm1442_vm2, %v1790_v23 }
 0x136   : > { %v1788_v57 = vpack.c.bf16 %v1307_v1, %v1307_v1  ;;  %v1312_v61 = vmul.f32 %v2076_v56, %v2440_v33 }
 0x138   : > { %1468 = vst.msk [vmem:[%s2345_s19 + $0x64] sm:$0xf] %vm1442_vm2, %v1788_v57  ;;  %v1793_v44 = vpack.c.bf16 %v1312_v61, %v1312_v61 }
 0x13a   : > { %v2078_v47 = vpop.eup %2077  ;;  %1473 = vst.msk [vmem:[%s2345_s19 + $0x78] sm:$0xf] %vm1442_vm2, %v1793_v44 }
 0x13b   : > { %v2080_v38 = vpop.eup %2079  ;;  %v1310_v10 = vmul.f32 %v2078_v47, %v2448_v48 }
 0x13c   : > { %v2082_v34 = vpop.eup %2081  ;;  %v1313_v19 = vmul.f32 %v2080_v38, %v2457_v60 }
 0x13d   : > { %v1791_v2 = vpack.c.bf16 %v1310_v10, %v1310_v10  ;;  %v1311_v3 = vmul.f32 %v2082_v34, %v2460_v62 }
 0x13e   : > { %v1794_v5 = vpack.c.bf16 %v1313_v19, %v1313_v19 }
 0x13f   : > { %1471 = vst.msk [vmem:[%s2345_s19 + $0x70] sm:$0xf] %vm1442_vm2, %v1791_v2  ;;  %v1792_v7 = vpack.c.bf16 %v1311_v3, %v1311_v3 }
 0x140   : > { %1474 = vst.msk [vmem:[%s2345_s19 + $0x7c] sm:$0xf] %vm1442_vm2, %v1794_v5 }
 0x141   : > { %1472 = vst.msk [vmem:[%s2345_s19 + $0x74] sm:$0xf] %vm1442_vm2, %v1792_v7 }
 0x142 PF: > { %s16_s23 = sadd.s32 1, %s2105_s23   ;;  %s2532_s21 = smov %s2101_s22 }
 0x143   : > { %p13_p5 = scmp.ge.s32.totalorder %s16_s23, 4   ;;  %s2533_s22 = smov %s2535_s24 }
 0x145   :  { %15 = sbr.rel (!%p13_p5) target bundleno = 2 (0x2), region = 89 }

// kernel: panet_forward.54
= control target key start
LH: loop header
LB: loop body
LE: loop exit
PB: predicated region body
PF: predicated region fallthrough
CT: control target
= control target key end

     0   :  { %vm135_vm0 = vcmask 1043456   ;;  %vm110_vm1 = vcmask 588800   ;;  %vm458_vm2 = vcmask 60416   ;;  %s920_s1 = inlined_call_operand.vmem [shape: bf16[72,8], index: 1, kind: input, shape index: {}]   ;;  %s921_s0 = inlined_call_operand.vmem [shape: bf16[128,72], index: 0, kind: input, shape index: {}]   ;;  %s922_s2 = inlined_call_operand.vmem [shape: f32[1,8], index: 2, kind: input, shape index: {}]   ;;  %s923_s3 = inlined_call_operand.vmem [shape: f32[1,8], index: 3, kind: input, shape index: {}]   ;;  %s924_s4 = inlined_call_operand.vmem [shape: bf16[128,8], index: 4, kind: output, shape index: {}]  }
   0x1   :  { %v601_v0 = vld [vmem:[%s920_s1 + $0x20] ss:$0 sps:$4 sm:$0xff]   ;;  %v602_v1 = vld [vmem:[%s920_s1 + $0x18] sm:$0xff]   ;;  %v603_v3 = vld [vmem:[%s920_s1 + $0x10] sm:$0xff]  }
   0x2   :  { %599 = vmatprep.subr.msk.bf16.mxu0 %vm135_vm0, %v601_v0  ;;  %600 = vmatprep.subr.msk.bf16.mxu1 %vm135_vm0, %v601_v0  ;;  %v137_v2 = vsel %vm135_vm0, %v601_v0, 0  ;;  %v606_v4 = vld [vmem:[%s921_s0] sm:$0xff]   ;;  %v604_v6 = vld [vmem:[%s920_s1 + $0x8] sm:$0xff]   ;;  %v610_v10 = vld [vmem:[%s921_s0 + $0x10] sm:$0xff]  }
   0x3   :  { %564 = vmatpush3.bf16.msra.mxu0 %v137_v2  ;;  %594 = vmatpush3.bf16.msra.mxu1 %v137_v2  ;;  %v607_v5 = vld [vmem:[%s921_s0 + $0x20] sm:$0xff]   ;;  %v608_v8 = vld [vmem:[%s921_s0 + $0x8] sm:$0xff]   ;;  %v611_v11 = vld [vmem:[%s921_s0 + $0x30] sm:$0xff]  }
   0x4   :  { %565 = vmatprep.subr.bf16.mxu0 %v602_v1  ;;  %590 = vmatprep.subr.bf16.mxu1 %v602_v1  ;;  %v605_v7 = vld [vmem:[%s920_s1] sm:$0xff]   ;;  %v609_v9 = vld [vmem:[%s921_s0 + $0x28] sm:$0xff]   ;;  %v612_v12 = vld [vmem:[%s921_s0 + $0x18] sm:$0xff]  }
   0x5   :  { %573 = vmatprep.mubr.msk.bf16.mxu0 %vm110_vm1, %v606_v4  ;;  %581 = vmatprep.mubr.msk.bf16.mxu1 %vm110_vm1, %v607_v5  ;;  %v613_v13 = vld [vmem:[%s921_s0 + $0x38] sm:$0xff]   ;;  %v753_v14 = vld [vmem:[%s922_s2] ss:$0 sm:$0xff] }
   0x6   :  { %v758_v16 = vld [vmem:[%s923_s3] ss:$0 sm:$0xff] }
   0x7   :  { %566 = vmatpush3.bf16.msra.mxu0 %v602_v1  ;;  %595 = vmatpush3.bf16.msra.mxu1 %v602_v1 }
   0x8   :  { %567 = vmatprep.subr.bf16.mxu0 %v603_v3  ;;  %591 = vmatprep.subr.bf16.mxu1 %v603_v3 }
   0xb   :  { %568 = vmatpush3.bf16.msra.mxu0 %v603_v3  ;;  %596 = vmatpush3.bf16.msra.mxu1 %v603_v3 }
   0xc   :  { %569 = vmatprep.subr.bf16.mxu0 %v604_v6  ;;  %592 = vmatprep.subr.bf16.mxu1 %v604_v6 }
   0xf   :  { %570 = vmatpush3.bf16.msra.mxu0 %v604_v6  ;;  %597 = vmatpush3.bf16.msra.mxu1 %v604_v6 }
  0x10   :  { %571 = vmatprep.subr.bf16.mxu0 %v605_v7  ;;  %593 = vmatprep.subr.bf16.mxu1 %v605_v7 }
  0x13   :  { %572 = vmatpush3.bf16.msra.mxu0 %v605_v7  ;;  %598 = vmatpush3.bf16.msra.mxu1 %v605_v7 }
  0x16   :  { %574 = vmatmul.mubr.msk.bf16.vlgmr.msra.gmra.mxu0 %vm110_vm1, %v608_v8  ;;  %582 = vmatmul.mubr.msk.bf16.vlgmr.msra.gmra.mxu1 %vm110_vm1, %v609_v9 }
  0x17   :  { %577 = vmatprep.mubr.msk.bf16.mxu0 %vm110_vm1, %v610_v10  ;;  %585 = vmatprep.mubr.msk.bf16.mxu1 %vm110_vm1, %v611_v11 }
  0x1e   :  { %578 = vmatmul.mubr.msk.bf16.gmra.mxu0 %vm110_vm1, %v612_v12  ;;  %586 = vmatmul.mubr.msk.bf16.gmra.mxu1 %vm110_vm1, %v613_v13 }
  0xd6   :  { %v575_v15 = vpop.f32.mrf.mxu0  ;;  %v583_v17 = vpop.f32.mrf.mxu1 }
  0xd7   :  { %v245_v18 = vmul.f32 %v575_v15, %v753_v14  ;;  %v253_v19 = vmul.f32 %v583_v17, %v753_v14 }
  0xd8   :  { %v173_v20 = vpop.f32.mrf.mxu0  ;;  %v205_v21 = vpop.f32.mrf.mxu1 }
  0xd9   :  { %v763_v22 = vadd.f32 %v758_v16, %v245_v18  ;;  %v766_v23 = vadd.f32 %v758_v16, %v253_v19  ;;  %v243_v24 = vmul.f32 %v753_v14, %v173_v20  ;;  %v251_v25 = vmul.f32 %v753_v14, %v205_v21 }
  0xda   :  { %v576_v26 = vpop.f32.mrf.mxu0  ;;  %v584_v27 = vpop.f32.mrf.mxu1 }
  0xdb   :  { %v504_v28 = vmul.f32 -1.442695, %v763_v22  ;;  %v512_v29 = vmul.f32 -1.442695, %v766_v23  ;;  %v773_v30 = vadd.f32 %v758_v16, %v243_v24  ;;  %v776_v31 = vadd.f32 %v758_v16, %v251_v25 }
  0xdc   :  { %v246_v32 = vmul.f32 %v576_v26, %v753_v14  ;;  %v254_v33 = vmul.f32 %v584_v27, %v753_v14  ;;  %v176_v34 = vpop.f32.mrf.mxu0  ;;  %v208_v35 = vpop.f32.mrf.mxu1 }
  0xdd   :  { %614 = vpow2.f32 %v504_v28  ;;  %v502_v36 = vmul.f32 -1.442695, %v773_v30  ;;  %v510_v37 = vmul.f32 -1.442695, %v776_v31  ;;  %v244_v38 = vmul.f32 %v753_v14, %v176_v34 }
  0xde   :  { %616 = vpow2.f32 %v512_v29  ;;  %v784_v39 = vadd.f32 %v758_v16, %v246_v32  ;;  %v787_v40 = vadd.f32 %v758_v16, %v254_v33  ;;  %v252_v41 = vmul.f32 %v753_v14, %v208_v35  ;;  %v579_v42 = vpop.f32.mrf.mxu0  ;;  %v587_v43 = vpop.f32.mrf.mxu1 }
  0xdf   :  { %618 = vpow2.f32 %v502_v36  ;;  %v791_v44 = vadd.f32 %v758_v16, %v244_v38  ;;  %v249_v45 = vmul.f32 %v579_v42, %v753_v14  ;;  %v257_v46 = vmul.f32 %v587_v43, %v753_v14 }
  0xe0   :  { %620 = vpow2.f32 %v510_v37  ;;  %v505_v47 = vmul.f32 -1.442695, %v784_v39  ;;  %v513_v48 = vmul.f32 -1.442695, %v787_v40  ;;  %v798_v49 = vadd.f32 %v758_v16, %v252_v41  ;;  %v189_v50 = vpop.f32.mrf.mxu0  ;;  %v221_v51 = vpop.f32.mrf.mxu1 }
  0xe1   :  { %v503_v52 = vmul.f32 -1.442695, %v791_v44  ;;  %v802_v53 = vadd.f32 %v758_v16, %v249_v45  ;;  %v805_v54 = vadd.f32 %v758_v16, %v257_v46  ;;  %v247_v55 = vmul.f32 %v753_v14, %v189_v50 }
  0xe2   :  { %622 = vpow2.f32 %v505_v47  ;;  %v511_v56 = vmul.f32 -1.442695, %v798_v49  ;;  %v255_v57 = vmul.f32 %v753_v14, %v221_v51  ;;  %v580_v58 = vpop.f32.mrf.mxu0  ;;  %v588_v59 = vpop.f32.mrf.mxu1 }
  0xe3   :  { %624 = vpow2.f32 %v513_v48  ;;  %v508_v60 = vmul.f32 -1.442695, %v802_v53  ;;  %v516_v61 = vmul.f32 -1.442695, %v805_v54  ;;  %v813_v62 = vadd.f32 %v758_v16, %v247_v55 }
  0xe4   :  { %626 = vpow2.f32 %v503_v52  ;;  %v816_v63 = vadd.f32 %v758_v16, %v255_v57  ;;  %v250_v0 = vmul.f32 %v580_v58, %v753_v14  ;;  %v258_v1 = vmul.f32 %v588_v59, %v753_v14  ;;  %v192_v2 = vpop.f32.mrf.mxu0  ;;  %v224_v3 = vpop.f32.mrf.mxu1 }
  0xe5   :  { %628 = vpow2.f32 %v511_v56  ;;  %v506_v4 = vmul.f32 -1.442695, %v813_v62  ;;  %v248_v5 = vmul.f32 %v753_v14, %v192_v2  ;;  %v256_v6 = vmul.f32 %v753_v14, %v224_v3 }
  0xe6   :  { %630 = vpow2.f32 %v508_v60  ;;  %v514_v7 = vmul.f32 -1.442695, %v816_v63  ;;  %v825_v8 = vadd.f32 %v758_v16, %v250_v0  ;;  %v828_v9 = vadd.f32 %v758_v16, %v258_v1 }
  0xe7   :  { %632 = vpow2.f32 %v516_v61  ;;  %v831_v10 = vadd.f32 %v758_v16, %v248_v5  ;;  %v837_v14 = vadd.f32 %v758_v16, %v256_v6 }
  0xe8   :  { %634 = vpow2.f32 %v506_v4  ;;  %v509_v11 = vmul.f32 -1.442695, %v825_v8  ;;  %v517_v12 = vmul.f32 -1.442695, %v828_v9 }
  0xe9   :  { %636 = vpow2.f32 %v514_v7  ;;  %v507_v13 = vmul.f32 -1.442695, %v831_v10  ;;  %v515_v25 = vmul.f32 -1.442695, %v837_v14 }
  0xea   :  { %v615_v15 = vpop.eup %614  ;;  %638 = vpow2.f32 %v509_v11 }
  0xeb   :  { %v617_v17 = vpop.eup %616  ;;  %v332_v18 = vadd.f32 1.0, %v615_v15  ;;  %640 = vpow2.f32 %v517_v12 }
  0xec   :  { %v619_v19 = vpop.eup %618  ;;  %v340_v20 = vadd.f32 1.0, %v617_v17  ;;  %642 = vpow2.f32 %v507_v13 }
  0xed   :  { %v621_v21 = vpop.eup %620  ;;  %644 = vrcp.f32 %v332_v18  ;;  %v330_v24 = vadd.f32 1.0, %v619_v19 }
  0xee   :  { %646 = vrcp.f32 %v340_v20  ;;  %v338_v26 = vadd.f32 1.0, %v621_v21 }
  0xef   :  { %v623_v27 = vpop.eup %622  ;;  %648 = vrcp.f32 %v330_v24 }
  0xf0   :  { %v625_v28 = vpop.eup %624  ;;  %650 = vrcp.f32 %v338_v26  ;;  %v333_v16 = vadd.f32 1.0, %v623_v27 }
  0xf1   :  { %v627_v29 = vpop.eup %626  ;;  %v341_v32 = vadd.f32 1.0, %v625_v28  ;;  %652 = vpow2.f32 %v515_v25 }
  0xf2   :  { %v629_v33 = vpop.eup %628  ;;  %654 = vrcp.f32 %v333_v16  ;;  %v331_v34 = vadd.f32 1.0, %v627_v29 }
  0xf3   :  { %v631_v35 = vpop.eup %630  ;;  %656 = vrcp.f32 %v341_v32  ;;  %v339_v36 = vadd.f32 1.0, %v629_v33 }
  0xf4   :  { %v633_v37 = vpop.eup %632  ;;  %658 = vrcp.f32 %v331_v34  ;;  %v336_v38 = vadd.f32 1.0, %v631_v35 }
  0xf5   :  { %v635_v41 = vpop.eup %634  ;;  %660 = vrcp.f32 %v339_v36  ;;  %v344_v42 = vadd.f32 1.0, %v633_v37 }
  0xf6   :  { %v637_v43 = vpop.eup %636  ;;  %662 = vrcp.f32 %v336_v38  ;;  %v334_v45 = vadd.f32 1.0, %v635_v41 }
  0xf7   :  { %v639_v46 = vpop.eup %638  ;;  %664 = vrcp.f32 %v344_v42  ;;  %v342_v47 = vadd.f32 1.0, %v637_v43 }
  0xf8   :  { %v641_v48 = vpop.eup %640  ;;  %666 = vrcp.f32 %v334_v45  ;;  %v337_v50 = vadd.f32 1.0, %v639_v46 }
  0xf9   :  { %v643_v51 = vpop.eup %642  ;;  %668 = vrcp.f32 %v342_v47  ;;  %v345_v52 = vadd.f32 1.0, %v641_v48 }
  0xfa   :  { %v645_v55 = vpop.eup %644  ;;  %670 = vrcp.f32 %v337_v50  ;;  %v335_v56 = vadd.f32 1.0, %v643_v51 }
  0xfb   :  { %v647_v57 = vpop.eup %646  ;;  %v380_v58 = vmul.f32 %v645_v55, %v763_v22  ;;  %672 = vrcp.f32 %v345_v52 }
  0xfc   :  { %v649_v59 = vpop.eup %648  ;;  %v388_v60 = vmul.f32 %v647_v57, %v766_v23  ;;  %674 = vrcp.f32 %v335_v56 }
  0xfd   :  { %v651_v61 = vpop.eup %650  ;;  %v536_v0 = vpack.c.bf16 %v380_v58, %v380_v58  ;;  %v378_v1 = vmul.f32 %v649_v59, %v773_v30 }
  0xfe   :  { %v653_v2 = vpop.eup %652  ;;  %v544_v3 = vpack.c.bf16 %v388_v60, %v388_v60  ;;  %v386_v4 = vmul.f32 %v651_v61, %v776_v31 }
  0xff   :  { %v655_v5 = vpop.eup %654  ;;  %461 = vst.msk [vmem:[%s924_s4 + $0x8] sm:$0xf] %vm458_vm2, %v536_v0  ;;  %v534_v22 = vpack.c.bf16 %v378_v1, %v378_v1  ;;  %v343_v6 = vadd.f32 1.0, %v653_v2 }
 0x100   :  { %v657_v7 = vpop.eup %656  ;;  %469 = vst.msk [vmem:[%s924_s4 + $0x28] sm:$0xf] %vm458_vm2, %v544_v3  ;;  %v542_v23 = vpack.c.bf16 %v386_v4, %v386_v4  ;;  %v381_v30 = vmul.f32 %v655_v5, %v784_v39 }
 0x101   :  { %v659_v11 = vpop.eup %658  ;;  %459 = vst.msk [vmem:[%s924_s4] sm:$0xf] %vm458_vm2, %v534_v22  ;;  %v389_v31 = vmul.f32 %v657_v7, %v787_v40  ;;  %676 = vrcp.f32 %v343_v6 }
 0x102   :  { %v661_v12 = vpop.eup %660  ;;  %467 = vst.msk [vmem:[%s924_s4 + $0x20] sm:$0xf] %vm458_vm2, %v542_v23  ;;  %v537_v13 = vpack.c.bf16 %v381_v30, %v381_v30  ;;  %v379_v15 = vmul.f32 %v659_v11, %v791_v44 }
 0x103   :  { %v663_v17 = vpop.eup %662  ;;  %v545_v39 = vpack.c.bf16 %v389_v31, %v389_v31  ;;  %v387_v18 = vmul.f32 %v661_v12, %v798_v49 }
 0x104   :  { %v665_v19 = vpop.eup %664  ;;  %462 = vst.msk [vmem:[%s924_s4 + $0xc] sm:$0xf] %vm458_vm2, %v537_v13  ;;  %v535_v40 = vpack.c.bf16 %v379_v15, %v379_v15  ;;  %v384_v20 = vmul.f32 %v663_v17, %v802_v53 }
 0x105   :  { %v667_v21 = vpop.eup %666  ;;  %470 = vst.msk [vmem:[%s924_s4 + $0x2c] sm:$0xf] %vm458_vm2, %v545_v39  ;;  %v543_v44 = vpack.c.bf16 %v387_v18, %v387_v18  ;;  %v392_v24 = vmul.f32 %v665_v19, %v805_v54 }
 0x106   :  { %v669_v25 = vpop.eup %668  ;;  %460 = vst.msk [vmem:[%s924_s4 + $0x4] sm:$0xf] %vm458_vm2, %v535_v40  ;;  %v540_v49 = vpack.c.bf16 %v384_v20, %v384_v20  ;;  %v382_v26 = vmul.f32 %v667_v21, %v813_v62 }
 0x107   :  { %v671_v27 = vpop.eup %670  ;;  %468 = vst.msk [vmem:[%s924_s4 + $0x24] sm:$0xf] %vm458_vm2, %v543_v44  ;;  %v548_v53 = vpack.c.bf16 %v392_v24, %v392_v24  ;;  %v390_v28 = vmul.f32 %v669_v25, %v816_v63 }
 0x108   :  { %v673_v16 = vpop.eup %672  ;;  %465 = vst.msk [vmem:[%s924_s4 + $0x18] sm:$0xf] %vm458_vm2, %v540_v49  ;;  %v538_v54 = vpack.c.bf16 %v382_v26, %v382_v26  ;;  %v385_v29 = vmul.f32 %v671_v27, %v825_v8 }
 0x109   :  { %v675_v32 = vpop.eup %674  ;;  %473 = vst.msk [vmem:[%s924_s4 + $0x38] sm:$0xf] %vm458_vm2, %v548_v53  ;;  %v546_v62 = vpack.c.bf16 %v390_v28, %v390_v28  ;;  %v393_v33 = vmul.f32 %v673_v16, %v828_v9 }
 0x10a   :  { %463 = vst.msk [vmem:[%s924_s4 + $0x10] sm:$0xf] %vm458_vm2, %v538_v54  ;;  %v541_v63 = vpack.c.bf16 %v385_v29, %v385_v29  ;;  %v383_v34 = vmul.f32 %v675_v32, %v831_v10 }
 0x10b   :  { %471 = vst.msk [vmem:[%s924_s4 + $0x30] sm:$0xf] %vm458_vm2, %v546_v62  ;;  %v549_v8 = vpack.c.bf16 %v393_v33, %v393_v33 }
 0x10c   :  { %466 = vst.msk [vmem:[%s924_s4 + $0x1c] sm:$0xf] %vm458_vm2, %v541_v63  ;;  %v539_v9 = vpack.c.bf16 %v383_v34, %v383_v34 }
 0x10d   :  { %474 = vst.msk [vmem:[%s924_s4 + $0x3c] sm:$0xf] %vm458_vm2, %v549_v8 }
 0x10e   :  { %v677_v35 = vpop.eup %676  ;;  %464 = vst.msk [vmem:[%s924_s4 + $0x14] sm:$0xf] %vm458_vm2, %v539_v9 }
 0x10f   :  { %v391_v10 = vmul.f32 %v677_v35, %v837_v14 }
 0x111   :  { %v547_v36 = vpack.c.bf16 %v391_v10, %v391_v10 }
 0x113   :  { %472 = vst.msk [vmem:[%s924_s4 + $0x34] sm:$0xf] %vm458_vm2, %v547_v36 }

// kernel: panet_forward.63
= control target key start
LH: loop header
LB: loop body
LE: loop exit
PB: predicated region body
PF: predicated region fallthrough
CT: control target
= control target key end

     0   :  { %v322_v0 = vmov 0   ;;  %vm112_vm0 = vcmask 130048   ;;  %vm234_vm1 = vcmask 125952   ;;  %s405_s1 = inlined_call_operand.vmem [shape: bf16[144,16], index: 1, kind: input, shape index: {}]   ;;  %s406_s0 = inlined_call_operand.vmem [shape: bf16[32,144], index: 0, kind: input, shape index: {}]   ;;  %s407_s2 = inlined_call_operand.vmem [shape: f32[1,16], index: 2, kind: input, shape index: {}]   ;;  %s408_s3 = inlined_call_operand.vmem [shape: f32[1,16], index: 3, kind: input, shape index: {}]   ;;  %s409_s4 = inlined_call_operand.vmem [shape: bf16[32,16], index: 4, kind: output, shape index: {}]  }
   0x1   :  { %119 = vmatprep.subr.bf16.mxu0 %v322_v0  ;;  %272 = vmatprep.subr.bf16.mxu1 %v322_v0  ;;  %v291_v1 = vld [vmem:[%s405_s1 + $0x38] sm:$0xff]   ;;  %v292_v2 = vld [vmem:[%s405_s1 + $0x30] sm:$0xff]   ;;  %v293_v3 = vld [vmem:[%s405_s1 + $0x28] sm:$0xff]  }
   0x2   :  { %120 = vmatpush1.bf16.msra.mxu0 %v291_v1  ;;  %281 = vmatpush1.bf16.msra.mxu1 %v291_v1  ;;  %v294_v4 = vld [vmem:[%s405_s1 + $0x20] sm:$0xff]   ;;  %v305_v6 = vld [vmem:[%s406_s0 + $0x14] ss:$8 sps:$4 sm:$0xff]   ;;  %v297_v9 = vld [vmem:[%s405_s1 + $0x8] sm:$0xff]  }
   0x3   :  { %121 = vmatprep.subr.bf16.mxu0 %v322_v0  ;;  %273 = vmatprep.subr.bf16.mxu1 %v322_v0  ;;  %v302_v5 = vld [vmem:[%s406_s0 + $0x4] ss:$8 sps:$4 sm:$0xff]   ;;  %v295_v7 = vld [vmem:[%s405_s1 + $0x18] sm:$0xff]   ;;  %v296_v8 = vld [vmem:[%s405_s1 + $0x10] sm:$0xff]  }
   0x4   :  { %256 = vmatprep.mubr.msk.bf16.mxu0 %vm112_vm0, %v302_v5  ;;  %257 = vmatprep.mubr.msk.bf16.mxu1 %vm112_vm0, %v305_v6  ;;  %v298_v10 = vld [vmem:[%s405_s1] sm:$0xff]   ;;  %v303_v13 = vld [vmem:[%s406_s0 + $0x10] ss:$8 sps:$4 sm:$0xff]  }
   0x5   :  { %v299_v11 = vld [vmem:[%s405_s1 + $0x40] sm:$0xff]  }
   0x6   :  { %122 = vmatpush1.bf16.msra.mxu0 %v292_v2  ;;  %282 = vmatpush1.bf16.msra.mxu1 %v292_v2  ;;  %v300_v12 = vld [vmem:[%s406_s0] ss:$8 sps:$4 sm:$0xff]  }
   0x7   :  { %123 = vmatprep.subr.bf16.mxu0 %v322_v0  ;;  %274 = vmatprep.subr.bf16.mxu1 %v322_v0  ;;  %v258_v14 = vld [vmem:[%s407_s2] ss:$0 sm:$0xff] }
   0x8   :  { %v259_v16 = vld [vmem:[%s408_s3] ss:$0 sm:$0xff] }
   0xa   :  { %124 = vmatpush1.bf16.msra.mxu0 %v293_v3  ;;  %283 = vmatpush1.bf16.msra.mxu1 %v293_v3 }
   0xb   :  { %125 = vmatprep.subr.bf16.mxu0 %v322_v0  ;;  %275 = vmatprep.subr.bf16.mxu1 %v322_v0 }
   0xe   :  { %126 = vmatpush1.bf16.msra.mxu0 %v294_v4  ;;  %284 = vmatpush1.bf16.msra.mxu1 %v294_v4 }
   0xf   :  { %127 = vmatprep.subr.bf16.mxu0 %v322_v0  ;;  %276 = vmatprep.subr.bf16.mxu1 %v322_v0 }
  0x12   :  { %128 = vmatpush1.bf16.msra.mxu0 %v295_v7  ;;  %285 = vmatpush1.bf16.msra.mxu1 %v295_v7 }
  0x13   :  { %129 = vmatprep.subr.bf16.mxu0 %v322_v0  ;;  %277 = vmatprep.subr.bf16.mxu1 %v322_v0 }
  0x16   :  { %130 = vmatpush1.bf16.msra.mxu0 %v296_v8  ;;  %286 = vmatpush1.bf16.msra.mxu1 %v296_v8 }
  0x17   :  { %131 = vmatprep.subr.bf16.mxu0 %v322_v0  ;;  %278 = vmatprep.subr.bf16.mxu1 %v322_v0 }
  0x1a   :  { %132 = vmatpush1.bf16.msra.mxu0 %v297_v9  ;;  %287 = vmatpush1.bf16.msra.mxu1 %v297_v9 }
  0x1b   :  { %133 = vmatprep.subr.bf16.mxu0 %v322_v0  ;;  %279 = vmatprep.subr.bf16.mxu1 %v322_v0 }
  0x1e   :  { %134 = vmatpush1.bf16.msra.mxu0 %v298_v10  ;;  %288 = vmatpush1.bf16.msra.mxu1 %v298_v10 }
  0x1f   :  { %149 = vmatprep.subr.bf16.mxu0 %v322_v0  ;;  %280 = vmatprep.subr.bf16.mxu1 %v322_v0 }
  0x22   :  { %150 = vmatpush2.bf16.msra.mxu0 %v299_v11  ;;  %289 = vmatpush2.bf16.msra.mxu1 %v299_v11 }
  0x25   :  { %152 = vmatmul.mubr.bf16.vlgmr.msra.gmra.mxu0 %v300_v12  ;;  %160 = vmatmul.mubr.bf16.vlgmr.msra.gmra.mxu1 %v303_v13 }
  0xe5   :  { %v153_v15 = vpop.f32.mrf.mxu0  ;;  %v161_v17 = vpop.f32.mrf.mxu1 }
  0xe6   :  { %v175_v18 = vmul.f32 %v258_v14, %v153_v15  ;;  %v177_v19 = vmul.f32 %v258_v14, %v161_v17 }
  0xe7   :  { %v155_v20 = vpop.f32.mrf.mxu0  ;;  %v163_v21 = vpop.f32.mrf.mxu1 }
  0xe8   :  { %v186_v22 = vadd.f32 %v259_v16, %v175_v18  ;;  %v188_v23 = vadd.f32 %v259_v16, %v177_v19 }
  0xe9   :  { %v156_v24 = vpop.f32.mrf.mxu0  ;;  %v164_v25 = vpop.f32.mrf.mxu1 }
  0xea   :  { %v260_v26 = vmul.f32 -1.442695, %v186_v22  ;;  %v262_v27 = vmul.f32 -1.442695, %v188_v23  ;;  %v176_v28 = vmul.f32 %v258_v14, %v156_v24  ;;  %v178_v29 = vmul.f32 %v258_v14, %v164_v25 }
  0xeb   :  { %v158_v30 = vpop.f32.mrf.mxu0  ;;  %v166_v31 = vpop.f32.mrf.mxu1 }
  0xec   :  { %306 = vpow2.f32 %v260_v26  ;;  %v187_v32 = vadd.f32 %v259_v16, %v176_v28  ;;  %v189_v33 = vadd.f32 %v259_v16, %v178_v29 }
  0xed   :  { %308 = vpow2.f32 %v262_v27 }
  0xee   :  { %v261_v34 = vmul.f32 -1.442695, %v187_v32  ;;  %v263_v35 = vmul.f32 -1.442695, %v189_v33 }
  0xf0   :  { %310 = vpow2.f32 %v261_v34 }
  0xf1   :  { %312 = vpow2.f32 %v263_v35 }
  0xf9   :  { %v307_v36 = vpop.eup %306 }
  0xfa   :  { %v309_v37 = vpop.eup %308  ;;  %v202_v38 = vadd.f32 1.0, %v307_v36 }
  0xfb   :  { %v204_v39 = vadd.f32 1.0, %v309_v37 }
  0xfc   :  { %314 = vrcp.f32 %v202_v38 }
  0xfd   :  { %v311_v40 = vpop.eup %310  ;;  %316 = vrcp.f32 %v204_v39 }
  0xfe   :  { %v313_v41 = vpop.eup %312  ;;  %v203_v42 = vadd.f32 1.0, %v311_v40 }
  0xff   :  { %v205_v43 = vadd.f32 1.0, %v313_v41 }
 0x100   :  { %318 = vrcp.f32 %v203_v42 }
 0x101   :  { %320 = vrcp.f32 %v205_v43 }
 0x109   :  { %v315_v44 = vpop.eup %314 }
 0x10a   :  { %v317_v45 = vpop.eup %316  ;;  %v214_v46 = vmul.f32 %v315_v44, %v186_v22 }
 0x10b   :  { %v216_v47 = vmul.f32 %v317_v45, %v188_v23 }
 0x10c   :  { %v268_v48 = vpack.c.bf16 %v214_v46, %v214_v46 }
 0x10d   :  { %v319_v49 = vpop.eup %318  ;;  %v270_v50 = vpack.c.bf16 %v216_v47, %v216_v47 }
 0x10e   :  { %v321_v51 = vpop.eup %320  ;;  %235 = vst.msk [vmem:[%s409_s4] sm:$0xf] %vm234_vm1, %v268_v48  ;;  %v215_v52 = vmul.f32 %v319_v49, %v187_v32 }
 0x10f   :  { %237 = vst.msk [vmem:[%s409_s4 + $0x8] sm:$0xf] %vm234_vm1, %v270_v50  ;;  %v217_v53 = vmul.f32 %v321_v51, %v189_v33 }
 0x110   :  { %v269_v54 = vpack.c.bf16 %v215_v52, %v215_v52 }
 0x111   :  { %v271_v55 = vpack.c.bf16 %v217_v53, %v217_v53 }
 0x112   :  { %236 = vst.msk [vmem:[%s409_s4 + $0x4] sm:$0xf] %vm234_vm1, %v269_v54 }
 0x113   :  { %238 = vst.msk [vmem:[%s409_s4 + $0xc] sm:$0xf] %vm234_vm1, %v271_v55 }

// kernel: panet_forward.64
= control target key start
LH: loop header
LB: loop body
LE: loop exit
PB: predicated region body
PF: predicated region fallthrough
CT: control target
= control target key end

     0   :  { %vm52_vm0 = vcmask 130048   ;;  %vm245_vm1 = vcmask 257024   ;;  %s389_s3 = inlined_call_operand.vmem [shape: bf16[16,32], index: 3, kind: input, shape index: {}]   ;;  %s390_s2 = inlined_call_operand.vmem [shape: bf16[16,32], index: 2, kind: input, shape index: {}]   ;;  %s391_s1 = inlined_call_operand.vmem [shape: bf16[32,16], index: 1, kind: input, shape index: {}]   ;;  %s392_s0 = inlined_call_operand.vmem [shape: bf16[32,16], index: 0, kind: input, shape index: {}]   ;;  %s393_s4 = inlined_call_operand.vmem [shape: f32[1,32], index: 4, kind: input, shape index: {}]   ;;  %s394_s5 = inlined_call_operand.vmem [shape: f32[1,32], index: 5, kind: input, shape index: {}]   ;;  %s395_s6 = inlined_call_operand.vmem [shape: bf16[32,32], index: 6, kind: output, shape index: {}]  }
   0x1   :  { %v296_v0 = vld [vmem:[%s389_s3] sm:$0xff]   ;;  %v300_v4 = vld [vmem:[%s391_s1 + $0x8] sm:$0xff]  }
   0x2   :  { %v297_v1 = vld [vmem:[%s390_s2] sm:$0xff]   ;;  %284 = vmatprep.subr.bf16.mxu0 %v296_v0  ;;  %v301_v5 = vld [vmem:[%s392_s0 + $0x8] sm:$0xff]  }
   0x3   :  { %v298_v2 = vld [vmem:[%s391_s1] sm:$0xff]   ;;  %290 = vmatprep.subr.bf16.mxu1 %v297_v1  ;;  %285 = vmatpush3.bf16.msra.mxu0 %v296_v0 }
   0x4   :  { %v299_v3 = vld [vmem:[%s392_s0] sm:$0xff]   ;;  %291 = vmatpush3.bf16.msra.mxu1 %v297_v1  ;;  %286 = vmatprep.mubr.msk.bf16.mxu0 %vm52_vm0, %v298_v2 }
   0x5   :  { %292 = vmatprep.mubr.msk.bf16.mxu1 %vm52_vm0, %v299_v3  ;;  %v264_v8 = vld [vmem:[%s393_s4] ss:$0 sm:$0xff] }
   0x6   :  { %287 = vmatmul.mubr.msk.bf16.vlgmr.msra.gmra.mxu0 %vm52_vm0, %v300_v4  ;;  %v265_v11 = vld [vmem:[%s394_s5] ss:$0 sm:$0xff] }
   0x7   :  { %293 = vmatmul.mubr.msk.bf16.vlgmr.msra.gmra.mxu1 %vm52_vm0, %v301_v5 }
  0xc6   :  { %v288_v6 = vpop.f32.mrf.mxu0 }
  0xc7   :  { %v294_v7 = vpop.f32.mrf.mxu1 }
  0xc8   :  { %v173_v9 = vadd.f32 %v294_v7, %v288_v6  ;;  %v93_v10 = vpop.f32.mrf.mxu0 }
  0xc9   :  { %v164_v12 = vpop.f32.mrf.mxu1 }
  0xca   :  { %v188_v13 = vmul.f32 %v264_v8, %v173_v9  ;;  %v165_v14 = vadd.f32 %v164_v12, %v93_v10  ;;  %v289_v15 = vpop.f32.mrf.mxu0 }
  0xcb   :  { %v295_v16 = vpop.f32.mrf.mxu1 }
  0xcc   :  { %v199_v17 = vadd.f32 %v265_v11, %v188_v13  ;;  %v186_v18 = vmul.f32 %v264_v8, %v165_v14  ;;  %v176_v19 = vadd.f32 %v295_v16, %v289_v15  ;;  %v96_v20 = vpop.f32.mrf.mxu0 }
  0xcd   :  { %v167_v21 = vpop.f32.mrf.mxu1 }
  0xce   :  { %v268_v22 = vmul.f32 -1.442695, %v199_v17  ;;  %v197_v23 = vadd.f32 %v265_v11, %v186_v18  ;;  %v189_v24 = vmul.f32 %v264_v8, %v176_v19  ;;  %v168_v25 = vadd.f32 %v167_v21, %v96_v20 }
  0xd0   :  { %302 = vpow2.f32 %v268_v22  ;;  %v266_v26 = vmul.f32 -1.442695, %v197_v23  ;;  %v200_v27 = vadd.f32 %v265_v11, %v189_v24  ;;  %v187_v28 = vmul.f32 %v264_v8, %v168_v25 }
  0xd2   :  { %304 = vpow2.f32 %v266_v26  ;;  %v269_v29 = vmul.f32 -1.442695, %v200_v27  ;;  %v198_v30 = vadd.f32 %v265_v11, %v187_v28 }
  0xd4   :  { %306 = vpow2.f32 %v269_v29  ;;  %v267_v31 = vmul.f32 -1.442695, %v198_v30 }
  0xd6   :  { %308 = vpow2.f32 %v267_v31 }
  0xdd   :  { %v303_v32 = vpop.eup %302 }
  0xde   :  { %v215_v33 = vadd.f32 1.0, %v303_v32 }
  0xdf   :  { %v305_v34 = vpop.eup %304 }
  0xe0   :  { %310 = vrcp.f32 %v215_v33  ;;  %v213_v35 = vadd.f32 1.0, %v305_v34 }
  0xe1   :  { %v307_v36 = vpop.eup %306 }
  0xe2   :  { %312 = vrcp.f32 %v213_v35  ;;  %v216_v37 = vadd.f32 1.0, %v307_v36 }
  0xe3   :  { %v309_v38 = vpop.eup %308 }
  0xe4   :  { %314 = vrcp.f32 %v216_v37  ;;  %v214_v39 = vadd.f32 1.0, %v309_v38 }
  0xe6   :  { %316 = vrcp.f32 %v214_v39 }
  0xed   :  { %v311_v40 = vpop.eup %310 }
  0xee   :  { %v227_v41 = vmul.f32 %v311_v40, %v199_v17 }
  0xef   :  { %v313_v42 = vpop.eup %312 }
  0xf0   :  { %v276_v43 = vpack.c.bf16 %v227_v41, %v227_v41  ;;  %v225_v44 = vmul.f32 %v313_v42, %v197_v23 }
  0xf1   :  { %v315_v45 = vpop.eup %314 }
  0xf2   :  { %248 = vst.msk [vmem:[%s395_s6 + $0x8] sm:$0xf] %vm245_vm1, %v276_v43  ;;  %v274_v46 = vpack.c.bf16 %v225_v44, %v225_v44  ;;  %v228_v47 = vmul.f32 %v315_v45, %v200_v27 }
  0xf3   :  { %v317_v48 = vpop.eup %316 }
  0xf4   :  { %246 = vst.msk [vmem:[%s395_s6] sm:$0xf] %vm245_vm1, %v274_v46  ;;  %v277_v49 = vpack.c.bf16 %v228_v47, %v228_v47  ;;  %v226_v50 = vmul.f32 %v317_v48, %v198_v30 }
  0xf6   :  { %249 = vst.msk [vmem:[%s395_s6 + $0xc] sm:$0xf] %vm245_vm1, %v277_v49  ;;  %v275_v51 = vpack.c.bf16 %v226_v50, %v226_v50 }
  0xf8   :  { %247 = vst.msk [vmem:[%s395_s6 + $0x4] sm:$0xf] %vm245_vm1, %v275_v51 }

// kernel: panet_forward.65
= control target key start
LH: loop header
LB: loop body
LE: loop exit
PB: predicated region body
PF: predicated region fallthrough
CT: control target
= control target key end

     0   :  { %vm40_vm0 = vcmask 130048   ;;  %vm162_vm1 = vcmask 125952   ;;  %s270_s1 = inlined_call_operand.vmem [shape: bf16[16,16], index: 1, kind: input, shape index: {}]   ;;  %s271_s0 = inlined_call_operand.vmem [shape: bf16[32,16], index: 0, kind: input, shape index: {}]   ;;  %s272_s2 = inlined_call_operand.vmem [shape: f32[1,16], index: 2, kind: input, shape index: {}]   ;;  %s273_s3 = inlined_call_operand.vmem [shape: f32[1,16], index: 3, kind: input, shape index: {}]   ;;  %s274_s4 = inlined_call_operand.vmem [shape: bf16[32,16], index: 4, kind: output, shape index: {}]  }
   0x1   :  { %v199_v0 = vld [vmem:[%s270_s1] sm:$0xff]   ;;  %v201_v2 = vld [vmem:[%s271_s0 + $0x8] sm:$0xff]  }
   0x2   :  { %v200_v1 = vld [vmem:[%s271_s0] sm:$0xff]   ;;  %193 = vmatprep.subr.bf16.mxu0 %v199_v0 }
   0x3   :  { %194 = vmatpush3.bf16.msra.mxu0 %v199_v0  ;;  %195 = vmatprep.mubr.msk.bf16.mxu0 %vm40_vm0, %v200_v1  ;;  %v176_v3 = vld [vmem:[%s272_s2] ss:$0 sm:$0xff] }
   0x4   :  { %v177_v5 = vld [vmem:[%s273_s3] ss:$0 sm:$0xff] }
   0x6   :  { %196 = vmatmul.mubr.msk.bf16.vlgmr.msra.gmra.mxu0 %vm40_vm0, %v201_v2 }
  0xc6   :  { %v197_v4 = vpop.f32.mrf.mxu0 }
  0xc7   :  { %v105_v6 = vmul.f32 %v197_v4, %v176_v3 }
  0xc8   :  { %v81_v7 = vpop.f32.mrf.mxu0 }
  0xc9   :  { %v116_v8 = vadd.f32 %v177_v5, %v105_v6  ;;  %v103_v9 = vmul.f32 %v176_v3, %v81_v7 }
  0xca   :  { %v198_v10 = vpop.f32.mrf.mxu0 }
  0xcb   :  { %v180_v11 = vmul.f32 -1.442695, %v116_v8  ;;  %v114_v12 = vadd.f32 %v177_v5, %v103_v9  ;;  %v106_v13 = vmul.f32 %v198_v10, %v176_v3 }
  0xcc   :  { %v84_v14 = vpop.f32.mrf.mxu0 }
  0xcd   :  { %202 = vpow2.f32 %v180_v11  ;;  %v178_v15 = vmul.f32 -1.442695, %v114_v12  ;;  %v117_v16 = vadd.f32 %v177_v5, %v106_v13  ;;  %v104_v17 = vmul.f32 %v176_v3, %v84_v14 }
  0xcf   :  { %204 = vpow2.f32 %v178_v15  ;;  %v181_v18 = vmul.f32 -1.442695, %v117_v16  ;;  %v115_v19 = vadd.f32 %v177_v5, %v104_v17 }
  0xd1   :  { %206 = vpow2.f32 %v181_v18  ;;  %v179_v20 = vmul.f32 -1.442695, %v115_v19 }
  0xd3   :  { %208 = vpow2.f32 %v179_v20 }
  0xda   :  { %v203_v21 = vpop.eup %202 }
  0xdb   :  { %v132_v22 = vadd.f32 1.0, %v203_v21 }
  0xdc   :  { %v205_v23 = vpop.eup %204 }
  0xdd   :  { %210 = vrcp.f32 %v132_v22  ;;  %v130_v24 = vadd.f32 1.0, %v205_v23 }
  0xde   :  { %v207_v25 = vpop.eup %206 }
  0xdf   :  { %212 = vrcp.f32 %v130_v24  ;;  %v133_v26 = vadd.f32 1.0, %v207_v25 }
  0xe0   :  { %v209_v27 = vpop.eup %208 }
  0xe1   :  { %214 = vrcp.f32 %v133_v26  ;;  %v131_v28 = vadd.f32 1.0, %v209_v27 }
  0xe3   :  { %216 = vrcp.f32 %v131_v28 }
  0xea   :  { %v211_v29 = vpop.eup %210 }
  0xeb   :  { %v144_v30 = vmul.f32 %v211_v29, %v116_v8 }
  0xec   :  { %v213_v31 = vpop.eup %212 }
  0xed   :  { %v188_v32 = vpack.c.bf16 %v144_v30, %v144_v30  ;;  %v142_v33 = vmul.f32 %v213_v31, %v114_v12 }
  0xee   :  { %v215_v34 = vpop.eup %214 }
  0xef   :  { %165 = vst.msk [vmem:[%s274_s4 + $0x8] sm:$0xf] %vm162_vm1, %v188_v32  ;;  %v186_v35 = vpack.c.bf16 %v142_v33, %v142_v33  ;;  %v145_v36 = vmul.f32 %v215_v34, %v117_v16 }
  0xf0   :  { %v217_v37 = vpop.eup %216 }
  0xf1   :  { %163 = vst.msk [vmem:[%s274_s4] sm:$0xf] %vm162_vm1, %v186_v35  ;;  %v189_v38 = vpack.c.bf16 %v145_v36, %v145_v36  ;;  %v143_v39 = vmul.f32 %v217_v37, %v115_v19 }
  0xf3   :  { %166 = vst.msk [vmem:[%s274_s4 + $0xc] sm:$0xf] %vm162_vm1, %v189_v38  ;;  %v187_v40 = vpack.c.bf16 %v143_v39, %v143_v39 }
  0xf5   :  { %164 = vst.msk [vmem:[%s274_s4 + $0x4] sm:$0xf] %vm162_vm1, %v187_v40 }

// kernel: panet_forward.71
= control target key start
LH: loop header
LB: loop body
LE: loop exit
PB: predicated region body
PF: predicated region fallthrough
CT: control target
= control target key end

     0   :  { %vm53_vm0 = vcmask 130048   ;;  %s425_s0 = inlined_call_operand.vmem [shape: bf16[32,16], index: 0, kind: input, shape index: {}]   ;;  %s426_s1 = inlined_call_operand.vmem [shape: bf16[32,16], index: 1, kind: input, shape index: {}]   ;;  %s427_s2 = inlined_call_operand.vmem [shape: bf16[16,32], index: 2, kind: input, shape index: {}]   ;;  %s428_s3 = inlined_call_operand.vmem [shape: bf16[16,32], index: 3, kind: input, shape index: {}]   ;;  %s429_s4 = inlined_call_operand.vmem [shape: f32[1,32], index: 4, kind: input, shape index: {}]   ;;  %s430_s5 = inlined_call_operand.vmem [shape: f32[1,32], index: 5, kind: input, shape index: {}]   ;;  %s431_s6 = inlined_call_operand.hbm [shape: bf16[32,32], index: 6, kind: output, shape index: {}]  }
   0x1   :  { %v312_v0 = vld [vmem:[%s428_s3] sm:$0xff]   ;;  %v316_v4 = vld [vmem:[%s426_s1 + $0x8] sm:$0xff]  }
   0x2   :  { %v313_v1 = vld [vmem:[%s427_s2] sm:$0xff]   ;;  %297 = vmatprep.subr.bf16.mxu0 %v312_v0  ;;  %v317_v5 = vld [vmem:[%s425_s0 + $0x8] sm:$0xff]  }
   0x3   :  { %v314_v2 = vld [vmem:[%s426_s1] sm:$0xff]   ;;  %303 = vmatprep.subr.bf16.mxu1 %v313_v1  ;;  %298 = vmatpush3.bf16.msra.mxu0 %v312_v0 }
   0x4   :  { %v315_v3 = vld [vmem:[%s425_s0] sm:$0xff]   ;;  %304 = vmatpush3.bf16.msra.mxu1 %v313_v1  ;;  %299 = vmatprep.mubr.msk.bf16.mxu0 %vm53_vm0, %v314_v2 }
   0x5   :  { %305 = vmatprep.mubr.msk.bf16.mxu1 %vm53_vm0, %v315_v3 }
   0x6   :  { %300 = vmatmul.mubr.msk.bf16.vlgmr.msra.gmra.mxu0 %vm53_vm0, %v316_v4 }
   0x7   :  { %11 = vsyncpa [#allocation3], 0  ;;  %306 = vmatmul.mubr.msk.bf16.vlgmr.msra.gmra.mxu1 %vm53_vm0, %v317_v5  ;;  %v277_v8 = vld [vmem:[%s429_s4] ss:$0 sm:$0xff]  ;;  %vm246_vm1 = vcmask 257024   ;;  %s356_s0 = smov [#allocation2]  }
   0x8   :  { %v278_v11 = vld [vmem:[%s430_s5] ss:$0 sm:$0xff]  ;;  %s256_s1 = sshll.u32 %s356_s0, 4  ;;  %s257_s1 = int_to_ptr.vmem [resolvable:$true] %s256_s1 }
   0x9   :  { %s334_s4 = scalar_lea.vmem %s257_s1, 256  ;;  %p339_p1 = scmp.lt.s32.totalorder %s257_s1, %s257_s1 }
   0xa   :  { %p335_p0 = scmp.ne.s32.totalorder %s257_s1, %s334_s4  ;;  %p340_p2 = scmp.lt.s32.totalorder %s334_s4, %s334_s4 }
   0xc   :  { %p341_p3 = por %p340_p2, %p339_p1 }
   0xe   :  { %p342_p4 = pnand %p341_p3, %p335_p0 }
  0xc6   :  { %v301_v6 = vpop.f32.mrf.mxu0 }
  0xc7   :  { %v307_v7 = vpop.f32.mrf.mxu1 }
  0xc8   :  { %v174_v9 = vadd.f32 %v307_v7, %v301_v6  ;;  %v94_v10 = vpop.f32.mrf.mxu0 }
  0xc9   :  { %v165_v12 = vpop.f32.mrf.mxu1 }
  0xca   :  { %v189_v13 = vmul.f32 %v277_v8, %v174_v9  ;;  %v166_v14 = vadd.f32 %v165_v12, %v94_v10  ;;  %v302_v15 = vpop.f32.mrf.mxu0 }
  0xcb   :  { %v308_v16 = vpop.f32.mrf.mxu1 }
  0xcc   :  { %v200_v17 = vadd.f32 %v278_v11, %v189_v13  ;;  %v187_v18 = vmul.f32 %v277_v8, %v166_v14  ;;  %v177_v19 = vadd.f32 %v308_v16, %v302_v15  ;;  %v97_v20 = vpop.f32.mrf.mxu0 }
  0xcd   :  { %v168_v21 = vpop.f32.mrf.mxu1 }
  0xce   :  { %v281_v22 = vmul.f32 -1.442695, %v200_v17  ;;  %v198_v23 = vadd.f32 %v278_v11, %v187_v18  ;;  %v190_v24 = vmul.f32 %v277_v8, %v177_v19  ;;  %v169_v25 = vadd.f32 %v168_v21, %v97_v20 }
  0xd0   :  { %318 = vpow2.f32 %v281_v22  ;;  %v279_v26 = vmul.f32 -1.442695, %v198_v23  ;;  %v201_v27 = vadd.f32 %v278_v11, %v190_v24  ;;  %v188_v28 = vmul.f32 %v277_v8, %v169_v25 }
  0xd2   :  { %320 = vpow2.f32 %v279_v26  ;;  %v282_v29 = vmul.f32 -1.442695, %v201_v27  ;;  %v199_v30 = vadd.f32 %v278_v11, %v188_v28 }
  0xd4   :  { %322 = vpow2.f32 %v282_v29  ;;  %v280_v31 = vmul.f32 -1.442695, %v199_v30 }
  0xd6   :  { %324 = vpow2.f32 %v280_v31 }
  0xdd   :  { %v319_v32 = vpop.eup %318 }
  0xde   :  { %v216_v33 = vadd.f32 1.0, %v319_v32 }
  0xdf   :  { %v321_v34 = vpop.eup %320 }
  0xe0   :  { %326 = vrcp.f32 %v216_v33  ;;  %v214_v35 = vadd.f32 1.0, %v321_v34 }
  0xe1   :  { %v323_v36 = vpop.eup %322 }
  0xe2   :  { %328 = vrcp.f32 %v214_v35  ;;  %v217_v37 = vadd.f32 1.0, %v323_v36 }
  0xe3   :  { %v325_v38 = vpop.eup %324 }
  0xe4   :  { %330 = vrcp.f32 %v217_v37  ;;  %v215_v39 = vadd.f32 1.0, %v325_v38 }
  0xe6   :  { %332 = vrcp.f32 %v215_v39 }
  0xed   :  { %v327_v40 = vpop.eup %326 }
  0xee   :  { %v228_v41 = vmul.f32 %v327_v40, %v200_v17 }
  0xef   :  { %v329_v42 = vpop.eup %328 }
  0xf0   :  { %v289_v43 = vpack.c.bf16 %v228_v41, %v228_v41  ;;  %v226_v44 = vmul.f32 %v329_v42, %v198_v23 }
  0xf1   :  { %v331_v45 = vpop.eup %330 }
  0xf2   :  { %249 = vst.msk [vmem:[#allocation2 + $0x8] sm:$0xf] %vm246_vm1, %v289_v43  ;;  %v287_v46 = vpack.c.bf16 %v226_v44, %v226_v44  ;;  %v229_v47 = vmul.f32 %v331_v45, %v201_v27 }
  0xf3   :  { %v333_v48 = vpop.eup %332 }
  0xf4   :  { %247 = vst.msk [vmem:[#allocation2] sm:$0xf] %vm246_vm1, %v287_v46  ;;  %v290_v49 = vpack.c.bf16 %v229_v47, %v229_v47  ;;  %v227_v50 = vmul.f32 %v333_v48, %v199_v30 }
  0xf6   :  { %250 = vst.msk [vmem:[#allocation2 + $0xc] sm:$0xf] %vm246_vm1, %v290_v49  ;;  %v288_v51 = vpack.c.bf16 %v227_v50, %v227_v50 }
  0xf8   :  { %248 = vst.msk [vmem:[#allocation2 + $0x4] sm:$0xf] %vm246_vm1, %v288_v51 }
  0xf9   :  { %345 = shalt.err (!%p342_p4)
}
  0xfa   :  { %s357_s5 = smov 64   ;;  %s358_s11 = smov 4  }
  0xfb   :  { %262 = dma.vmem_to_hbm [thread:$0]  %s257_s1, 256, %s431_s6, [#allocation3], %s357_s5, %s357_s5, %s358_s11  }
  0xfc   :  { %354 = dma.done.wait [#allocation3], 256  }
  0xfd   :  { %355 = vsyncadd [#allocation3], 4294967040 }
  0xfe   :  { %266 = vsyncpa [#allocation3], 1 }

// kernel: panet_forward.66
= control target key start
LH: loop header
LB: loop body
LE: loop exit
PB: predicated region body
PF: predicated region fallthrough
CT: control target
= control target key end

     0   :  { %v346_v0 = vmov 0   ;;  %vm115_vm0 = vcmask 130048   ;;  %vm249_vm1 = vcmask 125952   ;;  %s440_s1 = inlined_call_operand.vmem [shape: bf16[144,16], index: 1, kind: input, shape index: {}]   ;;  %s441_s0 = inlined_call_operand.vmem [shape: bf16[32,144], index: 0, kind: input, shape index: {}]   ;;  %s442_s2 = inlined_call_operand.vmem [shape: f32[1,16], index: 2, kind: input, shape index: {}]   ;;  %s443_s3 = inlined_call_operand.vmem [shape: f32[1,16], index: 3, kind: input, shape index: {}]   ;;  %s444_s4 = inlined_call_operand.vmem [shape: bf16[32,16], index: 4, kind: input, shape index: {}]   ;;  %s445_s5 = inlined_call_operand.vmem [shape: bf16[32,16], index: 5, kind: output, shape index: {}]  }
   0x1   :  { %122 = vmatprep.subr.bf16.mxu0 %v346_v0  ;;  %296 = vmatprep.subr.bf16.mxu1 %v346_v0  ;;  %v315_v1 = vld [vmem:[%s440_s1 + $0x38] sm:$0xff]   ;;  %v316_v2 = vld [vmem:[%s440_s1 + $0x30] sm:$0xff]   ;;  %v317_v3 = vld [vmem:[%s440_s1 + $0x28] sm:$0xff]  }
   0x2   :  { %123 = vmatpush1.bf16.msra.mxu0 %v315_v1  ;;  %305 = vmatpush1.bf16.msra.mxu1 %v315_v1  ;;  %v318_v4 = vld [vmem:[%s440_s1 + $0x20] sm:$0xff]   ;;  %v329_v6 = vld [vmem:[%s441_s0 + $0x14] ss:$8 sps:$4 sm:$0xff]   ;;  %v321_v9 = vld [vmem:[%s440_s1 + $0x8] sm:$0xff]  }
   0x3   :  { %124 = vmatprep.subr.bf16.mxu0 %v346_v0  ;;  %297 = vmatprep.subr.bf16.mxu1 %v346_v0  ;;  %v326_v5 = vld [vmem:[%s441_s0 + $0x4] ss:$8 sps:$4 sm:$0xff]   ;;  %v319_v7 = vld [vmem:[%s440_s1 + $0x18] sm:$0xff]   ;;  %v320_v8 = vld [vmem:[%s440_s1 + $0x10] sm:$0xff]  }
   0x4   :  { %271 = vmatprep.mubr.msk.bf16.mxu0 %vm115_vm0, %v326_v5  ;;  %272 = vmatprep.mubr.msk.bf16.mxu1 %vm115_vm0, %v329_v6  ;;  %v322_v10 = vld [vmem:[%s440_s1] sm:$0xff]   ;;  %v327_v13 = vld [vmem:[%s441_s0 + $0x10] ss:$8 sps:$4 sm:$0xff]   ;;  %v295_v45 = vld [vmem:[%s444_s4 + $0x8] sm:$0xff]  }
   0x5   :  { %v323_v11 = vld [vmem:[%s440_s1 + $0x40] sm:$0xff]   ;;  %v293_v48 = vunpack.c.l.bf16 %v295_v45  ;;  %v294_v56 = vunpack.c.h.bf16 %v295_v45 }
   0x6   :  { %125 = vmatpush1.bf16.msra.mxu0 %v316_v2  ;;  %306 = vmatpush1.bf16.msra.mxu1 %v316_v2  ;;  %v324_v12 = vld [vmem:[%s441_s0] ss:$8 sps:$4 sm:$0xff]  }
   0x7   :  { %126 = vmatprep.subr.bf16.mxu0 %v346_v0  ;;  %298 = vmatprep.subr.bf16.mxu1 %v346_v0  ;;  %v273_v14 = vld [vmem:[%s442_s2] ss:$0 sm:$0xff] }
   0x8   :  { %v274_v16 = vld [vmem:[%s443_s3] ss:$0 sm:$0xff] }
   0x9   :  { %v288_v44 = vld [vmem:[%s444_s4] sm:$0xff]  }
   0xa   :  { %127 = vmatpush1.bf16.msra.mxu0 %v317_v3  ;;  %307 = vmatpush1.bf16.msra.mxu1 %v317_v3  ;;  %v289_v46 = vunpack.c.l.bf16 %v288_v44  ;;  %v290_v53 = vunpack.c.h.bf16 %v288_v44 }
   0xb   :  { %128 = vmatprep.subr.bf16.mxu0 %v346_v0  ;;  %299 = vmatprep.subr.bf16.mxu1 %v346_v0 }
   0xe   :  { %129 = vmatpush1.bf16.msra.mxu0 %v318_v4  ;;  %308 = vmatpush1.bf16.msra.mxu1 %v318_v4 }
   0xf   :  { %130 = vmatprep.subr.bf16.mxu0 %v346_v0  ;;  %300 = vmatprep.subr.bf16.mxu1 %v346_v0 }
  0x12   :  { %131 = vmatpush1.bf16.msra.mxu0 %v319_v7  ;;  %309 = vmatpush1.bf16.msra.mxu1 %v319_v7 }
  0x13   :  { %132 = vmatprep.subr.bf16.mxu0 %v346_v0  ;;  %301 = vmatprep.subr.bf16.mxu1 %v346_v0 }
  0x16   :  { %133 = vmatpush1.bf16.msra.mxu0 %v320_v8  ;;  %310 = vmatpush1.bf16.msra.mxu1 %v320_v8 }
  0x17   :  { %134 = vmatprep.subr.bf16.mxu0 %v346_v0  ;;  %302 = vmatprep.subr.bf16.mxu1 %v346_v0 }
  0x1a   :  { %135 = vmatpush1.bf16.msra.mxu0 %v321_v9  ;;  %311 = vmatpush1.bf16.msra.mxu1 %v321_v9 }
  0x1b   :  { %136 = vmatprep.subr.bf16.mxu0 %v346_v0  ;;  %303 = vmatprep.subr.bf16.mxu1 %v346_v0 }
  0x1e   :  { %137 = vmatpush1.bf16.msra.mxu0 %v322_v10  ;;  %312 = vmatpush1.bf16.msra.mxu1 %v322_v10 }
  0x1f   :  { %152 = vmatprep.subr.bf16.mxu0 %v346_v0  ;;  %304 = vmatprep.subr.bf16.mxu1 %v346_v0 }
  0x22   :  { %153 = vmatpush2.bf16.msra.mxu0 %v323_v11  ;;  %313 = vmatpush2.bf16.msra.mxu1 %v323_v11 }
  0x25   :  { %155 = vmatmul.mubr.bf16.vlgmr.msra.gmra.mxu0 %v324_v12  ;;  %163 = vmatmul.mubr.bf16.vlgmr.msra.gmra.mxu1 %v327_v13 }
  0xe5   :  { %v156_v15 = vpop.f32.mrf.mxu0  ;;  %v164_v17 = vpop.f32.mrf.mxu1 }
  0xe6   :  { %v178_v18 = vmul.f32 %v273_v14, %v156_v15  ;;  %v180_v19 = vmul.f32 %v273_v14, %v164_v17 }
  0xe7   :  { %v158_v20 = vpop.f32.mrf.mxu0  ;;  %v166_v21 = vpop.f32.mrf.mxu1 }
  0xe8   :  { %v189_v22 = vadd.f32 %v274_v16, %v178_v18  ;;  %v191_v23 = vadd.f32 %v274_v16, %v180_v19 }
  0xe9   :  { %v159_v24 = vpop.f32.mrf.mxu0  ;;  %v167_v25 = vpop.f32.mrf.mxu1 }
  0xea   :  { %v275_v26 = vmul.f32 -1.442695, %v189_v22  ;;  %v277_v27 = vmul.f32 -1.442695, %v191_v23  ;;  %v179_v28 = vmul.f32 %v273_v14, %v159_v24  ;;  %v181_v29 = vmul.f32 %v273_v14, %v167_v25 }
  0xeb   :  { %v161_v30 = vpop.f32.mrf.mxu0  ;;  %v169_v31 = vpop.f32.mrf.mxu1 }
  0xec   :  { %330 = vpow2.f32 %v275_v26  ;;  %v190_v32 = vadd.f32 %v274_v16, %v179_v28  ;;  %v192_v33 = vadd.f32 %v274_v16, %v181_v29 }
  0xed   :  { %332 = vpow2.f32 %v277_v27 }
  0xee   :  { %v276_v34 = vmul.f32 -1.442695, %v190_v32  ;;  %v278_v35 = vmul.f32 -1.442695, %v192_v33 }
  0xf0   :  { %334 = vpow2.f32 %v276_v34 }
  0xf1   :  { %336 = vpow2.f32 %v278_v35 }
  0xf9   :  { %v331_v36 = vpop.eup %330 }
  0xfa   :  { %v333_v37 = vpop.eup %332  ;;  %v205_v38 = vadd.f32 1.0, %v331_v36 }
  0xfb   :  { %v207_v39 = vadd.f32 1.0, %v333_v37 }
  0xfc   :  { %338 = vrcp.f32 %v205_v38 }
  0xfd   :  { %v335_v40 = vpop.eup %334  ;;  %340 = vrcp.f32 %v207_v39 }
  0xfe   :  { %v337_v41 = vpop.eup %336  ;;  %v206_v42 = vadd.f32 1.0, %v335_v40 }
  0xff   :  { %v208_v43 = vadd.f32 1.0, %v337_v41 }
 0x100   :  { %342 = vrcp.f32 %v206_v42 }
 0x101   :  { %344 = vrcp.f32 %v208_v43 }
 0x109   :  { %v339_v47 = vpop.eup %338 }
 0x10a   :  { %v341_v49 = vpop.eup %340  ;;  %v217_v50 = vmul.f32 %v339_v47, %v189_v22 }
 0x10b   :  { %v219_v51 = vmul.f32 %v341_v49, %v191_v23 }
 0x10c   :  { %v229_v52 = vadd.f32 %v289_v46, %v217_v50 }
 0x10d   :  { %v343_v54 = vpop.eup %342  ;;  %v231_v55 = vadd.f32 %v293_v48, %v219_v51 }
 0x10e   :  { %v345_v57 = vpop.eup %344  ;;  %v283_v58 = vpack.c.bf16 %v229_v52, %v229_v52  ;;  %v218_v59 = vmul.f32 %v343_v54, %v190_v32 }
 0x10f   :  { %v285_v60 = vpack.c.bf16 %v231_v55, %v231_v55  ;;  %v220_v61 = vmul.f32 %v345_v57, %v192_v33 }
 0x110   :  { %250 = vst.msk [vmem:[%s445_s5] sm:$0xf] %vm249_vm1, %v283_v58  ;;  %v230_v62 = vadd.f32 %v290_v53, %v218_v59 }
 0x111   :  { %252 = vst.msk [vmem:[%s445_s5 + $0x8] sm:$0xf] %vm249_vm1, %v285_v60  ;;  %v232_v63 = vadd.f32 %v294_v56, %v220_v61 }
 0x112   :  { %v284_v0 = vpack.c.bf16 %v230_v62, %v230_v62 }
 0x113   :  { %v286_v1 = vpack.c.bf16 %v232_v63, %v232_v63 }
 0x114   :  { %251 = vst.msk [vmem:[%s445_s5 + $0x4] sm:$0xf] %vm249_vm1, %v284_v0 }
 0x115   :  { %253 = vst.msk [vmem:[%s445_s5 + $0xc] sm:$0xf] %vm249_vm1, %v286_v1 }

</bundles_post_ra>
